<compile_context>
chip_gen: v7x
topology: tpu7x:2x2x1
jax: 0.10.0
libtpu: 0.0.40
codegen_flags: <defaults>
</compile_context>

<pallas_src>
import functools

import numpy as np
import jax
import jax.numpy as jnp
from jax.experimental import pallas as pl
from jax.experimental.pallas import tpu as pltpu


# ---------------------------------------------------------------------------
# Small helpers
# ---------------------------------------------------------------------------

def _round_up(x, m):
    return ((x + m - 1) // m) * m


def _fs(shape):
    shape = tuple(int(s) for s in shape)
    return pl.BlockSpec(shape, lambda i: (0,) * len(shape))


def to_rows(x):
    """NCHW -> (N*H, W*C): rows=(n,h) image-major, lanes=(w,c) channel-minor."""
    N, C, H, W = x.shape
    return jnp.transpose(x, (0, 2, 3, 1)).reshape(N * H, W * C)


# ---------------------------------------------------------------------------
# Precomputed (numpy, compile-time constant) structural matrices
# ---------------------------------------------------------------------------

def _bilinear_matrix(out_size, in_size):
    # F.interpolate(mode='bilinear', align_corners=False) weights along one axis.
    i = np.arange(out_size, dtype=np.float64)
    src = (i + 0.5) * (in_size / out_size) - 0.5
    src = np.clip(src, 0.0, in_size - 1)
    i0 = np.floor(src).astype(np.int64)
    i1 = np.minimum(i0 + 1, in_size - 1)
    frac = src - i0
    M = np.zeros((out_size, in_size), dtype=np.float32)
    M[np.arange(out_size), i0] += (1.0 - frac)
    M[np.arange(out_size), i1] += frac
    return M


def _bicubic_taps(d):
    x = np.abs(d + np.arange(-1, 3, dtype=np.float64))
    a = -0.75
    return np.where(x < 1, (a + 2) * x ** 3 - (a + 3) * x ** 2 + 1,
                    np.where(x < 2, a * x ** 3 - 5 * a * x ** 2 + 8 * a * x - 4 * a,
                             0.0))


def _pyrup_matrix(n):
    """PyrUpBicubic2d along one axis: (2n, n) matrix (replicate pad + crop folded in)."""
    We = _bicubic_taps(-0.25)
    Wo = _bicubic_taps(-0.75)
    M = np.zeros((2 * n, n), dtype=np.float64)
    for u in range(2 * n):
        r, p = (u + 1) // 2, (u + 1) % 2
        w = We if p == 0 else Wo
        for di in range(4):
            M[u, int(np.clip(r + di - 2, 0, n - 1))] += w[di]
    return M.astype(np.float32)


def _kron_batch(A, n):      # per-image row mixing: kron(I_n, A)
    return np.kron(np.eye(n, dtype=np.float32), np.asarray(A, np.float32))


def _kron_chan(A, c):       # channel-interleaved column mixing: kron(A, I_c)
    return np.kron(np.asarray(A, np.float32), np.eye(c, dtype=np.float32))


def _pool_mats(N, H, W, C):
    prow = np.kron(np.eye(N, dtype=np.float32),
                   np.ones((1, H), np.float32)) / float(H * W)
    pcol = np.kron(np.ones((W, 1), np.float32), np.eye(C, dtype=np.float32))
    return prow, pcol


# ---------------------------------------------------------------------------
# Weight -> matrix packing (block-diagonal layouts, done once, outside jit)
# ---------------------------------------------------------------------------

def _conv1x1_mat(w, W):
    w = np.asarray(w, np.float32)
    return np.kron(np.eye(W, dtype=np.float32), w[:, :, 0, 0].T)


def _conv3x3_di_mats(w, W):
    """3x3 conv -> 3 matrices ((W+2)*IC, W*OC), one per row tap di; the lane
    (dj) shift is folded into the matrix (input is the zero-bordered row)."""
    w = np.asarray(w, np.float32)
    oc, ic = w.shape[0], w.shape[1]
    mats = []
    for di in range(3):
        m = np.zeros(((W + 2) * ic, W * oc), np.float32)
        for dj in range(3):
            m += np.kron(np.eye(W + 2, W, k=-dj, dtype=np.float32),
                         w[:, :, di, dj].T)
        mats.append(m)
    return mats


def _bias_row(b, W):
    return np.tile(np.asarray(b, np.float32).reshape(-1), W).reshape(1, -1)


class _PoolBuilder:
    """Packs many small constant matrices into a single bf16 buffer; each item
    is a statically addressed, 16-row-aligned sub-block."""
    _ALIGN = 16

    def __init__(self):
        self._items = {}
        self._chunks = []
        self._rows = 0
        self._cols = 0

    def add(self, name, arr):
        arr = np.asarray(arr, np.float32)
        assert arr.ndim == 2 and name not in self._items
        off = self._rows
        self._items[name] = (off, int(arr.shape[0]), int(arr.shape[1]))
        self._chunks.append((off, arr))
        self._rows = off + _round_up(arr.shape[0], self._ALIGN)
        self._cols = max(self._cols, int(arr.shape[1]))

    def finalize(self):
        rows = _round_up(max(self._rows, self._ALIGN), self._ALIGN)
        buf = np.zeros((rows, self._cols), np.float32)
        for off, arr in self._chunks:
            buf[off:off + arr.shape[0], :arr.shape[1]] = arr
        return jnp.asarray(buf, dtype=jnp.bfloat16), dict(self._items)


def pack_segnetwork(params, ft_channels, feature_shapes, scores_l3_shape,
                    scores_l4_shape, image_size, in_channels, out_channels):
    """Builds the per-level / upsampler constant pools + static kernel config."""
    IC, OC = in_channels, out_channels
    NC = OC + 2 * IC
    N = int(scores_l4_shape[0])
    first_level = next(iter(ft_channels))
    num_fmaps = int(feature_shapes[first_level][0])
    multi = N > num_fmaps

    H3, W3 = int(scores_l3_shape[-2]), int(scores_l3_shape[-1])
    H4, W4 = int(scores_l4_shape[-2]), int(scores_l4_shape[-1])
    Ho, Wo = int(image_size[-2]), int(image_size[-1])

    pools, levels = {}, []
    prev_hw = None
    for L in ft_channels:
        Nf, FC, H, W = (int(s) for s in feature_shapes[L])
        first = prev_hw is None
        p = params[L]
        P = _PoolBuilder()
        # score resize (bilinear, align_corners=False)
        P.add("r3r", _kron_batch(_bilinear_matrix(H, H3), N))
        P.add("r3c", _kron_chan(_bilinear_matrix(W, W3).T, IC))
        P.add("r4r", _kron_batch(_bilinear_matrix(H, H4), N))
        P.add("r4c", _kron_chan(_bilinear_matrix(W, W4).T, IC))
        # adaptive avg-pool
        prow, pcol = _pool_mats(N, H, W, OC)
        P.add("prow", prow)
        P.add("pcol", pcol)
        if not first:
            Hd, Wd = prev_hw
            prowd, pcold = _pool_mats(N, Hd, Wd, OC)
            P.add("prowd", prowd)
            P.add("pcold", pcold)
            P.add("dr", _kron_batch(_bilinear_matrix(H, Hd), N))
            P.add("dc", _kron_chan(_bilinear_matrix(W, Wd).T, OC))
        # TSE.reduce (1x1)
        P.add("w_r0", _conv1x1_mat(p["tse"]["r0"]["w"], W))
        P.add("b_r0", _bias_row(p["tse"]["r0"]["b"], W))
        P.add("w_r1", _conv1x1_mat(p["tse"]["r1"]["w"], W))
        P.add("b_r1", _bias_row(p["tse"]["r1"]["b"], W))
        # all 3x3 convs (dj folded into the tap matrices)
        for nm, q in (("t0", p["tse"]["t0"]), ("t1", p["tse"]["t1"]),
                      ("t2", p["tse"]["t2"]), ("ab0", p["rrb1"]["b0"]),
                      ("ab1", p["rrb1"]["b1"]), ("eb0", p["rrb2"]["b0"]),
                      ("eb1", p["rrb2"]["b1"])):
            mats = _conv3x3_di_mats(q["w"], W)
            for di in range(3):
                P.add("%s_d%d" % (nm, di), mats[di])
            if q["b"] is not None:
                P.add("b_" + nm, _bias_row(q["b"], W))
        # RRB 1x1s
        P.add("w_a1", _conv1x1_mat(p["rrb1"]["c1x1"]["w"], W))
        P.add("b_a1", _bias_row(p["rrb1"]["c1x1"]["b"], W))
        P.add("w_e1", _conv1x1_mat(p["rrb2"]["c1x1"]["w"], W))
        P.add("b_e1", _bias_row(p["rrb2"]["c1x1"]["b"], W))
        # CAB (global 1x1s)
        w_c0 = np.asarray(p["cab"]["c0"]["w"], np.float32)
        P.add("c0s", w_c0[:, :OC, 0, 0].T)
        P.add("c0d", w_c0[:, OC:, 0, 0].T)
        P.add("b_c0", np.asarray(p["cab"]["c0"]["b"], np.float32).reshape(1, OC))
        P.add("c1", np.asarray(p["cab"]["c1"]["w"], np.float32)[:, :, 0, 0].T)
        P.add("b_c1", np.asarray(p["cab"]["c1"]["b"], np.float32).reshape(1, OC))
        pool, items = P.finalize()
        pools[L] = pool
        levels.append(dict(name=L, H=H, W=W, Hp=_round_up(H + 2, 8), FC=FC,
                           Nf=Nf, rep=(N // Nf if multi else 1), items=items))
        prev_hw = (H, W)

    # --- upsampler (BackwardCompatibleUpsampler) ---
    Hin, Win = prev_hw
    C, C2 = OC, OC // 2
    H1, W1 = 2 * Hin, 2 * Win
    H2, W2 = 2 * H1, 2 * W1
    pp = params["project"]
    P = _PoolBuilder()
    P.add("u1r", _kron_batch(_pyrup_matrix(Hin), N))
    P.add("u1c", _kron_chan(_pyrup_matrix(Win).T, C))
    mats = _conv3x3_di_mats(pp["conv1"]["w"], W1)
    for di in range(3):
        P.add("w1_d%d" % di, mats[di])
    P.add("b1", _bias_row(pp["conv1"]["b"], W1))
    P.add("u2r", _kron_batch(_pyrup_matrix(H1), N))
    P.add("u2c", _kron_chan(_pyrup_matrix(W1).T, C2))
    P.add("fr", _kron_batch(_bilinear_matrix(Ho, H2), N))
    P.add("fc", _kron_chan(_bilinear_matrix(Wo, W2).T, C2))
    mats = _conv3x3_di_mats(pp["conv2"]["w"], Wo)
    for di in range(3):
        P.add("w2_d%d" % di, mats[di])
    P.add("b2", _bias_row(pp["conv2"]["b"], Wo))
    pool, items = P.finalize()
    pools["project"] = pool

    cfg = dict(
        N=N, IC=IC, OC=OC, NC=NC, levels=levels,
        up=dict(H1=H1, W1=W1, Hp1=_round_up(H1 + 2, 8), C2=C2,
                Ho=Ho, Wo=Wo, Hp2=_round_up(Ho + 2, 8), items=items),
        out_rows=_round_up(N * Ho, 8),
        out_cols=_round_up(Wo, 128),
    )
    return pools, cfg


# ---------------------------------------------------------------------------
# The single fused kernel
# ---------------------------------------------------------------------------

def _segnet_kernel(*args, cfg):
    f32, bf16 = jnp.float32, jnp.bfloat16
    N, IC, OC, NC = cfg["N"], cfg["IC"], cfg["OC"], cfg["NC"]
    levels = cfg["levels"]
    nlev = len(levels)

    s3_ref, s4_ref = args[0], args[1]
    ft_refs = args[2:2 + nlev]
    pool_refs = args[2 + nlev:2 + 2 * nlev]
    proj_ref = args[2 + 2 * nlev]
    o_ref = args[2 + 2 * nlev + 1]
    scratch = args[2 + 2 * nlev + 2:]

    def mm(a, b):  # bf16 x bf16 MXU matmul, f32 accumulation
        return jnp.dot(a.astype(bf16), b.astype(bf16),
                       preferred_element_type=f32)

    def make_reader(pool_ref, items):
        def rd(name):
            off, r, c = items[name]
            return pool_ref[off:off + r, 0:c]
        return rd

    def conv3x3(x, pad_ref, rd, wname, bname, relu, H, Hp, W, cin, cout):
        """3x3 conv on the rows=(n,h)/lanes=(w,c) tile.  If x is not None it is
        scattered into the zero-bordered pad scratch first; the conv itself is
        3 full-lane-width matmuls (one per row tap), output rows assembled in
        registers."""
        if x is not None:
            for n in range(N):
                pad_ref[n * Hp + 1:n * Hp + 1 + H, cin:cin + W * cin] = \
                    x[n * H:(n + 1) * H, :]
        L = N * Hp - 2
        acc = mm(pad_ref[0:L, :], rd(wname + "_d0"))
        acc = acc + mm(pad_ref[1:1 + L, :], rd(wname + "_d1"))
        acc = acc + mm(pad_ref[2:2 + L, :], rd(wname + "_d2"))
        if N > 1:
            out = jnp.concatenate(
                [acc[n * Hp:n * Hp + H, :] for n in range(N)], axis=0)
        else:
            out = acc[0:H, :]
        if bname is not None:
            out = out + rd(bname).astype(f32)
        if relu:
            out = jnp.maximum(out, 0.0)
        return out

    s3 = s3_ref[...].astype(f32)
    s4 = s4_ref[...].astype(f32)

    prev = None
    for li, lv in enumerate(levels):
        H, W, Hp = lv["H"], lv["W"], lv["Hp"]
        rd = make_reader(pool_refs[li], lv["items"])
        pad_nc = scratch[2 * li]
        pad_oc = scratch[2 * li + 1]
        pad_nc[...] = jnp.zeros(pad_nc.shape, f32)   # borders stay zero
        pad_oc[...] = jnp.zeros(pad_oc.shape, f32)

        def bcast(v):  # (N, OC) -> (N*H, W*OC) per-image broadcast (VPU)
            if N > 1:
                rows = jnp.concatenate(
                    [jnp.broadcast_to(v[n:n + 1, :], (H, OC)) for n in range(N)],
                    axis=0)
            else:
                rows = jnp.broadcast_to(v, (H, OC))
            return jnp.concatenate([rows] * W, axis=1)

        # ---- score resize (bilinear, align_corners=False) to (H, W) ----
        s3r = mm(mm(rd("r3r"), s3), rd("r3c"))            # (N*H, W*IC)
        s4r = mm(mm(rd("r4r"), s4), rd("r4c"))

        # ---- TSE.reduce : 1x1 conv + relu + 1x1 conv ----
        ft = ft_refs[li][...].astype(f32)                 # (Nf*H, W*FC)
        hr = jnp.maximum(mm(ft, rd("w_r0")) + rd("b_r0").astype(f32), 0.0)
        hr = mm(hr, rd("w_r1")) + rd("b_r1").astype(f32)  # (Nf*H, W*OC)
        if lv["rep"] > 1:                                 # shared fmaps, N targets
            hr = jnp.concatenate([hr] * lv["rep"], axis=0)

        # ---- CAB "deeper" branch ----
        if prev is None:          # deepest level: hpool = avg-pool(reduce out)
            deeper_pool = mm(mm(rd("prow"), hr), rd("pcol"))          # (N, OC)
            deeper_up = None
        else:                     # hpool = previous level output (full map)
            deeper_pool = mm(mm(rd("prowd"), prev), rd("pcold"))
            deeper_up = mm(mm(rd("dr"), prev), rd("dc"))              # (N*H, W*OC)

        # ---- TSE.transform : concat(h, s3, s4) written straight into pad_nc,
        #      then 3x (3x3 conv + relu) ----
        for n in range(N):
            r0, r1 = n * Hp + 1, n * Hp + 1 + H
            xs = slice(n * H, (n + 1) * H)
            for w in range(W):
                base = (w + 1) * NC
                pad_nc[r0:r1, base:base + OC] = hr[xs, w * OC:(w + 1) * OC]
                pad_nc[r0:r1, base + OC:base + OC + IC] = \
                    s3r[xs, w * IC:(w + 1) * IC]
                pad_nc[r0:r1, base + OC + IC:base + NC] = \
                    s4r[xs, w * IC:(w + 1) * IC]
        h = conv3x3(None, pad_nc, rd, "t0", "b_t0", True, H, Hp, W, NC, NC)
        h = conv3x3(h, pad_nc, rd, "t1", "b_t1", True, H, Hp, W, NC, NC)
        h = conv3x3(h, pad_nc, rd, "t2", "b_t2", True, H, Hp, W, NC, OC)

        # ---- RRB1 ----
        h1 = mm(h, rd("w_a1")) + rd("b_a1").astype(f32)
        y = conv3x3(h1, pad_oc, rd, "ab0", "b_ab0", True, H, Hp, W, OC, OC)
        y = conv3x3(y, pad_oc, rd, "ab1", None, False, H, Hp, W, OC, OC)
        h = jnp.maximum(h1 + y, 0.0)

        # ---- CAB ----
        shallow_pool = mm(mm(rd("prow"), h), rd("pcol"))              # (N, OC)
        g = jnp.maximum(mm(shallow_pool, rd("c0s")) + mm(deeper_pool, rd("c0d"))
                        + rd("b_c0").astype(f32), 0.0)
        g = mm(g, rd("c1")) + rd("b_c1").astype(f32)
        if deeper_up is None:
            deeper_up = bcast(deeper_pool)
        h = h * bcast(jax.nn.sigmoid(g)) + deeper_up

        # ---- RRB2 ----
        h1 = mm(h, rd("w_e1")) + rd("b_e1").astype(f32)
        y = conv3x3(h1, pad_oc, rd, "eb0", "b_eb0", True, H, Hp, W, OC, OC)
        y = conv3x3(y, pad_oc, rd, "eb1", None, False, H, Hp, W, OC, OC)
        prev = jnp.maximum(h1 + y, 0.0)

    # ---- upsampler: PyrUp -> conv+relu -> PyrUp -> bilinear -> conv ----
    up = cfg["up"]
    rdp = make_reader(proj_ref, up["items"])
    H1, W1, Hp1 = up["H1"], up["W1"], up["Hp1"]
    Ho, Wo, Hp2, C2 = up["Ho"], up["Wo"], up["Hp2"], up["C2"]
    pad1 = scratch[2 * nlev]
    pad2 = scratch[2 * nlev + 1]
    pad1[...] = jnp.zeros(pad1.shape, f32)
    pad2[...] = jnp.zeros(pad2.shape, f32)

    t = mm(mm(rdp("u1r"), prev), rdp("u1c"))              # (N*H1, W1*OC)
    t = conv3x3(t, pad1, rdp, "w1", "b1", True, H1, Hp1, W1, OC, C2)
    t = mm(mm(rdp("u2r"), t), rdp("u2c"))                 # (N*2H1, 2W1*C2)
    t = mm(mm(rdp("fr"), t), rdp("fc"))                   # (N*Ho, Wo*C2)
    t = conv3x3(t, pad2, rdp, "w2", "b2", False, Ho, Hp2, Wo, C2, 1)

    # lane/sublane-dense padded output; sliced outside the kernel.
    Ro, Co = o_ref.shape
    if Co > Wo:
        t = jnp.concatenate([t, jnp.zeros((N * Ho, Co - Wo), f32)], axis=1)
    if Ro > N * Ho:
        t = jnp.concatenate([t, jnp.zeros((Ro - N * Ho, Co), f32)], axis=0)
    o_ref[...] = t


# ---------------------------------------------------------------------------
# SegNetwork forward (one pallas_call)
# ---------------------------------------------------------------------------

def segnetwork_forward(pools, scores_l3, scores_l4, features, cfg):
    N = cfg["N"]
    up = cfg["up"]

    inputs = [to_rows(scores_l3.astype(jnp.float32)),
              to_rows(scores_l4.astype(jnp.float32))]
    for lv in cfg["levels"]:
        inputs.append(to_rows(features[lv["name"]].astype(jnp.float32)))
    for lv in cfg["levels"]:
        inputs.append(pools[lv["name"]])
    inputs.append(pools["project"])

    scratch_shapes = []
    for lv in cfg["levels"]:
        scratch_shapes.append(
            pltpu.VMEM((N * lv["Hp"], (lv["W"] + 2) * cfg["NC"]), jnp.float32))
        scratch_shapes.append(
            pltpu.VMEM((N * lv["Hp"], (lv["W"] + 2) * cfg["OC"]), jnp.float32))
    scratch_shapes.append(
        pltpu.VMEM((N * up["Hp1"], (up["W1"] + 2) * cfg["OC"]), jnp.float32))
    scratch_shapes.append(
        pltpu.VMEM((N * up["Hp2"], (up["Wo"] + 2) * up["C2"]), jnp.float32))

    out_shape = (cfg["out_rows"], cfg["out_cols"])
    kernel = functools.partial(_segnet_kernel, cfg=cfg)
    out = pl.pallas_call(
        kernel,
        out_shape=jax.ShapeDtypeStruct(out_shape, jnp.float32),
        grid=(1,),
        in_specs=[_fs(v.shape) for v in inputs],
        out_specs=_fs(out_shape),
        scratch_shapes=scratch_shapes,
        compiler_params=pltpu.CompilerParams(
            dimension_semantics=("arbitrary",)),
    )(*inputs)

    Ho, Wo = up["Ho"], up["Wo"]
    out = out[:N * Ho, :Wo].reshape(N, Ho, Wo)
    return out[:, None, :, :]


# ---------------------------------------------------------------------------
# Deterministic parameter init (shapes follow the PyTorch __init__)
# ---------------------------------------------------------------------------

def _init_conv(key, ic, oc, k, bias=True):
    kw, kb = jax.random.split(key)
    bound = 1.0 / np.sqrt(ic * k * k)
    w = jax.random.uniform(kw, (oc, ic, k, k), jnp.float32, -bound, bound)
    b = jax.random.uniform(kb, (oc,), jnp.float32, -bound, bound) if bias else None
    return {"w": w, "b": b}


def init_segnetwork_params(key, in_channels, out_channels, ft_channels):
    ic, oc = in_channels, out_channels
    keys = iter(jax.random.split(key, 64))
    params = {}
    for L, fc in ft_channels.items():
        nc = ic + ic + oc
        params[L] = {
            "tse": {
                "r0": _init_conv(next(keys), fc, oc, 1),
                "r1": _init_conv(next(keys), oc, oc, 1),
                "t0": _init_conv(next(keys), nc, nc, 3),
                "t1": _init_conv(next(keys), nc, nc, 3),
                "t2": _init_conv(next(keys), nc, oc, 3),
            },
            "rrb1": {
                "c1x1": _init_conv(next(keys), oc, oc, 1),
                "b0": _init_conv(next(keys), oc, oc, 3),
                "b1": _init_conv(next(keys), oc, oc, 3, bias=False),
            },
            "cab": {
                "c0": _init_conv(next(keys), 2 * oc, oc, 1),
                "c1": _init_conv(next(keys), oc, oc, 1),
            },
            "rrb2": {
                "c1x1": _init_conv(next(keys), oc, oc, 1),
                "b0": _init_conv(next(keys), oc, oc, 3),
                "b1": _init_conv(next(keys), oc, oc, 3, bias=False),
            },
        }
    params["project"] = {
        "conv1": _init_conv(next(keys), oc, oc // 2, 3),
        "conv2": _init_conv(next(keys), oc // 2, 1, 3),
    }
    return params


# ---------------------------------------------------------------------------

if __name__ == "__main__":
    in_channels, out_channels = 1, 16
    ft_channels = {"layer5": 32, "layer4": 24}   # deepest level first (FRTM order)

    params = init_segnetwork_params(jax.random.PRNGKey(1),
                                    in_channels, out_channels, ft_channels)

    key = jax.random.PRNGKey(0)
    k1, k2, k3, k4 = jax.random.split(key, 4)
    num_targets = 2
    scores_l3 = jax.random.normal(k1, (num_targets, in_channels, 16, 16), jnp.float32)
    scores_l4 = jax.random.normal(k2, (num_targets, in_channels, 8, 8), jnp.float32)
    features = {
        "layer5": jax.random.normal(k3, (1, 32, 4, 4), jnp.float32),
        "layer4": jax.random.normal(k4, (1, 24, 8, 8), jnp.float32),
    }
    image_size = (num_targets, 3, 30, 30)        # only [-2:] is used

    feature_shapes = {L: features[L].shape for L in ft_channels}
    pools, cfg = pack_segnetwork(params, ft_channels, feature_shapes,
                                 scores_l3.shape, scores_l4.shape, image_size,
                                 in_channels, out_channels)

    fwd = jax.jit(lambda p, s3, s4, ft: segnetwork_forward(p, s3, s4, ft, cfg))
    out = jax.block_until_ready(fwd(pools, scores_l3, scores_l4, features))

    assert out.shape == (num_targets, 1, 30, 30), out.shape
    assert out.dtype == jnp.float32
    assert bool(jnp.all(jnp.isfinite(out)))
    print("KERNEL_OK")
</pallas_src>

<mosaic_0001>
module attributes {stable_mosaic.version = 11 : i64} {
  func.func @_segnet_kernel(%arg0: i32, %arg1: memref<32x16xf32, #tpu.memory_space<vmem>>, %arg2: memref<16x8xf32, #tpu.memory_space<vmem>>, %arg3: memref<4x128xf32, #tpu.memory_space<vmem>>, %arg4: memref<8x192xf32, #tpu.memory_space<vmem>>, %arg5: memref<2848x72xbf16, #tpu.memory_space<vmem>>, %arg6: memref<4816x144xbf16, #tpu.memory_space<vmem>>, %arg7: memref<2336x256xbf16, #tpu.memory_space<vmem>>, %arg8: memref<64x128xf32, #tpu.memory_space<vmem>>, %arg9: memref<16x108xf32, #tpu.memory_space<vmem>>, %arg10: memref<16x96xf32, #tpu.memory_space<vmem>>, %arg11: memref<32x180xf32, #tpu.memory_space<vmem>>, %arg12: memref<32x160xf32, #tpu.memory_space<vmem>>, %arg13: memref<48x288xf32, #tpu.memory_space<vmem>>, %arg14: memref<64x256xf32, #tpu.memory_space<vmem>>) attributes {dimension_semantics = [#tpu.dimension_semantics<arbitrary>], iteration_bounds = array<i64: 1>, scalar_prefetch = 0 : i64, scratch_operands = 6 : i64, tpu.core_type = #tpu.core_type<tc>, window_params = [{pipeline_mode = #tpu.pipeline_mode<synchronous>, transform_indices = @transform_0, window_bounds = array<i64: 32, 16>}, {pipeline_mode = #tpu.pipeline_mode<synchronous>, transform_indices = @transform_1, window_bounds = array<i64: 16, 8>}, {pipeline_mode = #tpu.pipeline_mode<synchronous>, transform_indices = @transform_2, window_bounds = array<i64: 4, 128>}, {pipeline_mode = #tpu.pipeline_mode<synchronous>, transform_indices = @transform_3, window_bounds = array<i64: 8, 192>}, {pipeline_mode = #tpu.pipeline_mode<synchronous>, transform_indices = @transform_4, window_bounds = array<i64: 2848, 72>}, {pipeline_mode = #tpu.pipeline_mode<synchronous>, transform_indices = @transform_5, window_bounds = array<i64: 4816, 144>}, {pipeline_mode = #tpu.pipeline_mode<synchronous>, transform_indices = @transform_6, window_bounds = array<i64: 2336, 256>}, {pipeline_mode = #tpu.pipeline_mode<synchronous>, transform_indices = @transform_7, window_bounds = array<i64: 64, 128>}]} {
    %c0 = arith.constant 0 : index
    %c0_0 = arith.constant 0 : index
    %0 = vector.load %arg1[%c0, %c0_0] : memref<32x16xf32, #tpu.memory_space<vmem>>, vector<32x16xf32>
    %c0_1 = arith.constant 0 : index
    %c0_2 = arith.constant 0 : index
    %1 = vector.load %arg2[%c0_1, %c0_2] : memref<16x8xf32, #tpu.memory_space<vmem>>, vector<16x8xf32>
    %cst = arith.constant 0.000000e+00 : f32
    %2 = vector.broadcast %cst : f32 to vector<16x108xf32>
    %c0_3 = arith.constant 0 : index
    %c0_4 = arith.constant 0 : index
    %3 = vector.load %arg9[%c0_3, %c0_4] : memref<16x108xf32, #tpu.memory_space<vmem>>, vector<16x108xf32>
    tpu.vector_store %arg9[%c0_3, %c0_4], %2 {strides = array<i32>} : memref<16x108xf32, #tpu.memory_space<vmem>>, vector<16x108xf32>,
    %cst_5 = arith.constant 0.000000e+00 : f32
    %4 = vector.broadcast %cst_5 : f32 to vector<16x96xf32>
    %c0_6 = arith.constant 0 : index
    %c0_7 = arith.constant 0 : index
    %5 = vector.load %arg10[%c0_6, %c0_7] : memref<16x96xf32, #tpu.memory_space<vmem>>, vector<16x96xf32>
    tpu.vector_store %arg10[%c0_6, %c0_7], %4 {strides = array<i32>} : memref<16x96xf32, #tpu.memory_space<vmem>>, vector<16x96xf32>,
    %c0_8 = arith.constant 0 : index
    %c0_9 = arith.constant 0 : index
    %6 = vector.load %arg5[%c0_8, %c0_9] : memref<2848x72xbf16, #tpu.memory_space<vmem>>, vector<8x32xbf16>
    %7 = arith.truncf %0 : vector<32x16xf32> to vector<32x16xbf16>
    %cst_10 = arith.constant dense<0.000000e+00> : vector<8x16xf32>
    %8 = tpu.matmul %6, %7, %cst_10 {dimension_numbers = #tpu.dot_dimension_numbers<[1], [0], [0], [1], [0, 0, 1, 1], [], []>} : vector<8x32xbf16>, vector<32x16xbf16>, vector<8x16xf32> -> vector<8x16xf32>
    %c16 = arith.constant 16 : index
    %c0_11 = arith.constant 0 : index
    %9 = vector.load %arg5[%c16, %c0_11] : memref<2848x72xbf16, #tpu.memory_space<vmem>>, vector<16x4xbf16>
    %10 = arith.truncf %8 : vector<8x16xf32> to vector<8x16xbf16>
    %cst_12 = arith.constant dense<0.000000e+00> : vector<8x4xf32>
    %11 = tpu.matmul %10, %9, %cst_12 {dimension_numbers = #tpu.dot_dimension_numbers<[1], [0], [0], [1], [0, 0, 1, 1], [], []>} : vector<8x16xbf16>, vector<16x4xbf16>, vector<8x4xf32> -> vector<8x4xf32>
    %c32 = arith.constant 32 : index
    %c0_13 = arith.constant 0 : index
    %12 = vector.load %arg5[%c32, %c0_13] : memref<2848x72xbf16, #tpu.memory_space<vmem>>, vector<8x16xbf16>
    %13 = arith.truncf %1 : vector<16x8xf32> to vector<16x8xbf16>
    %cst_14 = arith.constant dense<0.000000e+00> : vector<8x8xf32>
    %14 = tpu.matmul %12, %13, %cst_14 {dimension_numbers = #tpu.dot_dimension_numbers<[1], [0], [0], [1], [0, 0, 1, 1], [], []>} : vector<8x16xbf16>, vector<16x8xbf16>, vector<8x8xf32> -> vector<8x8xf32>
    %c48 = arith.constant 48 : index
    %c0_15 = arith.constant 0 : index
    %15 = vector.load %arg5[%c48, %c0_15] : memref<2848x72xbf16, #tpu.memory_space<vmem>>, vector<8x4xbf16>
    %16 = arith.truncf %14 : vector<8x8xf32> to vector<8x8xbf16>
    %cst_16 = arith.constant dense<0.000000e+00> : vector<8x4xf32>
    %17 = tpu.matmul %16, %15, %cst_16 {dimension_numbers = #tpu.dot_dimension_numbers<[1], [0], [0], [1], [0, 0, 1, 1], [], []>} : vector<8x8xbf16>, vector<8x4xbf16>, vector<8x4xf32> -> vector<8x4xf32>
    %c0_17 = arith.constant 0 : index
    %c0_18 = arith.constant 0 : index
    %18 = vector.load %arg3[%c0_17, %c0_18] : memref<4x128xf32, #tpu.memory_space<vmem>>, vector<4x128xf32>
    %c144 = arith.constant 144 : index
    %c0_19 = arith.constant 0 : index
    %19 = vector.load %arg5[%c144, %c0_19] : memref<2848x72xbf16, #tpu.memory_space<vmem>>, vector<128x64xbf16>
    %20 = arith.truncf %18 : vector<4x128xf32> to vector<4x128xbf16>
    %cst_20 = arith.constant dense<0.000000e+00> : vector<4x64xf32>
    %21 = tpu.matmul %20, %19, %cst_20 {dimension_numbers = #tpu.dot_dimension_numbers<[1], [0], [0], [1], [0, 0, 1, 1], [], []>} : vector<4x128xbf16>, vector<128x64xbf16>, vector<4x64xf32> -> vector<4x64xf32>
    %c272 = arith.constant 272 : index
    %c0_21 = arith.constant 0 : index
    %22 = vector.load %arg5[%c272, %c0_21] : memref<2848x72xbf16, #tpu.memory_space<vmem>>, vector<1x64xbf16>
    %23 = arith.extf %22 : vector<1x64xbf16> to vector<1x64xf32>
    %24 = vector.broadcast %23 : vector<1x64xf32> to vector<4x64xf32>
    %25 = arith.addf %21, %24 : vector<4x64xf32>
    %cst_22 = arith.constant 0.000000e+00 : f32
    %26 = vector.broadcast %cst_22 : f32 to vector<4x64xf32>
    %27 = arith.maximumf %25, %26 : vector<4x64xf32>
    %c288 = arith.constant 288 : index
    %c0_23 = arith.constant 0 : index
    %28 = vector.load %arg5[%c288, %c0_23] : memref<2848x72xbf16, #tpu.memory_space<vmem>>, vector<64x64xbf16>
    %29 = arith.truncf %27 : vector<4x64xf32> to vector<4x64xbf16>
    %cst_24 = arith.constant dense<0.000000e+00> : vector<4x64xf32>
    %30 = tpu.matmul %29, %28, %cst_24 {dimension_numbers = #tpu.dot_dimension_numbers<[1], [0], [0], [1], [0, 0, 1, 1], [], []>} : vector<4x64xbf16>, vector<64x64xbf16>, vector<4x64xf32> -> vector<4x64xf32>
    %c352 = arith.constant 352 : index
    %c0_25 = arith.constant 0 : index
    %31 = vector.load %arg5[%c352, %c0_25] : memref<2848x72xbf16, #tpu.memory_space<vmem>>, vector<1x64xbf16>
    %32 = arith.extf %31 : vector<1x64xbf16> to vector<1x64xf32>
    %33 = vector.broadcast %32 : vector<1x64xf32> to vector<4x64xf32>
    %34 = arith.addf %30, %33 : vector<4x64xf32>
    %35 = tpu.concatenate %34, %34 in 0 : vector<4x64xf32>, vector<4x64xf32> -> vector<8x64xf32>
    %c64 = arith.constant 64 : index
    %c0_26 = arith.constant 0 : index
    %36 = vector.load %arg5[%c64, %c0_26] : memref<2848x72xbf16, #tpu.memory_space<vmem>>, vector<2x8xbf16>
    %37 = arith.truncf %35 : vector<8x64xf32> to vector<8x64xbf16>
    %cst_27 = arith.constant dense<0.000000e+00> : vector<2x64xf32>
    %38 = tpu.matmul %36, %37, %cst_27 {dimension_numbers = #tpu.dot_dimension_numbers<[1], [0], [0], [1], [0, 0, 1, 1], [], []>} : vector<2x8xbf16>, vector<8x64xbf16>, vector<2x64xf32> -> vector<2x64xf32>
    %c80 = arith.constant 80 : index
    %c0_28 = arith.constant 0 : index
    %39 = vector.load %arg5[%c80, %c0_28] : memref<2848x72xbf16, #tpu.memory_space<vmem>>, vector<64x16xbf16>
    %40 = arith.truncf %38 : vector<2x64xf32> to vector<2x64xbf16>
    %cst_29 = arith.constant dense<0.000000e+00> : vector<2x16xf32>
    %41 = tpu.matmul %40, %39, %cst_29 {dimension_numbers = #tpu.dot_dimension_numbers<[1], [0], [0], [1], [0, 0, 1, 1], [], []>} : vector<2x64xbf16>, vector<64x16xbf16>, vector<2x16xf32> -> vector<2x16xf32>
    %42 = vector.extract_strided_slice %35 {offsets = [0, 0], sizes = [4, 16], strides = [1, 1]} : vector<8x64xf32> to vector<4x16xf32>
    %c1 = arith.constant 1 : index
    %c18 = arith.constant 18 : index
    %43 = vector.load %arg9[%c1, %c18] : memref<16x108xf32, #tpu.memory_space<vmem>>, vector<4x16xf32>
    tpu.vector_store %arg9[%c1, %c18], %42 {strides = array<i32>} : memref<16x108xf32, #tpu.memory_space<vmem>>, vector<4x16xf32>,
    %44 = vector.extract_strided_slice %11 {offsets = [0, 0], sizes = [4, 1], strides = [1, 1]} : vector<8x4xf32> to vector<4x1xf32>
    %c1_30 = arith.constant 1 : index
    %c34 = arith.constant 34 : index
    %45 = vector.load %arg9[%c1_30, %c34] : memref<16x108xf32, #tpu.memory_space<vmem>>, vector<4x1xf32>
    tpu.vector_store %arg9[%c1_30, %c34], %44 {strides = array<i32>} : memref<16x108xf32, #tpu.memory_space<vmem>>, vector<4x1xf32>,
    %46 = vector.extract_strided_slice %17 {offsets = [0, 0], sizes = [4, 1], strides = [1, 1]} : vector<8x4xf32> to vector<4x1xf32>
    %c1_31 = arith.constant 1 : index
    %c35 = arith.constant 35 : index
    %47 = vector.load %arg9[%c1_31, %c35] : memref<16x108xf32, #tpu.memory_space<vmem>>, vector<4x1xf32>
    tpu.vector_store %arg9[%c1_31, %c35], %46 {strides = array<i32>} : memref<16x108xf32, #tpu.memory_space<vmem>>, vector<4x1xf32>,
    %48 = vector.extract_strided_slice %35 {offsets = [0, 16], sizes = [4, 16], strides = [1, 1]} : vector<8x64xf32> to vector<4x16xf32>
    %c1_32 = arith.constant 1 : index
    %c36 = arith.constant 36 : index
    %49 = vector.load %arg9[%c1_32, %c36] : memref<16x108xf32, #tpu.memory_space<vmem>>, vector<4x16xf32>
    tpu.vector_store %arg9[%c1_32, %c36], %48 {strides = array<i32>} : memref<16x108xf32, #tpu.memory_space<vmem>>, vector<4x16xf32>,
    %50 = vector.extract_strided_slice %11 {offsets = [0, 1], sizes = [4, 1], strides = [1, 1]} : vector<8x4xf32> to vector<4x1xf32>
    %c1_33 = arith.constant 1 : index
    %c52 = arith.constant 52 : index
    %51 = vector.load %arg9[%c1_33, %c52] : memref<16x108xf32, #tpu.memory_space<vmem>>, vector<4x1xf32>
    tpu.vector_store %arg9[%c1_33, %c52], %50 {strides = array<i32>} : memref<16x108xf32, #tpu.memory_space<vmem>>, vector<4x1xf32>,
    %52 = vector.extract_strided_slice %17 {offsets = [0, 1], sizes = [4, 1], strides = [1, 1]} : vector<8x4xf32> to vector<4x1xf32>
    %c1_34 = arith.constant 1 : index
    %c53 = arith.constant 53 : index
    %53 = vector.load %arg9[%c1_34, %c53] : memref<16x108xf32, #tpu.memory_space<vmem>>, vector<4x1xf32>
    tpu.vector_store %arg9[%c1_34, %c53], %52 {strides = array<i32>} : memref<16x108xf32, #tpu.memory_space<vmem>>, vector<4x1xf32>,
    %54 = vector.extract_strided_slice %35 {offsets = [0, 32], sizes = [4, 16], strides = [1, 1]} : vector<8x64xf32> to vector<4x16xf32>
    %c1_35 = arith.constant 1 : index
    %c54 = arith.constant 54 : index
    %55 = vector.load %arg9[%c1_35, %c54] : memref<16x108xf32, #tpu.memory_space<vmem>>, vector<4x16xf32>
    tpu.vector_store %arg9[%c1_35, %c54], %54 {strides = array<i32>} : memref<16x108xf32, #tpu.memory_space<vmem>>, vector<4x16xf32>,
    %56 = vector.extract_strided_slice %11 {offsets = [0, 2], sizes = [4, 1], strides = [1, 1]} : vector<8x4xf32> to vector<4x1xf32>
    %c1_36 = arith.constant 1 : index
    %c70 = arith.constant 70 : index
    %57 = vector.load %arg9[%c1_36, %c70] : memref<16x108xf32, #tpu.memory_space<vmem>>, vector<4x1xf32>
    tpu.vector_store %arg9[%c1_36, %c70], %56 {strides = array<i32>} : memref<16x108xf32, #tpu.memory_space<vmem>>, vector<4x1xf32>,
    %58 = vector.extract_strided_slice %17 {offsets = [0, 2], sizes = [4, 1], strides = [1, 1]} : vector<8x4xf32> to vector<4x1xf32>
    %c1_37 = arith.constant 1 : index
    %c71 = arith.constant 71 : index
    %59 = vector.load %arg9[%c1_37, %c71] : memref<16x108xf32, #tpu.memory_space<vmem>>, vector<4x1xf32>
    tpu.vector_store %arg9[%c1_37, %c71], %58 {strides = array<i32>} : memref<16x108xf32, #tpu.memory_space<vmem>>, vector<4x1xf32>,
    %60 = vector.extract_strided_slice %35 {offsets = [0, 48], sizes = [4, 16], strides = [1, 1]} : vector<8x64xf32> to vector<4x16xf32>
    %c1_38 = arith.constant 1 : index
    %c72 = arith.constant 72 : index
    %61 = vector.load %arg9[%c1_38, %c72] : memref<16x108xf32, #tpu.memory_space<vmem>>, vector<4x16xf32>
    tpu.vector_store %arg9[%c1_38, %c72], %60 {strides = array<i32>} : memref<16x108xf32, #tpu.memory_space<vmem>>, vector<4x16xf32>,
    %62 = vector.extract_strided_slice %11 {offsets = [0, 3], sizes = [4, 1], strides = [1, 1]} : vector<8x4xf32> to vector<4x1xf32>
    %c1_39 = arith.constant 1 : index
    %c88 = arith.constant 88 : index
    %63 = vector.load %arg9[%c1_39, %c88] : memref<16x108xf32, #tpu.memory_space<vmem>>, vector<4x1xf32>
    tpu.vector_store %arg9[%c1_39, %c88], %62 {strides = array<i32>} : memref<16x108xf32, #tpu.memory_space<vmem>>, vector<4x1xf32>,
    %64 = vector.extract_strided_slice %17 {offsets = [0, 3], sizes = [4, 1], strides = [1, 1]} : vector<8x4xf32> to vector<4x1xf32>
    %c1_40 = arith.constant 1 : index
    %c89 = arith.constant 89 : index
    %65 = vector.load %arg9[%c1_40, %c89] : memref<16x108xf32, #tpu.memory_space<vmem>>, vector<4x1xf32>
    tpu.vector_store %arg9[%c1_40, %c89], %64 {strides = array<i32>} : memref<16x108xf32, #tpu.memory_space<vmem>>, vector<4x1xf32>,
    %66 = vector.extract_strided_slice %35 {offsets = [4, 0], sizes = [4, 16], strides = [1, 1]} : vector<8x64xf32> to vector<4x16xf32>
    %c9 = arith.constant 9 : index
    %c18_41 = arith.constant 18 : index
    %67 = vector.load %arg9[%c9, %c18_41] : memref<16x108xf32, #tpu.memory_space<vmem>>, vector<4x16xf32>
    tpu.vector_store %arg9[%c9, %c18_41], %66 {strides = array<i32>} : memref<16x108xf32, #tpu.memory_space<vmem>>, vector<4x16xf32>,
    %68 = vector.extract_strided_slice %11 {offsets = [4, 0], sizes = [4, 1], strides = [1, 1]} : vector<8x4xf32> to vector<4x1xf32>
    %c9_42 = arith.constant 9 : index
    %c34_43 = arith.constant 34 : index
    %69 = vector.load %arg9[%c9_42, %c34_43] : memref<16x108xf32, #tpu.memory_space<vmem>>, vector<4x1xf32>
    tpu.vector_store %arg9[%c9_42, %c34_43], %68 {strides = array<i32>} : memref<16x108xf32, #tpu.memory_space<vmem>>, vector<4x1xf32>,
    %70 = vector.extract_strided_slice %17 {offsets = [4, 0], sizes = [4, 1], strides = [1, 1]} : vector<8x4xf32> to vector<4x1xf32>
    %c9_44 = arith.constant 9 : index
    %c35_45 = arith.constant 35 : index
    %71 = vector.load %arg9[%c9_44, %c35_45] : memref<16x108xf32, #tpu.memory_space<vmem>>, vector<4x1xf32>
    tpu.vector_store %arg9[%c9_44, %c35_45], %70 {strides = array<i32>} : memref<16x108xf32, #tpu.memory_space<vmem>>, vector<4x1xf32>,
    %72 = vector.extract_strided_slice %35 {offsets = [4, 16], sizes = [4, 16], strides = [1, 1]} : vector<8x64xf32> to vector<4x16xf32>
    %c9_46 = arith.constant 9 : index
    %c36_47 = arith.constant 36 : index
    %73 = vector.load %arg9[%c9_46, %c36_47] : memref<16x108xf32, #tpu.memory_space<vmem>>, vector<4x16xf32>
    tpu.vector_store %arg9[%c9_46, %c36_47], %72 {strides = array<i32>} : memref<16x108xf32, #tpu.memory_space<vmem>>, vector<4x16xf32>,
    %74 = vector.extract_strided_slice %11 {offsets = [4, 1], sizes = [4, 1], strides = [1, 1]} : vector<8x4xf32> to vector<4x1xf32>
    %c9_48 = arith.constant 9 : index
    %c52_49 = arith.constant 52 : index
    %75 = vector.load %arg9[%c9_48, %c52_49] : memref<16x108xf32, #tpu.memory_space<vmem>>, vector<4x1xf32>
    tpu.vector_store %arg9[%c9_48, %c52_49], %74 {strides = array<i32>} : memref<16x108xf32, #tpu.memory_space<vmem>>, vector<4x1xf32>,
    %76 = vector.extract_strided_slice %17 {offsets = [4, 1], sizes = [4, 1], strides = [1, 1]} : vector<8x4xf32> to vector<4x1xf32>
    %c9_50 = arith.constant 9 : index
    %c53_51 = arith.constant 53 : index
    %77 = vector.load %arg9[%c9_50, %c53_51] : memref<16x108xf32, #tpu.memory_space<vmem>>, vector<4x1xf32>
    tpu.vector_store %arg9[%c9_50, %c53_51], %76 {strides = array<i32>} : memref<16x108xf32, #tpu.memory_space<vmem>>, vector<4x1xf32>,
    %78 = vector.extract_strided_slice %35 {offsets = [4, 32], sizes = [4, 16], strides = [1, 1]} : vector<8x64xf32> to vector<4x16xf32>
    %c9_52 = arith.constant 9 : index
    %c54_53 = arith.constant 54 : index
    %79 = vector.load %arg9[%c9_52, %c54_53] : memref<16x108xf32, #tpu.memory_space<vmem>>, vector<4x16xf32>
    tpu.vector_store %arg9[%c9_52, %c54_53], %78 {strides = array<i32>} : memref<16x108xf32, #tpu.memory_space<vmem>>, vector<4x16xf32>,
    %80 = vector.extract_strided_slice %11 {offsets = [4, 2], sizes = [4, 1], strides = [1, 1]} : vector<8x4xf32> to vector<4x1xf32>
    %c9_54 = arith.constant 9 : index
    %c70_55 = arith.constant 70 : index
    %81 = vector.load %arg9[%c9_54, %c70_55] : memref<16x108xf32, #tpu.memory_space<vmem>>, vector<4x1xf32>
    tpu.vector_store %arg9[%c9_54, %c70_55], %80 {strides = array<i32>} : memref<16x108xf32, #tpu.memory_space<vmem>>, vector<4x1xf32>,
    %82 = vector.extract_strided_slice %17 {offsets = [4, 2], sizes = [4, 1], strides = [1, 1]} : vector<8x4xf32> to vector<4x1xf32>
    %c9_56 = arith.constant 9 : index
    %c71_57 = arith.constant 71 : index
    %83 = vector.load %arg9[%c9_56, %c71_57] : memref<16x108xf32, #tpu.memory_space<vmem>>, vector<4x1xf32>
    tpu.vector_store %arg9[%c9_56, %c71_57], %82 {strides = array<i32>} : memref<16x108xf32, #tpu.memory_space<vmem>>, vector<4x1xf32>,
    %84 = vector.extract_strided_slice %35 {offsets = [4, 48], sizes = [4, 16], strides = [1, 1]} : vector<8x64xf32> to vector<4x16xf32>
    %c9_58 = arith.constant 9 : index
    %c72_59 = arith.constant 72 : index
    %85 = vector.load %arg9[%c9_58, %c72_59] : memref<16x108xf32, #tpu.memory_space<vmem>>, vector<4x16xf32>
    tpu.vector_store %arg9[%c9_58, %c72_59], %84 {strides = array<i32>} : memref<16x108xf32, #tpu.memory_space<vmem>>, vector<4x16xf32>,
    %86 = vector.extract_strided_slice %11 {offsets = [4, 3], sizes = [4, 1], strides = [1, 1]} : vector<8x4xf32> to vector<4x1xf32>
    %c9_60 = arith.constant 9 : index
    %c88_61 = arith.constant 88 : index
    %87 = vector.load %arg9[%c9_60, %c88_61] : memref<16x108xf32, #tpu.memory_space<vmem>>, vector<4x1xf32>
    tpu.vector_store %arg9[%c9_60, %c88_61], %86 {strides = array<i32>} : memref<16x108xf32, #tpu.memory_space<vmem>>, vector<4x1xf32>,
    %88 = vector.extract_strided_slice %17 {offsets = [4, 3], sizes = [4, 1], strides = [1, 1]} : vector<8x4xf32> to vector<4x1xf32>
    %c9_62 = arith.constant 9 : index
    %c89_63 = arith.constant 89 : index
    %89 = vector.load %arg9[%c9_62, %c89_63] : memref<16x108xf32, #tpu.memory_space<vmem>>, vector<4x1xf32>
    tpu.vector_store %arg9[%c9_62, %c89_63], %88 {strides = array<i32>} : memref<16x108xf32, #tpu.memory_space<vmem>>, vector<4x1xf32>,
    %c0_64 = arith.constant 0 : index
    %c0_65 = arith.constant 0 : index
    %90 = vector.load %arg9[%c0_64, %c0_65] : memref<16x108xf32, #tpu.memory_space<vmem>>, vector<14x108xf32>
    %c368 = arith.constant 368 : index
    %c0_66 = arith.constant 0 : index
    %91 = vector.load %arg5[%c368, %c0_66] : memref<2848x72xbf16, #tpu.memory_space<vmem>>, vector<108x72xbf16>
    %92 = arith.truncf %90 : vector<14x108xf32> to vector<14x108xbf16>
    %cst_67 = arith.constant dense<0.000000e+00> : vector<14x72xf32>
    %93 = tpu.matmul %92, %91, %cst_67 {dimension_numbers = #tpu.dot_dimension_numbers<[1], [0], [0], [1], [0, 0, 1, 1], [], []>} : vector<14x108xbf16>, vector<108x72xbf16>, vector<14x72xf32> -> vector<14x72xf32>
    %c1_68 = arith.constant 1 : index
    %c0_69 = arith.constant 0 : index
    %94 = vector.load %arg9[%c1_68, %c0_69] : memref<16x108xf32, #tpu.memory_space<vmem>>, vector<14x108xf32>
    %c480 = arith.constant 480 : index
    %c0_70 = arith.constant 0 : index
    %95 = vector.load %arg5[%c480, %c0_70] : memref<2848x72xbf16, #tpu.memory_space<vmem>>, vector<108x72xbf16>
    %96 = arith.truncf %94 : vector<14x108xf32> to vector<14x108xbf16>
    %cst_71 = arith.constant dense<0.000000e+00> : vector<14x72xf32>
    %97 = tpu.matmul %96, %95, %cst_71 {dimension_numbers = #tpu.dot_dimension_numbers<[1], [0], [0], [1], [0, 0, 1, 1], [], []>} : vector<14x108xbf16>, vector<108x72xbf16>, vector<14x72xf32> -> vector<14x72xf32>
    %98 = arith.addf %93, %97 : vector<14x72xf32>
    %c2 = arith.constant 2 : index
    %c0_72 = arith.constant 0 : index
    %99 = vector.load %arg9[%c2, %c0_72] : memref<16x108xf32, #tpu.memory_space<vmem>>, vector<14x108xf32>
    %c592 = arith.constant 592 : index
    %c0_73 = arith.constant 0 : index
    %100 = vector.load %arg5[%c592, %c0_73] : memref<2848x72xbf16, #tpu.memory_space<vmem>>, vector<108x72xbf16>
    %101 = arith.truncf %99 : vector<14x108xf32> to vector<14x108xbf16>
    %cst_74 = arith.constant dense<0.000000e+00> : vector<14x72xf32>
    %102 = tpu.matmul %101, %100, %cst_74 {dimension_numbers = #tpu.dot_dimension_numbers<[1], [0], [0], [1], [0, 0, 1, 1], [], []>} : vector<14x108xbf16>, vector<108x72xbf16>, vector<14x72xf32> -> vector<14x72xf32>
    %103 = arith.addf %98, %102 : vector<14x72xf32>
    %104 = vector.extract_strided_slice %103 {offsets = [0, 0], sizes = [4, 72], strides = [1, 1]} : vector<14x72xf32> to vector<4x72xf32>
    %105 = vector.extract_strided_slice %103 {offsets = [8, 0], sizes = [4, 72], strides = [1, 1]} : vector<14x72xf32> to vector<4x72xf32>
    %106 = tpu.concatenate %104, %105 in 0 : vector<4x72xf32>, vector<4x72xf32> -> vector<8x72xf32>
    %c704 = arith.constant 704 : index
    %c0_75 = arith.constant 0 : index
    %107 = vector.load %arg5[%c704, %c0_75] : memref<2848x72xbf16, #tpu.memory_space<vmem>>, vector<1x72xbf16>
    %108 = arith.extf %107 : vector<1x72xbf16> to vector<1x72xf32>
    %109 = vector.broadcast %108 : vector<1x72xf32> to vector<8x72xf32>
    %110 = arith.addf %106, %109 : vector<8x72xf32>
    %cst_76 = arith.constant 0.000000e+00 : f32
    %111 = vector.broadcast %cst_76 : f32 to vector<8x72xf32>
    %112 = arith.maximumf %110, %111 : vector<8x72xf32>
    %113 = vector.extract_strided_slice %112 {offsets = [0, 0], sizes = [4, 72], strides = [1, 1]} : vector<8x72xf32> to vector<4x72xf32>
    %c1_77 = arith.constant 1 : index
    %c18_78 = arith.constant 18 : index
    %114 = vector.load %arg9[%c1_77, %c18_78] : memref<16x108xf32, #tpu.memory_space<vmem>>, vector<4x72xf32>
    tpu.vector_store %arg9[%c1_77, %c18_78], %113 {strides = array<i32>} : memref<16x108xf32, #tpu.memory_space<vmem>>, vector<4x72xf32>,
    %115 = vector.extract_strided_slice %112 {offsets = [4, 0], sizes = [4, 72], strides = [1, 1]} : vector<8x72xf32> to vector<4x72xf32>
    %c9_79 = arith.constant 9 : index
    %c18_80 = arith.constant 18 : index
    %116 = vector.load %arg9[%c9_79, %c18_80] : memref<16x108xf32, #tpu.memory_space<vmem>>, vector<4x72xf32>
    tpu.vector_store %arg9[%c9_79, %c18_80], %115 {strides = array<i32>} : memref<16x108xf32, #tpu.memory_space<vmem>>, vector<4x72xf32>,
    %c0_81 = arith.constant 0 : index
    %c0_82 = arith.constant 0 : index
    %117 = vector.load %arg9[%c0_81, %c0_82] : memref<16x108xf32, #tpu.memory_space<vmem>>, vector<14x108xf32>
    %c720 = arith.constant 720 : index
    %c0_83 = arith.constant 0 : index
    %118 = vector.load %arg5[%c720, %c0_83] : memref<2848x72xbf16, #tpu.memory_space<vmem>>, vector<108x72xbf16>
    %119 = arith.truncf %117 : vector<14x108xf32> to vector<14x108xbf16>
    %cst_84 = arith.constant dense<0.000000e+00> : vector<14x72xf32>
    %120 = tpu.matmul %119, %118, %cst_84 {dimension_numbers = #tpu.dot_dimension_numbers<[1], [0], [0], [1], [0, 0, 1, 1], [], []>} : vector<14x108xbf16>, vector<108x72xbf16>, vector<14x72xf32> -> vector<14x72xf32>
    %c1_85 = arith.constant 1 : index
    %c0_86 = arith.constant 0 : index
    %121 = vector.load %arg9[%c1_85, %c0_86] : memref<16x108xf32, #tpu.memory_space<vmem>>, vector<14x108xf32>
    %c832 = arith.constant 832 : index
    %c0_87 = arith.constant 0 : index
    %122 = vector.load %arg5[%c832, %c0_87] : memref<2848x72xbf16, #tpu.memory_space<vmem>>, vector<108x72xbf16>
    %123 = arith.truncf %121 : vector<14x108xf32> to vector<14x108xbf16>
    %cst_88 = arith.constant dense<0.000000e+00> : vector<14x72xf32>
    %124 = tpu.matmul %123, %122, %cst_88 {dimension_numbers = #tpu.dot_dimension_numbers<[1], [0], [0], [1], [0, 0, 1, 1], [], []>} : vector<14x108xbf16>, vector<108x72xbf16>, vector<14x72xf32> -> vector<14x72xf32>
    %125 = arith.addf %120, %124 : vector<14x72xf32>
    %c2_89 = arith.constant 2 : index
    %c0_90 = arith.constant 0 : index
    %126 = vector.load %arg9[%c2_89, %c0_90] : memref<16x108xf32, #tpu.memory_space<vmem>>, vector<14x108xf32>
    %c944 = arith.constant 944 : index
    %c0_91 = arith.constant 0 : index
    %127 = vector.load %arg5[%c944, %c0_91] : memref<2848x72xbf16, #tpu.memory_space<vmem>>, vector<108x72xbf16>
    %128 = arith.truncf %126 : vector<14x108xf32> to vector<14x108xbf16>
    %cst_92 = arith.constant dense<0.000000e+00> : vector<14x72xf32>
    %129 = tpu.matmul %128, %127, %cst_92 {dimension_numbers = #tpu.dot_dimension_numbers<[1], [0], [0], [1], [0, 0, 1, 1], [], []>} : vector<14x108xbf16>, vector<108x72xbf16>, vector<14x72xf32> -> vector<14x72xf32>
    %130 = arith.addf %125, %129 : vector<14x72xf32>
    %131 = vector.extract_strided_slice %130 {offsets = [0, 0], sizes = [4, 72], strides = [1, 1]} : vector<14x72xf32> to vector<4x72xf32>
    %132 = vector.extract_strided_slice %130 {offsets = [8, 0], sizes = [4, 72], strides = [1, 1]} : vector<14x72xf32> to vector<4x72xf32>
    %133 = tpu.concatenate %131, %132 in 0 : vector<4x72xf32>, vector<4x72xf32> -> vector<8x72xf32>
    %c1056 = arith.constant 1056 : index
    %c0_93 = arith.constant 0 : index
    %134 = vector.load %arg5[%c1056, %c0_93] : memref<2848x72xbf16, #tpu.memory_space<vmem>>, vector<1x72xbf16>
    %135 = arith.extf %134 : vector<1x72xbf16> to vector<1x72xf32>
    %136 = vector.broadcast %135 : vector<1x72xf32> to vector<8x72xf32>
    %137 = arith.addf %133, %136 : vector<8x72xf32>
    %cst_94 = arith.constant 0.000000e+00 : f32
    %138 = vector.broadcast %cst_94 : f32 to vector<8x72xf32>
    %139 = arith.maximumf %137, %138 : vector<8x72xf32>
    %140 = vector.extract_strided_slice %139 {offsets = [0, 0], sizes = [4, 72], strides = [1, 1]} : vector<8x72xf32> to vector<4x72xf32>
    %c1_95 = arith.constant 1 : index
    %c18_96 = arith.constant 18 : index
    %141 = vector.load %arg9[%c1_95, %c18_96] : memref<16x108xf32, #tpu.memory_space<vmem>>, vector<4x72xf32>
    tpu.vector_store %arg9[%c1_95, %c18_96], %140 {strides = array<i32>} : memref<16x108xf32, #tpu.memory_space<vmem>>, vector<4x72xf32>,
    %142 = vector.extract_strided_slice %139 {offsets = [4, 0], sizes = [4, 72], strides = [1, 1]} : vector<8x72xf32> to vector<4x72xf32>
    %c9_97 = arith.constant 9 : index
    %c18_98 = arith.constant 18 : index
    %143 = vector.load %arg9[%c9_97, %c18_98] : memref<16x108xf32, #tpu.memory_space<vmem>>, vector<4x72xf32>
    tpu.vector_store %arg9[%c9_97, %c18_98], %142 {strides = array<i32>} : memref<16x108xf32, #tpu.memory_space<vmem>>, vector<4x72xf32>,
    %c0_99 = arith.constant 0 : index
    %c0_100 = arith.constant 0 : index
    %144 = vector.load %arg9[%c0_99, %c0_100] : memref<16x108xf32, #tpu.memory_space<vmem>>, vector<14x108xf32>
    %c1072 = arith.constant 1072 : index
    %c0_101 = arith.constant 0 : index
    %145 = vector.load %arg5[%c1072, %c0_101] : memref<2848x72xbf16, #tpu.memory_space<vmem>>, vector<108x64xbf16>
    %146 = arith.truncf %144 : vector<14x108xf32> to vector<14x108xbf16>
    %cst_102 = arith.constant dense<0.000000e+00> : vector<14x64xf32>
    %147 = tpu.matmul %146, %145, %cst_102 {dimension_numbers = #tpu.dot_dimension_numbers<[1], [0], [0], [1], [0, 0, 1, 1], [], []>} : vector<14x108xbf16>, vector<108x64xbf16>, vector<14x64xf32> -> vector<14x64xf32>
    %c1_103 = arith.constant 1 : index
    %c0_104 = arith.constant 0 : index
    %148 = vector.load %arg9[%c1_103, %c0_104] : memref<16x108xf32, #tpu.memory_space<vmem>>, vector<14x108xf32>
    %c1184 = arith.constant 1184 : index
    %c0_105 = arith.constant 0 : index
    %149 = vector.load %arg5[%c1184, %c0_105] : memref<2848x72xbf16, #tpu.memory_space<vmem>>, vector<108x64xbf16>
    %150 = arith.truncf %148 : vector<14x108xf32> to vector<14x108xbf16>
    %cst_106 = arith.constant dense<0.000000e+00> : vector<14x64xf32>
    %151 = tpu.matmul %150, %149, %cst_106 {dimension_numbers = #tpu.dot_dimension_numbers<[1], [0], [0], [1], [0, 0, 1, 1], [], []>} : vector<14x108xbf16>, vector<108x64xbf16>, vector<14x64xf32> -> vector<14x64xf32>
    %152 = arith.addf %147, %151 : vector<14x64xf32>
    %c2_107 = arith.constant 2 : index
    %c0_108 = arith.constant 0 : index
    %153 = vector.load %arg9[%c2_107, %c0_108] : memref<16x108xf32, #tpu.memory_space<vmem>>, vector<14x108xf32>
    %c1296 = arith.constant 1296 : index
    %c0_109 = arith.constant 0 : index
    %154 = vector.load %arg5[%c1296, %c0_109] : memref<2848x72xbf16, #tpu.memory_space<vmem>>, vector<108x64xbf16>
    %155 = arith.truncf %153 : vector<14x108xf32> to vector<14x108xbf16>
    %cst_110 = arith.constant dense<0.000000e+00> : vector<14x64xf32>
    %156 = tpu.matmul %155, %154, %cst_110 {dimension_numbers = #tpu.dot_dimension_numbers<[1], [0], [0], [1], [0, 0, 1, 1], [], []>} : vector<14x108xbf16>, vector<108x64xbf16>, vector<14x64xf32> -> vector<14x64xf32>
    %157 = arith.addf %152, %156 : vector<14x64xf32>
    %158 = vector.extract_strided_slice %157 {offsets = [0, 0], sizes = [4, 64], strides = [1, 1]} : vector<14x64xf32> to vector<4x64xf32>
    %159 = vector.extract_strided_slice %157 {offsets = [8, 0], sizes = [4, 64], strides = [1, 1]} : vector<14x64xf32> to vector<4x64xf32>
    %160 = tpu.concatenate %158, %159 in 0 : vector<4x64xf32>, vector<4x64xf32> -> vector<8x64xf32>
    %c1408 = arith.constant 1408 : index
    %c0_111 = arith.constant 0 : index
    %161 = vector.load %arg5[%c1408, %c0_111] : memref<2848x72xbf16, #tpu.memory_space<vmem>>, vector<1x64xbf16>
    %162 = arith.extf %161 : vector<1x64xbf16> to vector<1x64xf32>
    %163 = vector.broadcast %162 : vector<1x64xf32> to vector<8x64xf32>
    %164 = arith.addf %160, %163 : vector<8x64xf32>
    %cst_112 = arith.constant 0.000000e+00 : f32
    %165 = vector.broadcast %cst_112 : f32 to vector<8x64xf32>
    %166 = arith.maximumf %164, %165 : vector<8x64xf32>
    %c2608 = arith.constant 2608 : index
    %c0_113 = arith.constant 0 : index
    %167 = vector.load %arg5[%c2608, %c0_113] : memref<2848x72xbf16, #tpu.memory_space<vmem>>, vector<64x64xbf16>
    %168 = arith.truncf %166 : vector<8x64xf32> to vector<8x64xbf16>
    %cst_114 = arith.constant dense<0.000000e+00> : vector<8x64xf32>
    %169 = tpu.matmul %168, %167, %cst_114 {dimension_numbers = #tpu.dot_dimension_numbers<[1], [0], [0], [1], [0, 0, 1, 1], [], []>} : vector<8x64xbf16>, vector<64x64xbf16>, vector<8x64xf32> -> vector<8x64xf32>
    %c2672 = arith.constant 2672 : index
    %c0_115 = arith.constant 0 : index
    %170 = vector.load %arg5[%c2672, %c0_115] : memref<2848x72xbf16, #tpu.memory_space<vmem>>, vector<1x64xbf16>
    %171 = arith.extf %170 : vector<1x64xbf16> to vector<1x64xf32>
    %172 = vector.broadcast %171 : vector<1x64xf32> to vector<8x64xf32>
    %173 = arith.addf %169, %172 : vector<8x64xf32>
    %174 = vector.extract_strided_slice %173 {offsets = [0, 0], sizes = [4, 64], strides = [1, 1]} : vector<8x64xf32> to vector<4x64xf32>
    %c1_116 = arith.constant 1 : index
    %c16_117 = arith.constant 16 : index
    %175 = vector.load %arg10[%c1_116, %c16_117] : memref<16x96xf32, #tpu.memory_space<vmem>>, vector<4x64xf32>
    tpu.vector_store %arg10[%c1_116, %c16_117], %174 {strides = array<i32>} : memref<16x96xf32, #tpu.memory_space<vmem>>, vector<4x64xf32>,
    %176 = vector.extract_strided_slice %173 {offsets = [4, 0], sizes = [4, 64], strides = [1, 1]} : vector<8x64xf32> to vector<4x64xf32>
    %c9_118 = arith.constant 9 : index
    %c16_119 = arith.constant 16 : index
    %177 = vector.load %arg10[%c9_118, %c16_119] : memref<16x96xf32, #tpu.memory_space<vmem>>, vector<4x64xf32>
    tpu.vector_store %arg10[%c9_118, %c16_119], %176 {strides = array<i32>} : memref<16x96xf32, #tpu.memory_space<vmem>>, vector<4x64xf32>,
    %c0_120 = arith.constant 0 : index
    %c0_121 = arith.constant 0 : index
    %178 = vector.load %arg10[%c0_120, %c0_121] : memref<16x96xf32, #tpu.memory_space<vmem>>, vector<14x96xf32>
    %c1424 = arith.constant 1424 : index
    %c0_122 = arith.constant 0 : index
    %179 = vector.load %arg5[%c1424, %c0_122] : memref<2848x72xbf16, #tpu.memory_space<vmem>>, vector<96x64xbf16>
    %180 = arith.truncf %178 : vector<14x96xf32> to vector<14x96xbf16>
    %cst_123 = arith.constant dense<0.000000e+00> : vector<14x64xf32>
    %181 = tpu.matmul %180, %179, %cst_123 {dimension_numbers = #tpu.dot_dimension_numbers<[1], [0], [0], [1], [0, 0, 1, 1], [], []>} : vector<14x96xbf16>, vector<96x64xbf16>, vector<14x64xf32> -> vector<14x64xf32>
    %c1_124 = arith.constant 1 : index
    %c0_125 = arith.constant 0 : index
    %182 = vector.load %arg10[%c1_124, %c0_125] : memref<16x96xf32, #tpu.memory_space<vmem>>, vector<14x96xf32>
    %c1520 = arith.constant 1520 : index
    %c0_126 = arith.constant 0 : index
    %183 = vector.load %arg5[%c1520, %c0_126] : memref<2848x72xbf16, #tpu.memory_space<vmem>>, vector<96x64xbf16>
    %184 = arith.truncf %182 : vector<14x96xf32> to vector<14x96xbf16>
    %cst_127 = arith.constant dense<0.000000e+00> : vector<14x64xf32>
    %185 = tpu.matmul %184, %183, %cst_127 {dimension_numbers = #tpu.dot_dimension_numbers<[1], [0], [0], [1], [0, 0, 1, 1], [], []>} : vector<14x96xbf16>, vector<96x64xbf16>, vector<14x64xf32> -> vector<14x64xf32>
    %186 = arith.addf %181, %185 : vector<14x64xf32>
    %c2_128 = arith.constant 2 : index
    %c0_129 = arith.constant 0 : index
    %187 = vector.load %arg10[%c2_128, %c0_129] : memref<16x96xf32, #tpu.memory_space<vmem>>, vector<14x96xf32>
    %c1616 = arith.constant 1616 : index
    %c0_130 = arith.constant 0 : index
    %188 = vector.load %arg5[%c1616, %c0_130] : memref<2848x72xbf16, #tpu.memory_space<vmem>>, vector<96x64xbf16>
    %189 = arith.truncf %187 : vector<14x96xf32> to vector<14x96xbf16>
    %cst_131 = arith.constant dense<0.000000e+00> : vector<14x64xf32>
    %190 = tpu.matmul %189, %188, %cst_131 {dimension_numbers = #tpu.dot_dimension_numbers<[1], [0], [0], [1], [0, 0, 1, 1], [], []>} : vector<14x96xbf16>, vector<96x64xbf16>, vector<14x64xf32> -> vector<14x64xf32>
    %191 = arith.addf %186, %190 : vector<14x64xf32>
    %192 = vector.extract_strided_slice %191 {offsets = [0, 0], sizes = [4, 64], strides = [1, 1]} : vector<14x64xf32> to vector<4x64xf32>
    %193 = vector.extract_strided_slice %191 {offsets = [8, 0], sizes = [4, 64], strides = [1, 1]} : vector<14x64xf32> to vector<4x64xf32>
    %194 = tpu.concatenate %192, %193 in 0 : vector<4x64xf32>, vector<4x64xf32> -> vector<8x64xf32>
    %c1712 = arith.constant 1712 : index
    %c0_132 = arith.constant 0 : index
    %195 = vector.load %arg5[%c1712, %c0_132] : memref<2848x72xbf16, #tpu.memory_space<vmem>>, vector<1x64xbf16>
    %196 = arith.extf %195 : vector<1x64xbf16> to vector<1x64xf32>
    %197 = vector.broadcast %196 : vector<1x64xf32> to vector<8x64xf32>
    %198 = arith.addf %194, %197 : vector<8x64xf32>
    %cst_133 = arith.constant 0.000000e+00 : f32
    %199 = vector.broadcast %cst_133 : f32 to vector<8x64xf32>
    %200 = arith.maximumf %198, %199 : vector<8x64xf32>
    %201 = vector.extract_strided_slice %200 {offsets = [0, 0], sizes = [4, 64], strides = [1, 1]} : vector<8x64xf32> to vector<4x64xf32>
    %c1_134 = arith.constant 1 : index
    %c16_135 = arith.constant 16 : index
    %202 = vector.load %arg10[%c1_134, %c16_135] : memref<16x96xf32, #tpu.memory_space<vmem>>, vector<4x64xf32>
    tpu.vector_store %arg10[%c1_134, %c16_135], %201 {strides = array<i32>} : memref<16x96xf32, #tpu.memory_space<vmem>>, vector<4x64xf32>,
    %203 = vector.extract_strided_slice %200 {offsets = [4, 0], sizes = [4, 64], strides = [1, 1]} : vector<8x64xf32> to vector<4x64xf32>
    %c9_136 = arith.constant 9 : index
    %c16_137 = arith.constant 16 : index
    %204 = vector.load %arg10[%c9_136, %c16_137] : memref<16x96xf32, #tpu.memory_space<vmem>>, vector<4x64xf32>
    tpu.vector_store %arg10[%c9_136, %c16_137], %203 {strides = array<i32>} : memref<16x96xf32, #tpu.memory_space<vmem>>, vector<4x64xf32>,
    %c0_138 = arith.constant 0 : index
    %c0_139 = arith.constant 0 : index
    %205 = vector.load %arg10[%c0_138, %c0_139] : memref<16x96xf32, #tpu.memory_space<vmem>>, vector<14x96xf32>
    %c1728 = arith.constant 1728 : index
    %c0_140 = arith.constant 0 : index
    %206 = vector.load %arg5[%c1728, %c0_140] : memref<2848x72xbf16, #tpu.memory_space<vmem>>, vector<96x64xbf16>
    %207 = arith.truncf %205 : vector<14x96xf32> to vector<14x96xbf16>
    %cst_141 = arith.constant dense<0.000000e+00> : vector<14x64xf32>
    %208 = tpu.matmul %207, %206, %cst_141 {dimension_numbers = #tpu.dot_dimension_numbers<[1], [0], [0], [1], [0, 0, 1, 1], [], []>} : vector<14x96xbf16>, vector<96x64xbf16>, vector<14x64xf32> -> vector<14x64xf32>
    %c1_142 = arith.constant 1 : index
    %c0_143 = arith.constant 0 : index
    %209 = vector.load %arg10[%c1_142, %c0_143] : memref<16x96xf32, #tpu.memory_space<vmem>>, vector<14x96xf32>
    %c1824 = arith.constant 1824 : index
    %c0_144 = arith.constant 0 : index
    %210 = vector.load %arg5[%c1824, %c0_144] : memref<2848x72xbf16, #tpu.memory_space<vmem>>, vector<96x64xbf16>
    %211 = arith.truncf %209 : vector<14x96xf32> to vector<14x96xbf16>
    %cst_145 = arith.constant dense<0.000000e+00> : vector<14x64xf32>
    %212 = tpu.matmul %211, %210, %cst_145 {dimension_numbers = #tpu.dot_dimension_numbers<[1], [0], [0], [1], [0, 0, 1, 1], [], []>} : vector<14x96xbf16>, vector<96x64xbf16>, vector<14x64xf32> -> vector<14x64xf32>
    %213 = arith.addf %208, %212 : vector<14x64xf32>
    %c2_146 = arith.constant 2 : index
    %c0_147 = arith.constant 0 : index
    %214 = vector.load %arg10[%c2_146, %c0_147] : memref<16x96xf32, #tpu.memory_space<vmem>>, vector<14x96xf32>
    %c1920 = arith.constant 1920 : index
    %c0_148 = arith.constant 0 : index
    %215 = vector.load %arg5[%c1920, %c0_148] : memref<2848x72xbf16, #tpu.memory_space<vmem>>, vector<96x64xbf16>
    %216 = arith.truncf %214 : vector<14x96xf32> to vector<14x96xbf16>
    %cst_149 = arith.constant dense<0.000000e+00> : vector<14x64xf32>
    %217 = tpu.matmul %216, %215, %cst_149 {dimension_numbers = #tpu.dot_dimension_numbers<[1], [0], [0], [1], [0, 0, 1, 1], [], []>} : vector<14x96xbf16>, vector<96x64xbf16>, vector<14x64xf32> -> vector<14x64xf32>
    %218 = arith.addf %213, %217 : vector<14x64xf32>
    %219 = vector.extract_strided_slice %218 {offsets = [0, 0], sizes = [4, 64], strides = [1, 1]} : vector<14x64xf32> to vector<4x64xf32>
    %220 = vector.extract_strided_slice %218 {offsets = [8, 0], sizes = [4, 64], strides = [1, 1]} : vector<14x64xf32> to vector<4x64xf32>
    %221 = tpu.concatenate %219, %220 in 0 : vector<4x64xf32>, vector<4x64xf32> -> vector<8x64xf32>
    %222 = arith.addf %173, %221 : vector<8x64xf32>
    %cst_150 = arith.constant 0.000000e+00 : f32
    %223 = vector.broadcast %cst_150 : f32 to vector<8x64xf32>
    %224 = arith.maximumf %222, %223 : vector<8x64xf32>
    %c64_151 = arith.constant 64 : index
    %c0_152 = arith.constant 0 : index
    %225 = vector.load %arg5[%c64_151, %c0_152] : memref<2848x72xbf16, #tpu.memory_space<vmem>>, vector<2x8xbf16>
    %226 = arith.truncf %224 : vector<8x64xf32> to vector<8x64xbf16>
    %cst_153 = arith.constant dense<0.000000e+00> : vector<2x64xf32>
    %227 = tpu.matmul %225, %226, %cst_153 {dimension_numbers = #tpu.dot_dimension_numbers<[1], [0], [0], [1], [0, 0, 1, 1], [], []>} : vector<2x8xbf16>, vector<8x64xbf16>, vector<2x64xf32> -> vector<2x64xf32>
    %c80_154 = arith.constant 80 : index
    %c0_155 = arith.constant 0 : index
    %228 = vector.load %arg5[%c80_154, %c0_155] : memref<2848x72xbf16, #tpu.memory_space<vmem>>, vector<64x16xbf16>
    %229 = arith.truncf %227 : vector<2x64xf32> to vector<2x64xbf16>
    %cst_156 = arith.constant dense<0.000000e+00> : vector<2x16xf32>
    %230 = tpu.matmul %229, %228, %cst_156 {dimension_numbers = #tpu.dot_dimension_numbers<[1], [0], [0], [1], [0, 0, 1, 1], [], []>} : vector<2x64xbf16>, vector<64x16xbf16>, vector<2x16xf32> -> vector<2x16xf32>
    %c2768 = arith.constant 2768 : index
    %c0_157 = arith.constant 0 : index
    %231 = vector.load %arg5[%c2768, %c0_157] : memref<2848x72xbf16, #tpu.memory_space<vmem>>, vector<16x16xbf16>
    %232 = arith.truncf %230 : vector<2x16xf32> to vector<2x16xbf16>
    %cst_158 = arith.constant dense<0.000000e+00> : vector<2x16xf32>
    %233 = tpu.matmul %232, %231, %cst_158 {dimension_numbers = #tpu.dot_dimension_numbers<[1], [0], [0], [1], [0, 0, 1, 1], [], []>} : vector<2x16xbf16>, vector<16x16xbf16>, vector<2x16xf32> -> vector<2x16xf32>
    %c2784 = arith.constant 2784 : index
    %c0_159 = arith.constant 0 : index
    %234 = vector.load %arg5[%c2784, %c0_159] : memref<2848x72xbf16, #tpu.memory_space<vmem>>, vector<16x16xbf16>
    %235 = arith.truncf %41 : vector<2x16xf32> to vector<2x16xbf16>
    %cst_160 = arith.constant dense<0.000000e+00> : vector<2x16xf32>
    %236 = tpu.matmul %235, %234, %cst_160 {dimension_numbers = #tpu.dot_dimension_numbers<[1], [0], [0], [1], [0, 0, 1, 1], [], []>} : vector<2x16xbf16>, vector<16x16xbf16>, vector<2x16xf32> -> vector<2x16xf32>
    %237 = arith.addf %233, %236 : vector<2x16xf32>
    %c2800 = arith.constant 2800 : index
    %c0_161 = arith.constant 0 : index
    %238 = vector.load %arg5[%c2800, %c0_161] : memref<2848x72xbf16, #tpu.memory_space<vmem>>, vector<1x16xbf16>
    %239 = arith.extf %238 : vector<1x16xbf16> to vector<1x16xf32>
    %240 = vector.broadcast %239 : vector<1x16xf32> to vector<2x16xf32>
    %241 = arith.addf %237, %240 : vector<2x16xf32>
    %cst_162 = arith.constant 0.000000e+00 : f32
    %242 = vector.broadcast %cst_162 : f32 to vector<2x16xf32>
    %243 = arith.maximumf %241, %242 : vector<2x16xf32>
    %c2816 = arith.constant 2816 : index
    %c0_163 = arith.constant 0 : index
    %244 = vector.load %arg5[%c2816, %c0_163] : memref<2848x72xbf16, #tpu.memory_space<vmem>>, vector<16x16xbf16>
    %245 = arith.truncf %243 : vector<2x16xf32> to vector<2x16xbf16>
    %cst_164 = arith.constant dense<0.000000e+00> : vector<2x16xf32>
    %246 = tpu.matmul %245, %244, %cst_164 {dimension_numbers = #tpu.dot_dimension_numbers<[1], [0], [0], [1], [0, 0, 1, 1], [], []>} : vector<2x16xbf16>, vector<16x16xbf16>, vector<2x16xf32> -> vector<2x16xf32>
    %c2832 = arith.constant 2832 : index
    %c0_165 = arith.constant 0 : index
    %247 = vector.load %arg5[%c2832, %c0_165] : memref<2848x72xbf16, #tpu.memory_space<vmem>>, vector<1x16xbf16>
    %248 = arith.extf %247 : vector<1x16xbf16> to vector<1x16xf32>
    %249 = vector.broadcast %248 : vector<1x16xf32> to vector<2x16xf32>
    %250 = arith.addf %246, %249 : vector<2x16xf32>
    %251 = vector.extract_strided_slice %41 {offsets = [0, 0], sizes = [1, 16], strides = [1, 1]} : vector<2x16xf32> to vector<1x16xf32>
    %252 = vector.shape_cast %251 : vector<1x16xf32> to vector<1x16xf32>
    %253 = vector.broadcast %252 : vector<1x16xf32> to vector<4x16xf32>
    %254 = vector.extract_strided_slice %41 {offsets = [1, 0], sizes = [1, 16], strides = [1, 1]} : vector<2x16xf32> to vector<1x16xf32>
    %255 = vector.shape_cast %254 : vector<1x16xf32> to vector<1x16xf32>
    %256 = vector.broadcast %255 : vector<1x16xf32> to vector<4x16xf32>
    %257 = tpu.concatenate %253, %256 in 0 : vector<4x16xf32>, vector<4x16xf32> -> vector<8x16xf32>
    %258 = tpu.concatenate %257, %257, %257, %257 in 1 : vector<8x16xf32>, vector<8x16xf32>, vector<8x16xf32>, vector<8x16xf32> -> vector<8x64xf32>
    %259 = arith.negf %250 : vector<2x16xf32>
    %260 = math.exp %259 : vector<2x16xf32>
    %cst_166 = arith.constant 1.000000e+00 : f32
    %261 = vector.broadcast %cst_166 : f32 to vector<2x16xf32>
    %262 = arith.addf %261, %260 : vector<2x16xf32>
    %263 = arith.divf %261, %262 : vector<2x16xf32>
    %264 = vector.extract_strided_slice %263 {offsets = [0, 0], sizes = [1, 16], strides = [1, 1]} : vector<2x16xf32> to vector<1x16xf32>
    %265 = vector.shape_cast %264 : vector<1x16xf32> to vector<1x16xf32>
    %266 = vector.broadcast %265 : vector<1x16xf32> to vector<4x16xf32>
    %267 = vector.extract_strided_slice %263 {offsets = [1, 0], sizes = [1, 16], strides = [1, 1]} : vector<2x16xf32> to vector<1x16xf32>
    %268 = vector.shape_cast %267 : vector<1x16xf32> to vector<1x16xf32>
    %269 = vector.broadcast %268 : vector<1x16xf32> to vector<4x16xf32>
    %270 = tpu.concatenate %266, %269 in 0 : vector<4x16xf32>, vector<4x16xf32> -> vector<8x16xf32>
    %271 = tpu.concatenate %270, %270, %270, %270 in 1 : vector<8x16xf32>, vector<8x16xf32>, vector<8x16xf32>, vector<8x16xf32> -> vector<8x64xf32>
    %272 = arith.mulf %224, %271 : vector<8x64xf32>
    %273 = arith.addf %272, %258 : vector<8x64xf32>
    %c2688 = arith.constant 2688 : index
    %c0_167 = arith.constant 0 : index
    %274 = vector.load %arg5[%c2688, %c0_167] : memref<2848x72xbf16, #tpu.memory_space<vmem>>, vector<64x64xbf16>
    %275 = arith.truncf %273 : vector<8x64xf32> to vector<8x64xbf16>
    %cst_168 = arith.constant dense<0.000000e+00> : vector<8x64xf32>
    %276 = tpu.matmul %275, %274, %cst_168 {dimension_numbers = #tpu.dot_dimension_numbers<[1], [0], [0], [1], [0, 0, 1, 1], [], []>} : vector<8x64xbf16>, vector<64x64xbf16>, vector<8x64xf32> -> vector<8x64xf32>
    %c2752 = arith.constant 2752 : index
    %c0_169 = arith.constant 0 : index
    %277 = vector.load %arg5[%c2752, %c0_169] : memref<2848x72xbf16, #tpu.memory_space<vmem>>, vector<1x64xbf16>
    %278 = arith.extf %277 : vector<1x64xbf16> to vector<1x64xf32>
    %279 = vector.broadcast %278 : vector<1x64xf32> to vector<8x64xf32>
    %280 = arith.addf %276, %279 : vector<8x64xf32>
    %281 = vector.extract_strided_slice %280 {offsets = [0, 0], sizes = [4, 64], strides = [1, 1]} : vector<8x64xf32> to vector<4x64xf32>
    %c1_170 = arith.constant 1 : index
    %c16_171 = arith.constant 16 : index
    %282 = vector.load %arg10[%c1_170, %c16_171] : memref<16x96xf32, #tpu.memory_space<vmem>>, vector<4x64xf32>
    tpu.vector_store %arg10[%c1_170, %c16_171], %281 {strides = array<i32>} : memref<16x96xf32, #tpu.memory_space<vmem>>, vector<4x64xf32>,
    %283 = vector.extract_strided_slice %280 {offsets = [4, 0], sizes = [4, 64], strides = [1, 1]} : vector<8x64xf32> to vector<4x64xf32>
    %c9_172 = arith.constant 9 : index
    %c16_173 = arith.constant 16 : index
    %284 = vector.load %arg10[%c9_172, %c16_173] : memref<16x96xf32, #tpu.memory_space<vmem>>, vector<4x64xf32>
    tpu.vector_store %arg10[%c9_172, %c16_173], %283 {strides = array<i32>} : memref<16x96xf32, #tpu.memory_space<vmem>>, vector<4x64xf32>,
    %c0_174 = arith.constant 0 : index
    %c0_175 = arith.constant 0 : index
    %285 = vector.load %arg10[%c0_174, %c0_175] : memref<16x96xf32, #tpu.memory_space<vmem>>, vector<14x96xf32>
    %c2016 = arith.constant 2016 : index
    %c0_176 = arith.constant 0 : index
    %286 = vector.load %arg5[%c2016, %c0_176] : memref<2848x72xbf16, #tpu.memory_space<vmem>>, vector<96x64xbf16>
    %287 = arith.truncf %285 : vector<14x96xf32> to vector<14x96xbf16>
    %cst_177 = arith.constant dense<0.000000e+00> : vector<14x64xf32>
    %288 = tpu.matmul %287, %286, %cst_177 {dimension_numbers = #tpu.dot_dimension_numbers<[1], [0], [0], [1], [0, 0, 1, 1], [], []>} : vector<14x96xbf16>, vector<96x64xbf16>, vector<14x64xf32> -> vector<14x64xf32>
    %c1_178 = arith.constant 1 : index
    %c0_179 = arith.constant 0 : index
    %289 = vector.load %arg10[%c1_178, %c0_179] : memref<16x96xf32, #tpu.memory_space<vmem>>, vector<14x96xf32>
    %c2112 = arith.constant 2112 : index
    %c0_180 = arith.constant 0 : index
    %290 = vector.load %arg5[%c2112, %c0_180] : memref<2848x72xbf16, #tpu.memory_space<vmem>>, vector<96x64xbf16>
    %291 = arith.truncf %289 : vector<14x96xf32> to vector<14x96xbf16>
    %cst_181 = arith.constant dense<0.000000e+00> : vector<14x64xf32>
    %292 = tpu.matmul %291, %290, %cst_181 {dimension_numbers = #tpu.dot_dimension_numbers<[1], [0], [0], [1], [0, 0, 1, 1], [], []>} : vector<14x96xbf16>, vector<96x64xbf16>, vector<14x64xf32> -> vector<14x64xf32>
    %293 = arith.addf %288, %292 : vector<14x64xf32>
    %c2_182 = arith.constant 2 : index
    %c0_183 = arith.constant 0 : index
    %294 = vector.load %arg10[%c2_182, %c0_183] : memref<16x96xf32, #tpu.memory_space<vmem>>, vector<14x96xf32>
    %c2208 = arith.constant 2208 : index
    %c0_184 = arith.constant 0 : index
    %295 = vector.load %arg5[%c2208, %c0_184] : memref<2848x72xbf16, #tpu.memory_space<vmem>>, vector<96x64xbf16>
    %296 = arith.truncf %294 : vector<14x96xf32> to vector<14x96xbf16>
    %cst_185 = arith.constant dense<0.000000e+00> : vector<14x64xf32>
    %297 = tpu.matmul %296, %295, %cst_185 {dimension_numbers = #tpu.dot_dimension_numbers<[1], [0], [0], [1], [0, 0, 1, 1], [], []>} : vector<14x96xbf16>, vector<96x64xbf16>, vector<14x64xf32> -> vector<14x64xf32>
    %298 = arith.addf %293, %297 : vector<14x64xf32>
    %299 = vector.extract_strided_slice %298 {offsets = [0, 0], sizes = [4, 64], strides = [1, 1]} : vector<14x64xf32> to vector<4x64xf32>
    %300 = vector.extract_strided_slice %298 {offsets = [8, 0], sizes = [4, 64], strides = [1, 1]} : vector<14x64xf32> to vector<4x64xf32>
    %301 = tpu.concatenate %299, %300 in 0 : vector<4x64xf32>, vector<4x64xf32> -> vector<8x64xf32>
    %c2304 = arith.constant 2304 : index
    %c0_186 = arith.constant 0 : index
    %302 = vector.load %arg5[%c2304, %c0_186] : memref<2848x72xbf16, #tpu.memory_space<vmem>>, vector<1x64xbf16>
    %303 = arith.extf %302 : vector<1x64xbf16> to vector<1x64xf32>
    %304 = vector.broadcast %303 : vector<1x64xf32> to vector<8x64xf32>
    %305 = arith.addf %301, %304 : vector<8x64xf32>
    %cst_187 = arith.constant 0.000000e+00 : f32
    %306 = vector.broadcast %cst_187 : f32 to vector<8x64xf32>
    %307 = arith.maximumf %305, %306 : vector<8x64xf32>
    %308 = vector.extract_strided_slice %307 {offsets = [0, 0], sizes = [4, 64], strides = [1, 1]} : vector<8x64xf32> to vector<4x64xf32>
    %c1_188 = arith.constant 1 : index
    %c16_189 = arith.constant 16 : index
    %309 = vector.load %arg10[%c1_188, %c16_189] : memref<16x96xf32, #tpu.memory_space<vmem>>, vector<4x64xf32>
    tpu.vector_store %arg10[%c1_188, %c16_189], %308 {strides = array<i32>} : memref<16x96xf32, #tpu.memory_space<vmem>>, vector<4x64xf32>,
    %310 = vector.extract_strided_slice %307 {offsets = [4, 0], sizes = [4, 64], strides = [1, 1]} : vector<8x64xf32> to vector<4x64xf32>
    %c9_190 = arith.constant 9 : index
    %c16_191 = arith.constant 16 : index
    %311 = vector.load %arg10[%c9_190, %c16_191] : memref<16x96xf32, #tpu.memory_space<vmem>>, vector<4x64xf32>
    tpu.vector_store %arg10[%c9_190, %c16_191], %310 {strides = array<i32>} : memref<16x96xf32, #tpu.memory_space<vmem>>, vector<4x64xf32>,
    %c0_192 = arith.constant 0 : index
    %c0_193 = arith.constant 0 : index
    %312 = vector.load %arg10[%c0_192, %c0_193] : memref<16x96xf32, #tpu.memory_space<vmem>>, vector<14x96xf32>
    %c2320 = arith.constant 2320 : index
    %c0_194 = arith.constant 0 : index
    %313 = vector.load %arg5[%c2320, %c0_194] : memref<2848x72xbf16, #tpu.memory_space<vmem>>, vector<96x64xbf16>
    %314 = arith.truncf %312 : vector<14x96xf32> to vector<14x96xbf16>
    %cst_195 = arith.constant dense<0.000000e+00> : vector<14x64xf32>
    %315 = tpu.matmul %314, %313, %cst_195 {dimension_numbers = #tpu.dot_dimension_numbers<[1], [0], [0], [1], [0, 0, 1, 1], [], []>} : vector<14x96xbf16>, vector<96x64xbf16>, vector<14x64xf32> -> vector<14x64xf32>
    %c1_196 = arith.constant 1 : index
    %c0_197 = arith.constant 0 : index
    %316 = vector.load %arg10[%c1_196, %c0_197] : memref<16x96xf32, #tpu.memory_space<vmem>>, vector<14x96xf32>
    %c2416 = arith.constant 2416 : index
    %c0_198 = arith.constant 0 : index
    %317 = vector.load %arg5[%c2416, %c0_198] : memref<2848x72xbf16, #tpu.memory_space<vmem>>, vector<96x64xbf16>
    %318 = arith.truncf %316 : vector<14x96xf32> to vector<14x96xbf16>
    %cst_199 = arith.constant dense<0.000000e+00> : vector<14x64xf32>
    %319 = tpu.matmul %318, %317, %cst_199 {dimension_numbers = #tpu.dot_dimension_numbers<[1], [0], [0], [1], [0, 0, 1, 1], [], []>} : vector<14x96xbf16>, vector<96x64xbf16>, vector<14x64xf32> -> vector<14x64xf32>
    %320 = arith.addf %315, %319 : vector<14x64xf32>
    %c2_200 = arith.constant 2 : index
    %c0_201 = arith.constant 0 : index
    %321 = vector.load %arg10[%c2_200, %c0_201] : memref<16x96xf32, #tpu.memory_space<vmem>>, vector<14x96xf32>
    %c2512 = arith.constant 2512 : index
    %c0_202 = arith.constant 0 : index
    %322 = vector.load %arg5[%c2512, %c0_202] : memref<2848x72xbf16, #tpu.memory_space<vmem>>, vector<96x64xbf16>
    %323 = arith.truncf %321 : vector<14x96xf32> to vector<14x96xbf16>
    %cst_203 = arith.constant dense<0.000000e+00> : vector<14x64xf32>
    %324 = tpu.matmul %323, %322, %cst_203 {dimension_numbers = #tpu.dot_dimension_numbers<[1], [0], [0], [1], [0, 0, 1, 1], [], []>} : vector<14x96xbf16>, vector<96x64xbf16>, vector<14x64xf32> -> vector<14x64xf32>
    %325 = arith.addf %320, %324 : vector<14x64xf32>
    %326 = vector.extract_strided_slice %325 {offsets = [0, 0], sizes = [4, 64], strides = [1, 1]} : vector<14x64xf32> to vector<4x64xf32>
    %327 = vector.extract_strided_slice %325 {offsets = [8, 0], sizes = [4, 64], strides = [1, 1]} : vector<14x64xf32> to vector<4x64xf32>
    %328 = tpu.concatenate %326, %327 in 0 : vector<4x64xf32>, vector<4x64xf32> -> vector<8x64xf32>
    %329 = arith.addf %280, %328 : vector<8x64xf32>
    %cst_204 = arith.constant 0.000000e+00 : f32
    %330 = vector.broadcast %cst_204 : f32 to vector<8x64xf32>
    %331 = arith.maximumf %329, %330 : vector<8x64xf32>
    %cst_205 = arith.constant 0.000000e+00 : f32
    %332 = vector.broadcast %cst_205 : f32 to vector<32x180xf32>
    %c0_206 = arith.constant 0 : index
    %c0_207 = arith.constant 0 : index
    %333 = vector.load %arg11[%c0_206, %c0_207] : memref<32x180xf32, #tpu.memory_space<vmem>>, vector<32x180xf32>
    tpu.vector_store %arg11[%c0_206, %c0_207], %332 {strides = array<i32>} : memref<32x180xf32, #tpu.memory_space<vmem>>, vector<32x180xf32>,
    %cst_208 = arith.constant 0.000000e+00 : f32
    %334 = vector.broadcast %cst_208 : f32 to vector<32x160xf32>
    %c0_209 = arith.constant 0 : index
    %c0_210 = arith.constant 0 : index
    %335 = vector.load %arg12[%c0_209, %c0_210] : memref<32x160xf32, #tpu.memory_space<vmem>>, vector<32x160xf32>
    tpu.vector_store %arg12[%c0_209, %c0_210], %334 {strides = array<i32>} : memref<32x160xf32, #tpu.memory_space<vmem>>, vector<32x160xf32>,
    %c0_211 = arith.constant 0 : index
    %c0_212 = arith.constant 0 : index
    %336 = vector.load %arg6[%c0_211, %c0_212] : memref<4816x144xbf16, #tpu.memory_space<vmem>>, vector<16x32xbf16>
    %337 = arith.truncf %0 : vector<32x16xf32> to vector<32x16xbf16>
    %cst_213 = arith.constant dense<0.000000e+00> : vector<16x16xf32>
    %338 = tpu.matmul %336, %337, %cst_213 {dimension_numbers = #tpu.dot_dimension_numbers<[1], [0], [0], [1], [0, 0, 1, 1], [], []>} : vector<16x32xbf16>, vector<32x16xbf16>, vector<16x16xf32> -> vector<16x16xf32>
    %c16_214 = arith.constant 16 : index
    %c0_215 = arith.constant 0 : index
    %339 = vector.load %arg6[%c16_214, %c0_215] : memref<4816x144xbf16, #tpu.memory_space<vmem>>, vector<16x8xbf16>
    %340 = arith.truncf %338 : vector<16x16xf32> to vector<16x16xbf16>
    %cst_216 = arith.constant dense<0.000000e+00> : vector<16x8xf32>
    %341 = tpu.matmul %340, %339, %cst_216 {dimension_numbers = #tpu.dot_dimension_numbers<[1], [0], [0], [1], [0, 0, 1, 1], [], []>} : vector<16x16xbf16>, vector<16x8xbf16>, vector<16x8xf32> -> vector<16x8xf32>
    %c32_217 = arith.constant 32 : index
    %c0_218 = arith.constant 0 : index
    %342 = vector.load %arg6[%c32_217, %c0_218] : memref<4816x144xbf16, #tpu.memory_space<vmem>>, vector<16x16xbf16>
    %343 = arith.truncf %1 : vector<16x8xf32> to vector<16x8xbf16>
    %cst_219 = arith.constant dense<0.000000e+00> : vector<16x8xf32>
    %344 = tpu.matmul %342, %343, %cst_219 {dimension_numbers = #tpu.dot_dimension_numbers<[1], [0], [0], [1], [0, 0, 1, 1], [], []>} : vector<16x16xbf16>, vector<16x8xbf16>, vector<16x8xf32> -> vector<16x8xf32>
    %c48_220 = arith.constant 48 : index
    %c0_221 = arith.constant 0 : index
    %345 = vector.load %arg6[%c48_220, %c0_221] : memref<4816x144xbf16, #tpu.memory_space<vmem>>, vector<8x8xbf16>
    %346 = arith.truncf %344 : vector<16x8xf32> to vector<16x8xbf16>
    %cst_222 = arith.constant dense<0.000000e+00> : vector<16x8xf32>
    %347 = tpu.matmul %346, %345, %cst_222 {dimension_numbers = #tpu.dot_dimension_numbers<[1], [0], [0], [1], [0, 0, 1, 1], [], []>} : vector<16x8xbf16>, vector<8x8xbf16>, vector<16x8xf32> -> vector<16x8xf32>
    %c0_223 = arith.constant 0 : index
    %c0_224 = arith.constant 0 : index
    %348 = vector.load %arg4[%c0_223, %c0_224] : memref<8x192xf32, #tpu.memory_space<vmem>>, vector<8x192xf32>
    %c368_225 = arith.constant 368 : index
    %c0_226 = arith.constant 0 : index
    %349 = vector.load %arg6[%c368_225, %c0_226] : memref<4816x144xbf16, #tpu.memory_space<vmem>>, vector<192x128xbf16>
    %350 = arith.truncf %348 : vector<8x192xf32> to vector<8x192xbf16>
    %cst_227 = arith.constant dense<0.000000e+00> : vector<8x128xf32>
    %351 = tpu.matmul %350, %349, %cst_227 {dimension_numbers = #tpu.dot_dimension_numbers<[1], [0], [0], [1], [0, 0, 1, 1], [], []>} : vector<8x192xbf16>, vector<192x128xbf16>, vector<8x128xf32> -> vector<8x128xf32>
    %c560 = arith.constant 560 : index
    %c0_228 = arith.constant 0 : index
    %352 = vector.load %arg6[%c560, %c0_228] : memref<4816x144xbf16, #tpu.memory_space<vmem>>, vector<1x128xbf16>
    %353 = arith.extf %352 : vector<1x128xbf16> to vector<1x128xf32>
    %354 = vector.broadcast %353 : vector<1x128xf32> to vector<8x128xf32>
    %355 = arith.addf %351, %354 : vector<8x128xf32>
    %cst_229 = arith.constant 0.000000e+00 : f32
    %356 = vector.broadcast %cst_229 : f32 to vector<8x128xf32>
    %357 = arith.maximumf %355, %356 : vector<8x128xf32>
    %c576 = arith.constant 576 : index
    %c0_230 = arith.constant 0 : index
    %358 = vector.load %arg6[%c576, %c0_230] : memref<4816x144xbf16, #tpu.memory_space<vmem>>, vector<128x128xbf16>
    %359 = arith.truncf %357 : vector<8x128xf32> to vector<8x128xbf16>
    %cst_231 = arith.constant dense<0.000000e+00> : vector<8x128xf32>
    %360 = tpu.matmul %359, %358, %cst_231 {dimension_numbers = #tpu.dot_dimension_numbers<[1], [0], [0], [1], [0, 0, 1, 1], [], []>} : vector<8x128xbf16>, vector<128x128xbf16>, vector<8x128xf32> -> vector<8x128xf32>
    %c704_232 = arith.constant 704 : index
    %c0_233 = arith.constant 0 : index
    %361 = vector.load %arg6[%c704_232, %c0_233] : memref<4816x144xbf16, #tpu.memory_space<vmem>>, vector<1x128xbf16>
    %362 = arith.extf %361 : vector<1x128xbf16> to vector<1x128xf32>
    %363 = vector.broadcast %362 : vector<1x128xf32> to vector<8x128xf32>
    %364 = arith.addf %360, %363 : vector<8x128xf32>
    %365 = tpu.concatenate %364, %364 in 0 : vector<8x128xf32>, vector<8x128xf32> -> vector<16x128xf32>
    %c208 = arith.constant 208 : index
    %c0_234 = arith.constant 0 : index
    %366 = vector.load %arg6[%c208, %c0_234] : memref<4816x144xbf16, #tpu.memory_space<vmem>>, vector<2x8xbf16>
    %367 = arith.truncf %331 : vector<8x64xf32> to vector<8x64xbf16>
    %cst_235 = arith.constant dense<0.000000e+00> : vector<2x64xf32>
    %368 = tpu.matmul %366, %367, %cst_235 {dimension_numbers = #tpu.dot_dimension_numbers<[1], [0], [0], [1], [0, 0, 1, 1], [], []>} : vector<2x8xbf16>, vector<8x64xbf16>, vector<2x64xf32> -> vector<2x64xf32>
    %c224 = arith.constant 224 : index
    %c0_236 = arith.constant 0 : index
    %369 = vector.load %arg6[%c224, %c0_236] : memref<4816x144xbf16, #tpu.memory_space<vmem>>, vector<64x16xbf16>
    %370 = arith.truncf %368 : vector<2x64xf32> to vector<2x64xbf16>
    %cst_237 = arith.constant dense<0.000000e+00> : vector<2x16xf32>
    %371 = tpu.matmul %370, %369, %cst_237 {dimension_numbers = #tpu.dot_dimension_numbers<[1], [0], [0], [1], [0, 0, 1, 1], [], []>} : vector<2x64xbf16>, vector<64x16xbf16>, vector<2x16xf32> -> vector<2x16xf32>
    %c288_238 = arith.constant 288 : index
    %c0_239 = arith.constant 0 : index
    %372 = vector.load %arg6[%c288_238, %c0_239] : memref<4816x144xbf16, #tpu.memory_space<vmem>>, vector<16x8xbf16>
    %373 = arith.truncf %331 : vector<8x64xf32> to vector<8x64xbf16>
    %cst_240 = arith.constant dense<0.000000e+00> : vector<16x64xf32>
    %374 = tpu.matmul %372, %373, %cst_240 {dimension_numbers = #tpu.dot_dimension_numbers<[1], [0], [0], [1], [0, 0, 1, 1], [], []>} : vector<16x8xbf16>, vector<8x64xbf16>, vector<16x64xf32> -> vector<16x64xf32>
    %c304 = arith.constant 304 : index
    %c0_241 = arith.constant 0 : index
    %375 = vector.load %arg6[%c304, %c0_241] : memref<4816x144xbf16, #tpu.memory_space<vmem>>, vector<64x128xbf16>
    %376 = arith.truncf %374 : vector<16x64xf32> to vector<16x64xbf16>
    %cst_242 = arith.constant dense<0.000000e+00> : vector<16x128xf32>
    %377 = tpu.matmul %376, %375, %cst_242 {dimension_numbers = #tpu.dot_dimension_numbers<[1], [0], [0], [1], [0, 0, 1, 1], [], []>} : vector<16x64xbf16>, vector<64x128xbf16>, vector<16x128xf32> -> vector<16x128xf32>
    %378 = vector.extract_strided_slice %365 {offsets = [0, 0], sizes = [8, 16], strides = [1, 1]} : vector<16x128xf32> to vector<8x16xf32>
    %c1_243 = arith.constant 1 : index
    %c18_244 = arith.constant 18 : index
    %379 = vector.load %arg11[%c1_243, %c18_244] : memref<32x180xf32, #tpu.memory_space<vmem>>, vector<8x16xf32>
    tpu.vector_store %arg11[%c1_243, %c18_244], %378 {strides = array<i32>} : memref<32x180xf32, #tpu.memory_space<vmem>>, vector<8x16xf32>,
    %380 = vector.extract_strided_slice %341 {offsets = [0, 0], sizes = [8, 1], strides = [1, 1]} : vector<16x8xf32> to vector<8x1xf32>
    %c1_245 = arith.constant 1 : index
    %c34_246 = arith.constant 34 : index
    %381 = vector.load %arg11[%c1_245, %c34_246] : memref<32x180xf32, #tpu.memory_space<vmem>>, vector<8x1xf32>
    tpu.vector_store %arg11[%c1_245, %c34_246], %380 {strides = array<i32>} : memref<32x180xf32, #tpu.memory_space<vmem>>, vector<8x1xf32>,
    %382 = vector.extract_strided_slice %347 {offsets = [0, 0], sizes = [8, 1], strides = [1, 1]} : vector<16x8xf32> to vector<8x1xf32>
    %c1_247 = arith.constant 1 : index
    %c35_248 = arith.constant 35 : index
    %383 = vector.load %arg11[%c1_247, %c35_248] : memref<32x180xf32, #tpu.memory_space<vmem>>, vector<8x1xf32>
    tpu.vector_store %arg11[%c1_247, %c35_248], %382 {strides = array<i32>} : memref<32x180xf32, #tpu.memory_space<vmem>>, vector<8x1xf32>,
    %384 = vector.extract_strided_slice %365 {offsets = [0, 16], sizes = [8, 16], strides = [1, 1]} : vector<16x128xf32> to vector<8x16xf32>
    %c1_249 = arith.constant 1 : index
    %c36_250 = arith.constant 36 : index
    %385 = vector.load %arg11[%c1_249, %c36_250] : memref<32x180xf32, #tpu.memory_space<vmem>>, vector<8x16xf32>
    tpu.vector_store %arg11[%c1_249, %c36_250], %384 {strides = array<i32>} : memref<32x180xf32, #tpu.memory_space<vmem>>, vector<8x16xf32>,
    %386 = vector.extract_strided_slice %341 {offsets = [0, 1], sizes = [8, 1], strides = [1, 1]} : vector<16x8xf32> to vector<8x1xf32>
    %c1_251 = arith.constant 1 : index
    %c52_252 = arith.constant 52 : index
    %387 = vector.load %arg11[%c1_251, %c52_252] : memref<32x180xf32, #tpu.memory_space<vmem>>, vector<8x1xf32>
    tpu.vector_store %arg11[%c1_251, %c52_252], %386 {strides = array<i32>} : memref<32x180xf32, #tpu.memory_space<vmem>>, vector<8x1xf32>,
    %388 = vector.extract_strided_slice %347 {offsets = [0, 1], sizes = [8, 1], strides = [1, 1]} : vector<16x8xf32> to vector<8x1xf32>
    %c1_253 = arith.constant 1 : index
    %c53_254 = arith.constant 53 : index
    %389 = vector.load %arg11[%c1_253, %c53_254] : memref<32x180xf32, #tpu.memory_space<vmem>>, vector<8x1xf32>
    tpu.vector_store %arg11[%c1_253, %c53_254], %388 {strides = array<i32>} : memref<32x180xf32, #tpu.memory_space<vmem>>, vector<8x1xf32>,
    %390 = vector.extract_strided_slice %365 {offsets = [0, 32], sizes = [8, 16], strides = [1, 1]} : vector<16x128xf32> to vector<8x16xf32>
    %c1_255 = arith.constant 1 : index
    %c54_256 = arith.constant 54 : index
    %391 = vector.load %arg11[%c1_255, %c54_256] : memref<32x180xf32, #tpu.memory_space<vmem>>, vector<8x16xf32>
    tpu.vector_store %arg11[%c1_255, %c54_256], %390 {strides = array<i32>} : memref<32x180xf32, #tpu.memory_space<vmem>>, vector<8x16xf32>,
    %392 = vector.extract_strided_slice %341 {offsets = [0, 2], sizes = [8, 1], strides = [1, 1]} : vector<16x8xf32> to vector<8x1xf32>
    %c1_257 = arith.constant 1 : index
    %c70_258 = arith.constant 70 : index
    %393 = vector.load %arg11[%c1_257, %c70_258] : memref<32x180xf32, #tpu.memory_space<vmem>>, vector<8x1xf32>
    tpu.vector_store %arg11[%c1_257, %c70_258], %392 {strides = array<i32>} : memref<32x180xf32, #tpu.memory_space<vmem>>, vector<8x1xf32>,
    %394 = vector.extract_strided_slice %347 {offsets = [0, 2], sizes = [8, 1], strides = [1, 1]} : vector<16x8xf32> to vector<8x1xf32>
    %c1_259 = arith.constant 1 : index
    %c71_260 = arith.constant 71 : index
    %395 = vector.load %arg11[%c1_259, %c71_260] : memref<32x180xf32, #tpu.memory_space<vmem>>, vector<8x1xf32>
    tpu.vector_store %arg11[%c1_259, %c71_260], %394 {strides = array<i32>} : memref<32x180xf32, #tpu.memory_space<vmem>>, vector<8x1xf32>,
    %396 = vector.extract_strided_slice %365 {offsets = [0, 48], sizes = [8, 16], strides = [1, 1]} : vector<16x128xf32> to vector<8x16xf32>
    %c1_261 = arith.constant 1 : index
    %c72_262 = arith.constant 72 : index
    %397 = vector.load %arg11[%c1_261, %c72_262] : memref<32x180xf32, #tpu.memory_space<vmem>>, vector<8x16xf32>
    tpu.vector_store %arg11[%c1_261, %c72_262], %396 {strides = array<i32>} : memref<32x180xf32, #tpu.memory_space<vmem>>, vector<8x16xf32>,
    %398 = vector.extract_strided_slice %341 {offsets = [0, 3], sizes = [8, 1], strides = [1, 1]} : vector<16x8xf32> to vector<8x1xf32>
    %c1_263 = arith.constant 1 : index
    %c88_264 = arith.constant 88 : index
    %399 = vector.load %arg11[%c1_263, %c88_264] : memref<32x180xf32, #tpu.memory_space<vmem>>, vector<8x1xf32>
    tpu.vector_store %arg11[%c1_263, %c88_264], %398 {strides = array<i32>} : memref<32x180xf32, #tpu.memory_space<vmem>>, vector<8x1xf32>,
    %400 = vector.extract_strided_slice %347 {offsets = [0, 3], sizes = [8, 1], strides = [1, 1]} : vector<16x8xf32> to vector<8x1xf32>
    %c1_265 = arith.constant 1 : index
    %c89_266 = arith.constant 89 : index
    %401 = vector.load %arg11[%c1_265, %c89_266] : memref<32x180xf32, #tpu.memory_space<vmem>>, vector<8x1xf32>
    tpu.vector_store %arg11[%c1_265, %c89_266], %400 {strides = array<i32>} : memref<32x180xf32, #tpu.memory_space<vmem>>, vector<8x1xf32>,
    %402 = vector.extract_strided_slice %365 {offsets = [0, 64], sizes = [8, 16], strides = [1, 1]} : vector<16x128xf32> to vector<8x16xf32>
    %c1_267 = arith.constant 1 : index
    %c90 = arith.constant 90 : index
    %403 = vector.load %arg11[%c1_267, %c90] : memref<32x180xf32, #tpu.memory_space<vmem>>, vector<8x16xf32>
    tpu.vector_store %arg11[%c1_267, %c90], %402 {strides = array<i32>} : memref<32x180xf32, #tpu.memory_space<vmem>>, vector<8x16xf32>,
    %404 = vector.extract_strided_slice %341 {offsets = [0, 4], sizes = [8, 1], strides = [1, 1]} : vector<16x8xf32> to vector<8x1xf32>
    %c1_268 = arith.constant 1 : index
    %c106 = arith.constant 106 : index
    %405 = vector.load %arg11[%c1_268, %c106] : memref<32x180xf32, #tpu.memory_space<vmem>>, vector<8x1xf32>
    tpu.vector_store %arg11[%c1_268, %c106], %404 {strides = array<i32>} : memref<32x180xf32, #tpu.memory_space<vmem>>, vector<8x1xf32>,
    %406 = vector.extract_strided_slice %347 {offsets = [0, 4], sizes = [8, 1], strides = [1, 1]} : vector<16x8xf32> to vector<8x1xf32>
    %c1_269 = arith.constant 1 : index
    %c107 = arith.constant 107 : index
    %407 = vector.load %arg11[%c1_269, %c107] : memref<32x180xf32, #tpu.memory_space<vmem>>, vector<8x1xf32>
    tpu.vector_store %arg11[%c1_269, %c107], %406 {strides = array<i32>} : memref<32x180xf32, #tpu.memory_space<vmem>>, vector<8x1xf32>,
    %408 = vector.extract_strided_slice %365 {offsets = [0, 80], sizes = [8, 16], strides = [1, 1]} : vector<16x128xf32> to vector<8x16xf32>
    %c1_270 = arith.constant 1 : index
    %c108 = arith.constant 108 : index
    %409 = vector.load %arg11[%c1_270, %c108] : memref<32x180xf32, #tpu.memory_space<vmem>>, vector<8x16xf32>
    tpu.vector_store %arg11[%c1_270, %c108], %408 {strides = array<i32>} : memref<32x180xf32, #tpu.memory_space<vmem>>, vector<8x16xf32>,
    %410 = vector.extract_strided_slice %341 {offsets = [0, 5], sizes = [8, 1], strides = [1, 1]} : vector<16x8xf32> to vector<8x1xf32>
    %c1_271 = arith.constant 1 : index
    %c124 = arith.constant 124 : index
    %411 = vector.load %arg11[%c1_271, %c124] : memref<32x180xf32, #tpu.memory_space<vmem>>, vector<8x1xf32>
    tpu.vector_store %arg11[%c1_271, %c124], %410 {strides = array<i32>} : memref<32x180xf32, #tpu.memory_space<vmem>>, vector<8x1xf32>,
    %412 = vector.extract_strided_slice %347 {offsets = [0, 5], sizes = [8, 1], strides = [1, 1]} : vector<16x8xf32> to vector<8x1xf32>
    %c1_272 = arith.constant 1 : index
    %c125 = arith.constant 125 : index
    %413 = vector.load %arg11[%c1_272, %c125] : memref<32x180xf32, #tpu.memory_space<vmem>>, vector<8x1xf32>
    tpu.vector_store %arg11[%c1_272, %c125], %412 {strides = array<i32>} : memref<32x180xf32, #tpu.memory_space<vmem>>, vector<8x1xf32>,
    %414 = vector.extract_strided_slice %365 {offsets = [0, 96], sizes = [8, 16], strides = [1, 1]} : vector<16x128xf32> to vector<8x16xf32>
    %c1_273 = arith.constant 1 : index
    %c126 = arith.constant 126 : index
    %415 = vector.load %arg11[%c1_273, %c126] : memref<32x180xf32, #tpu.memory_space<vmem>>, vector<8x16xf32>
    tpu.vector_store %arg11[%c1_273, %c126], %414 {strides = array<i32>} : memref<32x180xf32, #tpu.memory_space<vmem>>, vector<8x16xf32>,
    %416 = vector.extract_strided_slice %341 {offsets = [0, 6], sizes = [8, 1], strides = [1, 1]} : vector<16x8xf32> to vector<8x1xf32>
    %c1_274 = arith.constant 1 : index
    %c142 = arith.constant 142 : index
    %417 = vector.load %arg11[%c1_274, %c142] : memref<32x180xf32, #tpu.memory_space<vmem>>, vector<8x1xf32>
    tpu.vector_store %arg11[%c1_274, %c142], %416 {strides = array<i32>} : memref<32x180xf32, #tpu.memory_space<vmem>>, vector<8x1xf32>,
    %418 = vector.extract_strided_slice %347 {offsets = [0, 6], sizes = [8, 1], strides = [1, 1]} : vector<16x8xf32> to vector<8x1xf32>
    %c1_275 = arith.constant 1 : index
    %c143 = arith.constant 143 : index
    %419 = vector.load %arg11[%c1_275, %c143] : memref<32x180xf32, #tpu.memory_space<vmem>>, vector<8x1xf32>
    tpu.vector_store %arg11[%c1_275, %c143], %418 {strides = array<i32>} : memref<32x180xf32, #tpu.memory_space<vmem>>, vector<8x1xf32>,
    %420 = vector.extract_strided_slice %365 {offsets = [0, 112], sizes = [8, 16], strides = [1, 1]} : vector<16x128xf32> to vector<8x16xf32>
    %c1_276 = arith.constant 1 : index
    %c144_277 = arith.constant 144 : index
    %421 = vector.load %arg11[%c1_276, %c144_277] : memref<32x180xf32, #tpu.memory_space<vmem>>, vector<8x16xf32>
    tpu.vector_store %arg11[%c1_276, %c144_277], %420 {strides = array<i32>} : memref<32x180xf32, #tpu.memory_space<vmem>>, vector<8x16xf32>,
    %422 = vector.extract_strided_slice %341 {offsets = [0, 7], sizes = [8, 1], strides = [1, 1]} : vector<16x8xf32> to vector<8x1xf32>
    %c1_278 = arith.constant 1 : index
    %c160 = arith.constant 160 : index
    %423 = vector.load %arg11[%c1_278, %c160] : memref<32x180xf32, #tpu.memory_space<vmem>>, vector<8x1xf32>
    tpu.vector_store %arg11[%c1_278, %c160], %422 {strides = array<i32>} : memref<32x180xf32, #tpu.memory_space<vmem>>, vector<8x1xf32>,
    %424 = vector.extract_strided_slice %347 {offsets = [0, 7], sizes = [8, 1], strides = [1, 1]} : vector<16x8xf32> to vector<8x1xf32>
    %c1_279 = arith.constant 1 : index
    %c161 = arith.constant 161 : index
    %425 = vector.load %arg11[%c1_279, %c161] : memref<32x180xf32, #tpu.memory_space<vmem>>, vector<8x1xf32>
    tpu.vector_store %arg11[%c1_279, %c161], %424 {strides = array<i32>} : memref<32x180xf32, #tpu.memory_space<vmem>>, vector<8x1xf32>,
    %426 = vector.extract_strided_slice %365 {offsets = [8, 0], sizes = [8, 16], strides = [1, 1]} : vector<16x128xf32> to vector<8x16xf32>
    %c17 = arith.constant 17 : index
    %c18_280 = arith.constant 18 : index
    %427 = vector.load %arg11[%c17, %c18_280] : memref<32x180xf32, #tpu.memory_space<vmem>>, vector<8x16xf32>
    tpu.vector_store %arg11[%c17, %c18_280], %426 {strides = array<i32>} : memref<32x180xf32, #tpu.memory_space<vmem>>, vector<8x16xf32>,
    %428 = vector.extract_strided_slice %341 {offsets = [8, 0], sizes = [8, 1], strides = [1, 1]} : vector<16x8xf32> to vector<8x1xf32>
    %c17_281 = arith.constant 17 : index
    %c34_282 = arith.constant 34 : index
    %429 = vector.load %arg11[%c17_281, %c34_282] : memref<32x180xf32, #tpu.memory_space<vmem>>, vector<8x1xf32>
    tpu.vector_store %arg11[%c17_281, %c34_282], %428 {strides = array<i32>} : memref<32x180xf32, #tpu.memory_space<vmem>>, vector<8x1xf32>,
    %430 = vector.extract_strided_slice %347 {offsets = [8, 0], sizes = [8, 1], strides = [1, 1]} : vector<16x8xf32> to vector<8x1xf32>
    %c17_283 = arith.constant 17 : index
    %c35_284 = arith.constant 35 : index
    %431 = vector.load %arg11[%c17_283, %c35_284] : memref<32x180xf32, #tpu.memory_space<vmem>>, vector<8x1xf32>
    tpu.vector_store %arg11[%c17_283, %c35_284], %430 {strides = array<i32>} : memref<32x180xf32, #tpu.memory_space<vmem>>, vector<8x1xf32>,
    %432 = vector.extract_strided_slice %365 {offsets = [8, 16], sizes = [8, 16], strides = [1, 1]} : vector<16x128xf32> to vector<8x16xf32>
    %c17_285 = arith.constant 17 : index
    %c36_286 = arith.constant 36 : index
    %433 = vector.load %arg11[%c17_285, %c36_286] : memref<32x180xf32, #tpu.memory_space<vmem>>, vector<8x16xf32>
    tpu.vector_store %arg11[%c17_285, %c36_286], %432 {strides = array<i32>} : memref<32x180xf32, #tpu.memory_space<vmem>>, vector<8x16xf32>,
    %434 = vector.extract_strided_slice %341 {offsets = [8, 1], sizes = [8, 1], strides = [1, 1]} : vector<16x8xf32> to vector<8x1xf32>
    %c17_287 = arith.constant 17 : index
    %c52_288 = arith.constant 52 : index
    %435 = vector.load %arg11[%c17_287, %c52_288] : memref<32x180xf32, #tpu.memory_space<vmem>>, vector<8x1xf32>
    tpu.vector_store %arg11[%c17_287, %c52_288], %434 {strides = array<i32>} : memref<32x180xf32, #tpu.memory_space<vmem>>, vector<8x1xf32>,
    %436 = vector.extract_strided_slice %347 {offsets = [8, 1], sizes = [8, 1], strides = [1, 1]} : vector<16x8xf32> to vector<8x1xf32>
    %c17_289 = arith.constant 17 : index
    %c53_290 = arith.constant 53 : index
    %437 = vector.load %arg11[%c17_289, %c53_290] : memref<32x180xf32, #tpu.memory_space<vmem>>, vector<8x1xf32>
    tpu.vector_store %arg11[%c17_289, %c53_290], %436 {strides = array<i32>} : memref<32x180xf32, #tpu.memory_space<vmem>>, vector<8x1xf32>,
    %438 = vector.extract_strided_slice %365 {offsets = [8, 32], sizes = [8, 16], strides = [1, 1]} : vector<16x128xf32> to vector<8x16xf32>
    %c17_291 = arith.constant 17 : index
    %c54_292 = arith.constant 54 : index
    %439 = vector.load %arg11[%c17_291, %c54_292] : memref<32x180xf32, #tpu.memory_space<vmem>>, vector<8x16xf32>
    tpu.vector_store %arg11[%c17_291, %c54_292], %438 {strides = array<i32>} : memref<32x180xf32, #tpu.memory_space<vmem>>, vector<8x16xf32>,
    %440 = vector.extract_strided_slice %341 {offsets = [8, 2], sizes = [8, 1], strides = [1, 1]} : vector<16x8xf32> to vector<8x1xf32>
    %c17_293 = arith.constant 17 : index
    %c70_294 = arith.constant 70 : index
    %441 = vector.load %arg11[%c17_293, %c70_294] : memref<32x180xf32, #tpu.memory_space<vmem>>, vector<8x1xf32>
    tpu.vector_store %arg11[%c17_293, %c70_294], %440 {strides = array<i32>} : memref<32x180xf32, #tpu.memory_space<vmem>>, vector<8x1xf32>,
    %442 = vector.extract_strided_slice %347 {offsets = [8, 2], sizes = [8, 1], strides = [1, 1]} : vector<16x8xf32> to vector<8x1xf32>
    %c17_295 = arith.constant 17 : index
    %c71_296 = arith.constant 71 : index
    %443 = vector.load %arg11[%c17_295, %c71_296] : memref<32x180xf32, #tpu.memory_space<vmem>>, vector<8x1xf32>
    tpu.vector_store %arg11[%c17_295, %c71_296], %442 {strides = array<i32>} : memref<32x180xf32, #tpu.memory_space<vmem>>, vector<8x1xf32>,
    %444 = vector.extract_strided_slice %365 {offsets = [8, 48], sizes = [8, 16], strides = [1, 1]} : vector<16x128xf32> to vector<8x16xf32>
    %c17_297 = arith.constant 17 : index
    %c72_298 = arith.constant 72 : index
    %445 = vector.load %arg11[%c17_297, %c72_298] : memref<32x180xf32, #tpu.memory_space<vmem>>, vector<8x16xf32>
    tpu.vector_store %arg11[%c17_297, %c72_298], %444 {strides = array<i32>} : memref<32x180xf32, #tpu.memory_space<vmem>>, vector<8x16xf32>,
    %446 = vector.extract_strided_slice %341 {offsets = [8, 3], sizes = [8, 1], strides = [1, 1]} : vector<16x8xf32> to vector<8x1xf32>
    %c17_299 = arith.constant 17 : index
    %c88_300 = arith.constant 88 : index
    %447 = vector.load %arg11[%c17_299, %c88_300] : memref<32x180xf32, #tpu.memory_space<vmem>>, vector<8x1xf32>
    tpu.vector_store %arg11[%c17_299, %c88_300], %446 {strides = array<i32>} : memref<32x180xf32, #tpu.memory_space<vmem>>, vector<8x1xf32>,
    %448 = vector.extract_strided_slice %347 {offsets = [8, 3], sizes = [8, 1], strides = [1, 1]} : vector<16x8xf32> to vector<8x1xf32>
    %c17_301 = arith.constant 17 : index
    %c89_302 = arith.constant 89 : index
    %449 = vector.load %arg11[%c17_301, %c89_302] : memref<32x180xf32, #tpu.memory_space<vmem>>, vector<8x1xf32>
    tpu.vector_store %arg11[%c17_301, %c89_302], %448 {strides = array<i32>} : memref<32x180xf32, #tpu.memory_space<vmem>>, vector<8x1xf32>,
    %450 = vector.extract_strided_slice %365 {offsets = [8, 64], sizes = [8, 16], strides = [1, 1]} : vector<16x128xf32> to vector<8x16xf32>
    %c17_303 = arith.constant 17 : index
    %c90_304 = arith.constant 90 : index
    %451 = vector.load %arg11[%c17_303, %c90_304] : memref<32x180xf32, #tpu.memory_space<vmem>>, vector<8x16xf32>
    tpu.vector_store %arg11[%c17_303, %c90_304], %450 {strides = array<i32>} : memref<32x180xf32, #tpu.memory_space<vmem>>, vector<8x16xf32>,
    %452 = vector.extract_strided_slice %341 {offsets = [8, 4], sizes = [8, 1], strides = [1, 1]} : vector<16x8xf32> to vector<8x1xf32>
    %c17_305 = arith.constant 17 : index
    %c106_306 = arith.constant 106 : index
    %453 = vector.load %arg11[%c17_305, %c106_306] : memref<32x180xf32, #tpu.memory_space<vmem>>, vector<8x1xf32>
    tpu.vector_store %arg11[%c17_305, %c106_306], %452 {strides = array<i32>} : memref<32x180xf32, #tpu.memory_space<vmem>>, vector<8x1xf32>,
    %454 = vector.extract_strided_slice %347 {offsets = [8, 4], sizes = [8, 1], strides = [1, 1]} : vector<16x8xf32> to vector<8x1xf32>
    %c17_307 = arith.constant 17 : index
    %c107_308 = arith.constant 107 : index
    %455 = vector.load %arg11[%c17_307, %c107_308] : memref<32x180xf32, #tpu.memory_space<vmem>>, vector<8x1xf32>
    tpu.vector_store %arg11[%c17_307, %c107_308], %454 {strides = array<i32>} : memref<32x180xf32, #tpu.memory_space<vmem>>, vector<8x1xf32>,
    %456 = vector.extract_strided_slice %365 {offsets = [8, 80], sizes = [8, 16], strides = [1, 1]} : vector<16x128xf32> to vector<8x16xf32>
    %c17_309 = arith.constant 17 : index
    %c108_310 = arith.constant 108 : index
    %457 = vector.load %arg11[%c17_309, %c108_310] : memref<32x180xf32, #tpu.memory_space<vmem>>, vector<8x16xf32>
    tpu.vector_store %arg11[%c17_309, %c108_310], %456 {strides = array<i32>} : memref<32x180xf32, #tpu.memory_space<vmem>>, vector<8x16xf32>,
    %458 = vector.extract_strided_slice %341 {offsets = [8, 5], sizes = [8, 1], strides = [1, 1]} : vector<16x8xf32> to vector<8x1xf32>
    %c17_311 = arith.constant 17 : index
    %c124_312 = arith.constant 124 : index
    %459 = vector.load %arg11[%c17_311, %c124_312] : memref<32x180xf32, #tpu.memory_space<vmem>>, vector<8x1xf32>
    tpu.vector_store %arg11[%c17_311, %c124_312], %458 {strides = array<i32>} : memref<32x180xf32, #tpu.memory_space<vmem>>, vector<8x1xf32>,
    %460 = vector.extract_strided_slice %347 {offsets = [8, 5], sizes = [8, 1], strides = [1, 1]} : vector<16x8xf32> to vector<8x1xf32>
    %c17_313 = arith.constant 17 : index
    %c125_314 = arith.constant 125 : index
    %461 = vector.load %arg11[%c17_313, %c125_314] : memref<32x180xf32, #tpu.memory_space<vmem>>, vector<8x1xf32>
    tpu.vector_store %arg11[%c17_313, %c125_314], %460 {strides = array<i32>} : memref<32x180xf32, #tpu.memory_space<vmem>>, vector<8x1xf32>,
    %462 = vector.extract_strided_slice %365 {offsets = [8, 96], sizes = [8, 16], strides = [1, 1]} : vector<16x128xf32> to vector<8x16xf32>
    %c17_315 = arith.constant 17 : index
    %c126_316 = arith.constant 126 : index
    %463 = vector.load %arg11[%c17_315, %c126_316] : memref<32x180xf32, #tpu.memory_space<vmem>>, vector<8x16xf32>
    tpu.vector_store %arg11[%c17_315, %c126_316], %462 {strides = array<i32>} : memref<32x180xf32, #tpu.memory_space<vmem>>, vector<8x16xf32>,
    %464 = vector.extract_strided_slice %341 {offsets = [8, 6], sizes = [8, 1], strides = [1, 1]} : vector<16x8xf32> to vector<8x1xf32>
    %c17_317 = arith.constant 17 : index
    %c142_318 = arith.constant 142 : index
    %465 = vector.load %arg11[%c17_317, %c142_318] : memref<32x180xf32, #tpu.memory_space<vmem>>, vector<8x1xf32>
    tpu.vector_store %arg11[%c17_317, %c142_318], %464 {strides = array<i32>} : memref<32x180xf32, #tpu.memory_space<vmem>>, vector<8x1xf32>,
    %466 = vector.extract_strided_slice %347 {offsets = [8, 6], sizes = [8, 1], strides = [1, 1]} : vector<16x8xf32> to vector<8x1xf32>
    %c17_319 = arith.constant 17 : index
    %c143_320 = arith.constant 143 : index
    %467 = vector.load %arg11[%c17_319, %c143_320] : memref<32x180xf32, #tpu.memory_space<vmem>>, vector<8x1xf32>
    tpu.vector_store %arg11[%c17_319, %c143_320], %466 {strides = array<i32>} : memref<32x180xf32, #tpu.memory_space<vmem>>, vector<8x1xf32>,
    %468 = vector.extract_strided_slice %365 {offsets = [8, 112], sizes = [8, 16], strides = [1, 1]} : vector<16x128xf32> to vector<8x16xf32>
    %c17_321 = arith.constant 17 : index
    %c144_322 = arith.constant 144 : index
    %469 = vector.load %arg11[%c17_321, %c144_322] : memref<32x180xf32, #tpu.memory_space<vmem>>, vector<8x16xf32>
    tpu.vector_store %arg11[%c17_321, %c144_322], %468 {strides = array<i32>} : memref<32x180xf32, #tpu.memory_space<vmem>>, vector<8x16xf32>,
    %470 = vector.extract_strided_slice %341 {offsets = [8, 7], sizes = [8, 1], strides = [1, 1]} : vector<16x8xf32> to vector<8x1xf32>
    %c17_323 = arith.constant 17 : index
    %c160_324 = arith.constant 160 : index
    %471 = vector.load %arg11[%c17_323, %c160_324] : memref<32x180xf32, #tpu.memory_space<vmem>>, vector<8x1xf32>
    tpu.vector_store %arg11[%c17_323, %c160_324], %470 {strides = array<i32>} : memref<32x180xf32, #tpu.memory_space<vmem>>, vector<8x1xf32>,
    %472 = vector.extract_strided_slice %347 {offsets = [8, 7], sizes = [8, 1], strides = [1, 1]} : vector<16x8xf32> to vector<8x1xf32>
    %c17_325 = arith.constant 17 : index
    %c161_326 = arith.constant 161 : index
    %473 = vector.load %arg11[%c17_325, %c161_326] : memref<32x180xf32, #tpu.memory_space<vmem>>, vector<8x1xf32>
    tpu.vector_store %arg11[%c17_325, %c161_326], %472 {strides = array<i32>} : memref<32x180xf32, #tpu.memory_space<vmem>>, vector<8x1xf32>,
    %c0_327 = arith.constant 0 : index
    %c0_328 = arith.constant 0 : index
    %474 = vector.load %arg11[%c0_327, %c0_328] : memref<32x180xf32, #tpu.memory_space<vmem>>, vector<30x180xf32>
    %c720_329 = arith.constant 720 : index
    %c0_330 = arith.constant 0 : index
    %475 = vector.load %arg6[%c720_329, %c0_330] : memref<4816x144xbf16, #tpu.memory_space<vmem>>, vector<180x144xbf16>
    %476 = arith.truncf %474 : vector<30x180xf32> to vector<30x180xbf16>
    %cst_331 = arith.constant dense<0.000000e+00> : vector<30x144xf32>
    %477 = tpu.matmul %476, %475, %cst_331 {dimension_numbers = #tpu.dot_dimension_numbers<[1], [0], [0], [1], [0, 0, 1, 1], [], []>} : vector<30x180xbf16>, vector<180x144xbf16>, vector<30x144xf32> -> vector<30x144xf32>
    %c1_332 = arith.constant 1 : index
    %c0_333 = arith.constant 0 : index
    %478 = vector.load %arg11[%c1_332, %c0_333] : memref<32x180xf32, #tpu.memory_space<vmem>>, vector<30x180xf32>
    %c912 = arith.constant 912 : index
    %c0_334 = arith.constant 0 : index
    %479 = vector.load %arg6[%c912, %c0_334] : memref<4816x144xbf16, #tpu.memory_space<vmem>>, vector<180x144xbf16>
    %480 = arith.truncf %478 : vector<30x180xf32> to vector<30x180xbf16>
    %cst_335 = arith.constant dense<0.000000e+00> : vector<30x144xf32>
    %481 = tpu.matmul %480, %479, %cst_335 {dimension_numbers = #tpu.dot_dimension_numbers<[1], [0], [0], [1], [0, 0, 1, 1], [], []>} : vector<30x180xbf16>, vector<180x144xbf16>, vector<30x144xf32> -> vector<30x144xf32>
    %482 = arith.addf %477, %481 : vector<30x144xf32>
    %c2_336 = arith.constant 2 : index
    %c0_337 = arith.constant 0 : index
    %483 = vector.load %arg11[%c2_336, %c0_337] : memref<32x180xf32, #tpu.memory_space<vmem>>, vector<30x180xf32>
    %c1104 = arith.constant 1104 : index
    %c0_338 = arith.constant 0 : index
    %484 = vector.load %arg6[%c1104, %c0_338] : memref<4816x144xbf16, #tpu.memory_space<vmem>>, vector<180x144xbf16>
    %485 = arith.truncf %483 : vector<30x180xf32> to vector<30x180xbf16>
    %cst_339 = arith.constant dense<0.000000e+00> : vector<30x144xf32>
    %486 = tpu.matmul %485, %484, %cst_339 {dimension_numbers = #tpu.dot_dimension_numbers<[1], [0], [0], [1], [0, 0, 1, 1], [], []>} : vector<30x180xbf16>, vector<180x144xbf16>, vector<30x144xf32> -> vector<30x144xf32>
    %487 = arith.addf %482, %486 : vector<30x144xf32>
    %488 = vector.extract_strided_slice %487 {offsets = [0, 0], sizes = [8, 144], strides = [1, 1]} : vector<30x144xf32> to vector<8x144xf32>
    %489 = vector.extract_strided_slice %487 {offsets = [16, 0], sizes = [8, 144], strides = [1, 1]} : vector<30x144xf32> to vector<8x144xf32>
    %490 = tpu.concatenate %488, %489 in 0 : vector<8x144xf32>, vector<8x144xf32> -> vector<16x144xf32>
    %c1296_340 = arith.constant 1296 : index
    %c0_341 = arith.constant 0 : index
    %491 = vector.load %arg6[%c1296_340, %c0_341] : memref<4816x144xbf16, #tpu.memory_space<vmem>>, vector<1x144xbf16>
    %492 = arith.extf %491 : vector<1x144xbf16> to vector<1x144xf32>
    %493 = vector.broadcast %492 : vector<1x144xf32> to vector<16x144xf32>
    %494 = arith.addf %490, %493 : vector<16x144xf32>
    %cst_342 = arith.constant 0.000000e+00 : f32
    %495 = vector.broadcast %cst_342 : f32 to vector<16x144xf32>
    %496 = arith.maximumf %494, %495 : vector<16x144xf32>
    %497 = vector.extract_strided_slice %496 {offsets = [0, 0], sizes = [8, 144], strides = [1, 1]} : vector<16x144xf32> to vector<8x144xf32>
    %c1_343 = arith.constant 1 : index
    %c18_344 = arith.constant 18 : index
    %498 = vector.load %arg11[%c1_343, %c18_344] : memref<32x180xf32, #tpu.memory_space<vmem>>, vector<8x144xf32>
    tpu.vector_store %arg11[%c1_343, %c18_344], %497 {strides = array<i32>} : memref<32x180xf32, #tpu.memory_space<vmem>>, vector<8x144xf32>,
    %499 = vector.extract_strided_slice %496 {offsets = [8, 0], sizes = [8, 144], strides = [1, 1]} : vector<16x144xf32> to vector<8x144xf32>
    %c17_345 = arith.constant 17 : index
    %c18_346 = arith.constant 18 : index
    %500 = vector.load %arg11[%c17_345, %c18_346] : memref<32x180xf32, #tpu.memory_space<vmem>>, vector<8x144xf32>
    tpu.vector_store %arg11[%c17_345, %c18_346], %499 {strides = array<i32>} : memref<32x180xf32, #tpu.memory_space<vmem>>, vector<8x144xf32>,
    %c0_347 = arith.constant 0 : index
    %c0_348 = arith.constant 0 : index
    %501 = vector.load %arg11[%c0_347, %c0_348] : memref<32x180xf32, #tpu.memory_space<vmem>>, vector<30x180xf32>
    %c1312 = arith.constant 1312 : index
    %c0_349 = arith.constant 0 : index
    %502 = vector.load %arg6[%c1312, %c0_349] : memref<4816x144xbf16, #tpu.memory_space<vmem>>, vector<180x144xbf16>
    %503 = arith.truncf %501 : vector<30x180xf32> to vector<30x180xbf16>
    %cst_350 = arith.constant dense<0.000000e+00> : vector<30x144xf32>
    %504 = tpu.matmul %503, %502, %cst_350 {dimension_numbers = #tpu.dot_dimension_numbers<[1], [0], [0], [1], [0, 0, 1, 1], [], []>} : vector<30x180xbf16>, vector<180x144xbf16>, vector<30x144xf32> -> vector<30x144xf32>
    %c1_351 = arith.constant 1 : index
    %c0_352 = arith.constant 0 : index
    %505 = vector.load %arg11[%c1_351, %c0_352] : memref<32x180xf32, #tpu.memory_space<vmem>>, vector<30x180xf32>
    %c1504 = arith.constant 1504 : index
    %c0_353 = arith.constant 0 : index
    %506 = vector.load %arg6[%c1504, %c0_353] : memref<4816x144xbf16, #tpu.memory_space<vmem>>, vector<180x144xbf16>
    %507 = arith.truncf %505 : vector<30x180xf32> to vector<30x180xbf16>
    %cst_354 = arith.constant dense<0.000000e+00> : vector<30x144xf32>
    %508 = tpu.matmul %507, %506, %cst_354 {dimension_numbers = #tpu.dot_dimension_numbers<[1], [0], [0], [1], [0, 0, 1, 1], [], []>} : vector<30x180xbf16>, vector<180x144xbf16>, vector<30x144xf32> -> vector<30x144xf32>
    %509 = arith.addf %504, %508 : vector<30x144xf32>
    %c2_355 = arith.constant 2 : index
    %c0_356 = arith.constant 0 : index
    %510 = vector.load %arg11[%c2_355, %c0_356] : memref<32x180xf32, #tpu.memory_space<vmem>>, vector<30x180xf32>
    %c1696 = arith.constant 1696 : index
    %c0_357 = arith.constant 0 : index
    %511 = vector.load %arg6[%c1696, %c0_357] : memref<4816x144xbf16, #tpu.memory_space<vmem>>, vector<180x144xbf16>
    %512 = arith.truncf %510 : vector<30x180xf32> to vector<30x180xbf16>
    %cst_358 = arith.constant dense<0.000000e+00> : vector<30x144xf32>
    %513 = tpu.matmul %512, %511, %cst_358 {dimension_numbers = #tpu.dot_dimension_numbers<[1], [0], [0], [1], [0, 0, 1, 1], [], []>} : vector<30x180xbf16>, vector<180x144xbf16>, vector<30x144xf32> -> vector<30x144xf32>
    %514 = arith.addf %509, %513 : vector<30x144xf32>
    %515 = vector.extract_strided_slice %514 {offsets = [0, 0], sizes = [8, 144], strides = [1, 1]} : vector<30x144xf32> to vector<8x144xf32>
    %516 = vector.extract_strided_slice %514 {offsets = [16, 0], sizes = [8, 144], strides = [1, 1]} : vector<30x144xf32> to vector<8x144xf32>
    %517 = tpu.concatenate %515, %516 in 0 : vector<8x144xf32>, vector<8x144xf32> -> vector<16x144xf32>
    %c1888 = arith.constant 1888 : index
    %c0_359 = arith.constant 0 : index
    %518 = vector.load %arg6[%c1888, %c0_359] : memref<4816x144xbf16, #tpu.memory_space<vmem>>, vector<1x144xbf16>
    %519 = arith.extf %518 : vector<1x144xbf16> to vector<1x144xf32>
    %520 = vector.broadcast %519 : vector<1x144xf32> to vector<16x144xf32>
    %521 = arith.addf %517, %520 : vector<16x144xf32>
    %cst_360 = arith.constant 0.000000e+00 : f32
    %522 = vector.broadcast %cst_360 : f32 to vector<16x144xf32>
    %523 = arith.maximumf %521, %522 : vector<16x144xf32>
    %524 = vector.extract_strided_slice %523 {offsets = [0, 0], sizes = [8, 144], strides = [1, 1]} : vector<16x144xf32> to vector<8x144xf32>
    %c1_361 = arith.constant 1 : index
    %c18_362 = arith.constant 18 : index
    %525 = vector.load %arg11[%c1_361, %c18_362] : memref<32x180xf32, #tpu.memory_space<vmem>>, vector<8x144xf32>
    tpu.vector_store %arg11[%c1_361, %c18_362], %524 {strides = array<i32>} : memref<32x180xf32, #tpu.memory_space<vmem>>, vector<8x144xf32>,
    %526 = vector.extract_strided_slice %523 {offsets = [8, 0], sizes = [8, 144], strides = [1, 1]} : vector<16x144xf32> to vector<8x144xf32>
    %c17_363 = arith.constant 17 : index
    %c18_364 = arith.constant 18 : index
    %527 = vector.load %arg11[%c17_363, %c18_364] : memref<32x180xf32, #tpu.memory_space<vmem>>, vector<8x144xf32>
    tpu.vector_store %arg11[%c17_363, %c18_364], %526 {strides = array<i32>} : memref<32x180xf32, #tpu.memory_space<vmem>>, vector<8x144xf32>,
    %c0_365 = arith.constant 0 : index
    %c0_366 = arith.constant 0 : index
    %528 = vector.load %arg11[%c0_365, %c0_366] : memref<32x180xf32, #tpu.memory_space<vmem>>, vector<30x180xf32>
    %c1904 = arith.constant 1904 : index
    %c0_367 = arith.constant 0 : index
    %529 = vector.load %arg6[%c1904, %c0_367] : memref<4816x144xbf16, #tpu.memory_space<vmem>>, vector<180x128xbf16>
    %530 = arith.truncf %528 : vector<30x180xf32> to vector<30x180xbf16>
    %cst_368 = arith.constant dense<0.000000e+00> : vector<30x128xf32>
    %531 = tpu.matmul %530, %529, %cst_368 {dimension_numbers = #tpu.dot_dimension_numbers<[1], [0], [0], [1], [0, 0, 1, 1], [], []>} : vector<30x180xbf16>, vector<180x128xbf16>, vector<30x128xf32> -> vector<30x128xf32>
    %c1_369 = arith.constant 1 : index
    %c0_370 = arith.constant 0 : index
    %532 = vector.load %arg11[%c1_369, %c0_370] : memref<32x180xf32, #tpu.memory_space<vmem>>, vector<30x180xf32>
    %c2096 = arith.constant 2096 : index
    %c0_371 = arith.constant 0 : index
    %533 = vector.load %arg6[%c2096, %c0_371] : memref<4816x144xbf16, #tpu.memory_space<vmem>>, vector<180x128xbf16>
    %534 = arith.truncf %532 : vector<30x180xf32> to vector<30x180xbf16>
    %cst_372 = arith.constant dense<0.000000e+00> : vector<30x128xf32>
    %535 = tpu.matmul %534, %533, %cst_372 {dimension_numbers = #tpu.dot_dimension_numbers<[1], [0], [0], [1], [0, 0, 1, 1], [], []>} : vector<30x180xbf16>, vector<180x128xbf16>, vector<30x128xf32> -> vector<30x128xf32>
    %536 = arith.addf %531, %535 : vector<30x128xf32>
    %c2_373 = arith.constant 2 : index
    %c0_374 = arith.constant 0 : index
    %537 = vector.load %arg11[%c2_373, %c0_374] : memref<32x180xf32, #tpu.memory_space<vmem>>, vector<30x180xf32>
    %c2288 = arith.constant 2288 : index
    %c0_375 = arith.constant 0 : index
    %538 = vector.load %arg6[%c2288, %c0_375] : memref<4816x144xbf16, #tpu.memory_space<vmem>>, vector<180x128xbf16>
    %539 = arith.truncf %537 : vector<30x180xf32> to vector<30x180xbf16>
    %cst_376 = arith.constant dense<0.000000e+00> : vector<30x128xf32>
    %540 = tpu.matmul %539, %538, %cst_376 {dimension_numbers = #tpu.dot_dimension_numbers<[1], [0], [0], [1], [0, 0, 1, 1], [], []>} : vector<30x180xbf16>, vector<180x128xbf16>, vector<30x128xf32> -> vector<30x128xf32>
    %541 = arith.addf %536, %540 : vector<30x128xf32>
    %542 = vector.extract_strided_slice %541 {offsets = [0, 0], sizes = [8, 128], strides = [1, 1]} : vector<30x128xf32> to vector<8x128xf32>
    %543 = vector.extract_strided_slice %541 {offsets = [16, 0], sizes = [8, 128], strides = [1, 1]} : vector<30x128xf32> to vector<8x128xf32>
    %544 = tpu.concatenate %542, %543 in 0 : vector<8x128xf32>, vector<8x128xf32> -> vector<16x128xf32>
    %c2480 = arith.constant 2480 : index
    %c0_377 = arith.constant 0 : index
    %545 = vector.load %arg6[%c2480, %c0_377] : memref<4816x144xbf16, #tpu.memory_space<vmem>>, vector<1x128xbf16>
    %546 = arith.extf %545 : vector<1x128xbf16> to vector<1x128xf32>
    %547 = vector.broadcast %546 : vector<1x128xf32> to vector<16x128xf32>
    %548 = arith.addf %544, %547 : vector<16x128xf32>
    %cst_378 = arith.constant 0.000000e+00 : f32
    %549 = vector.broadcast %cst_378 : f32 to vector<16x128xf32>
    %550 = arith.maximumf %548, %549 : vector<16x128xf32>
    %c4448 = arith.constant 4448 : index
    %c0_379 = arith.constant 0 : index
    %551 = vector.load %arg6[%c4448, %c0_379] : memref<4816x144xbf16, #tpu.memory_space<vmem>>, vector<128x128xbf16>
    %552 = arith.truncf %550 : vector<16x128xf32> to vector<16x128xbf16>
    %cst_380 = arith.constant dense<0.000000e+00> : vector<16x128xf32>
    %553 = tpu.matmul %552, %551, %cst_380 {dimension_numbers = #tpu.dot_dimension_numbers<[1], [0], [0], [1], [0, 0, 1, 1], [], []>} : vector<16x128xbf16>, vector<128x128xbf16>, vector<16x128xf32> -> vector<16x128xf32>
    %c4576 = arith.constant 4576 : index
    %c0_381 = arith.constant 0 : index
    %554 = vector.load %arg6[%c4576, %c0_381] : memref<4816x144xbf16, #tpu.memory_space<vmem>>, vector<1x128xbf16>
    %555 = arith.extf %554 : vector<1x128xbf16> to vector<1x128xf32>
    %556 = vector.broadcast %555 : vector<1x128xf32> to vector<16x128xf32>
    %557 = arith.addf %553, %556 : vector<16x128xf32>
    %558 = vector.extract_strided_slice %557 {offsets = [0, 0], sizes = [8, 128], strides = [1, 1]} : vector<16x128xf32> to vector<8x128xf32>
    %c1_382 = arith.constant 1 : index
    %c16_383 = arith.constant 16 : index
    %559 = vector.load %arg12[%c1_382, %c16_383] : memref<32x160xf32, #tpu.memory_space<vmem>>, vector<8x128xf32>
    tpu.vector_store %arg12[%c1_382, %c16_383], %558 {strides = array<i32>} : memref<32x160xf32, #tpu.memory_space<vmem>>, vector<8x128xf32>,
    %560 = vector.extract_strided_slice %557 {offsets = [8, 0], sizes = [8, 128], strides = [1, 1]} : vector<16x128xf32> to vector<8x128xf32>
    %c17_384 = arith.constant 17 : index
    %c16_385 = arith.constant 16 : index
    %561 = vector.load %arg12[%c17_384, %c16_385] : memref<32x160xf32, #tpu.memory_space<vmem>>, vector<8x128xf32>
    tpu.vector_store %arg12[%c17_384, %c16_385], %560 {strides = array<i32>} : memref<32x160xf32, #tpu.memory_space<vmem>>, vector<8x128xf32>,
    %c0_386 = arith.constant 0 : index
    %c0_387 = arith.constant 0 : index
    %562 = vector.load %arg12[%c0_386, %c0_387] : memref<32x160xf32, #tpu.memory_space<vmem>>, vector<30x160xf32>
    %c2496 = arith.constant 2496 : index
    %c0_388 = arith.constant 0 : index
    %563 = vector.load %arg6[%c2496, %c0_388] : memref<4816x144xbf16, #tpu.memory_space<vmem>>, vector<160x128xbf16>
    %564 = arith.truncf %562 : vector<30x160xf32> to vector<30x160xbf16>
    %cst_389 = arith.constant dense<0.000000e+00> : vector<30x128xf32>
    %565 = tpu.matmul %564, %563, %cst_389 {dimension_numbers = #tpu.dot_dimension_numbers<[1], [0], [0], [1], [0, 0, 1, 1], [], []>} : vector<30x160xbf16>, vector<160x128xbf16>, vector<30x128xf32> -> vector<30x128xf32>
    %c1_390 = arith.constant 1 : index
    %c0_391 = arith.constant 0 : index
    %566 = vector.load %arg12[%c1_390, %c0_391] : memref<32x160xf32, #tpu.memory_space<vmem>>, vector<30x160xf32>
    %c2656 = arith.constant 2656 : index
    %c0_392 = arith.constant 0 : index
    %567 = vector.load %arg6[%c2656, %c0_392] : memref<4816x144xbf16, #tpu.memory_space<vmem>>, vector<160x128xbf16>
    %568 = arith.truncf %566 : vector<30x160xf32> to vector<30x160xbf16>
    %cst_393 = arith.constant dense<0.000000e+00> : vector<30x128xf32>
    %569 = tpu.matmul %568, %567, %cst_393 {dimension_numbers = #tpu.dot_dimension_numbers<[1], [0], [0], [1], [0, 0, 1, 1], [], []>} : vector<30x160xbf16>, vector<160x128xbf16>, vector<30x128xf32> -> vector<30x128xf32>
    %570 = arith.addf %565, %569 : vector<30x128xf32>
    %c2_394 = arith.constant 2 : index
    %c0_395 = arith.constant 0 : index
    %571 = vector.load %arg12[%c2_394, %c0_395] : memref<32x160xf32, #tpu.memory_space<vmem>>, vector<30x160xf32>
    %c2816_396 = arith.constant 2816 : index
    %c0_397 = arith.constant 0 : index
    %572 = vector.load %arg6[%c2816_396, %c0_397] : memref<4816x144xbf16, #tpu.memory_space<vmem>>, vector<160x128xbf16>
    %573 = arith.truncf %571 : vector<30x160xf32> to vector<30x160xbf16>
    %cst_398 = arith.constant dense<0.000000e+00> : vector<30x128xf32>
    %574 = tpu.matmul %573, %572, %cst_398 {dimension_numbers = #tpu.dot_dimension_numbers<[1], [0], [0], [1], [0, 0, 1, 1], [], []>} : vector<30x160xbf16>, vector<160x128xbf16>, vector<30x128xf32> -> vector<30x128xf32>
    %575 = arith.addf %570, %574 : vector<30x128xf32>
    %576 = vector.extract_strided_slice %575 {offsets = [0, 0], sizes = [8, 128], strides = [1, 1]} : vector<30x128xf32> to vector<8x128xf32>
    %577 = vector.extract_strided_slice %575 {offsets = [16, 0], sizes = [8, 128], strides = [1, 1]} : vector<30x128xf32> to vector<8x128xf32>
    %578 = tpu.concatenate %576, %577 in 0 : vector<8x128xf32>, vector<8x128xf32> -> vector<16x128xf32>
    %c2976 = arith.constant 2976 : index
    %c0_399 = arith.constant 0 : index
    %579 = vector.load %arg6[%c2976, %c0_399] : memref<4816x144xbf16, #tpu.memory_space<vmem>>, vector<1x128xbf16>
    %580 = arith.extf %579 : vector<1x128xbf16> to vector<1x128xf32>
    %581 = vector.broadcast %580 : vector<1x128xf32> to vector<16x128xf32>
    %582 = arith.addf %578, %581 : vector<16x128xf32>
    %cst_400 = arith.constant 0.000000e+00 : f32
    %583 = vector.broadcast %cst_400 : f32 to vector<16x128xf32>
    %584 = arith.maximumf %582, %583 : vector<16x128xf32>
    %585 = vector.extract_strided_slice %584 {offsets = [0, 0], sizes = [8, 128], strides = [1, 1]} : vector<16x128xf32> to vector<8x128xf32>
    %c1_401 = arith.constant 1 : index
    %c16_402 = arith.constant 16 : index
    %586 = vector.load %arg12[%c1_401, %c16_402] : memref<32x160xf32, #tpu.memory_space<vmem>>, vector<8x128xf32>
    tpu.vector_store %arg12[%c1_401, %c16_402], %585 {strides = array<i32>} : memref<32x160xf32, #tpu.memory_space<vmem>>, vector<8x128xf32>,
    %587 = vector.extract_strided_slice %584 {offsets = [8, 0], sizes = [8, 128], strides = [1, 1]} : vector<16x128xf32> to vector<8x128xf32>
    %c17_403 = arith.constant 17 : index
    %c16_404 = arith.constant 16 : index
    %588 = vector.load %arg12[%c17_403, %c16_404] : memref<32x160xf32, #tpu.memory_space<vmem>>, vector<8x128xf32>
    tpu.vector_store %arg12[%c17_403, %c16_404], %587 {strides = array<i32>} : memref<32x160xf32, #tpu.memory_space<vmem>>, vector<8x128xf32>,
    %c0_405 = arith.constant 0 : index
    %c0_406 = arith.constant 0 : index
    %589 = vector.load %arg12[%c0_405, %c0_406] : memref<32x160xf32, #tpu.memory_space<vmem>>, vector<30x160xf32>
    %c2992 = arith.constant 2992 : index
    %c0_407 = arith.constant 0 : index
    %590 = vector.load %arg6[%c2992, %c0_407] : memref<4816x144xbf16, #tpu.memory_space<vmem>>, vector<160x128xbf16>
    %591 = arith.truncf %589 : vector<30x160xf32> to vector<30x160xbf16>
    %cst_408 = arith.constant dense<0.000000e+00> : vector<30x128xf32>
    %592 = tpu.matmul %591, %590, %cst_408 {dimension_numbers = #tpu.dot_dimension_numbers<[1], [0], [0], [1], [0, 0, 1, 1], [], []>} : vector<30x160xbf16>, vector<160x128xbf16>, vector<30x128xf32> -> vector<30x128xf32>
    %c1_409 = arith.constant 1 : index
    %c0_410 = arith.constant 0 : index
    %593 = vector.load %arg12[%c1_409, %c0_410] : memref<32x160xf32, #tpu.memory_space<vmem>>, vector<30x160xf32>
    %c3152 = arith.constant 3152 : index
    %c0_411 = arith.constant 0 : index
    %594 = vector.load %arg6[%c3152, %c0_411] : memref<4816x144xbf16, #tpu.memory_space<vmem>>, vector<160x128xbf16>
    %595 = arith.truncf %593 : vector<30x160xf32> to vector<30x160xbf16>
    %cst_412 = arith.constant dense<0.000000e+00> : vector<30x128xf32>
    %596 = tpu.matmul %595, %594, %cst_412 {dimension_numbers = #tpu.dot_dimension_numbers<[1], [0], [0], [1], [0, 0, 1, 1], [], []>} : vector<30x160xbf16>, vector<160x128xbf16>, vector<30x128xf32> -> vector<30x128xf32>
    %597 = arith.addf %592, %596 : vector<30x128xf32>
    %c2_413 = arith.constant 2 : index
    %c0_414 = arith.constant 0 : index
    %598 = vector.load %arg12[%c2_413, %c0_414] : memref<32x160xf32, #tpu.memory_space<vmem>>, vector<30x160xf32>
    %c3312 = arith.constant 3312 : index
    %c0_415 = arith.constant 0 : index
    %599 = vector.load %arg6[%c3312, %c0_415] : memref<4816x144xbf16, #tpu.memory_space<vmem>>, vector<160x128xbf16>
    %600 = arith.truncf %598 : vector<30x160xf32> to vector<30x160xbf16>
    %cst_416 = arith.constant dense<0.000000e+00> : vector<30x128xf32>
    %601 = tpu.matmul %600, %599, %cst_416 {dimension_numbers = #tpu.dot_dimension_numbers<[1], [0], [0], [1], [0, 0, 1, 1], [], []>} : vector<30x160xbf16>, vector<160x128xbf16>, vector<30x128xf32> -> vector<30x128xf32>
    %602 = arith.addf %597, %601 : vector<30x128xf32>
    %603 = vector.extract_strided_slice %602 {offsets = [0, 0], sizes = [8, 128], strides = [1, 1]} : vector<30x128xf32> to vector<8x128xf32>
    %604 = vector.extract_strided_slice %602 {offsets = [16, 0], sizes = [8, 128], strides = [1, 1]} : vector<30x128xf32> to vector<8x128xf32>
    %605 = tpu.concatenate %603, %604 in 0 : vector<8x128xf32>, vector<8x128xf32> -> vector<16x128xf32>
    %606 = arith.addf %557, %605 : vector<16x128xf32>
    %cst_417 = arith.constant 0.000000e+00 : f32
    %607 = vector.broadcast %cst_417 : f32 to vector<16x128xf32>
    %608 = arith.maximumf %606, %607 : vector<16x128xf32>
    %c64_418 = arith.constant 64 : index
    %c0_419 = arith.constant 0 : index
    %609 = vector.load %arg6[%c64_418, %c0_419] : memref<4816x144xbf16, #tpu.memory_space<vmem>>, vector<2x16xbf16>
    %610 = arith.truncf %608 : vector<16x128xf32> to vector<16x128xbf16>
    %cst_420 = arith.constant dense<0.000000e+00> : vector<2x128xf32>
    %611 = tpu.matmul %609, %610, %cst_420 {dimension_numbers = #tpu.dot_dimension_numbers<[1], [0], [0], [1], [0, 0, 1, 1], [], []>} : vector<2x16xbf16>, vector<16x128xbf16>, vector<2x128xf32> -> vector<2x128xf32>
    %c80_421 = arith.constant 80 : index
    %c0_422 = arith.constant 0 : index
    %612 = vector.load %arg6[%c80_421, %c0_422] : memref<4816x144xbf16, #tpu.memory_space<vmem>>, vector<128x16xbf16>
    %613 = arith.truncf %611 : vector<2x128xf32> to vector<2x128xbf16>
    %cst_423 = arith.constant dense<0.000000e+00> : vector<2x16xf32>
    %614 = tpu.matmul %613, %612, %cst_423 {dimension_numbers = #tpu.dot_dimension_numbers<[1], [0], [0], [1], [0, 0, 1, 1], [], []>} : vector<2x128xbf16>, vector<128x16xbf16>, vector<2x16xf32> -> vector<2x16xf32>
    %c4736 = arith.constant 4736 : index
    %c0_424 = arith.constant 0 : index
    %615 = vector.load %arg6[%c4736, %c0_424] : memref<4816x144xbf16, #tpu.memory_space<vmem>>, vector<16x16xbf16>
    %616 = arith.truncf %614 : vector<2x16xf32> to vector<2x16xbf16>
    %cst_425 = arith.constant dense<0.000000e+00> : vector<2x16xf32>
    %617 = tpu.matmul %616, %615, %cst_425 {dimension_numbers = #tpu.dot_dimension_numbers<[1], [0], [0], [1], [0, 0, 1, 1], [], []>} : vector<2x16xbf16>, vector<16x16xbf16>, vector<2x16xf32> -> vector<2x16xf32>
    %c4752 = arith.constant 4752 : index
    %c0_426 = arith.constant 0 : index
    %618 = vector.load %arg6[%c4752, %c0_426] : memref<4816x144xbf16, #tpu.memory_space<vmem>>, vector<16x16xbf16>
    %619 = arith.truncf %371 : vector<2x16xf32> to vector<2x16xbf16>
    %cst_427 = arith.constant dense<0.000000e+00> : vector<2x16xf32>
    %620 = tpu.matmul %619, %618, %cst_427 {dimension_numbers = #tpu.dot_dimension_numbers<[1], [0], [0], [1], [0, 0, 1, 1], [], []>} : vector<2x16xbf16>, vector<16x16xbf16>, vector<2x16xf32> -> vector<2x16xf32>
    %621 = arith.addf %617, %620 : vector<2x16xf32>
    %c4768 = arith.constant 4768 : index
    %c0_428 = arith.constant 0 : index
    %622 = vector.load %arg6[%c4768, %c0_428] : memref<4816x144xbf16, #tpu.memory_space<vmem>>, vector<1x16xbf16>
    %623 = arith.extf %622 : vector<1x16xbf16> to vector<1x16xf32>
    %624 = vector.broadcast %623 : vector<1x16xf32> to vector<2x16xf32>
    %625 = arith.addf %621, %624 : vector<2x16xf32>
    %cst_429 = arith.constant 0.000000e+00 : f32
    %626 = vector.broadcast %cst_429 : f32 to vector<2x16xf32>
    %627 = arith.maximumf %625, %626 : vector<2x16xf32>
    %c4784 = arith.constant 4784 : index
    %c0_430 = arith.constant 0 : index
    %628 = vector.load %arg6[%c4784, %c0_430] : memref<4816x144xbf16, #tpu.memory_space<vmem>>, vector<16x16xbf16>
    %629 = arith.truncf %627 : vector<2x16xf32> to vector<2x16xbf16>
    %cst_431 = arith.constant dense<0.000000e+00> : vector<2x16xf32>
    %630 = tpu.matmul %629, %628, %cst_431 {dimension_numbers = #tpu.dot_dimension_numbers<[1], [0], [0], [1], [0, 0, 1, 1], [], []>} : vector<2x16xbf16>, vector<16x16xbf16>, vector<2x16xf32> -> vector<2x16xf32>
    %c4800 = arith.constant 4800 : index
    %c0_432 = arith.constant 0 : index
    %631 = vector.load %arg6[%c4800, %c0_432] : memref<4816x144xbf16, #tpu.memory_space<vmem>>, vector<1x16xbf16>
    %632 = arith.extf %631 : vector<1x16xbf16> to vector<1x16xf32>
    %633 = vector.broadcast %632 : vector<1x16xf32> to vector<2x16xf32>
    %634 = arith.addf %630, %633 : vector<2x16xf32>
    %635 = arith.negf %634 : vector<2x16xf32>
    %636 = math.exp %635 : vector<2x16xf32>
    %cst_433 = arith.constant 1.000000e+00 : f32
    %637 = vector.broadcast %cst_433 : f32 to vector<2x16xf32>
    %638 = arith.addf %637, %636 : vector<2x16xf32>
    %639 = arith.divf %637, %638 : vector<2x16xf32>
    %640 = vector.extract_strided_slice %639 {offsets = [0, 0], sizes = [1, 16], strides = [1, 1]} : vector<2x16xf32> to vector<1x16xf32>
    %641 = vector.shape_cast %640 : vector<1x16xf32> to vector<1x16xf32>
    %642 = vector.broadcast %641 : vector<1x16xf32> to vector<8x16xf32>
    %643 = vector.extract_strided_slice %639 {offsets = [1, 0], sizes = [1, 16], strides = [1, 1]} : vector<2x16xf32> to vector<1x16xf32>
    %644 = vector.shape_cast %643 : vector<1x16xf32> to vector<1x16xf32>
    %645 = vector.broadcast %644 : vector<1x16xf32> to vector<8x16xf32>
    %646 = tpu.concatenate %642, %645 in 0 : vector<8x16xf32>, vector<8x16xf32> -> vector<16x16xf32>
    %647 = tpu.concatenate %646, %646, %646, %646, %646, %646, %646, %646 in 1 : vector<16x16xf32>, vector<16x16xf32>, vector<16x16xf32>, vector<16x16xf32>, vector<16x16xf32>, vector<16x16xf32>, vector<16x16xf32>, vector<16x16xf32> -> vector<16x128xf32>
    %648 = arith.mulf %608, %647 : vector<16x128xf32>
    %649 = arith.addf %648, %377 : vector<16x128xf32>
    %c4592 = arith.constant 4592 : index
    %c0_434 = arith.constant 0 : index
    %650 = vector.load %arg6[%c4592, %c0_434] : memref<4816x144xbf16, #tpu.memory_space<vmem>>, vector<128x128xbf16>
    %651 = arith.truncf %649 : vector<16x128xf32> to vector<16x128xbf16>
    %cst_435 = arith.constant dense<0.000000e+00> : vector<16x128xf32>
    %652 = tpu.matmul %651, %650, %cst_435 {dimension_numbers = #tpu.dot_dimension_numbers<[1], [0], [0], [1], [0, 0, 1, 1], [], []>} : vector<16x128xbf16>, vector<128x128xbf16>, vector<16x128xf32> -> vector<16x128xf32>
    %c4720 = arith.constant 4720 : index
    %c0_436 = arith.constant 0 : index
    %653 = vector.load %arg6[%c4720, %c0_436] : memref<4816x144xbf16, #tpu.memory_space<vmem>>, vector<1x128xbf16>
    %654 = arith.extf %653 : vector<1x128xbf16> to vector<1x128xf32>
    %655 = vector.broadcast %654 : vector<1x128xf32> to vector<16x128xf32>
    %656 = arith.addf %652, %655 : vector<16x128xf32>
    %657 = vector.extract_strided_slice %656 {offsets = [0, 0], sizes = [8, 128], strides = [1, 1]} : vector<16x128xf32> to vector<8x128xf32>
    %c1_437 = arith.constant 1 : index
    %c16_438 = arith.constant 16 : index
    %658 = vector.load %arg12[%c1_437, %c16_438] : memref<32x160xf32, #tpu.memory_space<vmem>>, vector<8x128xf32>
    tpu.vector_store %arg12[%c1_437, %c16_438], %657 {strides = array<i32>} : memref<32x160xf32, #tpu.memory_space<vmem>>, vector<8x128xf32>,
    %659 = vector.extract_strided_slice %656 {offsets = [8, 0], sizes = [8, 128], strides = [1, 1]} : vector<16x128xf32> to vector<8x128xf32>
    %c17_439 = arith.constant 17 : index
    %c16_440 = arith.constant 16 : index
    %660 = vector.load %arg12[%c17_439, %c16_440] : memref<32x160xf32, #tpu.memory_space<vmem>>, vector<8x128xf32>
    tpu.vector_store %arg12[%c17_439, %c16_440], %659 {strides = array<i32>} : memref<32x160xf32, #tpu.memory_space<vmem>>, vector<8x128xf32>,
    %c0_441 = arith.constant 0 : index
    %c0_442 = arith.constant 0 : index
    %661 = vector.load %arg12[%c0_441, %c0_442] : memref<32x160xf32, #tpu.memory_space<vmem>>, vector<30x160xf32>
    %c3472 = arith.constant 3472 : index
    %c0_443 = arith.constant 0 : index
    %662 = vector.load %arg6[%c3472, %c0_443] : memref<4816x144xbf16, #tpu.memory_space<vmem>>, vector<160x128xbf16>
    %663 = arith.truncf %661 : vector<30x160xf32> to vector<30x160xbf16>
    %cst_444 = arith.constant dense<0.000000e+00> : vector<30x128xf32>
    %664 = tpu.matmul %663, %662, %cst_444 {dimension_numbers = #tpu.dot_dimension_numbers<[1], [0], [0], [1], [0, 0, 1, 1], [], []>} : vector<30x160xbf16>, vector<160x128xbf16>, vector<30x128xf32> -> vector<30x128xf32>
    %c1_445 = arith.constant 1 : index
    %c0_446 = arith.constant 0 : index
    %665 = vector.load %arg12[%c1_445, %c0_446] : memref<32x160xf32, #tpu.memory_space<vmem>>, vector<30x160xf32>
    %c3632 = arith.constant 3632 : index
    %c0_447 = arith.constant 0 : index
    %666 = vector.load %arg6[%c3632, %c0_447] : memref<4816x144xbf16, #tpu.memory_space<vmem>>, vector<160x128xbf16>
    %667 = arith.truncf %665 : vector<30x160xf32> to vector<30x160xbf16>
    %cst_448 = arith.constant dense<0.000000e+00> : vector<30x128xf32>
    %668 = tpu.matmul %667, %666, %cst_448 {dimension_numbers = #tpu.dot_dimension_numbers<[1], [0], [0], [1], [0, 0, 1, 1], [], []>} : vector<30x160xbf16>, vector<160x128xbf16>, vector<30x128xf32> -> vector<30x128xf32>
    %669 = arith.addf %664, %668 : vector<30x128xf32>
    %c2_449 = arith.constant 2 : index
    %c0_450 = arith.constant 0 : index
    %670 = vector.load %arg12[%c2_449, %c0_450] : memref<32x160xf32, #tpu.memory_space<vmem>>, vector<30x160xf32>
    %c3792 = arith.constant 3792 : index
    %c0_451 = arith.constant 0 : index
    %671 = vector.load %arg6[%c3792, %c0_451] : memref<4816x144xbf16, #tpu.memory_space<vmem>>, vector<160x128xbf16>
    %672 = arith.truncf %670 : vector<30x160xf32> to vector<30x160xbf16>
    %cst_452 = arith.constant dense<0.000000e+00> : vector<30x128xf32>
    %673 = tpu.matmul %672, %671, %cst_452 {dimension_numbers = #tpu.dot_dimension_numbers<[1], [0], [0], [1], [0, 0, 1, 1], [], []>} : vector<30x160xbf16>, vector<160x128xbf16>, vector<30x128xf32> -> vector<30x128xf32>
    %674 = arith.addf %669, %673 : vector<30x128xf32>
    %675 = vector.extract_strided_slice %674 {offsets = [0, 0], sizes = [8, 128], strides = [1, 1]} : vector<30x128xf32> to vector<8x128xf32>
    %676 = vector.extract_strided_slice %674 {offsets = [16, 0], sizes = [8, 128], strides = [1, 1]} : vector<30x128xf32> to vector<8x128xf32>
    %677 = tpu.concatenate %675, %676 in 0 : vector<8x128xf32>, vector<8x128xf32> -> vector<16x128xf32>
    %c3952 = arith.constant 3952 : index
    %c0_453 = arith.constant 0 : index
    %678 = vector.load %arg6[%c3952, %c0_453] : memref<4816x144xbf16, #tpu.memory_space<vmem>>, vector<1x128xbf16>
    %679 = arith.extf %678 : vector<1x128xbf16> to vector<1x128xf32>
    %680 = vector.broadcast %679 : vector<1x128xf32> to vector<16x128xf32>
    %681 = arith.addf %677, %680 : vector<16x128xf32>
    %cst_454 = arith.constant 0.000000e+00 : f32
    %682 = vector.broadcast %cst_454 : f32 to vector<16x128xf32>
    %683 = arith.maximumf %681, %682 : vector<16x128xf32>
    %684 = vector.extract_strided_slice %683 {offsets = [0, 0], sizes = [8, 128], strides = [1, 1]} : vector<16x128xf32> to vector<8x128xf32>
    %c1_455 = arith.constant 1 : index
    %c16_456 = arith.constant 16 : index
    %685 = vector.load %arg12[%c1_455, %c16_456] : memref<32x160xf32, #tpu.memory_space<vmem>>, vector<8x128xf32>
    tpu.vector_store %arg12[%c1_455, %c16_456], %684 {strides = array<i32>} : memref<32x160xf32, #tpu.memory_space<vmem>>, vector<8x128xf32>,
    %686 = vector.extract_strided_slice %683 {offsets = [8, 0], sizes = [8, 128], strides = [1, 1]} : vector<16x128xf32> to vector<8x128xf32>
    %c17_457 = arith.constant 17 : index
    %c16_458 = arith.constant 16 : index
    %687 = vector.load %arg12[%c17_457, %c16_458] : memref<32x160xf32, #tpu.memory_space<vmem>>, vector<8x128xf32>
    tpu.vector_store %arg12[%c17_457, %c16_458], %686 {strides = array<i32>} : memref<32x160xf32, #tpu.memory_space<vmem>>, vector<8x128xf32>,
    %c0_459 = arith.constant 0 : index
    %c0_460 = arith.constant 0 : index
    %688 = vector.load %arg12[%c0_459, %c0_460] : memref<32x160xf32, #tpu.memory_space<vmem>>, vector<30x160xf32>
    %c3968 = arith.constant 3968 : index
    %c0_461 = arith.constant 0 : index
    %689 = vector.load %arg6[%c3968, %c0_461] : memref<4816x144xbf16, #tpu.memory_space<vmem>>, vector<160x128xbf16>
    %690 = arith.truncf %688 : vector<30x160xf32> to vector<30x160xbf16>
    %cst_462 = arith.constant dense<0.000000e+00> : vector<30x128xf32>
    %691 = tpu.matmul %690, %689, %cst_462 {dimension_numbers = #tpu.dot_dimension_numbers<[1], [0], [0], [1], [0, 0, 1, 1], [], []>} : vector<30x160xbf16>, vector<160x128xbf16>, vector<30x128xf32> -> vector<30x128xf32>
    %c1_463 = arith.constant 1 : index
    %c0_464 = arith.constant 0 : index
    %692 = vector.load %arg12[%c1_463, %c0_464] : memref<32x160xf32, #tpu.memory_space<vmem>>, vector<30x160xf32>
    %c4128 = arith.constant 4128 : index
    %c0_465 = arith.constant 0 : index
    %693 = vector.load %arg6[%c4128, %c0_465] : memref<4816x144xbf16, #tpu.memory_space<vmem>>, vector<160x128xbf16>
    %694 = arith.truncf %692 : vector<30x160xf32> to vector<30x160xbf16>
    %cst_466 = arith.constant dense<0.000000e+00> : vector<30x128xf32>
    %695 = tpu.matmul %694, %693, %cst_466 {dimension_numbers = #tpu.dot_dimension_numbers<[1], [0], [0], [1], [0, 0, 1, 1], [], []>} : vector<30x160xbf16>, vector<160x128xbf16>, vector<30x128xf32> -> vector<30x128xf32>
    %696 = arith.addf %691, %695 : vector<30x128xf32>
    %c2_467 = arith.constant 2 : index
    %c0_468 = arith.constant 0 : index
    %697 = vector.load %arg12[%c2_467, %c0_468] : memref<32x160xf32, #tpu.memory_space<vmem>>, vector<30x160xf32>
    %c4288 = arith.constant 4288 : index
    %c0_469 = arith.constant 0 : index
    %698 = vector.load %arg6[%c4288, %c0_469] : memref<4816x144xbf16, #tpu.memory_space<vmem>>, vector<160x128xbf16>
    %699 = arith.truncf %697 : vector<30x160xf32> to vector<30x160xbf16>
    %cst_470 = arith.constant dense<0.000000e+00> : vector<30x128xf32>
    %700 = tpu.matmul %699, %698, %cst_470 {dimension_numbers = #tpu.dot_dimension_numbers<[1], [0], [0], [1], [0, 0, 1, 1], [], []>} : vector<30x160xbf16>, vector<160x128xbf16>, vector<30x128xf32> -> vector<30x128xf32>
    %701 = arith.addf %696, %700 : vector<30x128xf32>
    %702 = vector.extract_strided_slice %701 {offsets = [0, 0], sizes = [8, 128], strides = [1, 1]} : vector<30x128xf32> to vector<8x128xf32>
    %703 = vector.extract_strided_slice %701 {offsets = [16, 0], sizes = [8, 128], strides = [1, 1]} : vector<30x128xf32> to vector<8x128xf32>
    %704 = tpu.concatenate %702, %703 in 0 : vector<8x128xf32>, vector<8x128xf32> -> vector<16x128xf32>
    %705 = arith.addf %656, %704 : vector<16x128xf32>
    %cst_471 = arith.constant 0.000000e+00 : f32
    %706 = vector.broadcast %cst_471 : f32 to vector<16x128xf32>
    %707 = arith.maximumf %705, %706 : vector<16x128xf32>
    %cst_472 = arith.constant 0.000000e+00 : f32
    %708 = vector.broadcast %cst_472 : f32 to vector<48x288xf32>
    %c0_473 = arith.constant 0 : index
    %c0_474 = arith.constant 0 : index
    %709 = vector.load %arg13[%c0_473, %c0_474] : memref<48x288xf32, #tpu.memory_space<vmem>>, vector<48x288xf32>
    tpu.vector_store %arg13[%c0_473, %c0_474], %708 {strides = array<i32>} : memref<48x288xf32, #tpu.memory_space<vmem>>, vector<48x288xf32>,
    %cst_475 = arith.constant 0.000000e+00 : f32
    %710 = vector.broadcast %cst_475 : f32 to vector<64x256xf32>
    %c0_476 = arith.constant 0 : index
    %c0_477 = arith.constant 0 : index
    %711 = vector.load %arg14[%c0_476, %c0_477] : memref<64x256xf32, #tpu.memory_space<vmem>>, vector<64x256xf32>
    tpu.vector_store %arg14[%c0_476, %c0_477], %710 {strides = array<i32>} : memref<64x256xf32, #tpu.memory_space<vmem>>, vector<64x256xf32>,
    %c0_478 = arith.constant 0 : index
    %c0_479 = arith.constant 0 : index
    %712 = vector.load %arg7[%c0_478, %c0_479] : memref<2336x256xbf16, #tpu.memory_space<vmem>>, vector<32x16xbf16>
    %713 = arith.truncf %707 : vector<16x128xf32> to vector<16x128xbf16>
    %cst_480 = arith.constant dense<0.000000e+00> : vector<32x128xf32>
    %714 = tpu.matmul %712, %713, %cst_480 {dimension_numbers = #tpu.dot_dimension_numbers<[1], [0], [0], [1], [0, 0, 1, 1], [], []>} : vector<32x16xbf16>, vector<16x128xbf16>, vector<32x128xf32> -> vector<32x128xf32>
    %c32_481 = arith.constant 32 : index
    %c0_482 = arith.constant 0 : index
    %715 = vector.load %arg7[%c32_481, %c0_482] : memref<2336x256xbf16, #tpu.memory_space<vmem>>, vector<128x256xbf16>
    %716 = arith.truncf %714 : vector<32x128xf32> to vector<32x128xbf16>
    %cst_483 = arith.constant dense<0.000000e+00> : vector<32x256xf32>
    %717 = tpu.matmul %716, %715, %cst_483 {dimension_numbers = #tpu.dot_dimension_numbers<[1], [0], [0], [1], [0, 0, 1, 1], [], []>} : vector<32x128xbf16>, vector<128x256xbf16>, vector<32x256xf32> -> vector<32x256xf32>
    %718 = vector.extract_strided_slice %717 {offsets = [0, 0], sizes = [16, 256], strides = [1, 1]} : vector<32x256xf32> to vector<16x256xf32>
    %c1_484 = arith.constant 1 : index
    %c16_485 = arith.constant 16 : index
    %719 = vector.load %arg13[%c1_484, %c16_485] : memref<48x288xf32, #tpu.memory_space<vmem>>, vector<16x256xf32>
    tpu.vector_store %arg13[%c1_484, %c16_485], %718 {strides = array<i32>} : memref<48x288xf32, #tpu.memory_space<vmem>>, vector<16x256xf32>,
    %720 = vector.extract_strided_slice %717 {offsets = [16, 0], sizes = [16, 256], strides = [1, 1]} : vector<32x256xf32> to vector<16x256xf32>
    %c25 = arith.constant 25 : index
    %c16_486 = arith.constant 16 : index
    %721 = vector.load %arg13[%c25, %c16_486] : memref<48x288xf32, #tpu.memory_space<vmem>>, vector<16x256xf32>
    tpu.vector_store %arg13[%c25, %c16_486], %720 {strides = array<i32>} : memref<48x288xf32, #tpu.memory_space<vmem>>, vector<16x256xf32>,
    %c0_487 = arith.constant 0 : index
    %c0_488 = arith.constant 0 : index
    %722 = vector.load %arg13[%c0_487, %c0_488] : memref<48x288xf32, #tpu.memory_space<vmem>>, vector<46x288xf32>
    %c160_489 = arith.constant 160 : index
    %c0_490 = arith.constant 0 : index
    %723 = vector.load %arg7[%c160_489, %c0_490] : memref<2336x256xbf16, #tpu.memory_space<vmem>>, vector<288x128xbf16>
    %724 = arith.truncf %722 : vector<46x288xf32> to vector<46x288xbf16>
    %cst_491 = arith.constant dense<0.000000e+00> : vector<46x128xf32>
    %725 = tpu.matmul %724, %723, %cst_491 {dimension_numbers = #tpu.dot_dimension_numbers<[1], [0], [0], [1], [0, 0, 1, 1], [], []>} : vector<46x288xbf16>, vector<288x128xbf16>, vector<46x128xf32> -> vector<46x128xf32>
    %c1_492 = arith.constant 1 : index
    %c0_493 = arith.constant 0 : index
    %726 = vector.load %arg13[%c1_492, %c0_493] : memref<48x288xf32, #tpu.memory_space<vmem>>, vector<46x288xf32>
    %c448 = arith.constant 448 : index
    %c0_494 = arith.constant 0 : index
    %727 = vector.load %arg7[%c448, %c0_494] : memref<2336x256xbf16, #tpu.memory_space<vmem>>, vector<288x128xbf16>
    %728 = arith.truncf %726 : vector<46x288xf32> to vector<46x288xbf16>
    %cst_495 = arith.constant dense<0.000000e+00> : vector<46x128xf32>
    %729 = tpu.matmul %728, %727, %cst_495 {dimension_numbers = #tpu.dot_dimension_numbers<[1], [0], [0], [1], [0, 0, 1, 1], [], []>} : vector<46x288xbf16>, vector<288x128xbf16>, vector<46x128xf32> -> vector<46x128xf32>
    %730 = arith.addf %725, %729 : vector<46x128xf32>
    %c2_496 = arith.constant 2 : index
    %c0_497 = arith.constant 0 : index
    %731 = vector.load %arg13[%c2_496, %c0_497] : memref<48x288xf32, #tpu.memory_space<vmem>>, vector<46x288xf32>
    %c736 = arith.constant 736 : index
    %c0_498 = arith.constant 0 : index
    %732 = vector.load %arg7[%c736, %c0_498] : memref<2336x256xbf16, #tpu.memory_space<vmem>>, vector<288x128xbf16>
    %733 = arith.truncf %731 : vector<46x288xf32> to vector<46x288xbf16>
    %cst_499 = arith.constant dense<0.000000e+00> : vector<46x128xf32>
    %734 = tpu.matmul %733, %732, %cst_499 {dimension_numbers = #tpu.dot_dimension_numbers<[1], [0], [0], [1], [0, 0, 1, 1], [], []>} : vector<46x288xbf16>, vector<288x128xbf16>, vector<46x128xf32> -> vector<46x128xf32>
    %735 = arith.addf %730, %734 : vector<46x128xf32>
    %736 = vector.extract_strided_slice %735 {offsets = [0, 0], sizes = [16, 128], strides = [1, 1]} : vector<46x128xf32> to vector<16x128xf32>
    %737 = vector.extract_strided_slice %735 {offsets = [24, 0], sizes = [16, 128], strides = [1, 1]} : vector<46x128xf32> to vector<16x128xf32>
    %738 = tpu.concatenate %736, %737 in 0 : vector<16x128xf32>, vector<16x128xf32> -> vector<32x128xf32>
    %c1024 = arith.constant 1024 : index
    %c0_500 = arith.constant 0 : index
    %739 = vector.load %arg7[%c1024, %c0_500] : memref<2336x256xbf16, #tpu.memory_space<vmem>>, vector<1x128xbf16>
    %740 = arith.extf %739 : vector<1x128xbf16> to vector<1x128xf32>
    %741 = vector.broadcast %740 : vector<1x128xf32> to vector<32x128xf32>
    %742 = arith.addf %738, %741 : vector<32x128xf32>
    %cst_501 = arith.constant 0.000000e+00 : f32
    %743 = vector.broadcast %cst_501 : f32 to vector<32x128xf32>
    %744 = arith.maximumf %742, %743 : vector<32x128xf32>
    %c1040 = arith.constant 1040 : index
    %c0_502 = arith.constant 0 : index
    %745 = vector.load %arg7[%c1040, %c0_502] : memref<2336x256xbf16, #tpu.memory_space<vmem>>, vector<64x32xbf16>
    %746 = arith.truncf %744 : vector<32x128xf32> to vector<32x128xbf16>
    %cst_503 = arith.constant dense<0.000000e+00> : vector<64x128xf32>
    %747 = tpu.matmul %745, %746, %cst_503 {dimension_numbers = #tpu.dot_dimension_numbers<[1], [0], [0], [1], [0, 0, 1, 1], [], []>} : vector<64x32xbf16>, vector<32x128xbf16>, vector<64x128xf32> -> vector<64x128xf32>
    %c1104_504 = arith.constant 1104 : index
    %c0_505 = arith.constant 0 : index
    %748 = vector.load %arg7[%c1104_504, %c0_505] : memref<2336x256xbf16, #tpu.memory_space<vmem>>, vector<128x256xbf16>
    %749 = arith.truncf %747 : vector<64x128xf32> to vector<64x128xbf16>
    %cst_506 = arith.constant dense<0.000000e+00> : vector<64x256xf32>
    %750 = tpu.matmul %749, %748, %cst_506 {dimension_numbers = #tpu.dot_dimension_numbers<[1], [0], [0], [1], [0, 0, 1, 1], [], []>} : vector<64x128xbf16>, vector<128x256xbf16>, vector<64x256xf32> -> vector<64x256xf32>
    %c1232 = arith.constant 1232 : index
    %c0_507 = arith.constant 0 : index
    %751 = vector.load %arg7[%c1232, %c0_507] : memref<2336x256xbf16, #tpu.memory_space<vmem>>, vector<60x64xbf16>
    %752 = arith.truncf %750 : vector<64x256xf32> to vector<64x256xbf16>
    %cst_508 = arith.constant dense<0.000000e+00> : vector<60x256xf32>
    %753 = tpu.matmul %751, %752, %cst_508 {dimension_numbers = #tpu.dot_dimension_numbers<[1], [0], [0], [1], [0, 0, 1, 1], [], []>} : vector<60x64xbf16>, vector<64x256xbf16>, vector<60x256xf32> -> vector<60x256xf32>
    %c1296_509 = arith.constant 1296 : index
    %c0_510 = arith.constant 0 : index
    %754 = vector.load %arg7[%c1296_509, %c0_510] : memref<2336x256xbf16, #tpu.memory_space<vmem>>, vector<256x240xbf16>
    %755 = arith.truncf %753 : vector<60x256xf32> to vector<60x256xbf16>
    %cst_511 = arith.constant dense<0.000000e+00> : vector<60x240xf32>
    %756 = tpu.matmul %755, %754, %cst_511 {dimension_numbers = #tpu.dot_dimension_numbers<[1], [0], [0], [1], [0, 0, 1, 1], [], []>} : vector<60x256xbf16>, vector<256x240xbf16>, vector<60x240xf32> -> vector<60x240xf32>
    %757 = vector.extract_strided_slice %756 {offsets = [0, 0], sizes = [30, 240], strides = [1, 1]} : vector<60x240xf32> to vector<30x240xf32>
    %c1_512 = arith.constant 1 : index
    %c8 = arith.constant 8 : index
    %758 = vector.load %arg14[%c1_512, %c8] : memref<64x256xf32, #tpu.memory_space<vmem>>, vector<30x240xf32>
    tpu.vector_store %arg14[%c1_512, %c8], %757 {strides = array<i32>} : memref<64x256xf32, #tpu.memory_space<vmem>>, vector<30x240xf32>,
    %759 = vector.extract_strided_slice %756 {offsets = [30, 0], sizes = [30, 240], strides = [1, 1]} : vector<60x240xf32> to vector<30x240xf32>
    %c33 = arith.constant 33 : index
    %c8_513 = arith.constant 8 : index
    %760 = vector.load %arg14[%c33, %c8_513] : memref<64x256xf32, #tpu.memory_space<vmem>>, vector<30x240xf32>
    tpu.vector_store %arg14[%c33, %c8_513], %759 {strides = array<i32>} : memref<64x256xf32, #tpu.memory_space<vmem>>, vector<30x240xf32>,
    %c0_514 = arith.constant 0 : index
    %c0_515 = arith.constant 0 : index
    %761 = vector.load %arg14[%c0_514, %c0_515] : memref<64x256xf32, #tpu.memory_space<vmem>>, vector<62x256xf32>
    %c1552 = arith.constant 1552 : index
    %c0_516 = arith.constant 0 : index
    %762 = vector.load %arg7[%c1552, %c0_516] : memref<2336x256xbf16, #tpu.memory_space<vmem>>, vector<256x30xbf16>
    %763 = arith.truncf %761 : vector<62x256xf32> to vector<62x256xbf16>
    %cst_517 = arith.constant dense<0.000000e+00> : vector<62x30xf32>
    %764 = tpu.matmul %763, %762, %cst_517 {dimension_numbers = #tpu.dot_dimension_numbers<[1], [0], [0], [1], [0, 0, 1, 1], [], []>} : vector<62x256xbf16>, vector<256x30xbf16>, vector<62x30xf32> -> vector<62x30xf32>
    %c1_518 = arith.constant 1 : index
    %c0_519 = arith.constant 0 : index
    %765 = vector.load %arg14[%c1_518, %c0_519] : memref<64x256xf32, #tpu.memory_space<vmem>>, vector<62x256xf32>
    %c1808 = arith.constant 1808 : index
    %c0_520 = arith.constant 0 : index
    %766 = vector.load %arg7[%c1808, %c0_520] : memref<2336x256xbf16, #tpu.memory_space<vmem>>, vector<256x30xbf16>
    %767 = arith.truncf %765 : vector<62x256xf32> to vector<62x256xbf16>
    %cst_521 = arith.constant dense<0.000000e+00> : vector<62x30xf32>
    %768 = tpu.matmul %767, %766, %cst_521 {dimension_numbers = #tpu.dot_dimension_numbers<[1], [0], [0], [1], [0, 0, 1, 1], [], []>} : vector<62x256xbf16>, vector<256x30xbf16>, vector<62x30xf32> -> vector<62x30xf32>
    %769 = arith.addf %764, %768 : vector<62x30xf32>
    %c2_522 = arith.constant 2 : index
    %c0_523 = arith.constant 0 : index
    %770 = vector.load %arg14[%c2_522, %c0_523] : memref<64x256xf32, #tpu.memory_space<vmem>>, vector<62x256xf32>
    %c2064 = arith.constant 2064 : index
    %c0_524 = arith.constant 0 : index
    %771 = vector.load %arg7[%c2064, %c0_524] : memref<2336x256xbf16, #tpu.memory_space<vmem>>, vector<256x30xbf16>
    %772 = arith.truncf %770 : vector<62x256xf32> to vector<62x256xbf16>
    %cst_525 = arith.constant dense<0.000000e+00> : vector<62x30xf32>
    %773 = tpu.matmul %772, %771, %cst_525 {dimension_numbers = #tpu.dot_dimension_numbers<[1], [0], [0], [1], [0, 0, 1, 1], [], []>} : vector<62x256xbf16>, vector<256x30xbf16>, vector<62x30xf32> -> vector<62x30xf32>
    %774 = arith.addf %769, %773 : vector<62x30xf32>
    %775 = vector.extract_strided_slice %774 {offsets = [0, 0], sizes = [30, 30], strides = [1, 1]} : vector<62x30xf32> to vector<30x30xf32>
    %776 = vector.extract_strided_slice %774 {offsets = [32, 0], sizes = [30, 30], strides = [1, 1]} : vector<62x30xf32> to vector<30x30xf32>
    %777 = tpu.concatenate %775, %776 in 0 : vector<30x30xf32>, vector<30x30xf32> -> vector<60x30xf32>
    %c2320_526 = arith.constant 2320 : index
    %c0_527 = arith.constant 0 : index
    %778 = vector.load %arg7[%c2320_526, %c0_527] : memref<2336x256xbf16, #tpu.memory_space<vmem>>, vector<1x30xbf16>
    %779 = arith.extf %778 : vector<1x30xbf16> to vector<1x30xf32>
    %780 = vector.broadcast %779 : vector<1x30xf32> to vector<60x30xf32>
    %781 = arith.addf %777, %780 : vector<60x30xf32>
    %cst_528 = arith.constant 0.000000e+00 : f32
    %782 = vector.broadcast %cst_528 : f32 to vector<60x98xf32>
    %783 = tpu.concatenate %781, %782 in 1 : vector<60x30xf32>, vector<60x98xf32> -> vector<60x128xf32>
    %cst_529 = arith.constant 0.000000e+00 : f32
    %784 = vector.broadcast %cst_529 : f32 to vector<4x128xf32>
    %785 = tpu.concatenate %783, %784 in 0 : vector<60x128xf32>, vector<4x128xf32> -> vector<64x128xf32>
    %c0_530 = arith.constant 0 : index
    %c0_531 = arith.constant 0 : index
    %786 = vector.load %arg8[%c0_530, %c0_531] : memref<64x128xf32, #tpu.memory_space<vmem>>, vector<64x128xf32>
    tpu.vector_store %arg8[%c0_530, %c0_531], %785 {strides = array<i32>} : memref<64x128xf32, #tpu.memory_space<vmem>>, vector<64x128xf32>,
    return
  }
  func.func @transform_0(%arg0: i32) -> (i32, i32) {
    %c0_i32 = arith.constant 0 : i32
    %c0_i32_0 = arith.constant 0 : i32
    %c0_i32_1 = arith.constant 0 : i32
    return %c0_i32, %c0_i32_0 : i32, i32
  }
  func.func @transform_1(%arg0: i32) -> (i32, i32) {
    %c0_i32 = arith.constant 0 : i32
    %c0_i32_0 = arith.constant 0 : i32
    %c0_i32_1 = arith.constant 0 : i32
    return %c0_i32, %c0_i32_0 : i32, i32
  }
  func.func @transform_2(%arg0: i32) -> (i32, i32) {
    %c0_i32 = arith.constant 0 : i32
    %c0_i32_0 = arith.constant 0 : i32
    %c0_i32_1 = arith.constant 0 : i32
    return %c0_i32, %c0_i32_0 : i32, i32
  }
  func.func @transform_3(%arg0: i32) -> (i32, i32) {
    %c0_i32 = arith.constant 0 : i32
    %c0_i32_0 = arith.constant 0 : i32
    %c0_i32_1 = arith.constant 0 : i32
    return %c0_i32, %c0_i32_0 : i32, i32
  }
  func.func @transform_4(%arg0: i32) -> (i32, i32) {
    %c0_i32 = arith.constant 0 : i32
    %c0_i32_0 = arith.constant 0 : i32
    %c0_i32_1 = arith.constant 0 : i32
    return %c0_i32, %c0_i32_0 : i32, i32
  }
  func.func @transform_5(%arg0: i32) -> (i32, i32) {
    %c0_i32 = arith.constant 0 : i32
    %c0_i32_0 = arith.constant 0 : i32
    %c0_i32_1 = arith.constant 0 : i32
    return %c0_i32, %c0_i32_0 : i32, i32
  }
  func.func @transform_6(%arg0: i32) -> (i32, i32) {
    %c0_i32 = arith.constant 0 : i32
    %c0_i32_0 = arith.constant 0 : i32
    %c0_i32_1 = arith.constant 0 : i32
    return %c0_i32, %c0_i32_0 : i32, i32
  }
  func.func @transform_7(%arg0: i32) -> (i32, i32) {
    %c0_i32 = arith.constant 0 : i32
    %c0_i32_0 = arith.constant 0 : i32
    %c0_i32_1 = arith.constant 0 : i32
    return %c0_i32, %c0_i32_0 : i32, i32
  }
}

</mosaic_0001>

<bundles_post_ra>
// kernel: _lambda_.1
= control target key start
LH: loop header
LB: loop body
LE: loop exit
PB: predicated region body
PF: predicated region fallthrough
CT: control target
= control target key end

     0   :  { %vm18767_vm0 = vcmask 261120   ;;  %v14832_v0 = vmov 0.0   ;;  %vm18775_vm1 = vmmov 0   ;;  %vm18768_vm2 = vcmask 130048   ;;  %s14834_s23 = smov 68   ;;  %s14835_s24 = smov 34   ;;  %s18759_s0 = inlined_call_operand.vmem [shape: f32[32,16], index: 0, kind: input, shape index: {}]   ;;  %s18760_s1 = inlined_call_operand.vmem [shape: f32[16,8], index: 1, kind: input, shape index: {}]   ;;  %s18761_s4 = inlined_call_operand.vmem [shape: bf16[2848,72], index: 4, kind: input, shape index: {}]   ;;  %s18762_s2 = inlined_call_operand.vmem [shape: f32[4,128], index: 2, kind: input, shape index: {}]   ;;  %s18763_s5 = inlined_call_operand.vmem [shape: bf16[4816,144], index: 5, kind: input, shape index: {}]   ;;  %s18764_s3 = inlined_call_operand.vmem [shape: f32[8,192], index: 3, kind: input, shape index: {}]   ;;  %s18765_s6 = inlined_call_operand.vmem [shape: bf16[2336,256], index: 6, kind: input, shape index: {}]   ;;  %s18766_s7 = inlined_call_operand.vmem [shape: f32[64,128], index: 7, kind: output, shape index: {}]  }
   0x1   :  { %13207 = vmatprep.subr.bf16.mxu0 %v14832_v0  ;;  %3368 = vst [vmem:[#allocation4] sm:$0xff] %v14832_v0  ;;  %3371 = vst [vmem:[#allocation4 + $0x10] sm:$0xff] %v14832_v0  ;;  %13221 = vmatprep.subr.bf16.mxu1 %v14832_v0  ;;  %v27_v1 = vld [vmem:[%s18759_s0] sm:$0xff]  ;;  %v28_v2 = vld [vmem:[%s18759_s0 + $0x8] sm:$0xff]  ;;  %vm18770_vm3 = vcmask 1043456   ;;  %vm18769_vm4 = vcmask 64512   ;;  %v254_v37 = vlaneseq }
   0x2   :  { %3373 = vst [vmem:[#allocation4 + $0x20] sm:$0xff] %v14832_v0  ;;  %3375 = vst [vmem:[#allocation4 + $0x30] sm:$0xff] %v14832_v0  ;;  %v31_v3 = vld [vmem:[%s18760_s1] sm:$0xff]  ;;  %v14969_v4 = vpack.c.bf16 %v28_v2, %v27_v1  ;;  %v32_v5 = vld [vmem:[%s18760_s1 + $0x8] sm:$0xff]  ;;  %13223 = vmatprep.mubr.msk.bf16.mxu1 %vm18775_vm1, %v14832_v0  ;;  %13211 = vmatprep.mubr.msk.bf16.mxu0 %vm18775_vm1, %v14832_v0  ;;  %vm18771_vm5 = vcmask 523264   ;;  %s14836_s27 = smov 51  }
   0x3   :  { %3377 = vst [vmem:[#allocation5] sm:$0xff] %v14832_v0  ;;  %3379 = vst [vmem:[#allocation5 + $0x10] sm:$0xff] %v14832_v0  ;;  %v29_v6 = vld [vmem:[%s18759_s0 + $0x10] sm:$0xff]  ;;  %v14981_v7 = vpack.c.bf16 %v32_v5, %v31_v3  ;;  %v30_v8 = vld [vmem:[%s18759_s0 + $0x18] sm:$0xff]  ;;  %v15069_v39 = vshrl.u32 %v254_v37, 7  ;;  %s14837_s28 = smov 35  }
   0x4   :  { %3381 = vst [vmem:[#allocation5 + $0x20] sm:$0xff] %v14832_v0  ;;  %3383 = vst [vmem:[#allocation5 + $0x30] sm:$0xff] %v14832_v0  ;;  %13208 = vmatpush3.bf16.msra.mxu0 %v14969_v4  ;;  %v139_v9 = vld [vmem:[%s18761_s4 + $0x10] sm:$0xf]  ;;  %v14990_v10 = vpack.c.bf16 %v30_v8, %v29_v6  ;;  %v14017_v11 = vld [vmem:[%s18761_s4 + $0x48] sm:$0xff]   ;;  %s14838_s29 = smov 52  }
   0x5   :  { %8980 = vst [vmem:[#allocation6] sm:$0xff] %v14832_v0  ;;  %8981 = vst [vmem:[#allocation6 + $0x8] sm:$0xff] %v14832_v0  ;;  %13222 = vmatpush3.bf16.msra.mxu1 %v14981_v7  ;;  %13209 = vmatprep.subr.bf16.mxu0 %v14832_v0  ;;  %v39_v12 = vld [vmem:[%s18761_s4] sm:$0xf]  ;;  %v14018_v13 = vld [vmem:[%s18761_s4 + $0x50] sm:$0xff]   ;;  %v15079_v43 = vsub.s32 0, %v15069_v39 }
   0x6   :  { %8983 = vst [vmem:[#allocation6 + $0x18] sm:$0xff] %v14832_v0  ;;  %8986 = vst [vmem:[#allocation6 + $0x30] sm:$0xff] %v14832_v0  ;;  %13233 = vmatprep.subr.bf16.mxu1 %v14832_v0  ;;  %v14019_v14 = vld [vmem:[%s18761_s4 + $0x58] sm:$0xff]   ;;  %v14020_v15 = vld [vmem:[%s18761_s4 + $0x60] sm:$0xff]   ;;  %vm33_vm6 = vcmask 883712   ;;  %s14839_s13 = smov 20  }
   0x7   :  { %8987 = vst [vmem:[#allocation6 + $0x38] sm:$0xff] %v14832_v0  ;;  %8989 = vst [vmem:[#allocation6 + $0x48] sm:$0xff] %v14832_v0  ;;  %v14021_v16 = vld [vmem:[%s18761_s4 + $0x68] sm:$0xff]   ;;  %v14022_v17 = vld [vmem:[%s18761_s4 + $0x70] sm:$0xff]   ;;  %s14840_s14 = smov 18   ;;  %vm18772_vm7 = vcmask 1045504  }
   0x8   :  { %8990 = vst [vmem:[#allocation6 + $0x50] sm:$0xff] %v14832_v0  ;;  %8992 = vst [vmem:[#allocation6 + $0x60] sm:$0xff] %v14832_v0  ;;  %13224 = vmatmul.mubr.msk.bf16.vlgmr.msra.gmra.mrb[0].mxu1 %vm18768_vm2, %v139_v9  ;;  %13210 = vmatpush3.bf16.msra.mxu0 %v14990_v10  ;;  %v14023_v18 = vld [vmem:[%s18761_s4 + $0x78] sm:$0xff]   ;;  %v14024_v19 = vld [vmem:[%s18761_s4 + $0x80] sm:$0xff]   ;;  %s14841_s18 = smov 24   ;;  %s14842_s19 = smov 69  }
   0x9   :  { %8995 = vst [vmem:[#allocation6 + $0x78] sm:$0xff] %v14832_v0  ;;  %8996 = vst [vmem:[#allocation6 + $0x80] sm:$0xff] %v14832_v0  ;;  %13234 = vmatpush3.bf16.msra.mxu1 %v14017_v11  ;;  %13249 = vmatprep.mubr.msk.bf16.mxu1 %vm18775_vm1, %v14832_v0  ;;  %v234_v20 = vld [vmem:[%s18762_s2] sm:$0xf]  ;;  %v14025_v22 = vld [vmem:[%s18761_s4 + $0x8] sm:$0xff]   ;;  %s14843_s20 = smov 86  }
   0xa   :  { %8998 = vst [vmem:[#allocation7] sm:$0xff] %v14832_v0  ;;  %8999 = vst [vmem:[#allocation7 + $0x8] sm:$0xff] %v14832_v0  ;;  %13235 = vmatprep.subr.bf16.mxu1 %v14832_v0  ;;  %13215 = vmatprep.subr.bf16.mxu0 %v14832_v0  ;;  %v251_v21 = vpack.c.bf16 %v234_v20, %v234_v20  ;;  %v184_v25 = vld [vmem:[%s18761_s4 + $0x18] sm:$0xf]  ;;  %v14026_v34 = vld [vmem:[%s18761_s4 + $0x90] sm:$0xff]   ;;  %s14844_s21 = smov 22  }
   0xb   :  { %9000 = vst [vmem:[#allocation7 + $0x10] sm:$0xff] %v14832_v0  ;;  %9001 = vst [vmem:[#allocation7 + $0x18] sm:$0xff] %v14832_v0  ;;  %13212 = vmatmul.mubr.msk.bf16.vlgmr.msra.gmra.mrb[0].mxu0 %vm18767_vm0, %v39_v12  ;;  %v192_v31 = vsel %vm18770_vm3, %v184_v25, 0  ;;  %v14027_v36 = vld [vmem:[%s18761_s4 + $0x98] sm:$0xff]   ;;  %v14028_v38 = vld [vmem:[%s18761_s4 + $0xa0] sm:$0xff]   ;;  %s14845_s22 = smov 85  }
   0xc   :  { %9002 = vst [vmem:[#allocation7 + $0x20] sm:$0xff] %v14832_v0  ;;  %9003 = vst [vmem:[#allocation7 + $0x28] sm:$0xff] %v14832_v0  ;;  %13217 = vmatprep.mubr.msk.bf16.mxu0 %vm18775_vm1, %v14832_v0  ;;  %13216 = vmatpush3.bf16.msra.mxu0 %v14025_v22  ;;  %v252_v40 = vld [vmem:[%s18761_s4 + $0x88] sm:$0x1]  ;;  %v14030_v52 = vld [vmem:[%s18761_s4 + $0xf0] sm:$0xff]   ;;  %vm562_vm8 = vcmask 273552  }
   0xd   :  { %9004 = vst [vmem:[#allocation7 + $0x30] sm:$0xff] %v14832_v0  ;;  %9005 = vst [vmem:[#allocation7 + $0x38] sm:$0xff] %v14832_v0  ;;  %13236 = vmatpush3.bf16.msra.mxu1 %v14018_v13  ;;  %13227 = vmatprep.subr.bf16.mxu0 %v14832_v0  ;;  %v14029_v41 = vld [vmem:[%s18761_s4 + $0xa8] sm:$0xff]   ;;  %v253_v42 = vunpack.c.l.bf16 %v252_v40  ;;  %v14031_v56 = vld [vmem:[%s18761_s4 + $0xf8] sm:$0xff]   ;;  %vm621_vm9 = vcmask 277652   ;;  %vm568_vm10 = vcmask 281872  }
   0xe   :  { %9006 = vst [vmem:[#allocation7 + $0x40] sm:$0xff] %v14832_v0  ;;  %9007 = vst [vmem:[#allocation7 + $0x48] sm:$0xff] %v14832_v0  ;;  %13237 = vmatprep.subr.bf16.mxu1 %v14832_v0  ;;  %v356_v62 = vld [vmem:[%s18761_s4 + $0xb0] sm:$0x1]  ;;  %v14032_v1 = vld [vmem:[%s18761_s4 + $0x100] sm:$0xff]   ;;  %vm623_vm11 = vcmask 285972  }
   0xf   :  { %9008 = vst [vmem:[#allocation7 + $0x50] sm:$0xff] %v14832_v0  ;;  %9009 = vst [vmem:[#allocation7 + $0x58] sm:$0xff] %v14832_v0  ;;  %v257_v44 = vrot.slane %v253_v42, %v15079_v43  ;;  %v357_v63 = vunpack.c.l.bf16 %v356_v62  ;;  %v14033_v2 = vld [vmem:[%s18761_s4 + $0x108] sm:$0xff]   ;;  %v15118_v5 = vld [vmem:[#allocation4] sm:$0xff]  ;;  %vm574_vm12 = vcmask 290072   ;;  %vm625_vm13 = vcmask 294172  }
  0x10   :  { %9010 = vst [vmem:[#allocation7 + $0x60] sm:$0xff] %v14832_v0  ;;  %9011 = vst [vmem:[#allocation7 + $0x68] sm:$0xff] %v14832_v0  ;;  %v14034_v11 = vld [vmem:[%s18761_s4 + $0x110] sm:$0xff]   ;;  %v434_v20 = vld [vmem:[%s18761_s4 + $0x20] sm:$0x1]  ;;  %vm579_vm14 = vcmask 421152  }
  0x11   :  { %9012 = vst [vmem:[#allocation7 + $0x70] sm:$0xff] %v14832_v0  ;;  %9013 = vst [vmem:[#allocation7 + $0x78] sm:$0xff] %v14832_v0  ;;  %13238 = vmatpush3.bf16.msra.mxu1 %v14019_v14  ;;  %v361_v3 = vrot.slane %v357_v63, %v15079_v43  ;;  %vm627_vm15 = vcmask 425252   ;;  %v14038_v37 = vld [vmem:[%s18761_s4 + $0xc0] sm:$0xff]   ;;  %v14040_v40 = vld [vmem:[%s18761_s4 + $0xd0] sm:$0xff]   ;;  %s14846_s15 = smov 16  }
  0x12   :  { %3378 = vst.msk [vmem:[#allocation5 + $0x8] sm:$0xff] %vm18767_vm0, %v14832_v0  ;;  %3380 = vst.msk [vmem:[#allocation5 + $0x18] sm:$0xff] %vm18767_vm0, %v14832_v0  ;;  %13239 = vmatprep.subr.bf16.mxu1 %v14832_v0  ;;  %v14042_v42 = vld [vmem:[%s18761_s4 + $0xe0] sm:$0xff]   ;;  %v14052_v63 = vld [vmem:[%s18761_s4 + $0x30] sm:$0xff]   ;;  %s14847_s1 = smov 32   ;;  %s14848_s0 = smov 48  }
  0x13   :  { %3382 = vst.msk [vmem:[#allocation5 + $0x28] sm:$0xff] %vm18767_vm0, %v14832_v0  ;;  %3384 = vst.msk [vmem:[#allocation5 + $0x38] sm:$0xff] %vm18767_vm0, %v14832_v0  ;;  %s14850_s9 = smov 8   ;;  %s14851_s10 = smov 119  }
  0x14   :  { %8982 = vst.msk [vmem:[#allocation6 + $0x10] sm:$0xff] %vm18767_vm0, %v14832_v0  ;;  %8985 = vst.msk [vmem:[#allocation6 + $0x28] sm:$0xff] %vm18767_vm0, %v14832_v0  ;;  %s14853_s11 = smov 25   ;;  %s14855_s2 = smov 103  }
  0x15   :  { %8988 = vst.msk [vmem:[#allocation6 + $0x40] sm:$0xff] %vm18767_vm0, %v14832_v0  ;;  %8991 = vst.msk [vmem:[#allocation6 + $0x58] sm:$0xff] %vm18767_vm0, %v14832_v0  ;;  %13240 = vmatpush3.bf16.msra.mxu1 %v14020_v15  ;;  %s14857_s12 = smov 120   ;;  %s14859_s8 = smov 28  }
  0x16   :  { %8994 = vst.msk [vmem:[#allocation6 + $0x70] sm:$0xff] %vm18767_vm0, %v14832_v0  ;;  %8997 = vst.msk [vmem:[#allocation6 + $0x88] sm:$0xff] %vm18767_vm0, %v14832_v0  ;;  %13241 = vmatprep.subr.bf16.mxu1 %v14832_v0  ;;  %vm584_vm0 = vcmask 429472  }
  0x17   :  { %34 = vst.msk [vmem:[#allocation2] sm:$0xff] %vm33_vm6, %v14832_v0  ;;  %35 = vst.msk [vmem:[#allocation2 + $0x8] sm:$0xff] %vm33_vm6, %v14832_v0 }
  0x19   :  { %13242 = vmatpush3.bf16.msra.mxu1 %v14021_v16  ;;  %v14035_v16 = vld [vmem:[%s18761_s4 + $0x118] sm:$0xff]  }
  0x1a   :  { %13243 = vmatprep.subr.bf16.mxu1 %v14832_v0 }
  0x1d   :  { %13244 = vmatpush3.bf16.msra.mxu1 %v14022_v17  ;;  %v14036_v17 = vld [vmem:[%s18761_s4 + $0x120] sm:$0x3f]  }
  0x1e   :  { %13245 = vmatprep.subr.bf16.mxu1 %v14832_v0 }
  0x21   :  { %13246 = vmatpush3.bf16.msra.mxu1 %v14023_v18 }
  0x22   :  { %13247 = vmatprep.subr.bf16.mxu1 %v14832_v0 }
  0x25   :  { %13248 = vmatpush3.bf16.msra.mxu1 %v14024_v19  ;;  %v725_v19 = vsel %vm18772_vm7, %v14036_v17, 0  ;;  %vm635_vm7 = vcmask 581172  }
  0x26   :  { %13283 = vmatprep.subr.bf16.mxu1 %v14832_v0 }
  0x28   :  { %13250 = vmatmul.mubr.bf16.vlgmr.msra.gmra.mrb[4].mxu1 %v251_v21 }
  0x29   :  { %13297 = vmatprep.mubr.msk.bf16.mxu1 %vm18775_vm1, %v14832_v0  ;;  %13284 = vmatpush3.bf16.msra.mxu1 %v14030_v52  ;;  %v14047_v52 = vld [vmem:[%s18761_s4 + $0x140] sm:$0xff]  }
  0x2a   :  { %13285 = vmatprep.subr.bf16.mxu1 %v14832_v0 }
  0x2d   :  { %13286 = vmatpush3.bf16.msra.mxu1 %v14031_v56 }
  0x2e   :  { %13287 = vmatprep.subr.bf16.mxu1 %v14832_v0 }
  0x31   :  { %13288 = vmatpush3.bf16.msra.mxu1 %v14032_v1 }
  0x32   :  { %13289 = vmatprep.subr.bf16.mxu1 %v15118_v5 }
  0x35   :  { %13290 = vmatpush3.bf16.msra.mxu1 %v14033_v2 }
  0x36   :  { %13291 = vmatprep.subr.bf16.mxu1 %v15118_v5 }
  0x39   :  { %13292 = vmatpush3.bf16.msra.mxu1 %v14034_v11  ;;  %v14057_v11 = vld [vmem:[%s18761_s4 + $0x1b0] sm:$0xff]  }
  0x3a   :  { %13293 = vmatprep.subr.bf16.mxu1 %v15118_v5 }
  0x3d   :  { %13294 = vmatpush3.bf16.msra.mxu1 %v14035_v16  ;;  %v14061_v16 = vld [vmem:[%s18761_s4 + $0x1d0] sm:$0x3f]  }
  0x3e   :  { %13295 = vmatprep.subr.bf16.mxu1 %v15118_v5 }
  0x41   :  { %13296 = vmatpush3.bf16.msra.mxu1 %v725_v19 }
  0x42   :  { %13301 = vmatprep.subr.bf16.mxu1 %v15118_v5 }
  0xdb   :  { %v178_v23 = vpop.f32.mrb[0].mxu1 }
  0xdc   :  { %v13225_v24 = vpop.f32.mrb[1].mxu1  ;;  %v185_v35 = vpack.c.bf16 %v178_v23, %v178_v23 }
  0xdd   :  { %v181_v26 = vpop.f32.mrb[2].mxu1 }
  0xde   :  { %v13226_v27 = vpop.f32.mrb[3].mxu1  ;;  %v80_v28 = vpop.f32.mrb[0].mxu0 }
  0xdf   :  { %v88_v29 = vpack.c.bf16 %v80_v28, %v80_v28  ;;  %v13213_v30 = vpop.f32.mrb[1].mxu0 }
  0xe0   :  { %v83_v32 = vpop.f32.mrb[2].mxu0 }
  0xe1   :  { %13218 = vmatmul.mubr.msk.bf16.vlgmr.msra.gmra.mrb[4].mxu0 %vm18768_vm2, %v88_v29  ;;  %v13214_v33 = vpop.f32.mrb[3].mxu0  ;;  %vm629_vm2 = vcmask 433572  }
  0xe2   :  { %13228 = vmatpush3.bf16.msra.mxu0 %v192_v31  ;;  %13229 = vmatprep.mubr.msk.bf16.mxu0 %vm18775_vm1, %v14832_v0 }
  0xe3   :  { %13253 = vmatprep.subr.bf16.mxu0 %v14832_v0 }
  0xe9   :  { %13230 = vmatmul.mubr.msk.bf16.vlgmr.msra.gmra.mrb[8].mxu0 %vm18769_vm4, %v185_v35  ;;  %v14037_v35 = vld [vmem:[%s18761_s4 + $0xb8] sm:$0xff]  }
  0xea   :  { %13254 = vmatpush3.bf16.msra.mxu0 %v14026_v34  ;;  %13261 = vmatprep.mubr.msk.bf16.mxu0 %vm18775_vm1, %v14832_v0 }
  0xeb   :  { %13255 = vmatprep.subr.bf16.mxu0 %v14832_v0 }
  0xee   :  { %13256 = vmatpush3.bf16.msra.mxu0 %v14027_v36 }
  0xef   :  { %13257 = vmatprep.subr.bf16.mxu0 %v14832_v0 }
  0xf2   :  { %13258 = vmatpush3.bf16.msra.mxu0 %v14028_v38  ;;  %v14039_v38 = vld [vmem:[%s18761_s4 + $0xc8] sm:$0xff]  }
  0xf3   :  { %13259 = vmatprep.subr.bf16.mxu0 %v14832_v0 }
  0xf6   :  { %13260 = vmatpush3.bf16.msra.mxu0 %v14029_v41  ;;  %v14041_v41 = vld [vmem:[%s18761_s4 + $0xd8] sm:$0xff]  }
  0xf7   :  { %13265 = vmatprep.subr.bf16.mxu0 %v14832_v0 }
  0xfb   :  { %v340_v45 = vpop.f32.mrb[4].mxu1 }
  0xfc   :  { %v341_v46 = vadd.f32 %v340_v45, %v257_v44  ;;  %v13251_v47 = vpop.f32.mrb[5].mxu1  ;;  %v14043_v44 = vld [vmem:[%s18761_s4 + $0xe8] sm:$0x3f]  }
  0xfd   :  { %v343_v48 = vpop.f32.mrb[6].mxu1 }
  0xfe   :  { %v346_v49 = vmax.f32 %v341_v46, 0.0  ;;  %v13252_v50 = vpop.f32.mrb[7].mxu1  ;;  %v14044_v48 = vld [vmem:[%s18761_s4 + $0x128] sm:$0xff]  }
  0xff   :  { %v14045_v50 = vld [vmem:[%s18761_s4 + $0x130] sm:$0xff]  }
 0x100   :  { %v355_v51 = vpack.c.bf16 %v346_v49, %v346_v49 }
 0x102   :  { %13262 = vmatmul.mubr.msk.bf16.vlgmr.msra.gmra.mrb[12].mxu0 %vm18771_vm5, %v355_v51  ;;  %vm594_vm5 = vcmask 568752   ;;  %v14046_v51 = vld [vmem:[%s18761_s4 + $0x138] sm:$0xff]  }
 0x103   :  { %13267 = vmatprep.mubr.msk.bf16.mxu0 %vm18775_vm1, %v14832_v0 }
 0x1b4   :  { %v15089_v53 = vpop.f32.mrb[4].mxu0 }
 0x1b5   :  { %596 = vrot.lane.b32.xlu1 %v15089_v53, %s14834_s23  ;;  %v13219_v54 = vpop.f32.mrb[5].mxu0  ;;  %565 = vrot.lane.b32.xlu0 %v15089_v53, %s14835_s24 }
 0x1b6   :  { %v136_v55 = vpop.f32.mrb[6].mxu0  ;;  %v14049_v54 = vld [vmem:[%s18761_s4 + $0x150] sm:$0xff]  }
 0x1b7   :  { %v13220_v57 = vpop.f32.mrb[7].mxu0  ;;  %v14050_v55 = vld [vmem:[%s18761_s4 + $0x158] sm:$0x3f]  }
 0x1b9   :  { %581 = vrot.lane.b32.xlu0 %v15089_v53, %s14836_s27 }
 0x1bc   :  { %v228_v58 = vpop.f32.mrb[8].mxu0 }
 0x1bd   :  { %571 = vrot.lane.b32.xlu1 %v228_v58, %s14837_s28  ;;  %v13231_v59 = vpop.f32.mrb[9].mxu0 }
 0x1be   :  { %v231_v60 = vpop.f32.mrb[10].mxu0 }
 0x1bf   :  { %v13232_v61 = vpop.f32.mrb[11].mxu0  ;;  %v14051_v60 = vld [vmem:[%s18761_s4 + $0x28] sm:$0xff]  }
 0x1c1   :  { %586 = vrot.lane.b32.xlu1 %v228_v58, %s14838_s29 }
 0x1d5   :  { %v424_v6 = vpop.f32.mrb[12].mxu0 }
 0x1d6   :  { %v425_v8 = vadd.f32 %v424_v6, %v361_v3  ;;  %v13263_v0 = vpop.f32.mrb[13].mxu0  ;;  %v14053_v3 = vld [vmem:[%s18761_s4 + $0x38] sm:$0xff]   ;;  %v14054_v6 = vld [vmem:[%s18761_s4 + $0x40] sm:$0xff]  }
 0x1d7   :  { %v427_v9 = vpop.f32.mrb[14].mxu0  ;;  %v14055_v0 = vld [vmem:[%s18761_s4 + $0x1a0] sm:$0xff]  }
 0x1d8   :  { %v431_v12 = vrot.slane %v425_v8, 4  ;;  %v13264_v13 = vpop.f32.mrb[15].mxu0  ;;  %v14056_v9 = vld [vmem:[%s18761_s4 + $0x1a8] sm:$0xff]  }
 0x1d9   :  { %v14059_v13 = vld [vmem:[%s18761_s4 + $0x1c0] sm:$0xff]  }
 0x1da   :  { %v433_v14 = vsel %vm18770_vm3, %v425_v8, %v431_v12  ;;  %v14058_v12 = vld [vmem:[%s18761_s4 + $0x1b8] sm:$0xff]  }
 0x1db   :  { %576 = vrot.lane.b32.xlu1 %v433_v14, %s14839_s13  ;;  %559 = vrot.lane.b32.xlu0 %v433_v14, %s14840_s14  ;;  %v435_v15 = vpack.c.bf16 %v433_v14, %v433_v14 }
 0x1dd   :  { %v440_v18 = vsel %vm18770_vm3, %v435_v15, 0  ;;  %vm631_vm3 = vcmask 441772   ;;  %v14060_v15 = vld [vmem:[%s18761_s4 + $0x1c8] sm:$0xff]  }
 0x1de   :  { %13266 = vmatpush3.bf16.msra.mxu0 %v440_v18 }
 0x1df   :  { %606 = vrot.lane.b32.xlu1 %v433_v14, %s14841_s18  ;;  %601 = vrot.lane.b32.xlu0 %v228_v58, %s14842_s19 }
 0x1e0   :  { %13271 = vmatprep.subr.bf16.mxu0 %v15118_v5 }
 0x1e1   :  { %13268 = vmatmul.mubr.msk.bf16.vlgmr.msra.gmra.mrb[16].mxu0 %vm18769_vm4, %v434_v20  ;;  %vm589_vm4 = vcmask 437672  }
 0x1e2   :  { %13279 = vmatprep.mubr.msk.bf16.mxu0 %vm18775_vm1, %v15118_v5  ;;  %13272 = vmatpush3.bf16.msra.mxu0 %v14051_v60  ;;  %v14076_v60 = vld [vmem:[%s18761_s4 + $0x250] sm:$0xff]  }
 0x1e3   :  { %616 = vrot.lane.b32.xlu1 %v228_v58, %s14843_s20  ;;  %591 = vrot.lane.b32.xlu0 %v433_v14, %s14844_s21  ;;  %v967_v14 = vld [vmem:[%s18761_s4 + $0x160] sm:$0x1] }
 0x1e4   :  { %13273 = vmatprep.subr.bf16.mxu0 %v15118_v5  ;;  %v968_v17 = vunpack.c.l.bf16 %v967_v14 }
 0x1e6   :  { %13274 = vmatpush3.bf16.msra.mxu0 %v14052_v63  ;;  %v14079_v63 = vld [vmem:[%s18761_s4 + $0x268] sm:$0xff]  }
 0x1e7   :  { %611 = vrot.lane.b32.xlu0 %v15089_v53, %s14845_s22  ;;  %v14048_v53 = vld [vmem:[%s18761_s4 + $0x148] sm:$0xff]   ;;  %13275 = vmatprep.subr.bf16.mxu0 %v15118_v5 }
 0x1ea   :  { %13276 = vmatpush3.bf16.msra.mxu0 %v14053_v3  ;;  %v14081_v3 = vld [vmem:[%s18761_s4 + $0x278] sm:$0xff]  }
 0x1eb   :  { %13277 = vmatprep.subr.bf16.mxu0 %v15118_v5 }
 0x1ee   :  { %13278 = vmatpush3.bf16.msra.mxu0 %v14054_v6  ;;  %v14082_v6 = vld [vmem:[%s18761_s4 + $0x280] sm:$0x3f]  }
 0x1ef   :  { %13337 = vmatprep.subr.bf16.mxu0 %v15118_v5 }
 0x227   :  { %v597_v21 = vpop.permute.xlu1 %596  ;;  %v566_v22 = vpop.permute.xlu0 %565 }
 0x22b   :  { %v582_v24 = vpop.permute.xlu0 %581 }
 0x22f   :  { %v572_v23 = vpop.permute.xlu1 %571 }
 0x233   :  { %v587_v25 = vpop.permute.xlu1 %586 }
 0x24d   :  { %v560_v26 = vpop.permute.xlu0 %559  ;;  %v577_v27 = vpop.permute.xlu1 %576 }
 0x24e   :  { %563 = vst.msk [vmem:[#allocation2 + $0x1] sm:$0xf] %vm562_vm8, %v560_v26  ;;  %vm633_vm8 = vcmask 572852  }
 0x24f   :  { %622 = vst.msk [vmem:[#allocation2 + $0x5] sm:$0xf0] %vm621_vm9, %v560_v26  ;;  %vm599_vm9 = vcmask 577072  }
 0x250   :  { %569 = vst.msk [vmem:[#allocation2 + $0x1] sm:$0xf] %vm568_vm10, %v566_v22  ;;  %vm604_vm10 = vcmask 585272  }
 0x251   :  { %624 = vst.msk [vmem:[#allocation2 + $0x5] sm:$0xf0] %vm623_vm11, %v566_v22  ;;  %v602_v28 = vpop.permute.xlu0 %601  ;;  %v607_v29 = vpop.permute.xlu1 %606  ;;  %vm637_vm11 = vcmask 589372   ;;  %v972_v22 = vrot.slane %v968_v17, %v15079_v43 }
 0x252   :  { %575 = vst.msk [vmem:[#allocation2 + $0x1] sm:$0xf] %vm574_vm12, %v572_v23  ;;  %vm609_vm12 = vcmask 716352  }
 0x253   :  { %626 = vst.msk [vmem:[#allocation2 + $0x5] sm:$0xf0] %vm625_vm13, %v572_v23  ;;  %vm639_vm13 = vcmask 720452  }
 0x254   :  { %580 = vst.msk [vmem:[#allocation2 + $0x1] sm:$0xf] %vm579_vm14, %v577_v27  ;;  %vm614_vm14 = vcmask 724672  }
 0x255   :  { %628 = vst.msk [vmem:[#allocation2 + $0x5] sm:$0xf0] %vm627_vm15, %v577_v27  ;;  %v592_v30 = vpop.permute.xlu0 %591  ;;  %vm641_vm15 = vcmask 728772   ;;  %v617_v32 = vpop.permute.xlu1 %616 }
 0x256   :  { %585 = vst.msk [vmem:[#allocation2 + $0x1] sm:$0xf] %vm584_vm0, %v582_v24  ;;  %vm619_vm0 = vcmask 732872  }
 0x257   :  { %630 = vst.msk [vmem:[#allocation2 + $0x5] sm:$0xf0] %vm629_vm2, %v582_v24  ;;  %vm643_vm2 = vcmask 736972  }
 0x258   :  { %590 = vst.msk [vmem:[#allocation2 + $0x1] sm:$0xf] %vm589_vm4, %v587_v25 }
 0x259   :  { %632 = vst.msk [vmem:[#allocation2 + $0x5] sm:$0xf0] %vm631_vm3, %v587_v25  ;;  %v612_v31 = vpop.permute.xlu0 %611  ;;  %vm18777_vm3 = vcmask 1045504  }
 0x25a   :  { %595 = vst.msk [vmem:[#allocation2 + $0x1] sm:$0xf] %vm594_vm5, %v592_v30  ;;  %v813_v45 = vsel %vm18777_vm3, %v14043_v44, 0  ;;  %vm18778_vm4 = vmmov %vm18777_vm3  ;;  %vm18779_vm5 = vcmask 523264   ;;  %v14068_v44 = vld [vmem:[%s18761_s4 + $0x198] sm:$0x3f]  }
 0x25b   :  { %634 = vst.msk [vmem:[#allocation2 + $0x5] sm:$0xf0] %vm633_vm8, %v592_v30  ;;  %v918_v56 = vsel %vm18778_vm4, %v14050_v55, 0  ;;  %vm18781_vm8 = vcmask 1043456   ;;  %v14075_v55 = vld [vmem:[%s18761_s4 + $0x208] sm:$0x3f]  }
 0x25c   :  { %600 = vst.msk [vmem:[#allocation2 + $0x1] sm:$0xf] %vm599_vm9, %v597_v21  ;;  %vm979_vm9 = vcmask 732304  }
 0x25d   :  { %636 = vst.msk [vmem:[#allocation2 + $0x5] sm:$0xf0] %vm635_vm7, %v597_v21  ;;  %vm18780_vm7 = vmmov %vm18777_vm3 }
 0x25e   :  { %605 = vst.msk [vmem:[#allocation2 + $0x1] sm:$0xf] %vm604_vm10, %v602_v28  ;;  %v1062_v19 = vsel %vm18780_vm7, %v14061_v16, 0  ;;  %vm981_vm10 = vcmask 736404   ;;  %vm1735_vm7 = vcmask 654468  }
 0x25f   :  { %638 = vst.msk [vmem:[#allocation2 + $0x5] sm:$0xf0] %vm637_vm11, %v602_v28  ;;  %vm18782_vm11 = vmmov %vm18777_vm3 }
 0x260   :  { %610 = vst.msk [vmem:[#allocation2 + $0x1] sm:$0xf] %vm609_vm12, %v607_v29  ;;  %vm18783_vm12 = vmmov %vm18777_vm3 }
 0x261   :  { %640 = vst.msk [vmem:[#allocation2 + $0x5] sm:$0xf0] %vm639_vm13, %v607_v29  ;;  %vm18784_vm13 = vmmov %vm18777_vm3 }
 0x262   :  { %615 = vst.msk [vmem:[#allocation2 + $0x1] sm:$0xf] %vm614_vm14, %v612_v31  ;;  %vm18785_vm14 = vmmov %vm18781_vm8 }
 0x263   :  { %642 = vst.msk [vmem:[#allocation2 + $0x5] sm:$0xf0] %vm641_vm15, %v612_v31  ;;  %vm18786_vm15 = vmmov %vm18777_vm3 }
 0x264   :  { %620 = vst.msk [vmem:[#allocation2 + $0x1] sm:$0xf] %vm619_vm0, %v617_v32  ;;  %vm18787_vm0 = vmmov %vm18777_vm3  ;;  %vm18773_vm3 = vcmask 785408  }
 0x265   :  { %644 = vst.msk [vmem:[#allocation2 + $0x5] sm:$0xf0] %vm643_vm2, %v617_v32  ;;  %vm18789_vm2 = vmmov %vm18779_vm5 }
 0x266   :  { %37 = vst.msk [vmem:[#allocation3] sm:$0xff] %vm18773_vm3, %v15118_v5  ;;  %38 = vst.msk [vmem:[#allocation3 + $0x8] sm:$0xff] %vm18773_vm3, %v15118_v5 }
 0x26b   :  { %v662_v33 = vld [vmem:[#allocation2 + $0x1] sm:$0xff] }
 0x26c   :  { %v663_v34 = vld [vmem:[#allocation2 + $0x9] sm:$0x3f]  ;;  %v645_v46 = vld [vmem:[#allocation2] sm:$0xff] }
 0x26d   :  { %v678_v36 = vpack.c.bf16 %v663_v34, %v662_v33  ;;  %v646_v47 = vld [vmem:[#allocation2 + $0x8] sm:$0x3f] }
 0x26e   :  { %v661_v49 = vpack.c.bf16 %v646_v47, %v645_v46  ;;  %v856_v57 = vld [vmem:[#allocation2 + $0x2] sm:$0xff]  ;;  %v857_v58 = vld [vmem:[#allocation2 + $0xa] sm:$0x3f] }
 0x26f   :  { %13298 = vmatmul.mubr.msk.bf16.vlgmr.msra.gmra.mrb[8].mxu1 %vm33_vm6, %v678_v36  ;;  %v872_v59 = vpack.c.bf16 %v857_v58, %v856_v57 }
 0x270   :  { %13302 = vmatpush3.bf16.msra.mxu1 %v14037_v35  ;;  %13315 = vmatprep.mubr.msk.bf16.mxu1 %vm18775_vm1, %v15118_v5  ;;  %v14062_v35 = vld [vmem:[%s18761_s4 + $0x168] sm:$0xff]  }
 0x271   :  { %13303 = vmatprep.subr.bf16.mxu1 %v15118_v5 }
 0x274   :  { %13304 = vmatpush3.bf16.msra.mxu1 %v14038_v37  ;;  %v14063_v37 = vld [vmem:[%s18761_s4 + $0x170] sm:$0xff]  }
 0x275   :  { %13305 = vmatprep.subr.bf16.mxu1 %v15118_v5 }
 0x278   :  { %13306 = vmatpush3.bf16.msra.mxu1 %v14039_v38  ;;  %v14064_v38 = vld [vmem:[%s18761_s4 + $0x178] sm:$0xff]  }
 0x279   :  { %13307 = vmatprep.subr.bf16.mxu1 %v15118_v5 }
 0x27c   :  { %13308 = vmatpush3.bf16.msra.mxu1 %v14040_v40  ;;  %v14065_v40 = vld [vmem:[%s18761_s4 + $0x180] sm:$0xff]  }
 0x27d   :  { %13309 = vmatprep.subr.bf16.mxu1 %v15118_v5 }
 0x280   :  { %13310 = vmatpush3.bf16.msra.mxu1 %v14041_v41  ;;  %v14066_v41 = vld [vmem:[%s18761_s4 + $0x188] sm:$0xff]  }
 0x281   :  { %13311 = vmatprep.subr.bf16.mxu1 %v15118_v5 }
 0x284   :  { %13312 = vmatpush3.bf16.msra.mxu1 %v14042_v42  ;;  %v14067_v42 = vld [vmem:[%s18761_s4 + $0x190] sm:$0xff]  }
 0x285   :  { %13313 = vmatprep.subr.bf16.mxu1 %v15118_v5 }
 0x288   :  { %13314 = vmatpush3.bf16.msra.mxu1 %v813_v45  ;;  %v1150_v45 = vsel %vm18782_vm11, %v14068_v44, 0  ;;  %v14096_v44 = vld [vmem:[%s18761_s4 + $0x2b8] sm:$0x3f]   ;;  %vm18794_vm11 = vcmask 64512  }
 0x289   :  { %13319 = vmatprep.subr.bf16.mxu1 %v15118_v5 }
 0x28b   :  { %13316 = vmatmul.mubr.msk.bf16.vlgmr.msra.gmra.mrb[8].mxu1 %vm33_vm6, %v661_v49 }
 0x28c   :  { %13320 = vmatpush3.bf16.msra.mxu1 %v14044_v48  ;;  %13333 = vmatprep.mubr.msk.bf16.mxu1 %vm18775_vm1, %v15118_v5  ;;  %v14069_v48 = vld [vmem:[%s18761_s4 + $0x1d8] sm:$0xff]  }
 0x28d   :  { %13321 = vmatprep.subr.bf16.mxu1 %v15118_v5 }
 0x290   :  { %13322 = vmatpush3.bf16.msra.mxu1 %v14045_v50  ;;  %v14070_v50 = vld [vmem:[%s18761_s4 + $0x1e0] sm:$0xff]  }
 0x291   :  { %13323 = vmatprep.subr.bf16.mxu1 %v15118_v5 }
 0x294   :  { %13324 = vmatpush3.bf16.msra.mxu1 %v14046_v51  ;;  %v14071_v51 = vld [vmem:[%s18761_s4 + $0x1e8] sm:$0xff]  }
 0x295   :  { %13325 = vmatprep.subr.bf16.mxu1 %v15118_v5 }
 0x298   :  { %13326 = vmatpush3.bf16.msra.mxu1 %v14047_v52  ;;  %v14072_v52 = vld [vmem:[%s18761_s4 + $0x1f0] sm:$0xff]  }
 0x299   :  { %13327 = vmatprep.subr.bf16.mxu1 %v15118_v5 }
 0x29c   :  { %13328 = vmatpush3.bf16.msra.mxu1 %v14048_v53  ;;  %v14073_v53 = vld [vmem:[%s18761_s4 + $0x1f8] sm:$0xff]  }
 0x29d   :  { %13329 = vmatprep.subr.bf16.mxu1 %v15118_v5 }
 0x2a0   :  { %13330 = vmatpush3.bf16.msra.mxu1 %v14049_v54  ;;  %v14074_v54 = vld [vmem:[%s18761_s4 + $0x200] sm:$0xff]  }
 0x2a1   :  { %13331 = vmatprep.subr.bf16.mxu1 %v15118_v5 }
 0x2a4   :  { %13332 = vmatpush3.bf16.msra.mxu1 %v918_v56  ;;  %v1255_v56 = vsel %vm18783_vm12, %v14075_v55, 0  ;;  %vm18795_vm12 = vmmov %vm18789_vm2 }
 0x2a5   :  { %13391 = vmatprep.subr.bf16.mxu1 %v15118_v5 }
 0x2a7   :  { %13334 = vmatmul.mubr.msk.bf16.vlgmr.msra.gmra.mrb[8].mxu1 %vm33_vm6, %v872_v59 }
 0x2a8   :  { %13405 = vmatprep.mubr.msk.bf16.mxu1 %vm18775_vm1, %v15118_v5  ;;  %13392 = vmatpush3.bf16.msra.mxu1 %v14076_v60 }
 0x2a9   :  { %13393 = vmatprep.subr.bf16.mxu1 %v15118_v5 }
 0x2b4   :  { %v476_v61 = vpop.f32.mrb[16].mxu0 }
 0x2b5   :  { %v13269_v62 = vpop.f32.mrb[17].mxu0  ;;  %v490_v8 = vpack.c.bf16 %v476_v61, %v476_v61  ;;  %v14077_v61 = vld [vmem:[%s18761_s4 + $0x258] sm:$0xff]  }
 0x2b6   :  { %v479_v1 = vpop.f32.mrb[18].mxu0  ;;  %13394 = vmatpush3.bf16.msra.mxu1 %v14077_v61  ;;  %v14078_v62 = vld [vmem:[%s18761_s4 + $0x260] sm:$0xff]  }
 0x2b7   :  { %v13270_v2 = vpop.f32.mrb[19].mxu0  ;;  %13280 = vmatmul.mubr.msk.bf16.vlgmr.msra.gmra.mrb[20].mxu0 %vm18779_vm5, %v490_v8  ;;  %13395 = vmatprep.subr.bf16.mxu1 %v15118_v5  ;;  %v14080_v1 = vld [vmem:[%s18761_s4 + $0x270] sm:$0xff]   ;;  %vm1733_vm5 = vcmask 650368  }
 0x2b8   :  { %13338 = vmatpush3.bf16.msra.mxu0 %v14055_v0  ;;  %13351 = vmatprep.mubr.msk.bf16.mxu0 %vm18775_vm1, %v15118_v5  ;;  %v1304_v2 = vld [vmem:[%s18761_s4 + $0x210] sm:$0x1] }
 0x2b9   :  { %13339 = vmatprep.subr.bf16.mxu0 %v15118_v5  ;;  %v1305_v8 = vunpack.c.l.bf16 %v1304_v2  ;;  %v14102_v2 = vld [vmem:[%s18761_s4 + $0x300] sm:$0xff]  }
 0x2ba   :  { %13396 = vmatpush3.bf16.msra.mxu1 %v14078_v62 }
 0x2bb   :  { %13397 = vmatprep.subr.bf16.mxu1 %v15118_v5 }
 0x2bc   :  { %13340 = vmatpush3.bf16.msra.mxu0 %v14056_v9  ;;  %v1397_v9 = vsel %vm18784_vm13, %v14082_v6, 0  ;;  %v14104_v6 = vld [vmem:[%s18761_s4 + $0x310] sm:$0xff]   ;;  %vm18796_vm13 = vcmask 130048  }
 0x2bd   :  { %13341 = vmatprep.subr.bf16.mxu0 %v15118_v5 }
 0x2be   :  { %13398 = vmatpush3.bf16.msra.mxu1 %v14079_v63 }
 0x2bf   :  { %13399 = vmatprep.subr.bf16.mxu1 %v15118_v5 }
 0x2c0   :  { %13342 = vmatpush3.bf16.msra.mxu0 %v14057_v11 }
 0x2c1   :  { %13343 = vmatprep.subr.bf16.mxu0 %v15118_v5 }
 0x2c2   :  { %13400 = vmatpush3.bf16.msra.mxu1 %v14080_v1  ;;  %v14101_v1 = vld [vmem:[%s18761_s4 + $0x2f8] sm:$0xff]  }
 0x2c3   :  { %13401 = vmatprep.subr.bf16.mxu1 %v15118_v5 }
 0x2c4   :  { %13344 = vmatpush3.bf16.msra.mxu0 %v14058_v12 }
 0x2c5   :  { %13345 = vmatprep.subr.bf16.mxu0 %v15118_v5 }
 0x2c6   :  { %13402 = vmatpush3.bf16.msra.mxu1 %v14081_v3  ;;  %v14103_v3 = vld [vmem:[%s18761_s4 + $0x308] sm:$0xff]  }
 0x2c7   :  { %13403 = vmatprep.subr.bf16.mxu1 %v15118_v5 }
 0x2c8   :  { %13346 = vmatpush3.bf16.msra.mxu0 %v14059_v13  ;;  %v1309_v13 = vrot.slane %v1305_v8, %v15079_v43  ;;  %v1656_v8 = vld [vmem:[%s18761_s4 + $0x538] sm:$0x1] }
 0x2c9   :  { %13347 = vmatprep.subr.bf16.mxu0 %v15118_v5 }
 0x2ca   :  { %13404 = vmatpush3.bf16.msra.mxu1 %v1397_v9  ;;  %v1657_v9 = vunpack.c.l.bf16 %v1656_v8  ;;  %v14126_v8 = vld [vmem:[%s18761_s4 + $0x368] sm:$0xff]  }
 0x2cb   :  { %13409 = vmatprep.subr.bf16.mxu1 %v15118_v5 }
 0x2cc   :  { %13348 = vmatpush3.bf16.msra.mxu0 %v14060_v15 }
 0x2cd   :  { %13349 = vmatprep.subr.bf16.mxu0 %v15118_v5 }
 0x2d0   :  { %13350 = vmatpush3.bf16.msra.mxu0 %v1062_v19  ;;  %v14097_v19 = vld [vmem:[%s18761_s4 + $0x518] sm:$0xff]  }
 0x2d1   :  { %13355 = vmatprep.subr.bf16.mxu0 %v15118_v5 }
 0x37a   :  { %v954_v18 = vpop.f32.mrb[8].mxu1 }
 0x37b   :  { %v13335_v20 = vpop.f32.mrb[9].mxu1 }
 0x37c   :  { %v957_v21 = vpop.f32.mrb[10].mxu1 }
 0x37d   :  { %v964_v23 = vrot.slane %v957_v21, 4  ;;  %v13336_v24 = vpop.f32.mrb[11].mxu1 }
 0x37f   :  { %v966_v25 = vsel %vm18781_vm8, %v954_v18, %v964_v23  ;;  %v14083_v23 = vld [vmem:[%s18761_s4 + $0x218] sm:$0xff]  }
 0x380   :  { %v973_v26 = vadd.f32 %v972_v22, %v966_v25  ;;  %v14084_v25 = vld [vmem:[%s18761_s4 + $0x220] sm:$0xff]  }
 0x382   :  { %v974_v27 = vmax.f32 %v973_v26, 0.0  ;;  %v14085_v26 = vld [vmem:[%s18761_s4 + $0x228] sm:$0xff]  }
 0x384   :  { %976 = vrot.lane.b32.xlu0 %v974_v27, %s14840_s14  ;;  %v14086_v27 = vld [vmem:[%s18761_s4 + $0x230] sm:$0xff]  }
 0x38a   :  { %v15273_v28 = vpop.f32.mrb[20].mxu0 }
 0x38b   :  { %v13281_v29 = vpop.f32.mrb[21].mxu0 }
 0x38c   :  { %v555_v30 = vpop.f32.mrb[22].mxu0  ;;  %v14087_v29 = vld [vmem:[%s18761_s4 + $0x238] sm:$0xff]  }
 0x38d   :  { %v13282_v31 = vpop.f32.mrb[23].mxu0  ;;  %v14088_v30 = vld [vmem:[%s18761_s4 + $0x240] sm:$0xff]  }
 0x38e   :  { %v14089_v31 = vld [vmem:[%s18761_s4 + $0x248] sm:$0x3f]  }
 0x3f6   :  { %v977_v32 = vpop.permute.xlu0 %976 }
 0x3f7   :  { %980 = vst.msk [vmem:[#allocation2 + $0x1] sm:$0xf] %vm979_vm9, %v977_v32 }
 0x3f8   :  { %982 = vst.msk [vmem:[#allocation2 + $0x5] sm:$0xf0] %vm981_vm10, %v977_v32  ;;  %v1485_v32 = vsel %vm18786_vm15, %v14089_v31, 0  ;;  %v14112_v31 = vld [vmem:[%s18761_s4 + $0x2f0] sm:$0xff]   ;;  %vm18798_vm15 = vmmov %vm18796_vm13 }
 0x3fe   :  { %v1000_v33 = vld [vmem:[#allocation2 + $0x1] sm:$0xff] }
 0x3ff   :  { %v1001_v34 = vld [vmem:[#allocation2 + $0x9] sm:$0x3f]  ;;  %v983_v46 = vld [vmem:[#allocation2] sm:$0xff] }
 0x400   :  { %v1016_v36 = vpack.c.bf16 %v1001_v34, %v1000_v33  ;;  %v984_v47 = vld [vmem:[#allocation2 + $0x8] sm:$0x3f] }
 0x401   :  { %v999_v49 = vpack.c.bf16 %v984_v47, %v983_v46  ;;  %v1193_v57 = vld [vmem:[#allocation2 + $0x2] sm:$0xff]  ;;  %v1194_v58 = vld [vmem:[#allocation2 + $0xa] sm:$0x3f] }
 0x402   :  { %13352 = vmatmul.mubr.msk.bf16.vlgmr.msra.gmra.mrb[24].mxu0 %vm33_vm6, %v1016_v36  ;;  %v1209_v59 = vpack.c.bf16 %v1194_v58, %v1193_v57 }
 0x403   :  { %13356 = vmatpush3.bf16.msra.mxu0 %v14062_v35  ;;  %13369 = vmatprep.mubr.msk.bf16.mxu0 %vm18775_vm1, %v15118_v5  ;;  %v14090_v35 = vld [vmem:[%s18761_s4 + $0x288] sm:$0xff]  }
 0x404   :  { %13357 = vmatprep.subr.bf16.mxu0 %v15118_v5 }
 0x407   :  { %13358 = vmatpush3.bf16.msra.mxu0 %v14063_v37  ;;  %v14091_v37 = vld [vmem:[%s18761_s4 + $0x290] sm:$0xff]  }
 0x408   :  { %13359 = vmatprep.subr.bf16.mxu0 %v15118_v5 }
 0x40b   :  { %13360 = vmatpush3.bf16.msra.mxu0 %v14064_v38  ;;  %v14092_v38 = vld [vmem:[%s18761_s4 + $0x298] sm:$0xff]  }
 0x40c   :  { %13361 = vmatprep.subr.bf16.mxu0 %v15118_v5 }
 0x40f   :  { %13362 = vmatpush3.bf16.msra.mxu0 %v14065_v40  ;;  %v14093_v40 = vld [vmem:[%s18761_s4 + $0x2a0] sm:$0xff]  }
 0x410   :  { %13363 = vmatprep.subr.bf16.mxu0 %v15118_v5 }
 0x413   :  { %13364 = vmatpush3.bf16.msra.mxu0 %v14066_v41  ;;  %v14094_v41 = vld [vmem:[%s18761_s4 + $0x2a8] sm:$0xff]  }
 0x414   :  { %13365 = vmatprep.subr.bf16.mxu0 %v15118_v5 }
 0x417   :  { %13366 = vmatpush3.bf16.msra.mxu0 %v14067_v42  ;;  %v14095_v42 = vld [vmem:[%s18761_s4 + $0x2b0] sm:$0xff]  }
 0x418   :  { %13367 = vmatprep.subr.bf16.mxu0 %v15118_v5 }
 0x41b   :  { %13368 = vmatpush3.bf16.msra.mxu0 %v1150_v45  ;;  %v1590_v45 = vsel %vm18787_vm0, %v14096_v44, 0 }
 0x41c   :  { %13373 = vmatprep.subr.bf16.mxu0 %v15118_v5 }
 0x41e   :  { %13370 = vmatmul.mubr.msk.bf16.vlgmr.msra.gmra.mrb[24].mxu0 %vm33_vm6, %v999_v49  ;;  %v14098_v49 = vld [vmem:[%s18761_s4 + $0x520] sm:$0xff]  }
 0x41f   :  { %13374 = vmatpush3.bf16.msra.mxu0 %v14069_v48  ;;  %13387 = vmatprep.mubr.msk.bf16.mxu0 %vm18775_vm1, %v15118_v5 }
 0x420   :  { %13375 = vmatprep.subr.bf16.mxu0 %v15118_v5 }
 0x423   :  { %13376 = vmatpush3.bf16.msra.mxu0 %v14070_v50  ;;  %v14099_v50 = vld [vmem:[%s18761_s4 + $0x528] sm:$0xff]  }
 0x424   :  { %13377 = vmatprep.subr.bf16.mxu0 %v15118_v5 }
 0x427   :  { %13378 = vmatpush3.bf16.msra.mxu0 %v14071_v51  ;;  %v14100_v51 = vld [vmem:[%s18761_s4 + $0x530] sm:$0xff]  }
 0x428   :  { %13379 = vmatprep.subr.bf16.mxu0 %v15118_v5 }
 0x42b   :  { %13380 = vmatpush3.bf16.msra.mxu0 %v14072_v52  ;;  %v1639_v52 = vld [vmem:[%s18761_s4 + $0x2c0] sm:$0x1] }
 0x42c   :  { %13381 = vmatprep.subr.bf16.mxu0 %v15118_v5 }
 0x42f   :  { %13382 = vmatpush3.bf16.msra.mxu0 %v14073_v53  ;;  %v1640_v53 = vunpack.c.l.bf16 %v1639_v52 }
 0x430   :  { %13383 = vmatprep.subr.bf16.mxu0 %v15118_v5 }
 0x431   :  { %v1644_v57 = vrot.slane %v1640_v53, %v15079_v43  ;;  %v14124_v53 = vld [vmem:[%s18761_s4 + $0x3b8] sm:$0xff]  }
 0x433   :  { %13384 = vmatpush3.bf16.msra.mxu0 %v14074_v54 }
 0x434   :  { %13385 = vmatprep.subr.bf16.mxu0 %v15118_v5 }
 0x437   :  { %13386 = vmatpush3.bf16.msra.mxu0 %v1255_v56 }
 0x438   :  { %13445 = vmatprep.subr.bf16.mxu0 %v15118_v5 }
 0x43a   :  { %13388 = vmatmul.mubr.msk.bf16.vlgmr.msra.gmra.mrb[24].mxu0 %vm33_vm6, %v1209_v59 }
 0x43b   :  { %13453 = vmatprep.mubr.msk.bf16.mxu0 %vm18775_vm1, %v15118_v5  ;;  %13446 = vmatpush3.bf16.msra.mxu0 %v14097_v19 }
 0x43c   :  { %13447 = vmatprep.subr.bf16.mxu0 %v15118_v5 }
 0x43f   :  { %13448 = vmatpush3.bf16.msra.mxu0 %v14098_v49  ;;  %v14122_v49 = vld [vmem:[%s18761_s4 + $0x3a8] sm:$0xff]  }
 0x440   :  { %13449 = vmatprep.subr.bf16.mxu0 %v15118_v5 }
 0x443   :  { %13450 = vmatpush3.bf16.msra.mxu0 %v14099_v50  ;;  %v2028_v50 = vld [vmem:[%s18761_s4 + $0x358] sm:$0x1] }
 0x444   :  { %13451 = vmatprep.subr.bf16.mxu0 %v15118_v5  ;;  %v2029_v52 = vunpack.c.l.bf16 %v2028_v50  ;;  %v2464_v50 = vpack.c.bf16 %v15273_v28, %v15273_v28 }
 0x447   :  { %13452 = vmatpush3.bf16.msra.mxu0 %v14100_v51  ;;  %v14123_v51 = vld [vmem:[%s18761_s4 + $0x3b0] sm:$0xff]  }
 0x448   :  { %13457 = vmatprep.subr.bf16.mxu0 %v15118_v5 }
 0x50d   :  { %v1291_v0 = vpop.f32.mrb[24].mxu0 }
 0x50e   :  { %v13389_v11 = vpop.f32.mrb[25].mxu0 }
 0x50f   :  { %v1294_v12 = vpop.f32.mrb[26].mxu0  ;;  %v14106_v11 = vld [vmem:[%s18761_s4 + $0x320] sm:$0xff]  }
 0x510   :  { %v1301_v14 = vrot.slane %v1294_v12, 4  ;;  %v13390_v15 = vpop.f32.mrb[27].mxu0  ;;  %v1661_v12 = vrot.slane %v1657_v9, %v15079_v43  ;;  %v14128_v9 = vld [vmem:[%s18761_s4 + $0x378] sm:$0xff]  }
 0x512   :  { %v1303_v16 = vsel %vm18785_vm14, %v1291_v0, %v1301_v14  ;;  %v14105_v0 = vld [vmem:[%s18761_s4 + $0x318] sm:$0xff]   ;;  %vm18797_vm14 = vmmov %vm18796_vm13 }
 0x513   :  { %v1310_v17 = vadd.f32 %v1309_v13, %v1303_v16  ;;  %v15505_v13 = vsub.s32 1, %v15069_v39 }
 0x515   :  { %v1311_v18 = vmax.f32 %v1310_v17, 0.0  ;;  %v2632_v17 = vrot.slane %v15273_v28, %v15079_v43 }
 0x517   :  { %1313 = vrot.lane.b32.xlu1 %v1311_v18, %s14840_s14  ;;  %v2636_v18 = vrot.slane %v15273_v28, %v15505_v13 }
 0x589   :  { %v1314_v20 = vpop.permute.xlu1 %1313 }
 0x58a   :  { %1316 = vst.msk [vmem:[#allocation2 + $0x1] sm:$0xf] %vm979_vm9, %v1314_v20 }
 0x58b   :  { %1317 = vst.msk [vmem:[#allocation2 + $0x5] sm:$0xf0] %vm981_vm10, %v1314_v20 }
 0x591   :  { %v1335_v21 = vld [vmem:[#allocation2 + $0x1] sm:$0xff] }
 0x592   :  { %v1336_v22 = vld [vmem:[#allocation2 + $0x9] sm:$0x3f]  ;;  %v1318_v33 = vld [vmem:[#allocation2] sm:$0xff] }
 0x593   :  { %v1351_v24 = vpack.c.bf16 %v1336_v22, %v1335_v21  ;;  %v1319_v34 = vld [vmem:[#allocation2 + $0x8] sm:$0x3f] }
 0x594   :  { %v1334_v36 = vpack.c.bf16 %v1319_v34, %v1318_v33  ;;  %v1528_v46 = vld [vmem:[#allocation2 + $0x2] sm:$0xff]  ;;  %v1529_v47 = vld [vmem:[#allocation2 + $0xa] sm:$0x3f] }
 0x595   :  { %13406 = vmatmul.mubr.msk.bf16.vlgmr.msra.gmra.mrb[12].mxu1 %vm33_vm6, %v1351_v24  ;;  %v1544_v48 = vpack.c.bf16 %v1529_v47, %v1528_v46  ;;  %v14107_v24 = vld [vmem:[%s18761_s4 + $0x2c8] sm:$0xff]   ;;  %v14119_v46 = vld [vmem:[%s18761_s4 + $0x390] sm:$0xff]   ;;  %v14120_v47 = vld [vmem:[%s18761_s4 + $0x398] sm:$0xff]  }
 0x596   :  { %13410 = vmatpush3.bf16.msra.mxu1 %v14083_v23  ;;  %13423 = vmatprep.mubr.msk.bf16.mxu1 %vm18775_vm1, %v15118_v5  ;;  %v14113_v34 = vld [vmem:[%s18761_s4 + $0x328] sm:$0xff]  }
 0x597   :  { %13411 = vmatprep.subr.bf16.mxu1 %v15118_v5 }
 0x59a   :  { %13412 = vmatpush3.bf16.msra.mxu1 %v14084_v25 }
 0x59b   :  { %13413 = vmatprep.subr.bf16.mxu1 %v15118_v5 }
 0x59e   :  { %13414 = vmatpush3.bf16.msra.mxu1 %v14085_v26  ;;  %v14108_v26 = vld [vmem:[%s18761_s4 + $0x2d0] sm:$0xff]  }
 0x59f   :  { %13415 = vmatprep.subr.bf16.mxu1 %v15118_v5 }
 0x5a2   :  { %13416 = vmatpush3.bf16.msra.mxu1 %v14086_v27  ;;  %v14109_v27 = vld [vmem:[%s18761_s4 + $0x2d8] sm:$0xff]  }
 0x5a3   :  { %13417 = vmatprep.subr.bf16.mxu1 %v15118_v5 }
 0x5a6   :  { %13418 = vmatpush3.bf16.msra.mxu1 %v14087_v29  ;;  %v14110_v29 = vld [vmem:[%s18761_s4 + $0x2e0] sm:$0xff]  }
 0x5a7   :  { %13419 = vmatprep.subr.bf16.mxu1 %v15118_v5 }
 0x5aa   :  { %13420 = vmatpush3.bf16.msra.mxu1 %v14088_v30  ;;  %v14111_v30 = vld [vmem:[%s18761_s4 + $0x2e8] sm:$0xff]  }
 0x5ab   :  { %13421 = vmatprep.subr.bf16.mxu1 %v15118_v5 }
 0x5ae   :  { %13422 = vmatpush3.bf16.msra.mxu1 %v1485_v32 }
 0x5af   :  { %13427 = vmatprep.subr.bf16.mxu1 %v15118_v5 }
 0x5b1   :  { %13424 = vmatmul.mubr.msk.bf16.vlgmr.msra.gmra.mrb[12].mxu1 %vm33_vm6, %v1334_v36  ;;  %v14114_v36 = vld [vmem:[%s18761_s4 + $0x330] sm:$0xff]  }
 0x5b2   :  { %13428 = vmatpush3.bf16.msra.mxu1 %v14090_v35  ;;  %13441 = vmatprep.mubr.msk.bf16.mxu1 %vm18775_vm1, %v15118_v5 }
 0x5b3   :  { %13429 = vmatprep.subr.bf16.mxu1 %v15118_v5 }
 0x5b6   :  { %13430 = vmatpush3.bf16.msra.mxu1 %v14091_v37  ;;  %v14115_v37 = vld [vmem:[%s18761_s4 + $0x338] sm:$0xff]  }
 0x5b7   :  { %13431 = vmatprep.subr.bf16.mxu1 %v15118_v5 }
 0x5ba   :  { %13432 = vmatpush3.bf16.msra.mxu1 %v14092_v38  ;;  %v14116_v38 = vld [vmem:[%s18761_s4 + $0x340] sm:$0xff]  }
 0x5bb   :  { %13433 = vmatprep.subr.bf16.mxu1 %v15118_v5 }
 0x5be   :  { %13434 = vmatpush3.bf16.msra.mxu1 %v14093_v40  ;;  %v14117_v40 = vld [vmem:[%s18761_s4 + $0x348] sm:$0xff]  }
 0x5bf   :  { %13435 = vmatprep.subr.bf16.mxu1 %v15118_v5 }
 0x5c2   :  { %13436 = vmatpush3.bf16.msra.mxu1 %v14094_v41  ;;  %v14118_v41 = vld [vmem:[%s18761_s4 + $0x350] sm:$0xff]  }
 0x5c3   :  { %13437 = vmatprep.subr.bf16.mxu1 %v15118_v5 }
 0x5c6   :  { %13438 = vmatpush3.bf16.msra.mxu1 %v14095_v42 }
 0x5c7   :  { %13439 = vmatprep.subr.bf16.mxu1 %v15118_v5 }
 0x5ca   :  { %13440 = vmatpush3.bf16.msra.mxu1 %v1590_v45 }
 0x5cb   :  { %13505 = vmatprep.subr.bf16.mxu1 %v15118_v5 }
 0x5cd   :  { %13442 = vmatmul.mubr.msk.bf16.vlgmr.msra.gmra.mrb[12].mxu1 %vm33_vm6, %v1544_v48  ;;  %vm18788_vm6 = vmmov %vm18781_vm8  ;;  %v14121_v48 = vld [vmem:[%s18761_s4 + $0x3a0] sm:$0xff]  }
 0x5ce   :  { %13517 = vmatprep.mubr.msk.bf16.mxu1 %vm18775_vm1, %v15118_v5  ;;  %vm18790_vm4 = vmmov %vm18788_vm6  ;;  %13506 = vmatpush3.bf16.msra.mxu1 %v14119_v46 }
 0x5cf   :  { %v15516_v21 = vsel %vm18790_vm4, %v2632_v17, %v2636_v18  ;;  %13507 = vmatprep.subr.bf16.mxu1 %v15118_v5  ;;  %vm18791_vm8 = vmmov %vm18790_vm4  ;;  %v14131_v17 = vld [vmem:[%s18761_s4 + $0x3c0] sm:$0xff]  }
 0x5d0   :  { %vm18792_vm9 = vmmov %vm18790_vm4 }
 0x5d1   :  { %vm18793_vm10 = vmmov %vm18790_vm4 }
 0x5d2   :  { %13508 = vmatpush3.bf16.msra.mxu1 %v14120_v47  ;;  %vm18799_vm0 = vmmov %vm18790_vm4  ;;  %vm18801_vm4 = vcmask 261120  }
 0x5d3   :  { %13509 = vmatprep.subr.bf16.mxu1 %v15118_v5 }
 0x5d6   :  { %13510 = vmatpush3.bf16.msra.mxu1 %v14121_v48 }
 0x5d7   :  { %13511 = vmatprep.subr.bf16.mxu1 %v15118_v5 }
 0x5da   :  { %13512 = vmatpush3.bf16.msra.mxu1 %v14122_v49 }
 0x5db   :  { %13513 = vmatprep.subr.bf16.mxu1 %v15118_v5 }
 0x5de   :  { %13514 = vmatpush3.bf16.msra.mxu1 %v14123_v51  ;;  %v14142_v51 = vld [vmem:[%s18761_s4 + $0x568] sm:$0xff]  }
 0x6a0   :  { %v1626_v54 = vpop.f32.mrb[12].mxu1 }
 0x6a1   :  { %v13443_v55 = vpop.f32.mrb[13].mxu1 }
 0x6a2   :  { %v1629_v56 = vpop.f32.mrb[14].mxu1  ;;  %v15604_v55 = vld [vmem:[#allocation4] sm:$0xff] }
 0x6a3   :  { %v1636_v58 = vrot.slane %v1629_v56, 4  ;;  %v13444_v59 = vpop.f32.mrb[15].mxu1  ;;  %13515 = vmatprep.subr.bf16.mxu1 %v15604_v55 }
 0x6a4   :  { %13516 = vmatpush3.bf16.msra.mxu1 %v14124_v53 }
 0x6a5   :  { %v1638_v60 = vsel %vm18788_vm6, %v1626_v54, %v1636_v58  ;;  %13521 = vmatprep.subr.bf16.mxu1 %v15604_v55  ;;  %vm18800_vm6 = vmmov %vm18796_vm13 }
 0x6a6   :  { %v1645_v61 = vadd.f32 %v1644_v57, %v1638_v60  ;;  %v2033_v57 = vrot.slane %v2029_v52, %v15079_v43 }
 0x6a8   :  { %v1646_v62 = vmax.f32 %v1645_v61, 0.0 }
 0x6aa   :  { %v1655_v63 = vpack.c.bf16 %v1646_v62, %v1646_v62 }
 0x6ac   :  { %13454 = vmatmul.mubr.msk.bf16.vlgmr.msra.gmra.mrb[28].mxu0 %vm18789_vm2, %v1655_v63  ;;  %vm18774_vm2 = vcmask 392192  }
 0x6ad   :  { %13469 = vmatprep.mubr.msk.bf16.mxu0 %vm18775_vm1, %v15118_v5  ;;  %13458 = vmatpush3.bf16.msra.mxu0 %v14101_v1 }
 0x6ae   :  { %13459 = vmatprep.subr.bf16.mxu0 %v15118_v5 }
 0x6b1   :  { %13460 = vmatpush3.bf16.msra.mxu0 %v14102_v2 }
 0x6b2   :  { %13461 = vmatprep.subr.bf16.mxu0 %v15118_v5 }
 0x6b5   :  { %13462 = vmatpush3.bf16.msra.mxu0 %v14103_v3  ;;  %v14125_v3 = vld [vmem:[%s18761_s4 + $0x360] sm:$0xff]  }
 0x6b6   :  { %13463 = vmatprep.subr.bf16.mxu0 %v15118_v5 }
 0x6b9   :  { %13464 = vmatpush3.bf16.msra.mxu0 %v14104_v6 }
 0x6ba   :  { %13465 = vmatprep.subr.bf16.mxu0 %v15118_v5 }
 0x6bd   :  { %13466 = vmatpush3.bf16.msra.mxu0 %v14105_v0  ;;  %v14127_v0 = vld [vmem:[%s18761_s4 + $0x370] sm:$0xff]  }
 0x6be   :  { %13467 = vmatprep.subr.bf16.mxu0 %v15118_v5 }
 0x6c1   :  { %13468 = vmatpush3.bf16.msra.mxu0 %v14106_v11  ;;  %v14129_v11 = vld [vmem:[%s18761_s4 + $0x380] sm:$0xff]  }
 0x6c2   :  { %13473 = vmatprep.subr.bf16.mxu0 %v15118_v5 }
 0x77f   :  { %v1723_v14 = vpop.f32.mrb[28].mxu0 }
 0x780   :  { %v15507_v15 = vadd.f32 %v1723_v14, %v1661_v12  ;;  %v13455_v16 = vpop.f32.mrb[29].mxu0  ;;  %v14130_v12 = vld [vmem:[%s18761_s4 + $0x388] sm:$0xff]  }
 0x781   :  { %v1726_v19 = vpop.f32.mrb[30].mxu0 }
 0x782   :  { %1730 = vrot.lane.b32.xlu0 %v15507_v15, %s14846_s15  ;;  %v13456_v20 = vpop.f32.mrb[31].mxu0  ;;  %v14132_v19 = vld [vmem:[%s18761_s4 + $0x3c8] sm:$0xff]  }
 0x783   :  { %v14133_v20 = vld [vmem:[%s18761_s4 + $0x3d0] sm:$0xff]  }
 0x786   :  { %2639 = vrot.lane.b32.xlu0 %v15516_v21, %s14846_s15 }
 0x7f4   :  { %v1731_v39 = vpop.permute.xlu0 %1730 }
 0x7f5   :  { %1734 = vst.msk [vmem:[#allocation3 + $0x1] sm:$0xf] %vm1733_vm5, %v1731_v39 }
 0x7f6   :  { %1736 = vst.msk [vmem:[#allocation3 + $0x5] sm:$0xf0] %vm1735_vm7, %v1731_v39  ;;  %v14134_v39 = vld [vmem:[%s18761_s4 + $0x3d8] sm:$0xff]  }
 0x7fc   :  { %v1752_v22 = vld [vmem:[#allocation3 + $0x1] sm:$0xff] }
 0x7fd   :  { %v1753_v23 = vld [vmem:[#allocation3 + $0x9] sm:$0x3f]  ;;  %v1737_v32 = vld [vmem:[#allocation3] sm:$0xff] }
 0x7fe   :  { %v1766_v25 = vpack.c.bf16 %v1753_v23, %v1752_v22  ;;  %v1738_v33 = vld [vmem:[#allocation3 + $0x8] sm:$0x3f]  ;;  %v14135_v22 = vld [vmem:[%s18761_s4 + $0x3e0] sm:$0xff]   ;;  %v14136_v23 = vld [vmem:[%s18761_s4 + $0x3e8] sm:$0xff]  }
 0x7ff   :  { %v1751_v35 = vpack.c.bf16 %v1738_v33, %v1737_v32  ;;  %v1927_v42 = vld [vmem:[#allocation3 + $0x2] sm:$0xff]  ;;  %v1928_v44 = vld [vmem:[#allocation3 + $0xa] sm:$0x3f] }
 0x800   :  { %13470 = vmatmul.mubr.msk.bf16.vlgmr.msra.gmra.mrb[32].mxu0 %vm18773_vm3, %v1766_v25  ;;  %v1941_v45 = vpack.c.bf16 %v1928_v44, %v1927_v42  ;;  %v14140_v42 = vld [vmem:[%s18761_s4 + $0x40] sm:$0xff]  }
 0x801   :  { %13474 = vmatpush3.bf16.msra.mxu0 %v14107_v24  ;;  %13485 = vmatprep.mubr.msk.bf16.mxu0 %vm18775_vm1, %v15118_v5 }
 0x802   :  { %13475 = vmatprep.subr.bf16.mxu0 %v15118_v5 }
 0x805   :  { %13476 = vmatpush3.bf16.msra.mxu0 %v14108_v26 }
 0x806   :  { %13477 = vmatprep.subr.bf16.mxu0 %v15118_v5 }
 0x809   :  { %13478 = vmatpush3.bf16.msra.mxu0 %v14109_v27 }
 0x80a   :  { %13479 = vmatprep.subr.bf16.mxu0 %v15118_v5 }
 0x80d   :  { %13480 = vmatpush3.bf16.msra.mxu0 %v14110_v29 }
 0x80e   :  { %13481 = vmatprep.subr.bf16.mxu0 %v15118_v5 }
 0x811   :  { %13482 = vmatpush3.bf16.msra.mxu0 %v14111_v30 }
 0x812   :  { %13483 = vmatprep.subr.bf16.mxu0 %v15118_v5 }
 0x815   :  { %13484 = vmatpush3.bf16.msra.mxu0 %v14112_v31 }
 0x816   :  { %13489 = vmatprep.subr.bf16.mxu0 %v15118_v5 }
 0x818   :  { %13486 = vmatmul.mubr.msk.bf16.vlgmr.msra.gmra.mrb[32].mxu0 %vm18773_vm3, %v1751_v35 }
 0x819   :  { %13490 = vmatpush3.bf16.msra.mxu0 %v14113_v34  ;;  %13501 = vmatprep.mubr.msk.bf16.mxu0 %vm18775_vm1, %v15118_v5 }
 0x81a   :  { %13491 = vmatprep.subr.bf16.mxu0 %v15118_v5 }
 0x81d   :  { %13492 = vmatpush3.bf16.msra.mxu0 %v14114_v36 }
 0x81e   :  { %13493 = vmatprep.subr.bf16.mxu0 %v15118_v5 }
 0x821   :  { %13494 = vmatpush3.bf16.msra.mxu0 %v14115_v37 }
 0x822   :  { %13495 = vmatprep.subr.bf16.mxu0 %v15118_v5 }
 0x825   :  { %13496 = vmatpush3.bf16.msra.mxu0 %v14116_v38  ;;  %v2335_v38 = vld [vmem:[%s18761_s4 + $0x20] sm:$0x1] }
 0x826   :  { %13497 = vmatprep.subr.bf16.mxu0 %v15118_v5 }
 0x829   :  { %13498 = vmatpush3.bf16.msra.mxu0 %v14117_v40  ;;  %v14137_v40 = vld [vmem:[%s18761_s4 + $0x28] sm:$0xff]  }
 0x82a   :  { %13499 = vmatprep.subr.bf16.mxu0 %v15118_v5 }
 0x82d   :  { %13500 = vmatpush3.bf16.msra.mxu0 %v14118_v41  ;;  %v14139_v41 = vld [vmem:[%s18761_s4 + $0x38] sm:$0xff]  }
 0x82e   :  { %13553 = vmatprep.subr.bf16.mxu0 %v15118_v5 }
 0x830   :  { %13502 = vmatmul.mubr.msk.bf16.vlgmr.msra.gmra.mrb[32].mxu0 %vm18773_vm3, %v1941_v45  ;;  %v14141_v45 = vld [vmem:[%s18761_s4 + $0x570] sm:$0xff]  }
 0x831   :  { %13555 = vmatprep.mubr.msk.bf16.mxu0 %vm18775_vm1, %v15118_v5 }
 0x903   :  { %v2015_v54 = vpop.f32.mrb[32].mxu0 }
 0x904   :  { %v13503_v5 = vpop.f32.mrb[33].mxu0 }
 0x905   :  { %v2018_v56 = vpop.f32.mrb[34].mxu0 }
 0x906   :  { %v2025_v58 = vrot.slane %v2018_v56, 4  ;;  %v13504_v59 = vpop.f32.mrb[35].mxu0 }
 0x908   :  { %v2027_v60 = vsel %vm18791_vm8, %v2015_v54, %v2025_v58  ;;  %vm18802_vm8 = vmmov %vm18800_vm6 }
 0x909   :  { %v2034_v61 = vadd.f32 %v2033_v57, %v2027_v60  ;;  %v14143_v60 = vld [vmem:[%s18761_s4 + $0x580] sm:$0xff]  }
 0x90b   :  { %v2035_v62 = vmax.f32 %v2034_v61, 0.0  ;;  %v2563_v61 = vld [vmem:[%s18761_s4 + $0x578] sm:$0x1] }
 0x90d   :  { %2037 = vrot.lane.b32.xlu1 %v2035_v62, %s14846_s15  ;;  %v2564_v62 = vunpack.c.l.bf16 %v2563_v61 }
 0x97f   :  { %v2038_v63 = vpop.permute.xlu1 %2037 }
 0x980   :  { %2040 = vst.msk [vmem:[#allocation3 + $0x1] sm:$0xf] %vm1733_vm5, %v2038_v63 }
 0x981   :  { %2041 = vst.msk [vmem:[#allocation3 + $0x5] sm:$0xf0] %vm1735_vm7, %v2038_v63  ;;  %v2568_v63 = vrot.slane %v2564_v62, %v15079_v43 }
 0x987   :  { %v2057_v1 = vld [vmem:[#allocation3 + $0x1] sm:$0xff] }
 0x988   :  { %v2058_v2 = vld [vmem:[#allocation3 + $0x9] sm:$0x3f]  ;;  %v2042_v14 = vld [vmem:[#allocation3] sm:$0xff] }
 0x989   :  { %v2071_v6 = vpack.c.bf16 %v2058_v2, %v2057_v1  ;;  %v2043_v16 = vld [vmem:[#allocation3 + $0x8] sm:$0x3f] }
 0x98a   :  { %v2056_v18 = vpack.c.bf16 %v2043_v16, %v2042_v14  ;;  %v2232_v24 = vld [vmem:[#allocation3 + $0x2] sm:$0xff]  ;;  %v2233_v25 = vld [vmem:[#allocation3 + $0xa] sm:$0x3f]  ;;  %v2574_v14 = vld [vmem:[%s18761_s4 + $0x588] sm:$0x1] }
 0x98b   :  { %13518 = vmatmul.mubr.msk.bf16.vlgmr.msra.gmra.mrb[16].mxu1 %vm18773_vm3, %v2071_v6  ;;  %v2246_v26 = vpack.c.bf16 %v2233_v25, %v2232_v24  ;;  %v2575_v16 = vunpack.c.l.bf16 %v2574_v14 }
 0x98c   :  { %13522 = vmatpush3.bf16.msra.mxu1 %v14125_v3  ;;  %13533 = vmatprep.mubr.msk.bf16.mxu1 %vm18775_vm1, %v15604_v55 }
 0x98d   :  { %13523 = vmatprep.subr.bf16.mxu1 %v15604_v55 }
 0x990   :  { %13524 = vmatpush3.bf16.msra.mxu1 %v14126_v8 }
 0x991   :  { %13525 = vmatprep.subr.bf16.mxu1 %v15604_v55 }
 0x994   :  { %13526 = vmatpush3.bf16.msra.mxu1 %v14127_v0 }
 0x995   :  { %13527 = vmatprep.subr.bf16.mxu1 %v15604_v55 }
 0x998   :  { %13528 = vmatpush3.bf16.msra.mxu1 %v14128_v9 }
 0x999   :  { %13529 = vmatprep.subr.bf16.mxu1 %v15604_v55 }
 0x99c   :  { %13530 = vmatpush3.bf16.msra.mxu1 %v14129_v11 }
 0x99d   :  { %13531 = vmatprep.subr.bf16.mxu1 %v15604_v55 }
 0x9a0   :  { %13532 = vmatpush3.bf16.msra.mxu1 %v14130_v12  ;;  %v14144_v12 = vld [vmem:[%s18761_s4 + $0x540] sm:$0xff]  }
 0x9a1   :  { %13537 = vmatprep.subr.bf16.mxu1 %v15604_v55 }
 0x9a3   :  { %13534 = vmatmul.mubr.msk.bf16.vlgmr.msra.gmra.mrb[16].mxu1 %vm18773_vm3, %v2056_v18 }
 0x9a4   :  { %13538 = vmatpush3.bf16.msra.mxu1 %v14131_v17  ;;  %13549 = vmatprep.mubr.msk.bf16.mxu1 %vm18775_vm1, %v15604_v55  ;;  %v2579_v17 = vrot.slane %v2575_v16, %v15079_v43  ;;  %v14160_v16 = vld [vmem:[%s18761_s4 + $0x450] sm:$0xff]  }
 0x9a5   :  { %13539 = vmatprep.subr.bf16.mxu1 %v15604_v55 }
 0x9a8   :  { %13540 = vmatpush3.bf16.msra.mxu1 %v14132_v19 }
 0x9a9   :  { %13541 = vmatprep.subr.bf16.mxu1 %v15604_v55 }
 0x9ac   :  { %13542 = vmatpush3.bf16.msra.mxu1 %v14133_v20 }
 0x9ad   :  { %13543 = vmatprep.subr.bf16.mxu1 %v15604_v55 }
 0x9b0   :  { %13544 = vmatpush3.bf16.msra.mxu1 %v14134_v39 }
 0x9b1   :  { %13545 = vmatprep.subr.bf16.mxu1 %v15604_v55 }
 0x9b4   :  { %13546 = vmatpush3.bf16.msra.mxu1 %v14135_v22 }
 0x9b5   :  { %13547 = vmatprep.subr.bf16.mxu1 %v15604_v55 }
 0x9b8   :  { %13548 = vmatpush3.bf16.msra.mxu1 %v14136_v23 }
 0x9b9   :  { %13601 = vmatprep.subr.bf16.mxu1 %v15604_v55 }
 0x9bb   :  { %13550 = vmatmul.mubr.msk.bf16.vlgmr.msra.gmra.mrb[16].mxu1 %vm18773_vm3, %v2246_v26  ;;  %v14145_v26 = vld [vmem:[%s18761_s4 + $0x548] sm:$0xff]  }
 0x9bc   :  { %13613 = vmatprep.mubr.msk.bf16.mxu1 %vm18775_vm1, %v15604_v55 }
 0xa8e   :  { %v2320_v27 = vpop.f32.mrb[16].mxu1 }
 0xa8f   :  { %v13551_v29 = vpop.f32.mrb[17].mxu1 }
 0xa90   :  { %v2323_v30 = vpop.f32.mrb[18].mxu1  ;;  %v14147_v29 = vld [vmem:[%s18761_s4 + $0x558] sm:$0xff]  }
 0xa91   :  { %v2330_v31 = vrot.slane %v2323_v30, 4  ;;  %v13552_v32 = vpop.f32.mrb[19].mxu1 }
 0xa93   :  { %v2332_v33 = vsel %vm18792_vm9, %v2320_v27, %v2330_v31  ;;  %v14146_v27 = vld [vmem:[%s18761_s4 + $0x550] sm:$0xff]   ;;  %vm18803_vm9 = vmmov %vm18801_vm4 }
 0xa94   :  { %v2333_v34 = vadd.f32 %v2332_v33, %v15507_v15  ;;  %v14138_v15 = vld [vmem:[%s18761_s4 + $0x30] sm:$0xff]  }
 0xa96   :  { %v15672_v35 = vmax.f32 %v2333_v34, 0.0  ;;  %v2640_v34 = vpop.permute.xlu0 %2639 }
 0xa98   :  { %v2336_v36 = vpack.c.bf16 %v15672_v35, %v15672_v35 }
 0xa9a   :  { %v2341_v37 = vsel %vm18793_vm10, %v2336_v36, 0  ;;  %vm18804_vm10 = vmmov %vm18795_vm12 }
 0xa9b   :  { %13554 = vmatpush3.bf16.msra.mxu0 %v2341_v37 }
 0xa9c   :  { %13559 = vmatprep.subr.bf16.mxu0 %v15604_v55 }
 0xa9e   :  { %13556 = vmatmul.mubr.msk.bf16.vlgmr.msra.gmra.mrb[36].mxu0 %vm18794_vm11, %v2335_v38  ;;  %vm18805_vm11 = vmmov %vm18801_vm4 }
 0xa9f   :  { %13560 = vmatpush3.bf16.msra.mxu0 %v14137_v40  ;;  %13567 = vmatprep.mubr.msk.bf16.mxu0 %vm18775_vm1, %v15604_v55 }
 0xaa0   :  { %13561 = vmatprep.subr.bf16.mxu0 %v15604_v55 }
 0xaa3   :  { %13562 = vmatpush3.bf16.msra.mxu0 %v14138_v15 }
 0xaa4   :  { %13563 = vmatprep.subr.bf16.mxu0 %v15604_v55 }
 0xaa7   :  { %13564 = vmatpush3.bf16.msra.mxu0 %v14139_v41 }
 0xaa8   :  { %13565 = vmatprep.subr.bf16.mxu0 %v15604_v55 }
 0xaab   :  { %13566 = vmatpush3.bf16.msra.mxu0 %v14140_v42 }
 0xaac   :  { %13571 = vmatprep.subr.bf16.mxu0 %v15604_v55 }
 0xb71   :  { %v2377_v44 = vpop.f32.mrb[36].mxu0 }
 0xb72   :  { %v2391_v46 = vpack.c.bf16 %v2377_v44, %v2377_v44  ;;  %v13557_v47 = vpop.f32.mrb[37].mxu0  ;;  %v2648_v44 = vsel %vm18802_vm8, %v15516_v21, %v2640_v34  ;;  %v14175_v34 = vld [vmem:[%s18763_s5 + $0x1e0] ss:$8 sps:$4 sm:$0xff]  }
 0xb73   :  { %v2380_v48 = vpop.f32.mrb[38].mxu0 }
 0xb74   :  { %v13558_v49 = vpop.f32.mrb[39].mxu0  ;;  %13568 = vmatmul.mubr.msk.bf16.vlgmr.msra.gmra.mrb[40].mxu0 %vm18795_vm12, %v2391_v46  ;;  %vm18806_vm12 = vmmov %vm18800_vm6 }
 0xb75   :  { %13572 = vmatpush3.bf16.msra.mxu0 %v14141_v45  ;;  %13573 = vmatprep.mubr.msk.bf16.mxu0 %vm18775_vm1, %v15604_v55 }
 0xb76   :  { %13577 = vmatprep.subr.bf16.mxu0 %v15604_v55 }
 0xb7c   :  { %13574 = vmatmul.mubr.msk.bf16.vlgmr.msra.gmra.mrb[44].mxu0 %vm18796_vm13, %v2464_v50  ;;  %vm18807_vm13 = vmmov %vm18804_vm10 }
 0xb7d   :  { %13579 = vmatprep.mubr.msk.bf16.mxu0 %vm18775_vm1, %v15604_v55  ;;  %13578 = vmatpush3.bf16.msra.mxu0 %v14142_v51  ;;  %v14148_v51 = vld [vmem:[%s18761_s4 + $0x420] sm:$0xff]  }
 0xb7e   :  { %13583 = vmatprep.subr.bf16.mxu0 %v15604_v55  ;;  %13602 = vmatpush3.bf16.msra.mxu1 %v14148_v51 }
 0xb7f   :  { %13603 = vmatprep.subr.bf16.mxu1 %v15604_v55 }
 0xc47   :  { %v2453_v52 = vpop.f32.mrb[40].mxu0 }
 0xc48   :  { %v2461_v53 = vpack.c.bf16 %v2453_v52, %v2453_v52  ;;  %v13569_v54 = vpop.f32.mrb[41].mxu0  ;;  %v14151_v52 = vld [vmem:[%s18761_s4 + $0x438] sm:$0xff]  }
 0xc49   :  { %v2456_v5 = vpop.f32.mrb[42].mxu0  ;;  %v14152_v54 = vld [vmem:[%s18761_s4 + $0x440] sm:$0xff]  }
 0xc4a   :  { %v13570_v56 = vpop.f32.mrb[43].mxu0  ;;  %13580 = vmatmul.mubr.msk.bf16.vlgmr.msra.gmra.mrb[48].mxu0 %vm18797_vm14, %v2461_v53  ;;  %v2691_v53 = vld [vmem:[%s18761_s4 + $0x560] sm:$0x1]  ;;  %v14153_v5 = vld [vmem:[%s18761_s4 + $0x448] sm:$0xff]   ;;  %vm18808_vm14 = vmmov %vm18799_vm0 }
 0xc4b   :  { %13585 = vmatprep.mubr.msk.bf16.mxu0 %vm18775_vm1, %v15604_v55  ;;  %13584 = vmatpush3.bf16.msra.mxu0 %v14143_v60  ;;  %v2692_v56 = vunpack.c.l.bf16 %v2691_v53 }
 0xc4c   :  { %13589 = vmatprep.subr.bf16.mxu0 %v15604_v55 }
 0xc4f   :  { %v2508_v28 = vpop.f32.mrb[44].mxu0 }
 0xc50   :  { %v13575_v57 = vpop.f32.mrb[45].mxu0 }
 0xc51   :  { %v2511_v58 = vpop.f32.mrb[46].mxu0 }
 0xc52   :  { %v13576_v59 = vpop.f32.mrb[47].mxu0 }
 0xd1d   :  { %v2557_v1 = vpop.f32.mrb[48].mxu0 }
 0xd1e   :  { %v2558_v2 = vadd.f32 %v2557_v1, %v2508_v28  ;;  %v13581_v3 = vpop.f32.mrb[49].mxu0  ;;  %v2696_v28 = vrot.slane %v2692_v56, %v15079_v43 }
 0xd1f   :  { %v2560_v6 = vpop.f32.mrb[50].mxu0 }
 0xd20   :  { %v2569_v8 = vadd.f32 %v2568_v63, %v2558_v2  ;;  %v13582_v0 = vpop.f32.mrb[51].mxu0  ;;  %v14154_v2 = vld [vmem:[%s18761_s4 + $0x3f0] sm:$0xff]   ;;  %v14155_v6 = vld [vmem:[%s18761_s4 + $0x3f8] sm:$0xff]  }
 0xd21   :  { %v14157_v0 = vld [vmem:[%s18761_s4 + $0x408] sm:$0xff]  }
 0xd22   :  { %v2570_v9 = vmax.f32 %v2569_v8, 0.0  ;;  %v14156_v8 = vld [vmem:[%s18761_s4 + $0x400] sm:$0xff]  }
 0xd24   :  { %v2573_v11 = vpack.c.bf16 %v2570_v9, %v2570_v9  ;;  %v14158_v9 = vld [vmem:[%s18761_s4 + $0x410] sm:$0xff]  }
 0xd26   :  { %13586 = vmatmul.mubr.msk.bf16.vlgmr.msra.gmra.mrb[52].mxu0 %vm18798_vm15, %v2573_v11  ;;  %v14159_v11 = vld [vmem:[%s18761_s4 + $0x418] sm:$0xff]   ;;  %vm18811_vm15 = vcmask 64512  }
 0xd27   :  { %13597 = vmatprep.mubr.msk.bf16.mxu0 %vm18775_vm1, %v15604_v55  ;;  %13590 = vmatpush3.bf16.msra.mxu0 %v14144_v12 }
 0xd28   :  { %13591 = vmatprep.subr.bf16.mxu0 %v15604_v55 }
 0xd2b   :  { %13592 = vmatpush3.bf16.msra.mxu0 %v14145_v26  ;;  %v14166_v26 = vld [vmem:[%s18763_s5] ss:$8 sps:$4 sm:$0xff]  }
 0xd2c   :  { %13593 = vmatprep.subr.bf16.mxu0 %v15604_v55 }
 0xd2f   :  { %13594 = vmatpush3.bf16.msra.mxu0 %v14146_v27  ;;  %v14167_v27 = vld [vmem:[%s18763_s5 + $0x20] ss:$8 sps:$4 sm:$0xff]  }
 0xd30   :  { %13595 = vmatprep.subr.bf16.mxu0 %v15604_v55 }
 0xd33   :  { %13596 = vmatpush3.bf16.msra.mxu0 %v14147_v29  ;;  %v14169_v29 = vld [vmem:[%s18763_s5 + $0x180] ss:$8 sps:$4 sm:$0xff]  }
 0xd34   :  { %13649 = vmatprep.subr.bf16.mxu0 %v15604_v55 }
 0xdf9   :  { %v2623_v18 = vpop.f32.mrb[52].mxu0 }
 0xdfa   :  { %v2624_v19 = vadd.f32 %v2623_v18, %v2579_v17  ;;  %v13587_v20 = vpop.f32.mrb[53].mxu0  ;;  %v15834_v18 = vld [vmem:[#allocation4] sm:$0xff] }
 0xdfb   :  { %v2626_v39 = vpop.f32.mrb[54].mxu0  ;;  %v14163_v20 = vld [vmem:[%s18761_s4 + $0x468] sm:$0xff]  }
 0xdfc   :  { %v12021_v22 = vmul.f32 -1.442695, %v2624_v19  ;;  %v13588_v23 = vpop.f32.mrb[55].mxu0  ;;  %v14161_v19 = vld [vmem:[%s18761_s4 + $0x458] sm:$0xff]   ;;  %v14164_v39 = vld [vmem:[%s18761_s4 + $0x470] sm:$0xff]  }
 0xdfe   :  { %14817 = vpow2.f32 %v12021_v22  ;;  %v14165_v22 = vld [vmem:[%s18761_s4 + $0x478] sm:$0xff]  }
 0xe08   :  { %v14818_v24 = vpop.eup %14817 }
 0xe09   :  { %v2655_v25 = vadd.f32 1.0, %v14818_v24 }
 0xe0b   :  { %14819 = vrcp.f32 %v2655_v25 }
 0xe15   :  { %v14820_v30 = vpop.eup %14819 }
 0xe16   :  { %v2661_v31 = vrot.slane %v14820_v30, %v15079_v43  ;;  %v2665_v32 = vrot.slane %v14820_v30, %v15505_v13  ;;  %v14171_v30 = vld [vmem:[%s18763_s5 + $0x1a0] ss:$8 sps:$4 sm:$0xff]  }
 0xe18   :  { %v2666_v33 = vsel %vm18799_vm0, %v2661_v31, %v2665_v32  ;;  %v14172_v31 = vld [vmem:[%s18763_s5 + $0x1b0] ss:$8 sps:$4 sm:$0xff]   ;;  %v14173_v32 = vld [vmem:[%s18763_s5 + $0x1c0] ss:$8 sps:$4 sm:$0xff]  }
 0xe19   :  { %2671 = vrot.lane.b32.xlu1 %v2666_v33, %s14847_s1  ;;  %2668 = vrot.lane.b32.xlu0 %v2666_v33, %s14846_s15 }
 0xe1d   :  { %2674 = vrot.lane.b32.xlu1 %v2666_v33, %s14848_s0  ;;  %2642 = vrot.lane.b32.xlu0 %v15516_v21, %s14847_s1 }
 0xe21   :  { %2645 = vrot.lane.b32.xlu1 %v15516_v21, %s14848_s0  ;;  %v14149_v21 = vld [vmem:[%s18761_s4 + $0x428] sm:$0xff]  }
 0xe22   :  { %13604 = vmatpush3.bf16.msra.mxu1 %v14149_v21  ;;  %v14185_v21 = vld [vmem:[%s18761_s4 + $0x4e0] sm:$0xff]  }
 0xe23   :  { %13605 = vmatprep.subr.bf16.mxu1 %v15604_v55 }
 0xe8b   :  { %v2672_v36 = vpop.permute.xlu1 %2671  ;;  %v2669_v37 = vpop.permute.xlu0 %2668 }
 0xe8c   :  { %v2677_v38 = vsel %vm18800_vm6, %v2666_v33, %v2669_v37  ;;  %v14174_v33 = vld [vmem:[%s18763_s5 + $0x1d0] ss:$8 sps:$4 sm:$0xff]   ;;  %v14177_v37 = vld [vmem:[%s18763_s5 + $0x200] ss:$8 sps:$4 sm:$0xff]  }
 0xe8d   :  { %v2678_v15 = vsel %vm18801_vm4, %v2677_v38, %v2672_v36  ;;  %v14176_v36 = vld [vmem:[%s18763_s5 + $0x1f0] ss:$8 sps:$4 sm:$0xff]   ;;  %v3590_v38 = vld [vmem:[%s18764_s3 + $0x8] sm:$0xff]  ;;  %vm18813_vm4 = vmmov %vm18811_vm15 }
 0xe8e   :  { %vm18814_vm8 = vmmov %vm18813_vm4 }
 0xe8f   :  { %v2675_v40 = vpop.permute.xlu1 %2674  ;;  %v2643_v42 = vpop.permute.xlu0 %2642 }
 0xe90   :  { %v2679_v41 = vsel %vm18774_vm2, %v2678_v15, %v2675_v40  ;;  %v2649_v46 = vsel %vm18803_vm9, %v2648_v44, %v2643_v42  ;;  %v14180_v40 = vld [vmem:[%s18761_s4 + $0x4b8] sm:$0xff]   ;;  %v3616_v15 = vpack.c.bf16 %v3590_v38, %v3590_v38  ;;  %v14182_v44 = vld [vmem:[%s18761_s4 + $0x4c8] sm:$0xff]   ;;  %vm3369_vm9 = vcmask 424960  }
 0xe91   :  { %v2680_v45 = vmul.f32 %v2679_v41, %v15672_v35  ;;  %v14150_v35 = vld [vmem:[%s18761_s4 + $0x430] sm:$0xff]   ;;  %v14181_v41 = vld [vmem:[%s18761_s4 + $0x4c0] sm:$0xff]  }
 0xe92   :  { %13606 = vmatpush3.bf16.msra.mxu1 %v14150_v35  ;;  %v14178_v42 = vld [vmem:[%s18763_s5 + $0x210] ss:$8 sps:$4 sm:$0xff]  }
 0xe93   :  { %v2646_v47 = vpop.permute.xlu1 %2645  ;;  %13607 = vmatprep.subr.bf16.mxu1 %v15604_v55 }
 0xe94   :  { %v2651_v48 = vsel %vm18774_vm2, %v2649_v46, %v2646_v47  ;;  %v3589_v46 = vld [vmem:[%s18764_s3] sm:$0xff]  ;;  %v14183_v47 = vld [vmem:[%s18761_s4 + $0x4d0] sm:$0xff]   ;;  %vm4211_vm2 = vcmask 877400  }
 0xe95   :  { %v2681_v49 = vadd.f32 %v2680_v45, %v2651_v48  ;;  %v14179_v45 = vld [vmem:[%s18763_s5 + $0x220] ss:$8 sps:$4 sm:$0xff]   ;;  %v3615_v48 = vpack.c.bf16 %v3589_v46, %v3589_v46  ;;  %v3617_v46 = vld [vmem:[%s18763_s5 + $0x230] sm:$0x1] }
 0xe96   :  { %13608 = vmatpush3.bf16.msra.mxu1 %v14151_v52 }
 0xe97   :  { %v2690_v50 = vpack.c.bf16 %v2681_v49, %v2681_v49  ;;  %13609 = vmatprep.subr.bf16.mxu1 %v15604_v55  ;;  %v3061_v49 = vld [vmem:[%s18761_s4 + $0x480] sm:$0x1] }
 0xe98   :  { %v3062_v51 = vunpack.c.l.bf16 %v3061_v49 }
 0xe99   :  { %13598 = vmatmul.mubr.msk.bf16.vlgmr.msra.gmra.mrb[56].mxu0 %vm18804_vm10, %v2690_v50  ;;  %v14184_v50 = vld [vmem:[%s18761_s4 + $0x4d8] sm:$0xff]   ;;  %vm4107_vm10 = vcmask 277649  }
 0xe9a   :  { %13661 = vmatprep.mubr.msk.bf16.mxu0 %vm18775_vm1, %v15604_v55  ;;  %13610 = vmatpush3.bf16.msra.mxu1 %v14152_v54  ;;  %v3066_v54 = vrot.slane %v3062_v51, %v15079_v43 }
 0xe9b   :  { %13611 = vmatprep.subr.bf16.mxu1 %v15604_v55  ;;  %13650 = vmatpush3.bf16.msra.mxu0 %v14180_v40  ;;  %v3540_v40 = vld [vmem:[%s18763_s5 + $0x30] sm:$0xf] }
 0xe9c   :  { %13651 = vmatprep.subr.bf16.mxu0 %v15834_v18 }
 0xe9e   :  { %13612 = vmatpush3.bf16.msra.mxu1 %v14153_v5 }
 0xe9f   :  { %13617 = vmatprep.subr.bf16.mxu1 %v15604_v55  ;;  %13652 = vmatpush3.bf16.msra.mxu0 %v14181_v41  ;;  %v14199_v41 = vld [vmem:[%s18763_s5 + $0x240] ss:$8 sps:$4 sm:$0xff]  }
 0xea0   :  { %13653 = vmatprep.subr.bf16.mxu0 %v15834_v18 }
 0xea3   :  { %13654 = vmatpush3.bf16.msra.mxu0 %v14182_v44  ;;  %v14201_v44 = vld [vmem:[%s18763_s5 + $0x260] ss:$8 sps:$4 sm:$0xff]  }
 0xea4   :  { %13655 = vmatprep.subr.bf16.mxu0 %v15834_v18 }
 0xea7   :  { %13656 = vmatpush3.bf16.msra.mxu0 %v14183_v47  ;;  %v3618_v47 = vunpack.c.l.bf16 %v3617_v46 }
 0xea8   :  { %13657 = vmatprep.subr.bf16.mxu0 %v15834_v18 }
 0xea9   :  { %v3622_v49 = vrot.slane %v3618_v47, %v15079_v43 }
 0xeab   :  { %13658 = vmatpush3.bf16.msra.mxu0 %v14184_v50  ;;  %v14204_v50 = vld [vmem:[%s18763_s5 + $0x290] ss:$8 sps:$4 sm:$0xff]  }
 0xeac   :  { %13659 = vmatprep.subr.bf16.mxu0 %v15834_v18 }
 0xeaf   :  { %13660 = vmatpush3.bf16.msra.mxu0 %v14185_v21  ;;  %v14205_v21 = vld [vmem:[%s18763_s5 + $0x2a0] ss:$8 sps:$4 sm:$0xff]  }
 0xeb0   :  { %13665 = vmatprep.subr.bf16.mxu0 %v15834_v18 }
 0xf6c   :  { %v2758_v57 = vpop.f32.mrb[56].mxu0 }
 0xf6d   :  { %v15799_v58 = vadd.f32 %v2758_v57, %v2696_v28  ;;  %v13599_v59 = vpop.f32.mrb[57].mxu0 }
 0xf6e   :  { %v2761_v60 = vpop.f32.mrb[58].mxu0 }
 0xf6f   :  { %2765 = vrot.lane.b32.xlu0 %v15799_v58, %s14846_s15  ;;  %v13600_v61 = vpop.f32.mrb[59].mxu0 }
 0xfe1   :  { %v2766_v62 = vpop.permute.xlu0 %2765 }
 0xfe2   :  { %2768 = vst.msk [vmem:[#allocation3 + $0x1] sm:$0xf] %vm1733_vm5, %v2766_v62 }
 0xfe3   :  { %2769 = vst.msk [vmem:[#allocation3 + $0x5] sm:$0xf0] %vm1735_vm7, %v2766_v62 }
 0xfe9   :  { %v2785_v63 = vld [vmem:[#allocation3 + $0x1] sm:$0xff] }
 0xfea   :  { %v2786_v1 = vld [vmem:[#allocation3 + $0x9] sm:$0x3f]  ;;  %v2770_v12 = vld [vmem:[#allocation3] sm:$0xff] }
 0xfeb   :  { %v2799_v3 = vpack.c.bf16 %v2786_v1, %v2785_v63  ;;  %v2771_v14 = vld [vmem:[#allocation3 + $0x8] sm:$0x3f] }
 0xfec   :  { %v2784_v17 = vpack.c.bf16 %v2771_v14, %v2770_v12  ;;  %v2960_v23 = vld [vmem:[#allocation3 + $0x2] sm:$0xff]  ;;  %v2961_v24 = vld [vmem:[#allocation3 + $0xa] sm:$0x3f] }
 0xfed   :  { %13614 = vmatmul.mubr.msk.bf16.vlgmr.msra.gmra.mrb[20].mxu1 %vm18773_vm3, %v2799_v3  ;;  %v2974_v25 = vpack.c.bf16 %v2961_v24, %v2960_v23  ;;  %v14189_v23 = vld [vmem:[%s18761_s4 + $0x4a0] sm:$0xff]   ;;  %v14190_v24 = vld [vmem:[%s18761_s4 + $0x4a8] sm:$0xff]  }
 0xfee   :  { %13618 = vmatpush3.bf16.msra.mxu1 %v14154_v2  ;;  %13629 = vmatprep.mubr.msk.bf16.mxu1 %vm18775_vm1, %v15604_v55 }
 0xfef   :  { %13619 = vmatprep.subr.bf16.mxu1 %v15604_v55 }
 0xff2   :  { %13620 = vmatpush3.bf16.msra.mxu1 %v14155_v6 }
 0xff3   :  { %13621 = vmatprep.subr.bf16.mxu1 %v15604_v55 }
 0xff6   :  { %13622 = vmatpush3.bf16.msra.mxu1 %v14156_v8 }
 0xff7   :  { %13623 = vmatprep.subr.bf16.mxu1 %v15604_v55 }
 0xffa   :  { %13624 = vmatpush3.bf16.msra.mxu1 %v14157_v0 }
 0xffb   :  { %13625 = vmatprep.subr.bf16.mxu1 %v15604_v55 }
 0xffe   :  { %13626 = vmatpush3.bf16.msra.mxu1 %v14158_v9 }
 0xfff   :  { %13627 = vmatprep.subr.bf16.mxu1 %v15604_v55  ;;  %v14162_v55 = vld [vmem:[%s18761_s4 + $0x460] sm:$0xff]  }
0x1002   :  { %13628 = vmatpush3.bf16.msra.mxu1 %v14159_v11 }
0x1003   :  { %13633 = vmatprep.subr.bf16.mxu1 %v15834_v18 }
0x1005   :  { %13630 = vmatmul.mubr.msk.bf16.vlgmr.msra.gmra.mrb[20].mxu1 %vm18773_vm3, %v2784_v17 }
0x1006   :  { %13634 = vmatpush3.bf16.msra.mxu1 %v14160_v16  ;;  %13645 = vmatprep.mubr.msk.bf16.mxu1 %vm18775_vm1, %v15834_v18 }
0x1007   :  { %13635 = vmatprep.subr.bf16.mxu1 %v15834_v18 }
0x100a   :  { %13636 = vmatpush3.bf16.msra.mxu1 %v14161_v19 }
0x100b   :  { %13637 = vmatprep.subr.bf16.mxu1 %v15834_v18 }
0x100e   :  { %13638 = vmatpush3.bf16.msra.mxu1 %v14162_v55  ;;  %v14186_v55 = vld [vmem:[%s18761_s4 + $0x488] sm:$0xff]  }
0x100f   :  { %13639 = vmatprep.subr.bf16.mxu1 %v15834_v18 }
0x1012   :  { %13640 = vmatpush3.bf16.msra.mxu1 %v14163_v20 }
0x1013   :  { %13641 = vmatprep.subr.bf16.mxu1 %v15834_v18 }
0x1016   :  { %13642 = vmatpush3.bf16.msra.mxu1 %v14164_v39  ;;  %v14187_v39 = vld [vmem:[%s18761_s4 + $0x490] sm:$0xff]  }
0x1017   :  { %13643 = vmatprep.subr.bf16.mxu1 %v15834_v18 }
0x101a   :  { %13644 = vmatpush3.bf16.msra.mxu1 %v14165_v22  ;;  %v14188_v22 = vld [vmem:[%s18761_s4 + $0x498] sm:$0xff]  }
0x101b   :  { %13697 = vmatprep.subr.bf16.mxu1 %v15834_v18 }
0x101d   :  { %13646 = vmatmul.mubr.msk.bf16.vlgmr.msra.gmra.mrb[20].mxu1 %vm18773_vm3, %v2974_v25  ;;  %v14191_v25 = vld [vmem:[%s18761_s4 + $0x4b0] sm:$0xff]  }
0x101e   :  { %13698 = vmatpush3.bf16.msra.mxu1 %v14969_v4  ;;  %13701 = vmatprep.mubr.msk.bf16.mxu1 %vm18775_vm1, %v15834_v18  ;;  %v14849_v4 = vmov 0  }
0x101f   :  { %13699 = vmatprep.subr.bf16.mxu1 %v15834_v18 }
0x1022   :  { %13700 = vmatpush3.bf16.msra.mxu1 %v14990_v10  ;;  %v14168_v10 = vld [vmem:[%s18763_s5 + $0x170] ss:$8 sps:$4 sm:$0xff]  }
0x1023   :  { %13711 = vmatprep.subr.bf16.mxu1 %v15834_v18 }
0x1025   :  { %13702 = vmatmul.mubr.msk.bf16.vlgmr.msra.gmra.mrb[24].mxu1 %vm18805_vm11, %v14166_v26  ;;  %vm4109_vm11 = vcmask 270480  }
0x1026   :  { %13712 = vmatpush3.bf16.msra.mxu1 %v14981_v7  ;;  %13713 = vmatprep.mubr.msk.bf16.mxu1 %vm18775_vm1, %v15834_v18  ;;  %v14170_v7 = vld [vmem:[%s18763_s5 + $0x190] ss:$8 sps:$4 sm:$0xff]  }
0x1027   :  { %3698 = vmatprep.subr.bf16.mxu1 %v14849_v4 }
0x102d   :  { %13714 = vmatmul.mubr.msk.bf16.vlgmr.msra.gmra.mrb[28].mxu1 %vm18806_vm12, %v14167_v27  ;;  %vm4116_vm12 = vcmask 285969  }
0x102e   :  { %3699 = vmatpush1.bf16.msra.mxu1 %v14168_v10  ;;  %12088 = vmatprep.mubr.msk.bf16.mxu1 %vm18807_vm13, %v3616_v15  ;;  %v14192_v10 = vld [vmem:[%s18761_s4 + $0x4e8] sm:$0xff]   ;;  %vm4118_vm13 = vcmask 278800  }
0x102f   :  { %3700 = vmatprep.subr.bf16.mxu1 %v14849_v4 }
0x1032   :  { %3701 = vmatpush1.bf16.msra.mxu1 %v14169_v29 }
0x1033   :  { %3702 = vmatprep.subr.bf16.mxu1 %v14849_v4 }
0x1036   :  { %3703 = vmatpush1.bf16.msra.mxu1 %v14170_v7  ;;  %v14193_v7 = vld [vmem:[%s18761_s4 + $0x4f0] sm:$0xff]  }
0x1037   :  { %3704 = vmatprep.subr.bf16.mxu1 %v14849_v4 }
0x103a   :  { %3705 = vmatpush1.bf16.msra.mxu1 %v14171_v30  ;;  %v14194_v30 = vld [vmem:[%s18761_s4 + $0x4f8] sm:$0xff]  }
0x103b   :  { %3706 = vmatprep.subr.bf16.mxu1 %v14849_v4 }
0x103e   :  { %3707 = vmatpush1.bf16.msra.mxu1 %v14172_v31  ;;  %v14195_v31 = vld [vmem:[%s18761_s4 + $0x500] sm:$0xff]  }
0x103f   :  { %3708 = vmatprep.subr.bf16.mxu1 %v14849_v4 }
0x1042   :  { %3709 = vmatpush1.bf16.msra.mxu1 %v14173_v32  ;;  %v14196_v32 = vld [vmem:[%s18761_s4 + $0x508] sm:$0xff]  }
0x1043   :  { %3710 = vmatprep.subr.bf16.mxu1 %v14849_v4 }
0x1046   :  { %3711 = vmatpush1.bf16.msra.mxu1 %v14174_v33  ;;  %v14197_v33 = vld [vmem:[%s18761_s4 + $0x510] sm:$0xff]   ;;  %s14852_s4 = smov 102  }
0x1047   :  { %3712 = vmatprep.subr.bf16.mxu1 %v14849_v4 }
0x104a   :  { %3713 = vmatpush1.bf16.msra.mxu1 %v14175_v34 }
0x104b   :  { %3714 = vmatprep.subr.bf16.mxu1 %v14849_v4 }
0x104e   :  { %3715 = vmatpush1.bf16.msra.mxu1 %v14176_v36 }
0x104f   :  { %3716 = vmatprep.subr.bf16.mxu1 %v14849_v4 }
0x1052   :  { %3717 = vmatpush1.bf16.msra.mxu1 %v14177_v37  ;;  %v14198_v37 = vld [vmem:[%s18763_s5 + $0x10] ss:$8 sps:$4 sm:$0xff]  }
0x1053   :  { %3718 = vmatprep.subr.bf16.mxu1 %v14849_v4 }
0x1056   :  { %3719 = vmatpush1.bf16.msra.mxu1 %v14178_v42  ;;  %v14200_v42 = vld [vmem:[%s18763_s5 + $0x250] ss:$8 sps:$4 sm:$0xff]  }
0x1057   :  { %3720 = vmatprep.subr.bf16.mxu1 %v14849_v4 }
0x105a   :  { %3721 = vmatpush1.bf16.msra.mxu1 %v14179_v45  ;;  %v14202_v45 = vld [vmem:[%s18763_s5 + $0x270] ss:$8 sps:$4 sm:$0xff]  }
0x105b   :  { %13761 = vmatprep.subr.bf16.mxu1 %v15834_v18 }
0x105d   :  { %3731 = vmatmul.mubr.bf16.vlgmr.msra.gmra.mrb[32].mxu1 %v3615_v48  ;;  %v14203_v48 = vld [vmem:[%s18763_s5 + $0x280] ss:$8 sps:$4 sm:$0xff]  }
0x105e   :  { %13763 = vmatprep.mubr.msk.bf16.mxu1 %vm18775_vm1, %v15834_v18 }
0x10f0   :  { %v3048_v35 = vpop.f32.mrb[20].mxu1 }
0x10f1   :  { %v13647_v52 = vpop.f32.mrb[21].mxu1 }
0x10f2   :  { %v3051_v53 = vpop.f32.mrb[22].mxu1  ;;  %v14206_v52 = vld [vmem:[%s18763_s5 + $0x2b0] ss:$8 sps:$4 sm:$0xff]  }
0x10f3   :  { %v3058_v5 = vrot.slane %v3051_v53, 4  ;;  %v13648_v56 = vpop.f32.mrb[23].mxu1 }
0x10f5   :  { %v3060_v28 = vsel %vm18808_vm14, %v3048_v35, %v3058_v5  ;;  %vm4125_vm14 = vcmask 294169  }
0x10f6   :  { %v3067_v57 = vadd.f32 %v3066_v54, %v3060_v28 }
0x10f8   :  { %v3068_v59 = vmax.f32 %v3067_v57, 0.0  ;;  %v15967_v60 = vpop.f32.mrb[24].mxu1 }
0x10f9   :  { %v13703_v61 = vpop.f32.mrb[25].mxu1 }
0x10fa   :  { %3070 = vrot.lane.b32.xlu1 %v3068_v59, %s14846_s15  ;;  %v15969_v62 = vpop.f32.mrb[26].mxu1 }
0x10fb   :  { %v3438_v63 = vpack.c.bf16 %v15969_v62, %v15967_v60  ;;  %v13704_v1 = vpop.f32.mrb[27].mxu1 }
0x1100   :  { %v15973_v2 = vpop.f32.mrb[28].mxu1 }
0x1101   :  { %v13715_v3 = vpop.f32.mrb[29].mxu1 }
0x1102   :  { %v15975_v6 = vpop.f32.mrb[30].mxu1 }
0x1103   :  { %v3541_v8 = vpack.c.bf16 %v15975_v6, %v15973_v2  ;;  %v13716_v0 = vpop.f32.mrb[31].mxu1 }
0x1104   :  { %v16111_v0 = vld [vmem:[#allocation4] sm:$0xff] }
0x1105   :  { %3370 = vst.msk [vmem:[#allocation4 + $0x8] sm:$0xff] %vm3369_vm9, %v16111_v0  ;;  %3372 = vst.msk [vmem:[#allocation4 + $0x18] sm:$0xff] %vm3369_vm9, %v16111_v0 }
0x1106   :  { %3374 = vst.msk [vmem:[#allocation4 + $0x28] sm:$0xff] %vm3369_vm9, %v16111_v0  ;;  %3376 = vst.msk [vmem:[#allocation4 + $0x38] sm:$0xff] %vm3369_vm9, %v16111_v0 }
0x1130   :  { %v15979_v9 = vpop.f32.mrb[32].mxu1 }
0x1131   :  { %v3734_v11 = vpop.f32.mrb[33].mxu1  ;;  %v3733_v51 = vadd.f32 %v15979_v9, %v3622_v49 }
0x1132   :  { %v3735_v12 = vpop.f32.mrb[34].mxu1 }
0x1133   :  { %v3736_v14 = vpop.f32.mrb[35].mxu1  ;;  %v3738_v35 = vmax.f32 %v3733_v51, 0.0 }
0x1135   :  { %v3755_v53 = vpack.c.bf16 %v3738_v35, %v3738_v35 }
0x116c   :  { %v3071_v16 = vpop.permute.xlu1 %3070 }
0x116d   :  { %3073 = vst.msk [vmem:[#allocation3 + $0x1] sm:$0xf] %vm1733_vm5, %v3071_v16  ;;  %vm18809_vm5 = vmmov %vm18799_vm0 }
0x116e   :  { %3074 = vst.msk [vmem:[#allocation3 + $0x5] sm:$0xf0] %vm1735_vm7, %v3071_v16  ;;  %v3546_v15 = vsel %vm18809_vm5, %v3540_v40, 0  ;;  %vm18810_vm7 = vmmov %vm18800_vm6  ;;  %vm4127_vm5 = vcmask 287000  }
0x116f   :  { %vm18812_vm6 = vmmov %vm18799_vm0 }
0x1174   :  { %v3090_v17 = vld [vmem:[#allocation3 + $0x1] sm:$0xff] }
0x1175   :  { %v3091_v19 = vld [vmem:[#allocation3 + $0x9] sm:$0x3f]  ;;  %v3075_v26 = vld [vmem:[#allocation3] sm:$0xff] }
0x1176   :  { %v3104_v20 = vpack.c.bf16 %v3091_v19, %v3090_v17  ;;  %v3076_v27 = vld [vmem:[#allocation3 + $0x8] sm:$0x3f]  ;;  %v3756_v19 = vld [vmem:[%s18763_s5 + $0x2c0] sm:$0x1] }
0x1177   :  { %v3089_v29 = vpack.c.bf16 %v3076_v27, %v3075_v26  ;;  %v3265_v34 = vld [vmem:[#allocation3 + $0x2] sm:$0xff]  ;;  %v3266_v36 = vld [vmem:[#allocation3 + $0xa] sm:$0x3f] }
0x1178   :  { %13662 = vmatmul.mubr.msk.bf16.vlgmr.msra.gmra.mrb[60].mxu0 %vm18773_vm3, %v3104_v20  ;;  %v3279_v38 = vpack.c.bf16 %v3266_v36, %v3265_v34  ;;  %v14215_v34 = vld [vmem:[%s18763_s5 + $0x160] ss:$8 sps:$4 sm:$0xff]   ;;  %v14218_v36 = vld [vmem:[%s18763_s5 + $0x394] ss:$8 sps:$4 sm:$0xff]  }
0x1179   :  { %13666 = vmatpush3.bf16.msra.mxu0 %v14186_v55  ;;  %13677 = vmatprep.mubr.msk.bf16.mxu0 %vm18775_vm1, %v15834_v18 }
0x117a   :  { %13667 = vmatprep.subr.bf16.mxu0 %v15834_v18 }
0x117d   :  { %13668 = vmatpush3.bf16.msra.mxu0 %v14187_v39 }
0x117e   :  { %13669 = vmatprep.subr.bf16.mxu0 %v15834_v18 }
0x1181   :  { %13670 = vmatpush3.bf16.msra.mxu0 %v14188_v22 }
0x1182   :  { %13671 = vmatprep.subr.bf16.mxu0 %v15834_v18 }
0x1185   :  { %13672 = vmatpush3.bf16.msra.mxu0 %v14189_v23  ;;  %v3757_v23 = vunpack.c.l.bf16 %v3756_v19 }
0x1186   :  { %13673 = vmatprep.subr.bf16.mxu0 %v15834_v18 }
0x1189   :  { %13674 = vmatpush3.bf16.msra.mxu0 %v14190_v24 }
0x118a   :  { %13675 = vmatprep.subr.bf16.mxu0 %v15834_v18 }
0x118d   :  { %13676 = vmatpush3.bf16.msra.mxu0 %v14191_v25  ;;  %v3761_v25 = vrot.slane %v3757_v23, %v15079_v43 }
0x118e   :  { %13681 = vmatprep.subr.bf16.mxu0 %v15834_v18 }
0x1190   :  { %13678 = vmatmul.mubr.msk.bf16.vlgmr.msra.gmra.mrb[60].mxu0 %vm18773_vm3, %v3089_v29  ;;  %v14209_v29 = vld [vmem:[%s18763_s5 + $0x130] ss:$8 sps:$4 sm:$0xff]  }
0x1191   :  { %13682 = vmatpush3.bf16.msra.mxu0 %v14192_v10  ;;  %13693 = vmatprep.mubr.msk.bf16.mxu0 %vm18775_vm1, %v15834_v18  ;;  %v14208_v10 = vld [vmem:[%s18763_s5 + $0xe0] ss:$8 sps:$4 sm:$0xff]  }
0x1192   :  { %13683 = vmatprep.subr.bf16.mxu0 %v15834_v18 }
0x1195   :  { %13684 = vmatpush3.bf16.msra.mxu0 %v14193_v7  ;;  %v14210_v7 = vld [vmem:[%s18763_s5 + $0xf0] ss:$8 sps:$4 sm:$0xff]  }
0x1196   :  { %13685 = vmatprep.subr.bf16.mxu0 %v15834_v18 }
0x1199   :  { %13686 = vmatpush3.bf16.msra.mxu0 %v14194_v30  ;;  %v14211_v30 = vld [vmem:[%s18763_s5 + $0x140] ss:$8 sps:$4 sm:$0xff]  }
0x119a   :  { %13687 = vmatprep.subr.bf16.mxu0 %v15834_v18 }
0x119d   :  { %13688 = vmatpush3.bf16.msra.mxu0 %v14195_v31  ;;  %v14212_v31 = vld [vmem:[%s18763_s5 + $0x100] ss:$8 sps:$4 sm:$0xff]  }
0x119e   :  { %13689 = vmatprep.subr.bf16.mxu0 %v15834_v18 }
0x11a1   :  { %13690 = vmatpush3.bf16.msra.mxu0 %v14196_v32  ;;  %v14213_v32 = vld [vmem:[%s18763_s5 + $0x150] ss:$8 sps:$4 sm:$0xff]  }
0x11a2   :  { %13691 = vmatprep.subr.bf16.mxu0 %v15834_v18 }
0x11a5   :  { %13692 = vmatpush3.bf16.msra.mxu0 %v14197_v33  ;;  %v14214_v33 = vld [vmem:[%s18763_s5 + $0x110] ss:$8 sps:$4 sm:$0xff]  }
0x11a6   :  { %13705 = vmatprep.subr.bf16.mxu0 %v15834_v18 }
0x11a8   :  { %13694 = vmatmul.mubr.msk.bf16.vlgmr.msra.gmra.mrb[60].mxu0 %vm18773_vm3, %v3279_v38  ;;  %vm4209_vm3 = vcmask 884569  }
0x11a9   :  { %13706 = vmatpush3.bf16.msra.mxu0 %v14198_v37  ;;  %13707 = vmatprep.mubr.msk.bf16.mxu0 %vm18775_vm1, %v15834_v18  ;;  %v14221_v37 = vld [vmem:[%s18763_s5 + $0x2d4] ss:$8 sps:$4 sm:$0xff]  }
0x11aa   :  { %13717 = vmatprep.subr.bf16.mxu0 %v15834_v18 }
0x11b0   :  { %13708 = vmatmul.mubr.msk.bf16.vlgmr.msra.gmra.mrb[64].mxu0 %vm18810_vm7, %v3438_v63  ;;  %vm4132_vm7 = vcmask 425249  }
0x11b1   :  { %13718 = vmatpush3.bf16.msra.mxu0 %v3546_v15  ;;  %13719 = vmatprep.mubr.msk.bf16.mxu0 %vm18775_vm1, %v15834_v18 }
0x11b2   :  { %13723 = vmatprep.subr.bf16.mxu0 %v15834_v18 }
0x11b8   :  { %13720 = vmatmul.mubr.msk.bf16.vlgmr.msra.gmra.mrb[68].mxu0 %vm18811_vm15, %v3541_v8  ;;  %v14207_v8 = vld [vmem:[%s18763_s5 + $0x120] ss:$8 sps:$4 sm:$0xff]   ;;  %vm4134_vm15 = vcmask 418080  }
0x11b9   :  { %13724 = vmatpush3.bf16.msra.mxu0 %v14199_v41  ;;  %13739 = vmatprep.mubr.msk.bf16.mxu0 %vm18775_vm1, %v15834_v18 }
0x11ba   :  { %13725 = vmatprep.subr.bf16.mxu0 %v15834_v18 }
0x11bd   :  { %13726 = vmatpush3.bf16.msra.mxu0 %v14200_v42 }
0x11be   :  { %13727 = vmatprep.subr.bf16.mxu0 %v15834_v18 }
0x11c1   :  { %13728 = vmatpush3.bf16.msra.mxu0 %v14201_v44 }
0x11c2   :  { %13729 = vmatprep.subr.bf16.mxu0 %v15834_v18 }
0x11c5   :  { %13730 = vmatpush3.bf16.msra.mxu0 %v14202_v45 }
0x11c6   :  { %13731 = vmatprep.subr.bf16.mxu0 %v15834_v18 }
0x11c9   :  { %13732 = vmatpush3.bf16.msra.mxu0 %v14203_v48 }
0x11ca   :  { %13733 = vmatprep.subr.bf16.mxu0 %v15834_v18 }
0x11cd   :  { %13734 = vmatpush3.bf16.msra.mxu0 %v14204_v50 }
0x11ce   :  { %13735 = vmatprep.subr.bf16.mxu0 %v15834_v18 }
0x11d1   :  { %13736 = vmatpush3.bf16.msra.mxu0 %v14205_v21 }
0x11d2   :  { %13737 = vmatprep.subr.bf16.mxu0 %v15834_v18 }
0x11d5   :  { %13738 = vmatpush3.bf16.msra.mxu0 %v14206_v52 }
0x11d6   :  { %13743 = vmatprep.subr.bf16.mxu0 %v15834_v18 }
0x11d8   :  { %13740 = vmatmul.mubr.bf16.vlgmr.msra.gmra.mrb[72].mxu0 %v3755_v53 }
0x11d9   :  { %13745 = vmatprep.mubr.msk.bf16.mxu0 %vm18775_vm1, %v15834_v18 }
0x127b   :  { %v3353_v54 = vpop.f32.mrb[60].mxu0 }
0x127c   :  { %v13695_v5 = vpop.f32.mrb[61].mxu0 }
0x127d   :  { %v3356_v56 = vpop.f32.mrb[62].mxu0 }
0x127e   :  { %v3363_v28 = vrot.slane %v3356_v56, 4  ;;  %v13696_v57 = vpop.f32.mrb[63].mxu0 }
0x1280   :  { %v3365_v59 = vsel %vm18799_vm0, %v3353_v54, %v3363_v28  ;;  %vm4139_vm0 = vcmask 433569  }
0x1281   :  { %v3366_v60 = vadd.f32 %v3365_v59, %v15799_v58  ;;  %v3850_v58 = vld [vmem:[%s18763_s5 + $0xd0] sm:$0x1] }
0x1283   :  { %v3482_v61 = vpop.f32.mrb[64].mxu0  ;;  %v3367_v62 = vmax.f32 %v3366_v60, 0.0 }
0x1284   :  { %v4112_v63 = vrot.slane %v3482_v61, 7  ;;  %v13709_v1 = vpop.f32.mrb[65].mxu0 }
0x1285   :  { %v3851_v2 = vpack.c.bf16 %v3367_v62, %v3367_v62  ;;  %v3485_v3 = vpop.f32.mrb[66].mxu0 }
0x1286   :  { %4157 = vrot.lane.b32.xlu0 %v4112_v63, %s14834_s23  ;;  %4113 = vrot.lane.b32.xlu1 %v4112_v63, %s14835_s24  ;;  %v13710_v18 = vpop.f32.mrb[67].mxu0  ;;  %v4283_v14 = vrot.slane %v3485_v3, 7 }
0x1287   :  { %v3856_v6 = vsel %vm18812_vm6, %v3851_v2, 0  ;;  %vm4141_vm6 = vcmask 426400  }
0x1288   :  { %13744 = vmatpush3.bf16.msra.mxu0 %v3856_v6  ;;  %13762 = vmatpush3.bf16.msra.mxu1 %v3856_v6 }
0x1289   :  { %13749 = vmatprep.subr.bf16.mxu0 %v16111_v0  ;;  %13767 = vmatprep.subr.bf16.mxu1 %v16111_v0 }
0x128a   :  { %4245 = vrot.lane.b32.xlu0 %v4112_v63, %s14850_s9  ;;  %4136 = vrot.lane.b32.xlu1 %v4112_v63, %s14836_s27 }
0x128b   :  { %13746 = vmatmul.mubr.msk.bf16.vlgmr.msra.gmra.mrb[76].mxu0 %vm18813_vm4, %v3850_v58  ;;  %13764 = vmatmul.mubr.msk.bf16.vlgmr.msra.gmra.mrb[36].mxu1 %vm18814_vm8, %v14207_v8  ;;  %v3582_v9 = vpop.f32.mrb[68].mxu0  ;;  %vm4146_vm4 = vcmask 441769   ;;  %vm4148_vm8 = vcmask 434600  }
0x128c   :  { %v13721_v11 = vpop.f32.mrb[69].mxu0  ;;  %13757 = vmatprep.mubr.msk.bf16.mxu0 %vm18775_vm1, %v16111_v0  ;;  %13775 = vmatprep.mubr.msk.bf16.mxu1 %vm18775_vm1, %v16111_v0  ;;  %v4121_v17 = vrot.slane %v3582_v9, 7 }
0x128d   :  { %v3585_v12 = vpop.f32.mrb[70].mxu0  ;;  %13750 = vmatpush3.bf16.msra.mxu0 %v14208_v10  ;;  %13768 = vmatpush3.bf16.msra.mxu1 %v14209_v29 }
0x128e   :  { %4220 = vrot.lane.b32.xlu0 %v4112_v63, %s14851_s10  ;;  %4178 = vrot.lane.b32.xlu1 %v4112_v63, %s14845_s22  ;;  %v13722_v16 = vpop.f32.mrb[71].mxu0  ;;  %v4290_v22 = vrot.slane %v3585_v12, 7 }
0x128f   :  { %13751 = vmatprep.subr.bf16.mxu0 %v16111_v0  ;;  %13769 = vmatprep.subr.bf16.mxu1 %v16111_v0 }
0x1291   :  { %13752 = vmatpush3.bf16.msra.mxu0 %v14210_v7  ;;  %13770 = vmatpush3.bf16.msra.mxu1 %v14211_v30  ;;  %v14216_v30 = vld [vmem:[%s18763_s5 + $0x390] ss:$8 sps:$4 sm:$0xff]  }
0x1292   :  { %4199 = vrot.lane.b32.xlu1 %v4112_v63, %s14852_s4  ;;  %4284 = vrot.lane.b32.xlu0 %v4283_v14, %s14835_s24  ;;  %s14854_s24 = smov 9  }
0x1293   :  { %13753 = vmatprep.subr.bf16.mxu0 %v16111_v0  ;;  %13771 = vmatprep.subr.bf16.mxu1 %v16111_v0 }
0x1295   :  { %13754 = vmatpush3.bf16.msra.mxu0 %v14212_v31  ;;  %13772 = vmatpush3.bf16.msra.mxu1 %v14213_v32 }
0x1296   :  { %4266 = vrot.lane.b32.xlu1 %v4112_v63, %s14853_s11  ;;  %4310 = vrot.lane.b32.xlu0 %v4283_v14, %s14834_s23  ;;  %s14863_s23 = smov 112  }
0x1297   :  { %13755 = vmatprep.subr.bf16.mxu0 %v16111_v0  ;;  %13773 = vmatprep.subr.bf16.mxu1 %v16111_v0 }
0x1299   :  { %13756 = vmatpush3.bf16.msra.mxu0 %v14214_v33  ;;  %13774 = vmatpush3.bf16.msra.mxu1 %v14215_v34  ;;  %v14224_v34 = vld [vmem:[%s18763_s5 + $0x3a4] ss:$8 sps:$4 sm:$0xff]  }
0x129a   :  { %4298 = vrot.lane.b32.xlu1 %v4283_v14, %s14836_s27  ;;  %4322 = vrot.lane.b32.xlu0 %v4283_v14, %s14845_s22  ;;  %s14856_s22 = smov 26  }
0x129b   :  { %4609 = vmatprep.subr.bf16.mxu0 %v14218_v36  ;;  %4785 = vmatprep.subr.bf16.mxu1 %v14221_v37 }
0x129e   :  { %4360 = vrot.lane.b32.xlu1 %v4283_v14, %s14850_s9  ;;  %4334 = vrot.lane.b32.xlu0 %v4283_v14, %s14852_s4 }
0x12a2   :  { %4143 = vrot.lane.b32.xlu1 %v4121_v17, %s14838_s29  ;;  %4122 = vrot.lane.b32.xlu0 %v4121_v17, %s14837_s28 }
0x12a6   :  { %4185 = vrot.lane.b32.xlu1 %v4121_v17, %s14843_s20  ;;  %4164 = vrot.lane.b32.xlu0 %v4121_v17, %s14842_s19 }
0x12aa   :  { %4252 = vrot.lane.b32.xlu1 %v4121_v17, %s14854_s24  ;;  %4206 = vrot.lane.b32.xlu0 %v4121_v17, %s14855_s2 }
0x12ab   :  { %v3844_v55 = vpop.f32.mrb[72].mxu0 }
0x12ac   :  { %v13741_v20 = vpop.f32.mrb[73].mxu0  ;;  %v3845_v26 = vadd.f32 %v3844_v55, %v3761_v25 }
0x12ad   :  { %v3847_v39 = vpop.f32.mrb[74].mxu0 }
0x12ae   :  { %4273 = vrot.lane.b32.xlu1 %v4121_v17, %s14856_s22  ;;  %4227 = vrot.lane.b32.xlu0 %v4121_v17, %s14857_s12  ;;  %v13742_v24 = vpop.f32.mrb[75].mxu0  ;;  %v4103_v27 = vrot.slane %v3845_v26, 7 }
0x12b2   :  { %4303 = vrot.lane.b32.xlu1 %v4290_v22, %s14838_s29  ;;  %4291 = vrot.lane.b32.xlu0 %v4290_v22, %s14837_s28 }
0x12b6   :  { %4327 = vrot.lane.b32.xlu1 %v4290_v22, %s14843_s20  ;;  %4315 = vrot.lane.b32.xlu0 %v4290_v22, %s14842_s19 }
0x12ba   :  { %4365 = vrot.lane.b32.xlu1 %v4290_v22, %s14854_s24  ;;  %4339 = vrot.lane.b32.xlu0 %v4290_v22, %s14855_s2  ;;  %s14861_s2 = smov 80  }
0x12be   :  { %4129 = vrot.lane.b32.xlu1 %v4103_v27, %s14839_s13  ;;  %4104 = vrot.lane.b32.xlu0 %v4103_v27, %s14840_s14 }
0x12c2   :  { %4372 = vrot.lane.b32.xlu1 %v4283_v14, %s14853_s11  ;;  %4150 = vrot.lane.b32.xlu0 %v4103_v27, %s14844_s21  ;;  %s14860_s11 = smov 64  }
0x12c6   :  { %4171 = vrot.lane.b32.xlu1 %v4103_v27, %s14841_s18  ;;  %4346 = vrot.lane.b32.xlu0 %v4283_v14, %s14851_s10  ;;  %s14858_s18 = smov 30  }
0x12ca   :  { %4234 = vrot.lane.b32.xlu1 %v4103_v27, %s14858_s18  ;;  %4192 = vrot.lane.b32.xlu0 %v4103_v27, %s14856_s22 }
0x12ce   :  { %4259 = vrot.lane.b32.xlu1 %v4103_v27, %s14847_s1  ;;  %4213 = vrot.lane.b32.xlu0 %v4103_v27, %s14859_s8 }
0x12d2   :  { %4377 = vrot.lane.b32.xlu1 %v4290_v22, %s14856_s22  ;;  %4351 = vrot.lane.b32.xlu0 %v4290_v22, %s14857_s12 }
0x12f8   :  { %v16199_v38 = vpop.permute.xlu0 %4157  ;;  %v4114_v40 = vpop.permute.xlu1 %4113 }
0x12fc   :  { %v16201_v15 = vpop.permute.xlu0 %4245  ;;  %v4137_v41 = vpop.permute.xlu1 %4136 }
0x1300   :  { %v16203_v42 = vpop.permute.xlu0 %4220  ;;  %v16205_v44 = vpop.permute.xlu1 %4178 }
0x1304   :  { %v16207_v45 = vpop.permute.xlu1 %4199  ;;  %v4285_v46 = vpop.permute.xlu0 %4284 }
0x1308   :  { %v16209_v47 = vpop.permute.xlu1 %4266  ;;  %v16211_v48 = vpop.permute.xlu0 %4310 }
0x130c   :  { %v4299_v49 = vpop.permute.xlu1 %4298  ;;  %v16213_v50 = vpop.permute.xlu0 %4322 }
0x1310   :  { %v16215_v51 = vpop.permute.xlu1 %4360  ;;  %v16217_v21 = vpop.permute.xlu0 %4334 }
0x1314   :  { %v4144_v35 = vpop.permute.xlu1 %4143  ;;  %v4123_v52 = vpop.permute.xlu0 %4122 }
0x1318   :  { %v16219_v53 = vpop.permute.xlu1 %4185  ;;  %v16221_v54 = vpop.permute.xlu0 %4164 }
0x131c   :  { %v16223_v5 = vpop.permute.xlu1 %4252  ;;  %v16225_v56 = vpop.permute.xlu0 %4206 }
0x1320   :  { %v16227_v28 = vpop.permute.xlu1 %4273  ;;  %v16229_v57 = vpop.permute.xlu0 %4227 }
0x1324   :  { %v4304_v59 = vpop.permute.xlu1 %4303  ;;  %v4292_v60 = vpop.permute.xlu0 %4291 }
0x1328   :  { %v16231_v61 = vpop.permute.xlu1 %4327  ;;  %v16233_v62 = vpop.permute.xlu0 %4315 }
0x132c   :  { %v16235_v63 = vpop.permute.xlu1 %4365  ;;  %v16237_v1 = vpop.permute.xlu0 %4339 }
0x1330   :  { %v4130_v2 = vpop.permute.xlu1 %4129  ;;  %v4105_v3 = vpop.permute.xlu0 %4104 }
0x1331   :  { %4108 = vst.msk [vmem:[#allocation4] sm:$0xfe] %vm4107_vm10, %v4105_v3  ;;  %4280 = vst.msk [vmem:[#allocation4 + $0x20] sm:$0xfe] %vm4107_vm10, %v4105_v3  ;;  %vm4153_vm10 = vcmask 572849  }
0x1332   :  { %4110 = vst.msk [vmem:[#allocation4 + $0x10] sm:$0x1] %vm4109_vm11, %v4105_v3  ;;  %4281 = vst.msk [vmem:[#allocation4 + $0x30] sm:$0x1] %vm4109_vm11, %v4105_v3  ;;  %vm4155_vm11 = vcmask 565680  }
0x1333   :  { %4117 = vst.msk [vmem:[#allocation4] sm:$0xfe] %vm4116_vm12, %v4114_v40  ;;  %4287 = vst.msk [vmem:[#allocation4 + $0x20] sm:$0xfe] %vm4116_vm12, %v4285_v46  ;;  %vm4160_vm12 = vcmask 581169  }
0x1334   :  { %4119 = vst.msk [vmem:[#allocation4 + $0x10] sm:$0x1] %vm4118_vm13, %v4114_v40  ;;  %4288 = vst.msk [vmem:[#allocation4 + $0x30] sm:$0x1] %vm4118_vm13, %v4285_v46  ;;  %v16243_v18 = vpop.permute.xlu1 %4372  ;;  %v4151_v6 = vpop.permute.xlu0 %4150  ;;  %vm4162_vm13 = vcmask 574000  }
0x1335   :  { %4126 = vst.msk [vmem:[#allocation4] sm:$0xfe] %vm4125_vm14, %v4123_v52  ;;  %4294 = vst.msk [vmem:[#allocation4 + $0x20] sm:$0xfe] %vm4125_vm14, %v4292_v60  ;;  %vm4167_vm14 = vcmask 589369  }
0x1336   :  { %4128 = vst.msk [vmem:[#allocation4 + $0x10] sm:$0x1] %vm4127_vm5, %v4123_v52  ;;  %4295 = vst.msk [vmem:[#allocation4 + $0x30] sm:$0x1] %vm4127_vm5, %v4292_v60  ;;  %vm4169_vm5 = vcmask 582200  }
0x1337   :  { %4133 = vst.msk [vmem:[#allocation4] sm:$0xfe] %vm4132_vm7, %v4130_v2  ;;  %4296 = vst.msk [vmem:[#allocation4 + $0x20] sm:$0xfe] %vm4132_vm7, %v4130_v2  ;;  %vm4174_vm7 = vcmask 720449  }
0x1338   :  { %4135 = vst.msk [vmem:[#allocation4 + $0x10] sm:$0x1] %vm4134_vm15, %v4130_v2  ;;  %4297 = vst.msk [vmem:[#allocation4 + $0x30] sm:$0x1] %vm4134_vm15, %v4130_v2  ;;  %vm4176_vm15 = vcmask 713280   ;;  %v4172_v8 = vpop.permute.xlu1 %4171  ;;  %v16269_v58 = vpop.permute.xlu0 %4346 }
0x1339   :  { %4140 = vst.msk [vmem:[#allocation4] sm:$0xfe] %vm4139_vm0, %v4137_v41  ;;  %4301 = vst.msk [vmem:[#allocation4 + $0x20] sm:$0xfe] %vm4139_vm0, %v4299_v49  ;;  %vm4181_vm0 = vcmask 728769  }
0x133a   :  { %4142 = vst.msk [vmem:[#allocation4 + $0x10] sm:$0x1] %vm4141_vm6, %v4137_v41  ;;  %4302 = vst.msk [vmem:[#allocation4 + $0x30] sm:$0x1] %vm4141_vm6, %v4299_v49  ;;  %vm4183_vm6 = vcmask 721600  }
0x133b   :  { %4147 = vst.msk [vmem:[#allocation4] sm:$0xfe] %vm4146_vm4, %v4144_v35  ;;  %4306 = vst.msk [vmem:[#allocation4 + $0x20] sm:$0xfe] %vm4146_vm4, %v4304_v59  ;;  %vm4188_vm4 = vcmask 736969  }
0x133c   :  { %4149 = vst.msk [vmem:[#allocation4 + $0x10] sm:$0x1] %vm4148_vm8, %v4144_v35  ;;  %4307 = vst.msk [vmem:[#allocation4 + $0x30] sm:$0x1] %vm4148_vm8, %v4304_v59  ;;  %vm4190_vm8 = vcmask 729800   ;;  %v16291_v0 = vpop.permute.xlu1 %4234  ;;  %v4193_v9 = vpop.permute.xlu0 %4192 }
0x133d   :  { %4154 = vst.msk [vmem:[#allocation4] sm:$0xfe] %vm4153_vm10, %v4151_v6  ;;  %4308 = vst.msk [vmem:[#allocation4 + $0x20] sm:$0xfe] %vm4153_vm10, %v4151_v6  ;;  %vm4195_vm10 = vcmask 868049  }
0x133e   :  { %4156 = vst.msk [vmem:[#allocation4 + $0x10] sm:$0x1] %vm4155_vm11, %v4151_v6  ;;  %4309 = vst.msk [vmem:[#allocation4 + $0x30] sm:$0x1] %vm4155_vm11, %v4151_v6  ;;  %vm4197_vm11 = vcmask 860880  }
0x133f   :  { %4161 = vst.msk [vmem:[#allocation4] sm:$0xfe] %vm4160_vm12, %v16199_v38  ;;  %4313 = vst.msk [vmem:[#allocation4 + $0x20] sm:$0xfe] %vm4160_vm12, %v16211_v48  ;;  %vm4239_vm12 = vcmask 113665  }
0x1340   :  { %4163 = vst.msk [vmem:[#allocation4 + $0x10] sm:$0x1] %vm4162_vm13, %v16199_v38  ;;  %4314 = vst.msk [vmem:[#allocation4 + $0x30] sm:$0x1] %vm4162_vm13, %v16211_v48  ;;  %vm4243_vm13 = vcmask 106496   ;;  %v4260_v11 = vpop.permute.xlu1 %4259  ;;  %v4214_v12 = vpop.permute.xlu0 %4213 }
0x1341   :  { %4168 = vst.msk [vmem:[#allocation4] sm:$0xfe] %vm4167_vm14, %v16221_v54  ;;  %4318 = vst.msk [vmem:[#allocation4 + $0x20] sm:$0xfe] %vm4167_vm14, %v16233_v62  ;;  %vm4202_vm14 = vcmask 876369  }
0x1342   :  { %4170 = vst.msk [vmem:[#allocation4 + $0x10] sm:$0x1] %vm4169_vm5, %v16221_v54  ;;  %4319 = vst.msk [vmem:[#allocation4 + $0x30] sm:$0x1] %vm4169_vm5, %v16233_v62  ;;  %vm4204_vm5 = vcmask 869200  }
0x1343   :  { %4175 = vst.msk [vmem:[#allocation4] sm:$0xfe] %vm4174_vm7, %v4172_v8  ;;  %4320 = vst.msk [vmem:[#allocation4 + $0x20] sm:$0xfe] %vm4174_vm7, %v4172_v8  ;;  %vm4248_vm7 = vcmask 121969  }
0x1344   :  { %4177 = vst.msk [vmem:[#allocation4 + $0x10] sm:$0x1] %vm4176_vm15, %v4172_v8  ;;  %4321 = vst.msk [vmem:[#allocation4 + $0x30] sm:$0x1] %vm4176_vm15, %v4172_v8  ;;  %vm4250_vm15 = vcmask 114800   ;;  %v4378_v14 = vpop.permute.xlu1 %4377  ;;  %v4352_v16 = vpop.permute.xlu0 %4351 }
0x1345   :  { %4182 = vst.msk [vmem:[#allocation4] sm:$0xfe] %vm4181_vm0, %v16205_v44  ;;  %4325 = vst.msk [vmem:[#allocation4 + $0x20] sm:$0xfe] %vm4181_vm0, %v16213_v50  ;;  %vm4255_vm0 = vcmask 130169  }
0x1346   :  { %4184 = vst.msk [vmem:[#allocation4 + $0x10] sm:$0x1] %vm4183_vm6, %v16205_v44  ;;  %4326 = vst.msk [vmem:[#allocation4 + $0x30] sm:$0x1] %vm4183_vm6, %v16213_v50  ;;  %vm4257_vm6 = vcmask 123000  }
0x1347   :  { %4189 = vst.msk [vmem:[#allocation4] sm:$0xfe] %vm4188_vm4, %v16219_v53  ;;  %4330 = vst.msk [vmem:[#allocation4 + $0x20] sm:$0xfe] %vm4188_vm4, %v16231_v61  ;;  %vm4262_vm4 = vcmask 261249  }
0x1348   :  { %4191 = vst.msk [vmem:[#allocation4 + $0x10] sm:$0x1] %vm4190_vm8, %v16219_v53  ;;  %4331 = vst.msk [vmem:[#allocation4 + $0x30] sm:$0x1] %vm4190_vm8, %v16231_v61  ;;  %vm4264_vm8 = vcmask 254080  }
0x1349   :  { %4196 = vst.msk [vmem:[#allocation4] sm:$0xfe] %vm4195_vm10, %v4193_v9  ;;  %4332 = vst.msk [vmem:[#allocation4 + $0x20] sm:$0xfe] %vm4195_vm10, %v4193_v9  ;;  %vm4216_vm10 = vcmask 1015649  }
0x134a   :  { %4198 = vst.msk [vmem:[#allocation4 + $0x10] sm:$0x1] %vm4197_vm11, %v4193_v9  ;;  %4333 = vst.msk [vmem:[#allocation4 + $0x30] sm:$0x1] %vm4197_vm11, %v4193_v9  ;;  %vm4218_vm11 = vcmask 1008480  }
0x134b   :  { %4240 = vst.msk [vmem:[#allocation4 + $0x8] sm:$0xfe] %vm4239_vm12, %v16291_v0  ;;  %4357 = vst.msk [vmem:[#allocation4 + $0x28] sm:$0xfe] %vm4239_vm12, %v16291_v0  ;;  %vm4269_vm12 = vcmask 269569  }
0x134c   :  { %4244 = vst.msk [vmem:[#allocation4 + $0x18] sm:$0x1] %vm4243_vm13, %v16291_v0  ;;  %4359 = vst.msk [vmem:[#allocation4 + $0x38] sm:$0x1] %vm4243_vm13, %v16291_v0  ;;  %vm4271_vm13 = vcmask 262400  }
0x134d   :  { %4203 = vst.msk [vmem:[#allocation4] sm:$0xfe] %vm4202_vm14, %v16207_v45  ;;  %4337 = vst.msk [vmem:[#allocation4 + $0x20] sm:$0xfe] %vm4202_vm14, %v16217_v21  ;;  %vm4223_vm14 = vcmask 1023969  }
0x134e   :  { %4205 = vst.msk [vmem:[#allocation4 + $0x10] sm:$0x1] %vm4204_vm5, %v16207_v45  ;;  %4338 = vst.msk [vmem:[#allocation4 + $0x30] sm:$0x1] %vm4204_vm5, %v16217_v21  ;;  %vm4225_vm5 = vcmask 1016800  }
0x134f   :  { %4249 = vst.msk [vmem:[#allocation4 + $0x8] sm:$0xfe] %vm4248_vm7, %v16201_v15  ;;  %4363 = vst.msk [vmem:[#allocation4 + $0x28] sm:$0xfe] %vm4248_vm7, %v16215_v51  ;;  %vm4276_vm7 = vcmask 277769  }
0x1350   :  { %4251 = vst.msk [vmem:[#allocation4 + $0x18] sm:$0x1] %vm4250_vm15, %v16201_v15  ;;  %4364 = vst.msk [vmem:[#allocation4 + $0x38] sm:$0x1] %vm4250_vm15, %v16215_v51  ;;  %vm4278_vm15 = vcmask 270600  }
0x1351   :  { %4256 = vst.msk [vmem:[#allocation4 + $0x8] sm:$0xfe] %vm4255_vm0, %v16223_v5  ;;  %4368 = vst.msk [vmem:[#allocation4 + $0x28] sm:$0xfe] %vm4255_vm0, %v16235_v63  ;;  %vm4230_vm0 = vcmask 1032169  }
0x1352   :  { %4258 = vst.msk [vmem:[#allocation4 + $0x18] sm:$0x1] %vm4257_vm6, %v16223_v5  ;;  %4369 = vst.msk [vmem:[#allocation4 + $0x38] sm:$0x1] %vm4257_vm6, %v16235_v63  ;;  %vm4232_vm6 = vcmask 1025000  }
0x1353   :  { %4210 = vst.msk [vmem:[#allocation4] sm:$0xfe] %vm4209_vm3, %v16225_v56  ;;  %4342 = vst.msk [vmem:[#allocation4 + $0x20] sm:$0xfe] %vm4209_vm3, %v16237_v1  ;;  %vm4237_vm3 = vcmask 1048561  }
0x1354   :  { %4212 = vst.msk [vmem:[#allocation4 + $0x10] sm:$0x1] %vm4211_vm2, %v16225_v56  ;;  %4343 = vst.msk [vmem:[#allocation4 + $0x30] sm:$0x1] %vm4211_vm2, %v16237_v1  ;;  %vm4241_vm2 = vcmask 1041392  }
0x1355   :  { %4263 = vst.msk [vmem:[#allocation4 + $0x8] sm:$0xfe] %vm4262_vm4, %v4260_v11  ;;  %4370 = vst.msk [vmem:[#allocation4 + $0x28] sm:$0xfe] %vm4262_vm4, %v4260_v11  ;;  %vm4448_vm4 = vsmask.f32 7424 }
0x1356   :  { %4265 = vst.msk [vmem:[#allocation4 + $0x18] sm:$0x1] %vm4264_vm8, %v4260_v11  ;;  %4371 = vst.msk [vmem:[#allocation4 + $0x38] sm:$0x1] %vm4264_vm8, %v4260_v11  ;;  %v14219_v40 = vld [vmem:[%s18763_s5 + $0x2d0] ss:$8 sps:$4 sm:$0xff]  }
0x1357   :  { %4217 = vst.msk [vmem:[#allocation4] sm:$0xfe] %vm4216_vm10, %v4214_v12  ;;  %4344 = vst.msk [vmem:[#allocation4 + $0x20] sm:$0xfe] %vm4216_vm10, %v4214_v12  ;;  %vm18815_vm8 = vcmask 523264  }
0x1358   :  { %4219 = vst.msk [vmem:[#allocation4 + $0x10] sm:$0x1] %vm4218_vm11, %v4214_v12  ;;  %4345 = vst.msk [vmem:[#allocation4 + $0x30] sm:$0x1] %vm4218_vm11, %v4214_v12  ;;  %v14227_v44 = vld [vmem:[%s18763_s5 + $0x2e4] ss:$8 sps:$4 sm:$0xff]  }
0x1359   :  { %4270 = vst.msk [vmem:[#allocation4 + $0x8] sm:$0xfe] %vm4269_vm12, %v16209_v47  ;;  %4375 = vst.msk [vmem:[#allocation4 + $0x28] sm:$0xfe] %vm4269_vm12, %v16243_v18  ;;  %v14222_v46 = vld [vmem:[%s18763_s5 + $0x3a0] ss:$8 sps:$4 sm:$0xff]  }
0x135a   :  { %4272 = vst.msk [vmem:[#allocation4 + $0x18] sm:$0x1] %vm4271_vm13, %v16209_v47  ;;  %4376 = vst.msk [vmem:[#allocation4 + $0x38] sm:$0x1] %vm4271_vm13, %v16243_v18  ;;  %v14230_v48 = vld [vmem:[%s18763_s5 + $0x3b4] ss:$8 sps:$4 sm:$0xff]  }
0x135b   :  { %4224 = vst.msk [vmem:[#allocation4] sm:$0xfe] %vm4223_vm14, %v16203_v42  ;;  %4349 = vst.msk [vmem:[#allocation4 + $0x20] sm:$0xfe] %vm4223_vm14, %v16269_v58  ;;  %v14225_v49 = vld [vmem:[%s18763_s5 + $0x2e0] ss:$8 sps:$4 sm:$0xff]  }
0x135c   :  { %4226 = vst.msk [vmem:[#allocation4 + $0x10] sm:$0x1] %vm4225_vm5, %v16203_v42  ;;  %4350 = vst.msk [vmem:[#allocation4 + $0x30] sm:$0x1] %vm4225_vm5, %v16269_v58  ;;  %v14233_v50 = vld [vmem:[%s18763_s5 + $0x2f4] ss:$8 sps:$4 sm:$0xff]  }
0x135d   :  { %4277 = vst.msk [vmem:[#allocation4 + $0x8] sm:$0xfe] %vm4276_vm7, %v16227_v28  ;;  %4380 = vst.msk [vmem:[#allocation4 + $0x28] sm:$0xfe] %vm4276_vm7, %v4378_v14  ;;  %v14228_v51 = vld [vmem:[%s18763_s5 + $0x3b0] ss:$8 sps:$4 sm:$0xff]  }
0x135e   :  { %4279 = vst.msk [vmem:[#allocation4 + $0x18] sm:$0x1] %vm4278_vm15, %v16227_v28  ;;  %4381 = vst.msk [vmem:[#allocation4 + $0x38] sm:$0x1] %vm4278_vm15, %v4378_v14  ;;  %v3892_v29 = vpop.f32.mrb[76].mxu0  ;;  %v4018_v7 = vpop.f32.mrb[36].mxu1 }
0x135f   :  { %4231 = vst.msk [vmem:[#allocation4] sm:$0xfe] %vm4230_vm0, %v16229_v57  ;;  %4354 = vst.msk [vmem:[#allocation4 + $0x20] sm:$0xfe] %vm4230_vm0, %v4352_v16  ;;  %v3906_v31 = vpack.c.bf16 %v3892_v29, %v3892_v29  ;;  %v13747_v32 = vpop.f32.mrb[77].mxu0  ;;  %v13765_v33 = vpop.f32.mrb[37].mxu1 }
0x1360   :  { %4233 = vst.msk [vmem:[#allocation4 + $0x10] sm:$0x1] %vm4232_vm6, %v16229_v57  ;;  %4355 = vst.msk [vmem:[#allocation4 + $0x30] sm:$0x1] %vm4232_vm6, %v4352_v16  ;;  %v3895_v37 = vpop.f32.mrb[78].mxu0  ;;  %v4021_v38 = vpop.f32.mrb[38].mxu1 }
0x1361   :  { %4238 = vst.msk [vmem:[#allocation4] sm:$0xfe] %vm4237_vm3, %v16291_v0  ;;  %4356 = vst.msk [vmem:[#allocation4 + $0x20] sm:$0xfe] %vm4237_vm3, %v16291_v0  ;;  %v4033_v15 = vpack.c.bf16 %v4021_v38, %v4018_v7  ;;  %v13748_v41 = vpop.f32.mrb[79].mxu0  ;;  %13758 = vmatmul.mubr.msk.bf16.vlgmr.msra.gmra.mrb[80].mxu0 %vm18815_vm8, %v3906_v31  ;;  %v13766_v45 = vpop.f32.mrb[39].mxu1 }
0x1362   :  { %4242 = vst.msk [vmem:[#allocation4 + $0x10] sm:$0x1] %vm4241_vm2, %v16291_v0  ;;  %4358 = vst.msk [vmem:[#allocation4 + $0x30] sm:$0x1] %vm4241_vm2, %v16291_v0  ;;  %4610 = vmatpush1.bf16.msra.mxu0 %v14216_v30  ;;  %v14236_v21 = vld [vmem:[%s18763_s5 + $0x3c4] ss:$8 sps:$4 sm:$0xff]  }
0x1363   :  { %vm18816_vm10 = vmmov %vm18815_vm8  ;;  %4611 = vmatprep.subr.bf16.mxu0 %v14224_v34  ;;  %v14231_v35 = vld [vmem:[%s18763_s5 + $0x2f0] ss:$8 sps:$4 sm:$0xff]   ;;  %v14239_v52 = vld [vmem:[%s18763_s5 + $0x304] ss:$8 sps:$4 sm:$0xff]   ;;  %vm4602_vm11 = vcmask 1041408   ;;  %vm4869_vm12 = vcmask 1046528  }
0x1364   :  { %v4418_v19 = vld [vmem:[#allocation4 + $0x8] sm:$0xfe]  ;;  %13776 = vmatmul.mubr.msk.bf16.vlgmr.msra.gmra.mrb[40].mxu1 %vm18816_vm10, %v4033_v15  ;;  %v14242_v54 = vld [vmem:[%s18763_s5 + $0x3d4] ss:$8 sps:$4 sm:$0xff]   ;;  %v14240_v28 = vld [vmem:[%s18763_s5 + $0x3d0] ss:$8 sps:$4 sm:$0xff]  }
0x1365   :  { %v16389_v17 = vld [vmem:[#allocation4 + $0x18] sm:$0xff]  ;;  %v16392_v20 = vld [vmem:[#allocation4 + $0x28] sm:$0xff]  ;;  %4786 = vmatpush1.bf16.msra.mxu1 %v14219_v40  ;;  %v4443_v29 = vld [vmem:[%s18763_s5 + $0x440] sm:$0x33]  ;;  %vm5093_vm13 = vcmask 1040528   ;;  %vm5089_vm14 = vcmask 1047697  }
0x1366   :  { %v4445_v55 = vpack.c.bf16 %v16389_v17, %v4418_v19  ;;  %v4420_v39 = vld [vmem:[#allocation4 + $0x38] sm:$0x7f]  ;;  %v4383_v36 = vld [vmem:[#allocation4 + $0x8] sm:$0xff]  ;;  %4787 = vmatprep.subr.bf16.mxu1 %v14227_v44  ;;  %4612 = vmatpush1.bf16.msra.mxu0 %v14222_v46  ;;  %v4412_v32 = vld [vmem:[%s18763_s5 + $0x380] sm:$0x33]  ;;  %v12133_v34 = vcombine.high %v4443_v29, %v4443_v29  ;;  %vm5085_vm5 = vcmask 146432  }
0x1367   :  { %v16395_v22 = vpack.c.bf16 %v4420_v39, %v16392_v20  ;;  %v4414_v47 = vpack.c.bf16 %v16389_v17, %v4383_v36  ;;  %4613 = vmatprep.subr.bf16.mxu0 %v14230_v48  ;;  %v14234_v53 = vld [vmem:[%s18763_s5 + $0x3c0] ss:$8 sps:$4 sm:$0xff]   ;;  %v14245_v56 = vld [vmem:[%s18763_s5 + $0x314] ss:$8 sps:$4 sm:$0xff]   ;;  %v14248_v57 = vld [vmem:[%s18763_s5 + $0x3e4] ss:$8 sps:$4 sm:$0xff]   ;;  %v12132_v36 = vcombine.low %v4443_v29, %v4443_v29  ;;  %v12160_v15 = vcombine.high %v4412_v32, %v4412_v32 }
0x1368   :  { %v4464_v23 = vshll.u32 %v4445_v55, 16  ;;  %v4462_v26 = vshrl.u32 %v4445_v55, 16  ;;  %v14237_v5 = vld [vmem:[%s18763_s5 + $0x300] ss:$8 sps:$4 sm:$0xff]   ;;  %v14243_v59 = vld [vmem:[%s18763_s5 + $0x310] ss:$8 sps:$4 sm:$0xff]   ;;  %v12159_v41 = vcombine.low %v4412_v32, %v4412_v32 }
0x1369   :  { %v4469_v25 = vshll.u32 %v16395_v22, 16  ;;  %12162 = vmatprep.mubr.msk.bf16.mxu1 %vm3369_vm9, %v4414_v47  ;;  %4788 = vmatpush1.bf16.msra.mxu1 %v14225_v49  ;;  %v14251_v60 = vld [vmem:[%s18763_s5 + $0x324] ss:$8 sps:$4 sm:$0xff]   ;;  %v14246_v61 = vld [vmem:[%s18763_s5 + $0x3e0] ss:$8 sps:$4 sm:$0xff]   ;;  %v16503_v11 = vld [vmem:[#allocation4 + $0x10] sm:$0xff] }
0x136a   :  { %v4466_v24 = vrot.slane %v4464_v23, 1  ;;  %4789 = vmatprep.subr.bf16.mxu1 %v14233_v50  ;;  %4614 = vmatpush1.bf16.msra.mxu0 %v14228_v51  ;;  %v14254_v62 = vld [vmem:[%s18763_s5 + $0x3f4] ss:$8 sps:$4 sm:$0xff]   ;;  %v14249_v63 = vld [vmem:[%s18763_s5 + $0x320] ss:$8 sps:$4 sm:$0xff]   ;;  %v4604_v44 = vsel %vm4602_vm11, %v12132_v36, 0 }
0x136b   :  { %v16398_v10 = vrot.slane %v4469_v25, 1  ;;  %4615 = vmatprep.subr.bf16.mxu0 %v14236_v21  ;;  %v14257_v1 = vld [vmem:[%s18763_s5 + $0x334] ss:$8 sps:$4 sm:$0xff]   ;;  %v14252_v2 = vld [vmem:[%s18763_s5 + $0x3f0] ss:$8 sps:$4 sm:$0xff]   ;;  %v16524_v25 = vld [vmem:[#allocation4 + $0x20] sm:$0xff] }
0x136c   :  { %v4467_v27 = vor.u32 %v4466_v24, %v4462_v26  ;;  %v14260_v3 = vld [vmem:[%s18763_s5 + $0x404] ss:$8 sps:$4 sm:$0xff]   ;;  %v14255_v18 = vld [vmem:[%s18763_s5 + $0x330] ss:$8 sps:$4 sm:$0xff]   ;;  %v14258_v8 = vld [vmem:[%s18763_s5 + $0x400] ss:$8 sps:$4 sm:$0xff]  }
0x136d   :  { %4790 = vmatpush1.bf16.msra.mxu1 %v14231_v35  ;;  %v14263_v6 = vld [vmem:[%s18763_s5 + $0x344] ss:$8 sps:$4 sm:$0xff]   ;;  %v14266_v58 = vld [vmem:[%s18763_s5 + $0x414] ss:$8 sps:$4 sm:$0xff]   ;;  %v14261_v0 = vld [vmem:[%s18763_s5 + $0x340] ss:$8 sps:$4 sm:$0xff]  }
0x136e   :  { %v4472_v42 = vsel %vm4448_vm4, %v4467_v27, %v16398_v10  ;;  %4791 = vmatprep.subr.bf16.mxu1 %v14239_v52  ;;  %4616 = vmatpush1.bf16.msra.mxu0 %v14234_v53  ;;  %v14269_v9 = vld [vmem:[%s18763_s5 + $0x354] ss:$8 sps:$4 sm:$0xff]   ;;  %v4417_v12 = vld [vmem:[#allocation4] sm:$0xfe]  ;;  %v14264_v14 = vld [vmem:[%s18763_s5 + $0x410] ss:$8 sps:$4 sm:$0xff]  }
0x136f   :  { %12135 = vmatprep.mubr.msk.bf16.mxu0 %vm3369_vm9, %v4472_v42  ;;  %4617 = vmatprep.subr.bf16.mxu0 %v14242_v54  ;;  %v14272_v16 = vld [vmem:[%s18763_s5 + $0x424] ss:$8 sps:$4 sm:$0xff]   ;;  %v14267_v19 = vld [vmem:[%s18763_s5 + $0x350] ss:$8 sps:$4 sm:$0xff]   ;;  %v4444_v55 = vpack.c.bf16 %v16503_v11, %v4417_v12  ;;  %v14270_v23 = vld [vmem:[%s18763_s5 + $0x420] ss:$8 sps:$4 sm:$0xff]  }
0x1370   :  { %v14275_v39 = vld [vmem:[%s18763_s5 + $0x364] ss:$8 sps:$4 sm:$0xff]   ;;  %v14278_v24 = vld [vmem:[%s18763_s5 + $0x434] ss:$8 sps:$4 sm:$0xff]   ;;  %v14273_v27 = vld [vmem:[%s18763_s5 + $0x360] ss:$8 sps:$4 sm:$0xff]  }
0x1371   :  { %4792 = vmatpush1.bf16.msra.mxu1 %v14237_v5  ;;  %v4419_v26 = vld [vmem:[#allocation4 + $0x30] sm:$0x7f]  ;;  %v4452_v7 = vshll.u32 %v4444_v55, 16  ;;  %v4450_v38 = vshrl.u32 %v4444_v55, 16  ;;  %v4780_v47 = vsel %vm4602_vm11, %v12159_v41, 0  ;;  %v4476_v50 = vshrl.u32 %v16395_v22, 16 }
0x1372   :  { %4793 = vmatprep.subr.bf16.mxu1 %v14245_v56  ;;  %4618 = vmatpush1.bf16.msra.mxu0 %v14240_v28  ;;  %v14281_v30 = vld [vmem:[%s18763_s5 + $0x374] ss:$8 sps:$4 sm:$0xff]   ;;  %v14276_v31 = vld [vmem:[%s18763_s5 + $0x430] ss:$8 sps:$4 sm:$0xff]   ;;  %v4446_v33 = vpack.c.bf16 %v4419_v26, %v16524_v25  ;;  %v4382_v51 = vld [vmem:[#allocation4] sm:$0xff]  ;;  %vm5095_vm7 = vcmask 270336  }
0x1373   :  { %4619 = vmatprep.subr.bf16.mxu0 %v14248_v57  ;;  %v14279_v37 = vld [vmem:[%s18763_s5 + $0x370] ss:$8 sps:$4 sm:$0xff]   ;;  %v4454_v40 = vrot.slane %v4452_v7, 1  ;;  %v14288_v45 = vld [vmem:[%s18763_s5 + $0x454] ss:$8 sps:$4 sm:$0xff]   ;;  %v4478_v54 = vor.u32 %v4476_v50, %v16398_v10  ;;  %v4413_v56 = vpack.c.bf16 %v16503_v11, %v4382_v51  ;;  %vm5091_vm15 = vcmask 277505  }
0x1374   :  { %v4457_v42 = vshll.u32 %v4446_v33, 16  ;;  %v14286_v49 = vld [vmem:[%s18763_s5 + $0x450] ss:$8 sps:$4 sm:$0xff]   ;;  %v14291_v52 = vld [vmem:[%s18763_s5 + $0x464] ss:$8 sps:$4 sm:$0xff]   ;;  %vm6481_vm0 = vcmask 130049  }
0x1375   :  { %4794 = vmatpush1.bf16.msra.mxu1 %v14243_v59  ;;  %v4455_v46 = vor.u32 %v4454_v40, %v4450_v38  ;;  %v4837_v21 = vld [vmem:[#allocation4 + $0x38] sm:$0xff]  ;;  %v4835_v5 = vld [vmem:[#allocation4 + $0x8] sm:$0xfc]  ;;  %v4473_v59 = vshrl.u32 %v4446_v33, 16  ;;  %v4860_v26 = vld [vmem:[%s18763_s5 + $0x500] sm:$0x33] }
0x1376   :  { %4795 = vmatprep.subr.bf16.mxu1 %v14251_v60  ;;  %4620 = vmatpush1.bf16.msra.mxu0 %v14246_v61  ;;  %v4459_v48 = vrot.slane %v4457_v42, 1  ;;  %v4389_v35 = vld [vmem:[#allocation4 + $0x38] sm:$0x3f]  ;;  %v4864_v28 = vpack.c.bf16 %v4837_v21, %v16392_v20  ;;  %v14289_v57 = vld [vmem:[%s18763_s5 + $0x460] ss:$8 sps:$4 sm:$0xff]   ;;  %v4862_v60 = vpack.c.bf16 %v16389_v17, %v4835_v5  ;;  %v4836_v29 = vld [vmem:[#allocation4 + $0x30] sm:$0xff] }
0x1377   :  { %4621 = vmatprep.subr.bf16.mxu0 %v14254_v62  ;;  %v4416_v22 = vpack.c.bf16 %v4389_v35, %v16392_v20  ;;  %v14294_v10 = vld [vmem:[%s18763_s5 + $0x474] ss:$8 sps:$4 sm:$0xff]   ;;  %v14292_v20 = vld [vmem:[%s18763_s5 + $0x470] ss:$8 sps:$4 sm:$0xff]   ;;  %v4863_v33 = vpack.c.bf16 %v4836_v29, %v16524_v25  ;;  %v14332_v41 = vld [vmem:[%s18763_s5 + $0x5e4] ss:$8 sps:$4 sm:$0xff]  }
0x1378   :  { %v4460_v53 = vsel %vm4448_vm4, %v4455_v46, %v4459_v48  ;;  %v4874_v61 = vrot.slane %v4864_v28, 1  ;;  %v4388_v62 = vld [vmem:[#allocation4 + $0x30] sm:$0x3f]  ;;  %v14342_v50 = vld [vmem:[%s18763_s5 + $0x600] ss:$8 sps:$4 sm:$0xff]   ;;  %vm6483_vm6 = vcmask 1040512  }
0x1379   :  { %4796 = vmatpush1.bf16.msra.mxu1 %v14249_v63  ;;  %v4475_v63 = vor.u32 %v4473_v59, %v4459_v48  ;;  %v14304_v12 = vld [vmem:[%s18763_s5 + $0x4b0] ss:$8 sps:$4 sm:$0xff]   ;;  %v14326_v40 = vld [vmem:[%s18763_s5 + $0x534] ss:$8 sps:$4 sm:$0xff]   ;;  %v14327_v48 = vld [vmem:[%s18763_s5 + $0x540] ss:$8 sps:$4 sm:$0xff]  }
0x137a   :  { %4797 = vmatprep.subr.bf16.mxu1 %v14257_v1  ;;  %4622 = vmatpush1.bf16.msra.mxu0 %v14252_v2  ;;  %v4873_v1 = vrot.slane %v4862_v60, 1  ;;  %v14297_v2 = vld [vmem:[%s18763_s5 + $0x484] ss:$8 sps:$4 sm:$0xff]   ;;  %v14310_v55 = vld [vmem:[%s18763_s5 + $0x4d0] ss:$8 sps:$4 sm:$0xff]   ;;  %vm6485_vm3 = vcmask 122880  }
0x137b   :  { %4623 = vmatprep.subr.bf16.mxu0 %v14260_v3  ;;  %v4415_v3 = vpack.c.bf16 %v4388_v62, %v16524_v25  ;;  %v14316_v7 = vld [vmem:[%s18763_s5 + $0x4f0] ss:$8 sps:$4 sm:$0xff]   ;;  %v14323_v25 = vld [vmem:[%s18763_s5 + $0x524] ss:$8 sps:$4 sm:$0xff]   ;;  %v14350_v51 = vld [vmem:[%s18763_s5 + $0x614] ss:$8 sps:$4 sm:$0xff]  }
0x137c   :  { %v4875_v17 = vsel %vm4869_vm12, %v4873_v1, %v4874_v61  ;;  %v14324_v42 = vld [vmem:[%s18763_s5 + $0x530] ss:$8 sps:$4 sm:$0xff]   ;;  %v14341_v35 = vld [vmem:[%s18763_s5 + $0x564] ss:$8 sps:$4 sm:$0xff]   ;;  %v14354_v60 = vld [vmem:[%s18763_s5 + $0x620] ss:$8 sps:$4 sm:$0xff]  }
0x137d   :  { %4798 = vmatpush1.bf16.msra.mxu1 %v14255_v18  ;;  %v14295_v18 = vld [vmem:[%s18763_s5 + $0x480] ss:$8 sps:$4 sm:$0xff]   ;;  %v14336_v46 = vld [vmem:[%s18763_s5 + $0x5f0] ss:$8 sps:$4 sm:$0xff]   ;;  %v14353_v1 = vld [vmem:[%s18763_s5 + $0x584] ss:$8 sps:$4 sm:$0xff]  }
0x137e   :  { %4799 = vmatprep.subr.bf16.mxu1 %v14263_v6  ;;  %4624 = vmatpush1.bf16.msra.mxu0 %v14258_v8  ;;  %v14300_v6 = vld [vmem:[%s18763_s5 + $0x494] ss:$8 sps:$4 sm:$0xff]   ;;  %v14298_v8 = vld [vmem:[%s18763_s5 + $0x490] ss:$8 sps:$4 sm:$0xff]   ;;  %vm18817_vm2 = vcmask 261120  }
0x137f   :  { %4625 = vmatprep.subr.bf16.mxu0 %v14266_v58  ;;  %v14303_v58 = vld [vmem:[%s18763_s5 + $0x4a4] ss:$8 sps:$4 sm:$0xff]   ;;  %v14333_v21 = vld [vmem:[%s18763_s5 + $0x550] ss:$8 sps:$4 sm:$0xff]   ;;  %vm18818_vm8 = vmmov %vm18817_vm2 }
0x1380   :  { %vm18819_vm10 = vmmov %vm18817_vm2 }
0x1381   :  { %4800 = vmatpush1.bf16.msra.mxu1 %v14261_v0  ;;  %v14301_v0 = vld [vmem:[%s18763_s5 + $0x4a0] ss:$8 sps:$4 sm:$0xff]  }
0x1382   :  { %4801 = vmatprep.subr.bf16.mxu1 %v14269_v9  ;;  %4626 = vmatpush1.bf16.msra.mxu0 %v14264_v14  ;;  %v14306_v9 = vld [vmem:[%s18763_s5 + $0x4b4] ss:$8 sps:$4 sm:$0xff]   ;;  %v14309_v14 = vld [vmem:[%s18763_s5 + $0x4c4] ss:$8 sps:$4 sm:$0xff]  }
0x1383   :  { %4627 = vmatprep.subr.bf16.mxu0 %v14272_v16  ;;  %v14307_v16 = vld [vmem:[%s18763_s5 + $0x4c0] ss:$8 sps:$4 sm:$0xff]  }
0x1385   :  { %4802 = vmatpush1.bf16.msra.mxu1 %v14267_v19  ;;  %v14312_v19 = vld [vmem:[%s18763_s5 + $0x4d4] ss:$8 sps:$4 sm:$0xff]  }
0x1386   :  { %4803 = vmatprep.subr.bf16.mxu1 %v14275_v39  ;;  %4628 = vmatpush1.bf16.msra.mxu0 %v14270_v23  ;;  %v14315_v39 = vld [vmem:[%s18763_s5 + $0x4e4] ss:$8 sps:$4 sm:$0xff]   ;;  %v14313_v23 = vld [vmem:[%s18763_s5 + $0x4e0] ss:$8 sps:$4 sm:$0xff]  }
0x1387   :  { %4629 = vmatprep.subr.bf16.mxu0 %v14278_v24  ;;  %v14318_v24 = vld [vmem:[%s18763_s5 + $0x4f4] ss:$8 sps:$4 sm:$0xff]  }
0x1389   :  { %4804 = vmatpush1.bf16.msra.mxu1 %v14273_v27  ;;  %v4834_v27 = vld [vmem:[#allocation4] sm:$0xfc] }
0x138a   :  { %4805 = vmatprep.subr.bf16.mxu1 %v14281_v30  ;;  %4630 = vmatpush1.bf16.msra.mxu0 %v14276_v31  ;;  %v12187_v30 = vcombine.high %v4860_v26, %v4860_v26  ;;  %v12186_v31 = vcombine.low %v4860_v26, %v4860_v26  ;;  %v4861_v32 = vpack.c.bf16 %v16503_v11, %v4834_v27  ;;  %v14321_v11 = vld [vmem:[%s18763_s5 + $0x520] ss:$8 sps:$4 sm:$0xff]  }
0x138b   :  { %12134 = vmatprep.subr.msk.bf16.mxu0 %vm4602_vm11, %v12133_v34 }
0x138c   :  { %v5000_v34 = vsel %vm4602_vm11, %v12186_v31, 0  ;;  %v4870_v36 = vrot.slane %v4861_v32, 1 }
0x138d   :  { %4806 = vmatpush1.bf16.msra.mxu1 %v14279_v37  ;;  %v4871_v37 = vrot.slane %v4863_v33, 1 }
0x138e   :  { %12161 = vmatprep.subr.msk.bf16.mxu1 %vm4602_vm11, %v12160_v15  ;;  %4632 = vmatpush1.bf16.msra.mxu0 %v4604_v44  ;;  %v14330_v15 = vld [vmem:[%s18763_s5 + $0x5e0] ss:$8 sps:$4 sm:$0xff]   ;;  %v14338_v44 = vld [vmem:[%s18763_s5 + $0x5f4] ss:$8 sps:$4 sm:$0xff]  }
0x138f   :  { %5005 = vmatprep.subr.bf16.mxu0 %v14288_v45  ;;  %v4872_v38 = vsel %vm4869_vm12, %v4870_v36, %v4871_v37  ;;  %v14329_v45 = vld [vmem:[%s18763_s5 + $0x544] ss:$8 sps:$4 sm:$0xff]   ;;  %v5058_v36 = vld [vmem:[%s18763_s5 + $0x510] sm:$0x11] }
0x1391   :  { %4808 = vmatpush1.bf16.msra.mxu1 %v4780_v47  ;;  %4642 = vmatmul.mubr.bf16.vlgmr.msra.gmra.mrb[84].mxu0 %v4460_v53  ;;  %v14344_v47 = vld [vmem:[%s18763_s5 + $0x604] ss:$8 sps:$4 sm:$0xff]  }
0x1392   :  { %12136 = vmatprep.mubr.msk.bf16.mxu0 %vm3369_vm9, %v4478_v54  ;;  %5006 = vmatpush1.bf16.msra.mxu0 %v14286_v49  ;;  %v14335_v49 = vld [vmem:[%s18763_s5 + $0x554] ss:$8 sps:$4 sm:$0xff]   ;;  %v14356_v54 = vld [vmem:[%s18763_s5 + $0x624] ss:$8 sps:$4 sm:$0xff]  }
0x1393   :  { %5007 = vmatprep.subr.bf16.mxu0 %v14291_v52  ;;  %5337 = vmatprep.subr.bf16.mxu1 %v14332_v41  ;;  %v14348_v52 = vld [vmem:[%s18763_s5 + $0x610] ss:$8 sps:$4 sm:$0xff]   ;;  %v14371_v41 = vld [vmem:[%s18763_s5 + $0x5b4] ss:$8 sps:$4 sm:$0xff]  }
0x1394   :  { %4818 = vmatmul.mubr.bf16.vlgmr.msra.gmra.mrb[44].mxu1 %v4413_v56  ;;  %v14339_v56 = vld [vmem:[%s18763_s5 + $0x560] ss:$8 sps:$4 sm:$0xff]  }
0x1395   :  { %12163 = vmatprep.mubr.msk.bf16.mxu1 %vm3369_vm9, %v4416_v22  ;;  %5338 = vmatpush1.bf16.msra.mxu1 %v14330_v15 }
0x1396   :  { %5008 = vmatpush1.bf16.msra.mxu0 %v14289_v57  ;;  %5339 = vmatprep.subr.bf16.mxu1 %v14338_v44  ;;  %v14347_v57 = vld [vmem:[%s18763_s5 + $0x574] ss:$8 sps:$4 sm:$0xff]  }
0x1397   :  { %5009 = vmatprep.subr.bf16.mxu0 %v14294_v10 }
0x1399   :  { %4650 = vmatmul.mubr.bf16.gmra.mrb[88].mxu0 %v4475_v63  ;;  %5340 = vmatpush1.bf16.msra.mxu1 %v14336_v46  ;;  %v14345_v63 = vld [vmem:[%s18763_s5 + $0x570] ss:$8 sps:$4 sm:$0xff]   ;;  %v14377_v46 = vld [vmem:[%s18763_s5 + $0x5c4] ss:$8 sps:$4 sm:$0xff]  }
0x139a   :  { %5010 = vmatpush1.bf16.msra.mxu0 %v14292_v20  ;;  %12189 = vmatprep.mubr.msk.bf16.mxu0 %vm3369_vm9, %v4875_v17  ;;  %v14362_v20 = vld [vmem:[%s18763_s5 + $0x634] ss:$8 sps:$4 sm:$0xff]   ;;  %v14351_v17 = vld [vmem:[%s18763_s5 + $0x580] ss:$8 sps:$4 sm:$0xff]  }
0x139b   :  { %5011 = vmatprep.subr.bf16.mxu0 %v14297_v2  ;;  %5341 = vmatprep.subr.bf16.mxu1 %v14344_v47  ;;  %v14360_v2 = vld [vmem:[%s18763_s5 + $0x630] ss:$8 sps:$4 sm:$0xff]  }
0x139c   :  { %4826 = vmatmul.mubr.bf16.gmra.mrb[48].mxu1 %v4415_v3  ;;  %v14359_v3 = vld [vmem:[%s18763_s5 + $0x594] ss:$8 sps:$4 sm:$0xff]  }
0x139d   :  { %5342 = vmatpush1.bf16.msra.mxu1 %v14342_v50 }
0x139e   :  { %5012 = vmatpush1.bf16.msra.mxu0 %v14295_v18  ;;  %5343 = vmatprep.subr.bf16.mxu1 %v14350_v51  ;;  %v14357_v18 = vld [vmem:[%s18763_s5 + $0x590] ss:$8 sps:$4 sm:$0xff]  }
0x139f   :  { %5013 = vmatprep.subr.bf16.mxu0 %v14300_v6  ;;  %v14365_v6 = vld [vmem:[%s18763_s5 + $0x5a4] ss:$8 sps:$4 sm:$0xff]  }
0x13a1   :  { %5344 = vmatpush1.bf16.msra.mxu1 %v14348_v52 }
0x13a2   :  { %5014 = vmatpush1.bf16.msra.mxu0 %v14298_v8  ;;  %5345 = vmatprep.subr.bf16.mxu1 %v14356_v54  ;;  %v14363_v8 = vld [vmem:[%s18763_s5 + $0x5a0] ss:$8 sps:$4 sm:$0xff]  }
0x13a3   :  { %5015 = vmatprep.subr.bf16.mxu0 %v14303_v58 }
0x13a5   :  { %5346 = vmatpush1.bf16.msra.mxu1 %v14354_v60 }
0x13a6   :  { %5016 = vmatpush1.bf16.msra.mxu0 %v14301_v0  ;;  %5347 = vmatprep.subr.bf16.mxu1 %v14362_v20 }
0x13a7   :  { %5017 = vmatprep.subr.bf16.mxu0 %v14306_v9 }
0x13a9   :  { %5348 = vmatpush1.bf16.msra.mxu1 %v14360_v2 }
0x13aa   :  { %5018 = vmatpush1.bf16.msra.mxu0 %v14304_v12 }
0x13ab   :  { %5019 = vmatprep.subr.bf16.mxu0 %v14309_v14 }
0x13ae   :  { %5020 = vmatpush1.bf16.msra.mxu0 %v14307_v16 }
0x13af   :  { %5021 = vmatprep.subr.bf16.mxu0 %v14312_v19 }
0x13b2   :  { %5022 = vmatpush1.bf16.msra.mxu0 %v14310_v55 }
0x13b3   :  { %5023 = vmatprep.subr.bf16.mxu0 %v14315_v39 }
0x13b6   :  { %5024 = vmatpush1.bf16.msra.mxu0 %v14313_v23 }
0x13b7   :  { %5025 = vmatprep.subr.bf16.mxu0 %v14318_v24 }
0x13ba   :  { %5026 = vmatpush1.bf16.msra.mxu0 %v14316_v7 }
0x13bb   :  { %12188 = vmatprep.subr.msk.bf16.mxu0 %vm4602_vm11, %v12187_v30 }
0x13be   :  { %5028 = vmatpush1.bf16.msra.mxu0 %v5000_v34 }
0x13bf   :  { %5513 = vmatprep.subr.bf16.mxu0 %v14323_v25  ;;  %v14368_v25 = vld [vmem:[%s18763_s5 + $0x644] ss:$8 sps:$4 sm:$0xff]  }
0x13c0   :  { %5349 = vmatprep.subr.bf16.mxu1 %v14368_v25 }
0x13c1   :  { %5038 = vmatmul.mubr.bf16.vlgmr.msra.gmra.mrb[92].mxu0 %v4872_v38  ;;  %v5060_v38 = vunpack.c.h.bf16 %v5058_v36 }
0x13c2   :  { %12190 = vmatprep.mubr.msk.bf16.mxu0 %vm3369_vm9, %v4874_v61  ;;  %5514 = vmatpush1.bf16.msra.mxu0 %v14321_v11  ;;  %v14366_v11 = vld [vmem:[%s18763_s5 + $0x640] ss:$8 sps:$4 sm:$0xff]  }
0x13c3   :  { %5515 = vmatprep.subr.bf16.mxu0 %v14326_v40  ;;  %v14369_v40 = vld [vmem:[%s18763_s5 + $0x5b0] ss:$8 sps:$4 sm:$0xff]   ;;  %5350 = vmatpush1.bf16.msra.mxu1 %v14366_v11 }
0x13c6   :  { %5516 = vmatpush1.bf16.msra.mxu0 %v14324_v42  ;;  %v14374_v42 = vld [vmem:[%s18763_s5 + $0x654] ss:$8 sps:$4 sm:$0xff]  }
0x13c7   :  { %5517 = vmatprep.subr.bf16.mxu0 %v14329_v45  ;;  %v5068_v45 = vrot.slane %v5060_v38, %v15079_v43  ;;  %5351 = vmatprep.subr.bf16.mxu1 %v14374_v42 }
0x13c9   :  { %5046 = vmatmul.mubr.bf16.gmra.mrb[96].mxu0 %v4871_v37  ;;  %v5059_v37 = vunpack.c.l.bf16 %v5058_v36 }
0x13ca   :  { %5518 = vmatpush1.bf16.msra.mxu0 %v14327_v48 }
0x13cb   :  { %5519 = vmatprep.subr.bf16.mxu0 %v14335_v49  ;;  %v5064_v15 = vrot.slane %v5059_v37, %v15079_v43  ;;  %v14372_v49 = vld [vmem:[%s18763_s5 + $0x650] ss:$8 sps:$4 sm:$0xff]  }
0x13cc   :  { %5352 = vmatpush1.bf16.msra.mxu1 %v14372_v49 }
0x13ce   :  { %5520 = vmatpush1.bf16.msra.mxu0 %v14333_v21  ;;  %v14375_v21 = vld [vmem:[%s18763_s5 + $0x5c0] ss:$8 sps:$4 sm:$0xff]  }
0x13cf   :  { %5521 = vmatprep.subr.bf16.mxu0 %v14341_v35 }
0x13d2   :  { %5522 = vmatpush1.bf16.msra.mxu0 %v14339_v56  ;;  %v5142_v56 = vld [vmem:[%s18763_s5 + $0x5d0] sm:$0x33] }
0x13d3   :  { %5523 = vmatprep.subr.bf16.mxu0 %v14347_v57  ;;  %v14378_v57 = vld [vmem:[%s18763_s5 + $0x660] ss:$8 sps:$4 sm:$0xff]   ;;  %v12240_v60 = vcombine.low %v5142_v56, %v5142_v56 }
0x13d6   :  { %5524 = vmatpush1.bf16.msra.mxu0 %v14345_v63 }
0x13d7   :  { %5525 = vmatprep.subr.bf16.mxu0 %v14353_v1  ;;  %v5508_v1 = vsel %vm4602_vm11, %v12240_v60, 0 }
0x13da   :  { %5526 = vmatpush1.bf16.msra.mxu0 %v14351_v17 }
0x13db   :  { %5527 = vmatprep.subr.bf16.mxu0 %v14359_v3  ;;  %v14383_v3 = vld [vmem:[%s18763_s5 + $0x670] ss:$8 sps:$4 sm:$0xff]  }
0x13de   :  { %5528 = vmatpush1.bf16.msra.mxu0 %v14357_v18  ;;  %v14385_v18 = vld [vmem:[%s18763_s5 + $0x674] ss:$8 sps:$4 sm:$0xff]  }
0x13df   :  { %5529 = vmatprep.subr.bf16.mxu0 %v14365_v6 }
0x13e2   :  { %5530 = vmatpush1.bf16.msra.mxu0 %v14363_v8 }
0x13e3   :  { %5531 = vmatprep.subr.bf16.mxu0 %v14371_v41 }
0x13e6   :  { %5532 = vmatpush1.bf16.msra.mxu0 %v14369_v40 }
0x13e7   :  { %5533 = vmatprep.subr.bf16.mxu0 %v14377_v46 }
0x13ea   :  { %5534 = vmatpush1.bf16.msra.mxu0 %v14375_v21 }
0x1434   :  { %v16687_v53 = vpop.f32.mrb[80].mxu0 }
0x1435   :  { %v13759_v5 = vpop.f32.mrb[81].mxu0 }
0x1436   :  { %v3971_v28 = vpop.f32.mrb[82].mxu0 }
0x1437   :  { %v16695_v22 = vpop.f32.mrb[40].mxu1  ;;  %v13760_v59 = vpop.f32.mrb[83].mxu0 }
0x1438   :  { %v13777_v10 = vpop.f32.mrb[41].mxu1  ;;  %v14380_v59 = vld [vmem:[%s18763_s5 + $0x664] ss:$8 sps:$4 sm:$0xff]  }
0x1439   :  { %v16703_v61 = vpop.f32.mrb[42].mxu1  ;;  %v12241_v10 = vcombine.high %v5142_v56, %v5142_v56  ;;  %5353 = vmatprep.subr.bf16.mxu1 %v14380_v59 }
0x143a   :  { %v13778_v62 = vpop.f32.mrb[43].mxu1  ;;  %5354 = vmatpush1.bf16.msra.mxu1 %v14378_v57 }
0x143b   :  { %12242 = vmatprep.subr.msk.bf16.mxu0 %vm4602_vm11, %v12241_v10  ;;  %5355 = vmatprep.subr.bf16.mxu1 %v14385_v18 }
0x143c   :  { %5536 = vmatpush1.bf16.msra.mxu0 %v5508_v1 }
0x143d   :  { %6010 = vmatprep.subr.bf16.mxu0 %v14849_v4 }
0x143e   :  { %5356 = vmatpush1.bf16.msra.mxu1 %v14383_v3 }
0x1464   :  { %v4643_v58 = vpop.f32.mrb[84].mxu0 }
0x1465   :  { %v4645_v0 = vpop.f32.mrb[85].mxu0 }
0x1466   :  { %v4647_v9 = vpop.f32.mrb[86].mxu0 }
0x1467   :  { %v4819_v12 = vpop.f32.mrb[44].mxu1  ;;  %v4648_v16 = vpop.f32.mrb[87].mxu0 }
0x1468   :  { %v4820_v14 = vadd.f32 %v4819_v12, %v4643_v58  ;;  %v4821_v19 = vpop.f32.mrb[45].mxu1  ;;  %v14388_v58 = vld [vmem:[%s18763_s5 + $0x684] ss:$8 sps:$4 sm:$0xff]   ;;  %v14386_v16 = vld [vmem:[%s18763_s5 + $0x680] ss:$8 sps:$4 sm:$0xff]  }
0x1469   :  { %v4822_v55 = vadd.f32 %v4821_v19, %v4645_v0  ;;  %v4823_v39 = vpop.f32.mrb[46].mxu1  ;;  %5357 = vmatprep.subr.bf16.mxu1 %v14388_v58 }
0x146a   :  { %v4824_v23 = vpop.f32.mrb[47].mxu1  ;;  %5358 = vmatpush1.bf16.msra.mxu1 %v14386_v16 }
0x146b   :  { %v5173_v23 = vld [vmem:[%s18763_s5 + $0x690] sm:$0x33] }
0x146c   :  { %v4651_v24 = vpop.f32.mrb[88].mxu0 }
0x146d   :  { %v4653_v26 = vpop.f32.mrb[89].mxu0 }
0x146e   :  { %v4655_v27 = vpop.f32.mrb[90].mxu0 }
0x146f   :  { %v4827_v29 = vpop.f32.mrb[48].mxu1  ;;  %v4656_v30 = vpop.f32.mrb[91].mxu0 }
0x1470   :  { %v4828_v7 = vadd.f32 %v4827_v29, %v4651_v24  ;;  %v4829_v31 = vpop.f32.mrb[49].mxu1  ;;  %v12214_v24 = vcombine.high %v5173_v23, %v5173_v23  ;;  %v14393_v29 = vld [vmem:[%s18763_s5 + $0x6a4] ss:$8 sps:$4 sm:$0xff]  }
0x1471   :  { %v4830_v32 = vadd.f32 %v4829_v31, %v4653_v26  ;;  %v4831_v33 = vpop.f32.mrb[50].mxu1  ;;  %v12213_v26 = vcombine.low %v5173_v23, %v5173_v23 }
0x1472   :  { %v4832_v34 = vpop.f32.mrb[51].mxu1  ;;  %12215 = vmatprep.subr.msk.bf16.mxu1 %vm4602_vm11, %v12214_v24 }
0x1473   :  { %v5332_v27 = vsel %vm4602_vm11, %v12213_v26, 0  ;;  %v14402_v26 = vld [vmem:[%s18763_s5 + $0x6d4] ss:$8 sps:$4 sm:$0xff]  }
0x1474   :  { %5360 = vmatpush1.bf16.msra.mxu1 %v5332_v27 }
0x1475   :  { %5732 = vmatprep.subr.bf16.mxu1 %v14393_v29  ;;  %v14400_v29 = vld [vmem:[%s18763_s5 + $0x6d0] ss:$8 sps:$4 sm:$0xff]  }
0x1494   :  { %v5039_v44 = vpop.f32.mrb[92].mxu0 }
0x1495   :  { %v5054_v47 = vadd.f32 %v5039_v44, %v4820_v14  ;;  %v5041_v48 = vpop.f32.mrb[93].mxu0 }
0x1496   :  { %v5055_v50 = vadd.f32 %v5041_v48, %v4822_v55  ;;  %v5043_v51 = vpop.f32.mrb[94].mxu0 }
0x1497   :  { %v5069_v35 = vadd.f32 %v5064_v15, %v5054_v47  ;;  %v5044_v52 = vpop.f32.mrb[95].mxu0 }
0x1498   :  { %v5070_v54 = vadd.f32 %v5068_v45, %v5055_v50 }
0x1499   :  { %v5073_v5 = vmax.f32 %v5069_v35, 0.0 }
0x149a   :  { %v5074_v28 = vmax.f32 %v5070_v54, 0.0 }
0x149b   :  { %v5079_v20 = vrot.slane %v5073_v5, 7 }
0x149c   :  { %v5080_v62 = vrot.slane %v5074_v28, 7  ;;  %v5047_v63 = vpop.f32.mrb[96].mxu0 }
0x149d   :  { %v5056_v2 = vadd.f32 %v5047_v63, %v4828_v7  ;;  %5081 = vrot.lane.b32.xlu0 %v5079_v20, %s14840_s14  ;;  %v5049_v17 = vpop.f32.mrb[97].mxu0 }
0x149e   :  { %v5057_v6 = vadd.f32 %v5049_v17, %v4830_v32  ;;  %5083 = vrot.lane.b32.xlu1 %v5080_v62, %s14840_s14  ;;  %v5051_v8 = vpop.f32.mrb[98].mxu0 }
0x149f   :  { %v5071_v0 = vadd.f32 %v5064_v15, %v5056_v2  ;;  %v5052_v9 = vpop.f32.mrb[99].mxu0  ;;  %v14391_v2 = vld [vmem:[%s18763_s5 + $0x6a0] ss:$8 sps:$4 sm:$0xff]   ;;  %v14396_v8 = vld [vmem:[%s18763_s5 + $0x6b4] ss:$8 sps:$4 sm:$0xff]  }
0x14a0   :  { %v5072_v12 = vadd.f32 %v5068_v45, %v5057_v6 }
0x14a1   :  { %v5075_v14 = vmax.f32 %v5071_v0, 0.0 }
0x14a2   :  { %v5076_v19 = vmax.f32 %v5072_v12, 0.0  ;;  %v14394_v12 = vld [vmem:[%s18763_s5 + $0x6b0] ss:$8 sps:$4 sm:$0xff]  }
0x14a3   :  { %v5099_v55 = vrot.slane %v5075_v14, 7  ;;  %v14399_v14 = vld [vmem:[%s18763_s5 + $0x6c4] ss:$8 sps:$4 sm:$0xff]  }
0x14a4   :  { %v5100_v39 = vrot.slane %v5076_v19, 7 }
0x14a5   :  { %5101 = vrot.lane.b32.xlu0 %v5099_v55, %s14840_s14 }
0x14a6   :  { %5103 = vrot.lane.b32.xlu1 %v5100_v39, %s14840_s14  ;;  %v14397_v39 = vld [vmem:[%s18763_s5 + $0x6c0] ss:$8 sps:$4 sm:$0xff]  }
0x150f   :  { %v5082_v7 = vpop.permute.xlu0 %5081 }
0x1510   :  { %5094 = vst.msk [vmem:[#allocation4 + $0x10] sm:$0x1] %vm5093_vm13, %v5082_v7  ;;  %v5084_v30 = vpop.permute.xlu1 %5083 }
0x1511   :  { %5090 = vst.msk [vmem:[#allocation4] sm:$0xfe] %vm5089_vm14, %v5082_v7  ;;  %v5086_v31 = vsel %vm5085_vm5, %v5082_v7, %v5084_v30  ;;  %v14405_v7 = vld [vmem:[%s18763_s5 + $0x6e4] ss:$8 sps:$4 sm:$0xff]   ;;  %v14403_v30 = vld [vmem:[%s18763_s5 + $0x6e0] ss:$8 sps:$4 sm:$0xff]  }
0x1512   :  { %5096 = vst.msk [vmem:[#allocation4 + $0x18] sm:$0x1] %vm5095_vm7, %v5086_v31 }
0x1513   :  { %5092 = vst.msk [vmem:[#allocation4 + $0x8] sm:$0xfe] %vm5091_vm15, %v5086_v31  ;;  %v14408_v31 = vld [vmem:[%s18763_s5 + $0x6f4] ss:$8 sps:$4 sm:$0xff]  }
0x1517   :  { %v5102_v32 = vpop.permute.xlu0 %5101  ;;  %v16804_v36 = vld [vmem:[#allocation4 + $0x10] sm:$0xff] }
0x1518   :  { %5108 = vst.msk [vmem:[#allocation4 + $0x20] sm:$0xfe] %vm5089_vm14, %v5102_v32  ;;  %v5104_v33 = vpop.permute.xlu1 %5103  ;;  %v5112_v34 = vld [vmem:[#allocation4] sm:$0xff] }
0x1519   :  { %5110 = vst.msk [vmem:[#allocation4 + $0x30] sm:$0x1] %vm5093_vm13, %v5102_v32  ;;  %v5147_v37 = vld [vmem:[#allocation4] sm:$0xfe]  ;;  %v5105_v38 = vsel %vm5085_vm5, %v5102_v32, %v5104_v33  ;;  %v5115_v25 = vld [vmem:[#allocation4 + $0x18] sm:$0xff]  ;;  %v5143_v42 = vpack.c.bf16 %v16804_v36, %v5112_v34 }
0x151a   :  { %v5113_v11 = vld [vmem:[#allocation4 + $0x8] sm:$0xff]  ;;  %5109 = vst.msk [vmem:[#allocation4 + $0x28] sm:$0xfe] %vm5091_vm15, %v5105_v38  ;;  %v5174_v44 = vpack.c.bf16 %v16804_v36, %v5147_v37  ;;  %v14406_v32 = vld [vmem:[%s18763_s5 + $0x6f0] ss:$8 sps:$4 sm:$0xff]  }
0x151b   :  { %v5148_v40 = vld [vmem:[#allocation4 + $0x8] sm:$0xfe]  ;;  %5111 = vst.msk [vmem:[#allocation4 + $0x38] sm:$0x1] %vm5095_vm7, %v5105_v38  ;;  %v5144_v15 = vpack.c.bf16 %v5115_v25, %v5113_v11  ;;  %v14414_v37 = vld [vmem:[%s18763_s5 + $0x714] ss:$8 sps:$4 sm:$0xff]  }
0x151c   :  { %v5175_v41 = vpack.c.bf16 %v5115_v25, %v5148_v40  ;;  %v5181_v48 = vshll.u32 %v5174_v44, 16  ;;  %v5179_v60 = vshrl.u32 %v5174_v44, 16  ;;  %v5563_v0 = vld [vmem:[#allocation4 + $0x8] sm:$0xfc]  ;;  %v14412_v38 = vld [vmem:[%s18763_s5 + $0x710] ss:$8 sps:$4 sm:$0xff]  }
0x151d   :  { %12243 = vmatprep.mubr.msk.bf16.mxu0 %vm3369_vm9, %v5144_v15  ;;  %v5590_v16 = vpack.c.bf16 %v5115_v25, %v5563_v0  ;;  %v14411_v33 = vld [vmem:[%s18763_s5 + $0x704] ss:$8 sps:$4 sm:$0xff]   ;;  %v14409_v34 = vld [vmem:[%s18763_s5 + $0x700] ss:$8 sps:$4 sm:$0xff]   ;;  %v14420_v40 = vld [vmem:[%s18763_s5 + $0x734] ss:$8 sps:$4 sm:$0xff]  }
0x151e   :  { %5546 = vmatmul.mubr.bf16.vlgmr.msra.gmra.mrb[100].mxu0 %v5143_v42  ;;  %v5193_v45 = vshll.u32 %v5175_v41, 16  ;;  %v5183_v57 = vrot.slane %v5181_v48, 1  ;;  %v5191_v59 = vshrl.u32 %v5175_v41, 16  ;;  %v14417_v11 = vld [vmem:[%s18763_s5 + $0x724] ss:$8 sps:$4 sm:$0xff]  }
0x151f   :  { %v16812_v46 = vld [vmem:[#allocation4 + $0x20] sm:$0xff]  ;;  %v5600_v24 = vrot.slane %v5590_v16, 1  ;;  %v14418_v15 = vld [vmem:[%s18763_s5 + $0x730] ss:$8 sps:$4 sm:$0xff]  }
0x1520   :  { %v5149_v47 = vld [vmem:[#allocation4 + $0x30] sm:$0x7f]  ;;  %v5195_v5 = vrot.slane %v5193_v45, 1  ;;  %v5184_v17 = vor.u32 %v5183_v57, %v5179_v60  ;;  %v14415_v25 = vld [vmem:[%s18763_s5 + $0x720] ss:$8 sps:$4 sm:$0xff]  }
0x1521   :  { %v5118_v49 = vld [vmem:[#allocation4 + $0x30] sm:$0x3f]  ;;  %v5176_v50 = vpack.c.bf16 %v5149_v47, %v16812_v46  ;;  %v5117_v51 = vld [vmem:[#allocation4 + $0x28] sm:$0xff] }
0x1522   :  { %v5119_v21 = vld [vmem:[#allocation4 + $0x38] sm:$0x3f]  ;;  %v5145_v28 = vpack.c.bf16 %v5118_v49, %v16812_v46  ;;  %v5196_v62 = vor.u32 %v5195_v5, %v5191_v59  ;;  %v14423_v41 = vld [vmem:[%s18763_s5 + $0x744] ss:$8 sps:$4 sm:$0xff]   ;;  %v5588_v42 = vld [vmem:[%s18763_s5 + $0x750] sm:$0x33] }
0x1523   :  { %v5150_v35 = vld [vmem:[#allocation4 + $0x38] sm:$0x7f]  ;;  %v5146_v52 = vpack.c.bf16 %v5119_v21, %v5117_v51  ;;  %v5186_v56 = vshll.u32 %v5176_v50, 16  ;;  %v5202_v19 = vshrl.u32 %v5176_v50, 16  ;;  %v5564_v44 = vld [vmem:[#allocation4 + $0x30] sm:$0xff]  ;;  %v12268_v47 = vcombine.high %v5588_v42, %v5588_v42 }
0x1524   :  { %v5177_v54 = vpack.c.bf16 %v5150_v35, %v5117_v51  ;;  %v5565_v3 = vld [vmem:[#allocation4 + $0x38] sm:$0xff]  ;;  %v14421_v45 = vld [vmem:[%s18763_s5 + $0x740] ss:$8 sps:$4 sm:$0xff]   ;;  %v12267_v48 = vcombine.low %v5588_v42, %v5588_v42  ;;  %v5591_v50 = vpack.c.bf16 %v5564_v44, %v16812_v46 }
0x1525   :  { %12244 = vmatprep.mubr.msk.bf16.mxu0 %vm3369_vm9, %v5146_v52  ;;  %v5188_v20 = vrot.slane %v5186_v56, 1  ;;  %v5592_v9 = vpack.c.bf16 %v5565_v3, %v5117_v51  ;;  %v5562_v49 = vld [vmem:[#allocation4] sm:$0xfc]  ;;  %v14426_v46 = vld [vmem:[%s18763_s5 + $0x770] ss:$8 sps:$4 sm:$0xff]  }
0x1526   :  { %v5198_v10 = vshll.u32 %v5177_v54, 16  ;;  %5554 = vmatmul.mubr.bf16.gmra.mrb[104].mxu0 %v5145_v28  ;;  %v5205_v1 = vshrl.u32 %v5177_v54, 16  ;;  %v5589_v51 = vpack.c.bf16 %v16804_v36, %v5562_v49  ;;  %v5727_v21 = vsel %vm4602_vm11, %v12267_v48, 0  ;;  %v14429_v36 = vld [vmem:[%s18763_s5 + $0x830] ss:$8 sps:$4 sm:$0xff]  }
0x1527   :  { %v5189_v58 = vsel %vm4448_vm4, %v5184_v17, %v5188_v20  ;;  %v5601_v55 = vrot.slane %v5592_v9, 1  ;;  %v5204_v23 = vor.u32 %v5202_v19, %v5188_v20  ;;  %v5598_v35 = vrot.slane %v5591_v50, 1  ;;  %v14427_v5 = vld [vmem:[%s18763_s5 + $0x780] ss:$8 sps:$4 sm:$0xff]   ;;  %6011 = vmatpush1.bf16.msra.mxu0 %v14429_v36  ;;  %v14428_v28 = vld [vmem:[%s18763_s5 + $0x790] ss:$8 sps:$4 sm:$0xff]  }
0x1528   :  { %v5200_v63 = vrot.slane %v5198_v10, 1  ;;  %v5597_v52 = vrot.slane %v5589_v51, 1  ;;  %v14431_v56 = vld [vmem:[%s18763_s5 + $0x840] ss:$8 sps:$4 sm:$0xff]   ;;  %6012 = vmatprep.subr.bf16.mxu0 %v14849_v4  ;;  %v14433_v57 = vld [vmem:[%s18763_s5 + $0x850] ss:$8 sps:$4 sm:$0xff]  }
0x1529   :  { %v5602_v27 = vsel %vm4869_vm12, %v5600_v24, %v5601_v55  ;;  %v14430_v59 = vld [vmem:[%s18763_s5 + $0x7a0] ss:$8 sps:$4 sm:$0xff]   ;;  %v14432_v60 = vld [vmem:[%s18763_s5 + $0x7b0] ss:$8 sps:$4 sm:$0xff]  }
0x152a   :  { %v5201_v18 = vsel %vm4448_vm4, %v5196_v62, %v5200_v63  ;;  %v5207_v6 = vor.u32 %v5205_v1, %v5200_v63  ;;  %v5599_v54 = vsel %vm4869_vm12, %v5597_v52, %v5598_v35  ;;  %v14435_v10 = vld [vmem:[%s18763_s5 + $0x860] ss:$8 sps:$4 sm:$0xff]   ;;  %v14437_v20 = vld [vmem:[%s18763_s5 + $0x870] ss:$8 sps:$4 sm:$0xff]  }
0x152b   :  { %12216 = vmatprep.mubr.msk.bf16.mxu1 %vm3369_vm9, %v5201_v18  ;;  %6013 = vmatpush1.bf16.msra.mxu0 %v14431_v56  ;;  %v14434_v62 = vld [vmem:[%s18763_s5 + $0x7c0] ss:$8 sps:$4 sm:$0xff]   ;;  %v14436_v1 = vld [vmem:[%s18763_s5 + $0x7d0] ss:$8 sps:$4 sm:$0xff]  }
0x152c   :  { %5370 = vmatmul.mubr.bf16.vlgmr.msra.gmra.mrb[52].mxu1 %v5189_v58  ;;  %6014 = vmatprep.subr.bf16.mxu0 %v14849_v4  ;;  %v14439_v63 = vld [vmem:[%s18763_s5 + $0x880] ss:$8 sps:$4 sm:$0xff]   ;;  %v14440_v17 = vld [vmem:[%s18763_s5 + $0x7f0] ss:$8 sps:$4 sm:$0xff]  }
0x152d   :  { %5733 = vmatpush1.bf16.msra.mxu1 %v14391_v2  ;;  %12217 = vmatprep.mubr.msk.bf16.mxu1 %vm3369_vm9, %v5207_v6  ;;  %v14438_v2 = vld [vmem:[%s18763_s5 + $0x7e0] ss:$8 sps:$4 sm:$0xff]  }
0x152e   :  { %5734 = vmatprep.subr.bf16.mxu1 %v14396_v8  ;;  %v14446_v51 = vld [vmem:[%s18763_s5 + $0x820] ss:$0 sps:$4 sm:$0x33]  }
0x152f   :  { %6015 = vmatpush1.bf16.msra.mxu0 %v14433_v57 }
0x1530   :  { %6016 = vmatprep.subr.bf16.mxu0 %v14849_v4 }
0x1531   :  { %5735 = vmatpush1.bf16.msra.mxu1 %v14394_v12 }
0x1532   :  { %5736 = vmatprep.subr.bf16.mxu1 %v14399_v14 }
0x1533   :  { %6017 = vmatpush1.bf16.msra.mxu0 %v14435_v10  ;;  %v16990_v10 = vld [vmem:[#allocation5] sm:$0xff] }
0x1534   :  { %5378 = vmatmul.mubr.bf16.gmra.mrb[56].mxu1 %v5204_v23  ;;  %6018 = vmatprep.subr.bf16.mxu0 %v14849_v4 }
0x1535   :  { %5737 = vmatpush1.bf16.msra.mxu1 %v14397_v39  ;;  %12270 = vmatprep.mubr.msk.bf16.mxu1 %vm3369_vm9, %v5602_v27 }
0x1536   :  { %5738 = vmatprep.subr.bf16.mxu1 %v14402_v26 }
0x1537   :  { %6019 = vmatpush1.bf16.msra.mxu0 %v14437_v20 }
0x1538   :  { %6020 = vmatprep.subr.bf16.mxu0 %v14849_v4 }
0x1539   :  { %5739 = vmatpush1.bf16.msra.mxu1 %v14400_v29 }
0x153a   :  { %5740 = vmatprep.subr.bf16.mxu1 %v14405_v7 }
0x153b   :  { %6021 = vmatpush1.bf16.msra.mxu0 %v14439_v63  ;;  %v14448_v63 = vld [vmem:[%s18763_s5 + $0x8d0] ss:$8 sps:$4 sm:$0xff]  }
0x153c   :  { %6022 = vmatprep.subr.bf16.mxu0 %v14849_v4 }
0x153d   :  { %5741 = vmatpush1.bf16.msra.mxu1 %v14403_v30 }
0x153e   :  { %5742 = vmatprep.subr.bf16.mxu1 %v14408_v31  ;;  %v5785_v31 = vld [vmem:[%s18763_s5 + $0x760] sm:$0x11] }
0x1541   :  { %5743 = vmatpush1.bf16.msra.mxu1 %v14406_v32  ;;  %v5786_v32 = vunpack.c.l.bf16 %v5785_v31 }
0x1542   :  { %5744 = vmatprep.subr.bf16.mxu1 %v14411_v33  ;;  %v5787_v33 = vunpack.c.h.bf16 %v5785_v31 }
0x1545   :  { %5745 = vmatpush1.bf16.msra.mxu1 %v14409_v34  ;;  %v14441_v34 = vld [vmem:[%s18763_s5 + $0x890] ss:$8 sps:$4 sm:$0xff]  }
0x1546   :  { %5746 = vmatprep.subr.bf16.mxu1 %v14414_v37  ;;  %v14442_v37 = vld [vmem:[%s18763_s5 + $0x800] ss:$8 sps:$4 sm:$0xff]   ;;  %6023 = vmatpush1.bf16.msra.mxu0 %v14441_v34 }
0x1547   :  { %6024 = vmatprep.subr.bf16.mxu0 %v14849_v4 }
0x1549   :  { %5747 = vmatpush1.bf16.msra.mxu1 %v14412_v38  ;;  %v5791_v38 = vrot.slane %v5786_v32, %v15079_v43 }
0x154a   :  { %5748 = vmatprep.subr.bf16.mxu1 %v14417_v11 }
0x154d   :  { %5749 = vmatpush1.bf16.msra.mxu1 %v14415_v25  ;;  %v5795_v25 = vrot.slane %v5787_v33, %v15079_v43 }
0x154e   :  { %5750 = vmatprep.subr.bf16.mxu1 %v14420_v40  ;;  %v14443_v40 = vld [vmem:[%s18763_s5 + $0x8a0] ss:$8 sps:$4 sm:$0xff]  }
0x154f   :  { %6025 = vmatpush1.bf16.msra.mxu0 %v14443_v40 }
0x1550   :  { %6026 = vmatprep.subr.bf16.mxu0 %v14849_v4 }
0x1551   :  { %5751 = vmatpush1.bf16.msra.mxu1 %v14418_v15  ;;  %v14444_v15 = vld [vmem:[%s18763_s5 + $0x810] ss:$8 sps:$4 sm:$0xff]  }
0x1552   :  { %5752 = vmatprep.subr.bf16.mxu1 %v14423_v41 }
0x1555   :  { %5753 = vmatpush1.bf16.msra.mxu1 %v14421_v45 }
0x1556   :  { %12269 = vmatprep.subr.msk.bf16.mxu1 %vm4602_vm11, %v12268_v47 }
0x1559   :  { %5755 = vmatpush1.bf16.msra.mxu1 %v5727_v21 }
0x155a   :  { %6135 = vmatprep.subr.bf16.mxu1 %v14849_v4 }
0x155c   :  { %5765 = vmatmul.mubr.bf16.vlgmr.msra.gmra.mrb[60].mxu1 %v5599_v54  ;;  %v6133_v54 = vsel %vm4602_vm11, %v14446_v51, 0 }
0x155d   :  { %12271 = vmatprep.mubr.msk.bf16.mxu1 %vm3369_vm9, %v5601_v55  ;;  %6136 = vmatpush1.bf16.msra.mxu1 %v14426_v46 }
0x155e   :  { %6137 = vmatprep.subr.bf16.mxu1 %v14849_v4 }
0x1561   :  { %6138 = vmatpush1.bf16.msra.mxu1 %v14427_v5 }
0x1562   :  { %6139 = vmatprep.subr.bf16.mxu1 %v14849_v4 }
0x1564   :  { %5773 = vmatmul.mubr.bf16.gmra.mrb[64].mxu1 %v5598_v35  ;;  %v14445_v35 = vld [vmem:[%s18763_s5 + $0x8b0] ss:$8 sps:$4 sm:$0xff]  }
0x1565   :  { %6140 = vmatpush1.bf16.msra.mxu1 %v14428_v28  ;;  %6027 = vmatpush1.bf16.msra.mxu0 %v14445_v35  ;;  %v14447_v28 = vld [vmem:[%s18763_s5 + $0x8c0] ss:$8 sps:$4 sm:$0xff]  }
0x1566   :  { %6141 = vmatprep.subr.bf16.mxu1 %v14849_v4  ;;  %6028 = vmatprep.subr.bf16.mxu0 %v14849_v4 }
0x1569   :  { %6142 = vmatpush1.bf16.msra.mxu1 %v14430_v59  ;;  %6029 = vmatpush1.bf16.msra.mxu0 %v14447_v28 }
0x156a   :  { %6143 = vmatprep.subr.bf16.mxu1 %v14849_v4  ;;  %6030 = vmatprep.subr.bf16.mxu0 %v14849_v4 }
0x156d   :  { %6144 = vmatpush1.bf16.msra.mxu1 %v14432_v60  ;;  %6031 = vmatpush1.bf16.msra.mxu0 %v14448_v63  ;;  %v14452_v63 = vld [vmem:[%s18763_s5 + $0x910] ss:$8 sps:$4 sm:$0xff]  }
0x156e   :  { %6145 = vmatprep.subr.bf16.mxu1 %v14849_v4  ;;  %6032 = vmatprep.subr.bf16.mxu0 %v14849_v4 }
0x1571   :  { %6146 = vmatpush1.bf16.msra.mxu1 %v14434_v62 }
0x1572   :  { %6147 = vmatprep.subr.bf16.mxu1 %v14849_v4 }
0x1575   :  { %6148 = vmatpush1.bf16.msra.mxu1 %v14436_v1 }
0x1576   :  { %6149 = vmatprep.subr.bf16.mxu1 %v14849_v4 }
0x1579   :  { %6150 = vmatpush1.bf16.msra.mxu1 %v14438_v2 }
0x157a   :  { %6151 = vmatprep.subr.bf16.mxu1 %v14849_v4 }
0x157d   :  { %6152 = vmatpush1.bf16.msra.mxu1 %v14440_v17 }
0x157e   :  { %6153 = vmatprep.subr.bf16.mxu1 %v14849_v4 }
0x1581   :  { %6154 = vmatpush1.bf16.msra.mxu1 %v14442_v37 }
0x1582   :  { %6155 = vmatprep.subr.bf16.mxu1 %v14849_v4 }
0x1585   :  { %6156 = vmatpush1.bf16.msra.mxu1 %v14444_v15 }
0x1586   :  { %6157 = vmatprep.subr.bf16.mxu1 %v14849_v4 }
0x1589   :  { %6158 = vmatpush1.bf16.msra.mxu1 %v6133_v54  ;;  %v14450_v54 = vld [vmem:[%s18763_s5 + $0x8f0] ss:$8 sps:$4 sm:$0xff]  }
0x158a   :  { %13779 = vmatprep.subr.bf16.mxu1 %v16990_v10 }
0x15f1   :  { %v5547_v3 = vpop.f32.mrb[100].mxu0 }
0x15f2   :  { %v5549_v18 = vpop.f32.mrb[101].mxu0 }
0x15f3   :  { %v5551_v6 = vpop.f32.mrb[102].mxu0 }
0x15f4   :  { %v5552_v8 = vpop.f32.mrb[103].mxu0 }
0x15f9   :  { %v5555_v58 = vpop.f32.mrb[104].mxu0 }
0x15fa   :  { %v5557_v0 = vpop.f32.mrb[105].mxu0 }
0x15fb   :  { %v5559_v9 = vpop.f32.mrb[106].mxu0 }
0x15fc   :  { %v5560_v12 = vpop.f32.mrb[107].mxu0 }
0x15ff   :  { %v5371_v14 = vpop.f32.mrb[52].mxu1 }
0x1600   :  { %v5548_v16 = vadd.f32 %v5547_v3, %v5371_v14  ;;  %v5373_v19 = vpop.f32.mrb[53].mxu1 }
0x1601   :  { %v5550_v55 = vadd.f32 %v5549_v18, %v5373_v19  ;;  %v5375_v39 = vpop.f32.mrb[54].mxu1  ;;  %v14449_v18 = vld [vmem:[%s18763_s5 + $0x8e0] ss:$0 sps:$4 sm:$0x33]  }
0x1602   :  { %v5376_v23 = vpop.f32.mrb[55].mxu1  ;;  %v6008_v6 = vsel %vm4602_vm11, %v14449_v18, 0  ;;  %v14454_v18 = vld [vmem:[%s18763_s5 + $0x930] ss:$8 sps:$4 sm:$0xff]  }
0x1603   :  { %6033 = vmatpush1.bf16.msra.mxu0 %v6008_v6  ;;  %v14455_v6 = vld [vmem:[%s18763_s5 + $0x940] ss:$8 sps:$4 sm:$0xff]  }
0x1604   :  { %6303 = vmatprep.subr.bf16.mxu0 %v14849_v4 }
0x1607   :  { %v5379_v24 = vpop.f32.mrb[56].mxu1 }
0x1608   :  { %v5556_v26 = vadd.f32 %v5555_v58, %v5379_v24  ;;  %v5381_v27 = vpop.f32.mrb[57].mxu1 }
0x1609   :  { %v5558_v29 = vadd.f32 %v5557_v0, %v5381_v27  ;;  %v5383_v7 = vpop.f32.mrb[58].mxu1 }
0x160a   :  { %v5384_v30 = vpop.f32.mrb[59].mxu1 }
0x162f   :  { %v5766_v11 = vpop.f32.mrb[60].mxu1 }
0x1630   :  { %v5781_v41 = vadd.f32 %v5766_v11, %v5548_v16  ;;  %v5768_v42 = vpop.f32.mrb[61].mxu1 }
0x1631   :  { %v5782_v44 = vadd.f32 %v5768_v42, %v5550_v55  ;;  %v5770_v45 = vpop.f32.mrb[62].mxu1 }
0x1632   :  { %v5796_v47 = vadd.f32 %v5791_v38, %v5781_v41  ;;  %v5771_v48 = vpop.f32.mrb[63].mxu1 }
0x1633   :  { %v5797_v49 = vadd.f32 %v5795_v25, %v5782_v44 }
0x1634   :  { %v5800_v50 = vmax.f32 %v5796_v47, 0.0 }
0x1635   :  { %v5801_v21 = vmax.f32 %v5797_v49, 0.0 }
0x1636   :  { %v5806_v52 = vrot.slane %v5800_v50, 7 }
0x1637   :  { %v5807_v46 = vrot.slane %v5801_v21, 7  ;;  %v5774_v36 = vpop.f32.mrb[64].mxu1 }
0x1638   :  { %v5783_v5 = vadd.f32 %v5774_v36, %v5556_v26  ;;  %v5776_v56 = vpop.f32.mrb[65].mxu1  ;;  %5808 = vrot.lane.b32.xlu0 %v5806_v52, %s14840_s14 }
0x1639   :  { %v5784_v57 = vadd.f32 %v5776_v56, %v5558_v29  ;;  %v5778_v59 = vpop.f32.mrb[66].mxu1  ;;  %5810 = vrot.lane.b32.xlu1 %v5807_v46, %s14840_s14 }
0x163a   :  { %v5798_v60 = vadd.f32 %v5791_v38, %v5783_v5  ;;  %v5779_v20 = vpop.f32.mrb[67].mxu1  ;;  %v14451_v59 = vld [vmem:[%s18763_s5 + $0x900] ss:$8 sps:$4 sm:$0xff]  }
0x163b   :  { %v5799_v62 = vadd.f32 %v5795_v25, %v5784_v57 }
0x163c   :  { %v5802_v1 = vmax.f32 %v5798_v60, 0.0 }
0x163d   :  { %v5803_v2 = vmax.f32 %v5799_v62, 0.0 }
0x163e   :  { %v5821_v17 = vrot.slane %v5802_v1, 7 }
0x163f   :  { %v5822_v3 = vrot.slane %v5803_v2, 7 }
0x1640   :  { %5823 = vrot.lane.b32.xlu0 %v5821_v17, %s14840_s14 }
0x1641   :  { %5825 = vrot.lane.b32.xlu1 %v5822_v3, %s14840_s14  ;;  %v14453_v3 = vld [vmem:[%s18763_s5 + $0x920] ss:$8 sps:$4 sm:$0xff]  }
0x16aa   :  { %v5809_v8 = vpop.permute.xlu0 %5808 }
0x16ab   :  { %5815 = vst.msk [vmem:[#allocation4] sm:$0xfe] %vm5089_vm14, %v5809_v8  ;;  %v5811_v58 = vpop.permute.xlu1 %5810 }
0x16ac   :  { %5817 = vst.msk [vmem:[#allocation4 + $0x10] sm:$0x1] %vm5093_vm13, %v5809_v8  ;;  %v5812_v0 = vsel %vm5085_vm5, %v5809_v8, %v5811_v58  ;;  %v14456_v8 = vld [vmem:[%s18763_s5 + $0x950] ss:$8 sps:$4 sm:$0xff]   ;;  %v14457_v58 = vld [vmem:[%s18763_s5 + $0x960] ss:$8 sps:$4 sm:$0xff]  }
0x16ad   :  { %5816 = vst.msk [vmem:[#allocation4 + $0x8] sm:$0xfe] %vm5091_vm15, %v5812_v0 }
0x16ae   :  { %5818 = vst.msk [vmem:[#allocation4 + $0x18] sm:$0x1] %vm5095_vm7, %v5812_v0  ;;  %v14458_v0 = vld [vmem:[%s18763_s5 + $0x970] ss:$8 sps:$4 sm:$0xff]  }
0x16b2   :  { %v5824_v9 = vpop.permute.xlu0 %5823  ;;  %v5834_v14 = vld [vmem:[#allocation4] sm:$0xff] }
0x16b3   :  { %5830 = vst.msk [vmem:[#allocation4 + $0x20] sm:$0xfe] %vm5089_vm14, %v5824_v9  ;;  %v5826_v12 = vpop.permute.xlu1 %5825  ;;  %v17012_v16 = vld [vmem:[#allocation4 + $0x10] sm:$0xff]  ;;  %v5869_v19 = vld [vmem:[#allocation4] sm:$0xfe]  ;;  %vm18822_vm14 = vmmov %vm18817_vm2 }
0x16b4   :  { %5832 = vst.msk [vmem:[#allocation4 + $0x30] sm:$0x1] %vm5093_vm13, %v5824_v9  ;;  %v5827_v55 = vsel %vm5085_vm5, %v5824_v9, %v5826_v12  ;;  %v5835_v39 = vld [vmem:[#allocation4 + $0x8] sm:$0xff]  ;;  %v5865_v29 = vpack.c.bf16 %v17012_v16, %v5834_v14  ;;  %v5896_v7 = vpack.c.bf16 %v17012_v16, %v5869_v19  ;;  %v14460_v14 = vld [vmem:[%s18763_s5 + $0x990] ss:$8 sps:$4 sm:$0xff]   ;;  %vm18821_vm13 = vmmov %vm18817_vm2 }
0x16b5   :  { %v5837_v23 = vld [vmem:[#allocation4 + $0x18] sm:$0xff]  ;;  %v5870_v24 = vld [vmem:[#allocation4 + $0x8] sm:$0xfe]  ;;  %5831 = vst.msk [vmem:[#allocation4 + $0x28] sm:$0xfe] %vm5091_vm15, %v5827_v55  ;;  %vm18823_vm5 = vmmov %vm18817_vm2 }
0x16b6   :  { %5833 = vst.msk [vmem:[#allocation4 + $0x38] sm:$0x1] %vm5095_vm7, %v5827_v55  ;;  %v5866_v26 = vpack.c.bf16 %v5837_v23, %v5835_v39  ;;  %v5897_v27 = vpack.c.bf16 %v5837_v23, %v5870_v24  ;;  %v5903_v33 = vshll.u32 %v5896_v7, 16  ;;  %v5901_v49 = vshrl.u32 %v5896_v7, 16  ;;  %v6183_v28 = vld [vmem:[#allocation4 + $0x8] sm:$0xfc]  ;;  %vm18824_vm7 = vmmov %vm18817_vm2 }
0x16b7   :  { %v6210_v60 = vpack.c.bf16 %v5837_v23, %v6183_v28  ;;  %v14459_v9 = vld [vmem:[%s18763_s5 + $0x980] ss:$8 sps:$4 sm:$0xff]   ;;  %vm18825_vm15 = vmmov %vm18817_vm2 }
0x16b8   :  { %12298 = vmatprep.mubr.msk.bf16.mxu1 %vm3369_vm9, %v5866_v26  ;;  %v5915_v30 = vshll.u32 %v5897_v27, 16  ;;  %v5905_v45 = vrot.slane %v5903_v33, 1  ;;  %v5913_v47 = vshrl.u32 %v5897_v27, 16  ;;  %v14461_v19 = vld [vmem:[%s18763_s5 + $0x9a0] ss:$0 sps:$4 sm:$0x33]  }
0x16b9   :  { %6168 = vmatmul.mubr.bf16.vlgmr.msra.gmra.mrb[68].mxu1 %v5865_v29  ;;  %v6220_v2 = vrot.slane %v6210_v60, 1  ;;  %v6182_v55 = vld [vmem:[#allocation4] sm:$0xfc]  ;;  %v6301_v24 = vsel %vm4602_vm11, %v14461_v19, 0  ;;  %v14467_v33 = vld [vmem:[%s18763_s5 + $0x11b0] ss:$8 sps:$4 sm:$0xff]   ;;  %vm18820_vm11 = vmmov %vm18817_vm2 }
0x16ba   :  { %v17020_v31 = vld [vmem:[#allocation4 + $0x20] sm:$0xff]  ;;  %v5917_v42 = vrot.slane %v5915_v30, 1  ;;  %v5906_v52 = vor.u32 %v5905_v45, %v5901_v49  ;;  %v6209_v23 = vpack.c.bf16 %v17012_v16, %v6182_v55  ;;  %v14463_v16 = vld [vmem:[%s18763_s5 + $0x1170] ss:$8 sps:$4 sm:$0xff]  }
0x16bb   :  { %v5871_v32 = vld [vmem:[#allocation4 + $0x30] sm:$0x7f]  ;;  %v14462_v7 = vld [vmem:[%s18763_s5 + $0x1160] ss:$8 sps:$4 sm:$0xff]  }
0x16bc   :  { %v5840_v34 = vld [vmem:[#allocation4 + $0x30] sm:$0x3f]  ;;  %v5898_v37 = vpack.c.bf16 %v5871_v32, %v17020_v31  ;;  %v5839_v38 = vld [vmem:[#allocation4 + $0x28] sm:$0xff]  ;;  %v5918_v51 = vor.u32 %v5917_v42, %v5913_v47  ;;  %v6217_v27 = vrot.slane %v6209_v23, 1  ;;  %13780 = vmatpush3.bf16.msra.mxu1 %v14462_v7  ;;  %v6379_v7 = vld [vmem:[%s18763_s5 + $0x11e0] sm:$0x1] }
0x16bd   :  { %v5841_v11 = vld [vmem:[#allocation4 + $0x38] sm:$0x3f]  ;;  %v5867_v44 = vpack.c.bf16 %v5840_v34, %v17020_v31  ;;  %v6184_v12 = vld [vmem:[#allocation4 + $0x30] sm:$0xff]  ;;  %13781 = vmatprep.subr.bf16.mxu1 %v16990_v10  ;;  %v14464_v30 = vld [vmem:[%s18763_s5 + $0x1180] ss:$8 sps:$4 sm:$0xff]  }
0x16be   :  { %v5872_v25 = vld [vmem:[#allocation4 + $0x38] sm:$0x7f]  ;;  %v5868_v40 = vpack.c.bf16 %v5841_v11, %v5839_v38  ;;  %v5908_v15 = vshll.u32 %v5898_v37, 16  ;;  %v5924_v20 = vshrl.u32 %v5898_v37, 16  ;;  %v6211_v39 = vpack.c.bf16 %v6184_v12, %v17020_v31  ;;  %v14466_v32 = vld [vmem:[%s18763_s5 + $0x11a0] ss:$8 sps:$4 sm:$0xff]  }
0x16bf   :  { %v5899_v41 = vpack.c.bf16 %v5872_v25, %v5839_v38  ;;  %v6185_v46 = vld [vmem:[#allocation4 + $0x38] sm:$0xff]  ;;  %v14468_v34 = vld [vmem:[%s18763_s5 + $0x11c0] ss:$8 sps:$4 sm:$0xff]  }
0x16c0   :  { %12299 = vmatprep.mubr.msk.bf16.mxu1 %vm3369_vm9, %v5868_v40  ;;  %v5910_v50 = vrot.slane %v5908_v15, 1  ;;  %v6212_v57 = vpack.c.bf16 %v6185_v46, %v5839_v38  ;;  %v6218_v26 = vrot.slane %v6211_v39, 1  ;;  %13782 = vmatpush3.bf16.msra.mxu1 %v14463_v16  ;;  %v14465_v31 = vld [vmem:[%s18763_s5 + $0x1190] ss:$8 sps:$4 sm:$0xff]   ;;  %v14476_v19 = vld [vmem:[%s18763_s5 + $0xa80] ss:$8 sps:$4 sm:$0xff]  }
0x16c1   :  { %v5920_v48 = vshll.u32 %v5899_v41, 16  ;;  %6175 = vmatmul.mubr.bf16.gmra.mrb[72].mxu1 %v5867_v44  ;;  %v5927_v35 = vshrl.u32 %v5899_v41, 16  ;;  %13783 = vmatprep.subr.bf16.mxu1 %v16990_v10  ;;  %v14469_v37 = vld [vmem:[%s18763_s5 + $0x11d0] ss:$8 sps:$4 sm:$0xff]   ;;  %v14477_v23 = vld [vmem:[%s18763_s5 + $0xa00] ss:$8 sps:$4 sm:$0xff]  }
0x16c2   :  { %13795 = vmatprep.mubr.msk.bf16.mxu1 %vm18775_vm1, %v16990_v10  ;;  %v5911_v56 = vsel %vm4448_vm4, %v5906_v52, %v5910_v50  ;;  %v6221_v62 = vrot.slane %v6212_v57, 1  ;;  %v5926_v1 = vor.u32 %v5924_v20, %v5910_v50  ;;  %v6219_v29 = vsel %vm4869_vm12, %v6217_v27, %v6218_v26  ;;  %v6352_v46 = vld [vmem:[%s18763_s5 + $0x9b0] sm:$0x1] }
0x16c3   :  { %v5922_v21 = vrot.slane %v5920_v48, 1  ;;  %v14474_v12 = vld [vmem:[%s18763_s5 + $0xa70] ss:$8 sps:$4 sm:$0xff]  }
0x16c4   :  { %v6222_v17 = vsel %vm4869_vm12, %v6220_v2, %v6221_v62  ;;  %13784 = vmatpush3.bf16.msra.mxu1 %v14464_v30  ;;  %v14475_v55 = vld [vmem:[%s18763_s5 + $0x9f0] ss:$8 sps:$4 sm:$0xff]   ;;  %v6380_v30 = vunpack.c.l.bf16 %v6379_v7 }
0x16c5   :  { %v5923_v36 = vsel %vm4448_vm4, %v5918_v51, %v5922_v21  ;;  %v5929_v5 = vor.u32 %v5927_v35, %v5922_v21  ;;  %13785 = vmatprep.subr.bf16.mxu1 %v16990_v10  ;;  %v14478_v39 = vld [vmem:[%s18763_s5 + $0xa90] ss:$8 sps:$4 sm:$0xff]  }
0x16c6   :  { %12284 = vmatprep.mubr.msk.bf16.mxu0 %vm3369_vm9, %v5923_v36  ;;  %v14482_v27 = vld [vmem:[%s18763_s5 + $0xab0] ss:$8 sps:$4 sm:$0xff]  }
0x16c7   :  { %6043 = vmatmul.mubr.bf16.vlgmr.msra.gmra.mrb[108].mxu0 %v5911_v56  ;;  %v6353_v56 = vunpack.c.l.bf16 %v6352_v46  ;;  %v14483_v16 = vld [vmem:[%s18763_s5 + $0xa30] ss:$8 sps:$4 sm:$0xff]  }
0x16c8   :  { %6304 = vmatpush1.bf16.msra.mxu0 %v14450_v54  ;;  %12285 = vmatprep.mubr.msk.bf16.mxu0 %vm3369_vm9, %v5929_v5 }
0x16c9   :  { %6305 = vmatprep.subr.bf16.mxu0 %v14849_v4  ;;  %13786 = vmatpush3.bf16.msra.mxu1 %v14465_v31  ;;  %v6357_v60 = vrot.slane %v6353_v56, %v15079_v43  ;;  %v14484_v31 = vld [vmem:[%s18763_s5 + $0xac0] ss:$8 sps:$4 sm:$0xff]  }
0x16ca   :  { %13787 = vmatprep.subr.bf16.mxu1 %v16990_v10 }
0x16cc   :  { %6306 = vmatpush1.bf16.msra.mxu0 %v14451_v59 }
0x16cd   :  { %6307 = vmatprep.subr.bf16.mxu0 %v14849_v4  ;;  %13788 = vmatpush3.bf16.msra.mxu1 %v14466_v32  ;;  %v14485_v32 = vld [vmem:[%s18763_s5 + $0xa40] ss:$8 sps:$4 sm:$0xff]  }
0x16ce   :  { %13789 = vmatprep.subr.bf16.mxu1 %v16990_v10 }
0x16cf   :  { %6050 = vmatmul.mubr.bf16.gmra.mrb[112].mxu0 %v5926_v1 }
0x16d0   :  { %6308 = vmatpush1.bf16.msra.mxu0 %v14452_v63  ;;  %12312 = vmatprep.mubr.msk.bf16.mxu0 %vm3369_vm9, %v6222_v17 }
0x16d1   :  { %6309 = vmatprep.subr.bf16.mxu0 %v14849_v4  ;;  %13790 = vmatpush3.bf16.msra.mxu1 %v14467_v33  ;;  %v14486_v33 = vld [vmem:[%s18763_s5 + $0xad0] ss:$8 sps:$4 sm:$0xff]  }
0x16d2   :  { %13791 = vmatprep.subr.bf16.mxu1 %v16990_v10 }
0x16d4   :  { %6310 = vmatpush1.bf16.msra.mxu0 %v14453_v3 }
0x16d5   :  { %6311 = vmatprep.subr.bf16.mxu0 %v14849_v4  ;;  %13792 = vmatpush3.bf16.msra.mxu1 %v14468_v34  ;;  %v6384_v34 = vrot.slane %v6380_v30, %v15079_v43 }
0x16d6   :  { %13793 = vmatprep.subr.bf16.mxu1 %v16990_v10 }
0x16d8   :  { %6312 = vmatpush1.bf16.msra.mxu0 %v14454_v18 }
0x16d9   :  { %6313 = vmatprep.subr.bf16.mxu0 %v14849_v4  ;;  %13794 = vmatpush3.bf16.msra.mxu1 %v14469_v37  ;;  %v14487_v37 = vld [vmem:[%s18763_s5 + $0xa50] ss:$8 sps:$4 sm:$0xff]  }
0x16da   :  { %6654 = vmatprep.subr.bf16.mxu1 %v14849_v4 }
0x16dc   :  { %6314 = vmatpush1.bf16.msra.mxu0 %v14455_v6 }
0x16dd   :  { %6315 = vmatprep.subr.bf16.mxu0 %v14849_v4 }
0x16e0   :  { %6316 = vmatpush1.bf16.msra.mxu0 %v14456_v8 }
0x16e1   :  { %6317 = vmatprep.subr.bf16.mxu0 %v14849_v4 }
0x16e4   :  { %6318 = vmatpush1.bf16.msra.mxu0 %v14457_v58  ;;  %v14470_v58 = vld [vmem:[%s18763_s5 + $0x9c0] ss:$8 sps:$4 sm:$0xff]  }
0x16e5   :  { %6319 = vmatprep.subr.bf16.mxu0 %v14849_v4 }
0x16e8   :  { %6320 = vmatpush1.bf16.msra.mxu0 %v14458_v0  ;;  %v14472_v0 = vld [vmem:[%s18763_s5 + $0xa60] ss:$8 sps:$4 sm:$0xff]  }
0x16e9   :  { %6321 = vmatprep.subr.bf16.mxu0 %v14849_v4 }
0x16ec   :  { %6322 = vmatpush1.bf16.msra.mxu0 %v14459_v9  ;;  %v14471_v9 = vld [vmem:[%s18763_s5 + $0x9d0] ss:$8 sps:$4 sm:$0xff]  }
0x16ed   :  { %6323 = vmatprep.subr.bf16.mxu0 %v14849_v4 }
0x16f0   :  { %6324 = vmatpush1.bf16.msra.mxu0 %v14460_v14  ;;  %v14473_v14 = vld [vmem:[%s18763_s5 + $0x9e0] ss:$8 sps:$4 sm:$0xff]  }
0x16f1   :  { %6325 = vmatprep.subr.bf16.mxu0 %v14849_v4 }
0x16f4   :  { %6326 = vmatpush1.bf16.msra.mxu0 %v6301_v24  ;;  %v14480_v24 = vld [vmem:[%s18763_s5 + $0xaa0] ss:$8 sps:$4 sm:$0xff]  }
0x16f5   :  { %6767 = vmatprep.subr.bf16.mxu0 %v14849_v4 }
0x16f7   :  { %6336 = vmatmul.mubr.bf16.vlgmr.msra.gmra.mrb[116].mxu0 %v6219_v29  ;;  %v14481_v29 = vld [vmem:[%s18763_s5 + $0xa20] ss:$8 sps:$4 sm:$0xff]  }
0x16f8   :  { %12313 = vmatprep.mubr.msk.bf16.mxu0 %vm3369_vm9, %v6221_v62  ;;  %6768 = vmatpush1.bf16.msra.mxu0 %v14470_v58  ;;  %vm6479_vm9 = vcmask 1047681  }
0x16f9   :  { %6769 = vmatprep.subr.bf16.mxu0 %v14849_v4 }
0x16fc   :  { %6770 = vmatpush1.bf16.msra.mxu0 %v14471_v9 }
0x16fd   :  { %6771 = vmatprep.subr.bf16.mxu0 %v14849_v4 }
0x16ff   :  { %6343 = vmatmul.mubr.bf16.gmra.mrb[120].mxu0 %v6218_v26  ;;  %v14479_v26 = vld [vmem:[%s18763_s5 + $0xa10] ss:$8 sps:$4 sm:$0xff]  }
0x1700   :  { %6772 = vmatpush1.bf16.msra.mxu0 %v14473_v14 }
0x1701   :  { %6773 = vmatprep.subr.bf16.mxu0 %v14849_v4 }
0x1704   :  { %6774 = vmatpush1.bf16.msra.mxu0 %v14475_v55 }
0x1705   :  { %6775 = vmatprep.subr.bf16.mxu0 %v14849_v4 }
0x1708   :  { %6776 = vmatpush1.bf16.msra.mxu0 %v14477_v23  ;;  %v14490_v23 = vld [vmem:[%s18763_s5 + $0xb00] ss:$8 sps:$4 sm:$0xff]  }
0x1709   :  { %6777 = vmatprep.subr.bf16.mxu0 %v14849_v4 }
0x170c   :  { %6778 = vmatpush1.bf16.msra.mxu0 %v14479_v26 }
0x170d   :  { %6779 = vmatprep.subr.bf16.mxu0 %v14849_v4 }
0x1710   :  { %6780 = vmatpush1.bf16.msra.mxu0 %v14481_v29 }
0x1711   :  { %6781 = vmatprep.subr.bf16.mxu0 %v14849_v4 }
0x1714   :  { %6782 = vmatpush1.bf16.msra.mxu0 %v14483_v16 }
0x1715   :  { %6783 = vmatprep.subr.bf16.mxu0 %v14849_v4 }
0x1718   :  { %6784 = vmatpush1.bf16.msra.mxu0 %v14485_v32 }
0x1719   :  { %6785 = vmatprep.subr.bf16.mxu0 %v14849_v4 }
0x171c   :  { %6786 = vmatpush1.bf16.msra.mxu0 %v14487_v37  ;;  %v14492_v37 = vld [vmem:[%s18763_s5 + $0xb20] ss:$8 sps:$4 sm:$0xff]  }
0x171d   :  { %7155 = vmatprep.subr.bf16.mxu0 %v14849_v4 }
0x178c   :  { %v6169_v38 = vpop.f32.mrb[68].mxu1 }
0x178d   :  { %v6171_v11 = vpop.f32.mrb[69].mxu1 }
0x178e   :  { %v6172_v25 = vpop.f32.mrb[70].mxu1 }
0x178f   :  { %v6173_v40 = vpop.f32.mrb[71].mxu1 }
0x1794   :  { %v6176_v15 = vpop.f32.mrb[72].mxu1 }
0x1795   :  { %v6178_v41 = vpop.f32.mrb[73].mxu1 }
0x1796   :  { %v6179_v42 = vpop.f32.mrb[74].mxu1 }
0x1797   :  { %v6180_v44 = vpop.f32.mrb[75].mxu1 }
0x179a   :  { %v6044_v45 = vpop.f32.mrb[108].mxu0 }
0x179b   :  { %v6170_v47 = vadd.f32 %v6169_v38, %v6044_v45  ;;  %v6046_v48 = vpop.f32.mrb[109].mxu0  ;;  %v14488_v38 = vld [vmem:[%s18763_s5 + $0xae0] ss:$8 sps:$4 sm:$0xff]   ;;  %v14489_v45 = vld [vmem:[%s18763_s5 + $0xaf0] ss:$8 sps:$4 sm:$0xff]  }
0x179c   :  { %v6047_v49 = vpop.f32.mrb[110].mxu0 }
0x179d   :  { %v6048_v50 = vpop.f32.mrb[111].mxu0 }
0x17a2   :  { %v6051_v51 = vpop.f32.mrb[112].mxu0 }
0x17a3   :  { %v6177_v21 = vadd.f32 %v6176_v15, %v6051_v51  ;;  %v6053_v35 = vpop.f32.mrb[113].mxu0 }
0x17a4   :  { %v6054_v52 = vpop.f32.mrb[114].mxu0 }
0x17a5   :  { %v6055_v54 = vpop.f32.mrb[115].mxu0 }
0x17ca   :  { %v6337_v36 = vpop.f32.mrb[116].mxu0 }
0x17cb   :  { %v6350_v5 = vadd.f32 %v6337_v36, %v6170_v47  ;;  %v6339_v28 = vpop.f32.mrb[117].mxu0 }
0x17cc   :  { %v6340_v57 = vpop.f32.mrb[118].mxu0 }
0x17cd   :  { %v6341_v59 = vpop.f32.mrb[119].mxu0  ;;  %v6358_v62 = vadd.f32 %v6357_v60, %v6350_v5 }
0x17cf   :  { %v6360_v18 = vmax.f32 %v6358_v62, 0.0 }
0x17d2   :  { %v6344_v20 = vpop.f32.mrb[120].mxu0 }
0x17d3   :  { %v6351_v63 = vadd.f32 %v6344_v20, %v6177_v21  ;;  %v6346_v1 = vpop.f32.mrb[121].mxu0 }
0x17d4   :  { %v6347_v2 = vpop.f32.mrb[122].mxu0 }
0x17d5   :  { %v6359_v17 = vadd.f32 %v6357_v60, %v6351_v63  ;;  %v6348_v3 = vpop.f32.mrb[123].mxu0 }
0x17d7   :  { %v6361_v6 = vmax.f32 %v6359_v17, 0.0 }
0x17d9   :  { %v6378_v8 = vpack.c.bf16 %v6361_v6, %v6360_v18 }
0x17db   :  { %13796 = vmatmul.mubr.bf16.vlgmr.msra.gmra.mrb[76].mxu1 %v6378_v8 }
0x17dc   :  { %6655 = vmatpush1.bf16.msra.mxu1 %v14472_v0 }
0x17dd   :  { %6656 = vmatprep.subr.bf16.mxu1 %v14849_v4 }
0x17e0   :  { %6657 = vmatpush1.bf16.msra.mxu1 %v14474_v12 }
0x17e1   :  { %6658 = vmatprep.subr.bf16.mxu1 %v14849_v4 }
0x17e4   :  { %6659 = vmatpush1.bf16.msra.mxu1 %v14476_v19 }
0x17e5   :  { %6660 = vmatprep.subr.bf16.mxu1 %v14849_v4 }
0x17e8   :  { %6661 = vmatpush1.bf16.msra.mxu1 %v14478_v39 }
0x17e9   :  { %6662 = vmatprep.subr.bf16.mxu1 %v14849_v4 }
0x17ec   :  { %6663 = vmatpush1.bf16.msra.mxu1 %v14480_v24 }
0x17ed   :  { %6664 = vmatprep.subr.bf16.mxu1 %v14849_v4 }
0x17f0   :  { %6665 = vmatpush1.bf16.msra.mxu1 %v14482_v27 }
0x17f1   :  { %6666 = vmatprep.subr.bf16.mxu1 %v14849_v4 }
0x17f4   :  { %6667 = vmatpush1.bf16.msra.mxu1 %v14484_v31  ;;  %v14491_v31 = vld [vmem:[%s18763_s5 + $0xb10] ss:$8 sps:$4 sm:$0xff]  }
0x17f5   :  { %6668 = vmatprep.subr.bf16.mxu1 %v14849_v4 }
0x17f8   :  { %6669 = vmatpush1.bf16.msra.mxu1 %v14486_v33 }
0x17f9   :  { %6670 = vmatprep.subr.bf16.mxu1 %v14849_v4 }
0x17fc   :  { %6671 = vmatpush1.bf16.msra.mxu1 %v14488_v38 }
0x17fd   :  { %6672 = vmatprep.subr.bf16.mxu1 %v14849_v4 }
0x1800   :  { %6673 = vmatpush1.bf16.msra.mxu1 %v14489_v45  ;;  %v14496_v45 = vld [vmem:[%s18763_s5 + $0xb60] ss:$8 sps:$4 sm:$0xff]  }
0x1801   :  { %6920 = vmatprep.subr.bf16.mxu1 %v14849_v4 }
0x18ae   :  { %v6467_v11 = vpop.f32.mrb[76].mxu1 }
0x18af   :  { %v17200_v25 = vadd.f32 %v6467_v11, %v6384_v34  ;;  %v13797_v40 = vpop.f32.mrb[77].mxu1 }
0x18b0   :  { %v6470_v15 = vpop.f32.mrb[78].mxu1 }
0x18b1   :  { %v6475_v41 = vrot.slane %v17200_v25, 7  ;;  %v17204_v42 = vadd.f32 %v6470_v15, %v6384_v34  ;;  %v13798_v44 = vpop.f32.mrb[79].mxu1  ;;  %v14493_v15 = vld [vmem:[%s18763_s5 + $0xb30] ss:$8 sps:$4 sm:$0xff]  }
0x18b2   :  { %v14495_v44 = vld [vmem:[%s18763_s5 + $0xb50] ss:$8 sps:$4 sm:$0xff]  }
0x18b3   :  { %v6488_v47 = vrot.slane %v17204_v42, 7  ;;  %6476 = vrot.lane.b32.xlu0 %v6475_v41, %s14846_s15  ;;  %v14494_v41 = vld [vmem:[%s18763_s5 + $0xb40] ss:$8 sps:$4 sm:$0xff]  }
0x18b5   :  { %6489 = vrot.lane.b32.xlu1 %v6488_v47, %s14846_s15  ;;  %v14497_v47 = vld [vmem:[%s18763_s5 + $0xb70] ss:$8 sps:$4 sm:$0xff]  }
0x1925   :  { %v6477_v48 = vpop.permute.xlu0 %6476 }
0x1926   :  { %6480 = vst.msk [vmem:[#allocation5] sm:$0xfe] %vm6479_vm9, %v6477_v48 }
0x1927   :  { %6482 = vst.msk [vmem:[#allocation5 + $0x8] sm:$0xfe] %vm6481_vm0, %v6477_v48  ;;  %v6490_v49 = vpop.permute.xlu1 %6489 }
0x1928   :  { %6484 = vst.msk [vmem:[#allocation5 + $0x10] sm:$0x1] %vm6483_vm6, %v6477_v48  ;;  %6494 = vst.msk [vmem:[#allocation5 + $0x30] sm:$0x1] %vm6483_vm6, %v6490_v49 }
0x1929   :  { %6486 = vst.msk [vmem:[#allocation5 + $0x18] sm:$0x1] %vm6485_vm3, %v6477_v48  ;;  %6495 = vst.msk [vmem:[#allocation5 + $0x38] sm:$0x1] %vm6485_vm3, %v6490_v49 }
0x192a   :  { %6492 = vst.msk [vmem:[#allocation5 + $0x20] sm:$0xfe] %vm6479_vm9, %v6490_v49 }
0x192b   :  { %6493 = vst.msk [vmem:[#allocation5 + $0x28] sm:$0xfe] %vm6481_vm0, %v6490_v49  ;;  %v14498_v49 = vld [vmem:[%s18763_s5 + $0xb80] ss:$8 sps:$4 sm:$0xff]  }
0x192d   :  { %v6496_v21 = vld [vmem:[#allocation5] sm:$0xff] }
0x192e   :  { %v6497_v50 = vld [vmem:[#allocation5 + $0x8] sm:$0xff]  ;;  %v6528_v46 = vld [vmem:[#allocation5] sm:$0xfe] }
0x192f   :  { %v17222_v52 = vld [vmem:[#allocation5 + $0x10] sm:$0xff]  ;;  %v6529_v54 = vld [vmem:[#allocation5 + $0x8] sm:$0xfe] }
0x1930   :  { %v6499_v51 = vld [vmem:[#allocation5 + $0x18] sm:$0xff]  ;;  %v6524_v36 = vpack.c.bf16 %v17222_v52, %v6496_v21  ;;  %v6552_v59 = vpack.c.bf16 %v17222_v52, %v6528_v46  ;;  %v6530_v63 = vld [vmem:[#allocation5 + $0x30] sm:$0x7f]  ;;  %v6815_v16 = vld [vmem:[#allocation5 + $0x8] sm:$0xfc] }
0x1931   :  { %v6525_v35 = vpack.c.bf16 %v6499_v51, %v6497_v50  ;;  %v6503_v56 = vld [vmem:[#allocation5 + $0x38] sm:$0x3f]  ;;  %v6553_v57 = vpack.c.bf16 %v6499_v51, %v6529_v54  ;;  %v17227_v62 = vld [vmem:[#allocation5 + $0x20] sm:$0xff]  ;;  %v6502_v14 = vld [vmem:[#allocation5 + $0x30] sm:$0x3f]  ;;  %v6839_v32 = vpack.c.bf16 %v6499_v51, %v6815_v16 }
0x1932   :  { %v6501_v5 = vld [vmem:[#allocation5 + $0x28] sm:$0xff]  ;;  %v6531_v28 = vld [vmem:[#allocation5 + $0x38] sm:$0x7f]  ;;  %v6554_v2 = vpack.c.bf16 %v6530_v63, %v17227_v62  ;;  %v6559_v3 = vshll.u32 %v6552_v59, 16  ;;  %v6557_v0 = vshrl.u32 %v6552_v59, 16  ;;  %v6526_v29 = vpack.c.bf16 %v6502_v14, %v17227_v62  ;;  %v6816_v48 = vld [vmem:[#allocation5 + $0x30] sm:$0xff] }
0x1933   :  { %12344 = vmatprep.mubr.msk.bf16.mxu0 %vm18817_vm2, %v6525_v35  ;;  %v6527_v60 = vpack.c.bf16 %v6503_v56, %v6501_v5  ;;  %v6555_v20 = vpack.c.bf16 %v6531_v28, %v6501_v5  ;;  %v6571_v1 = vshll.u32 %v6553_v57, 16  ;;  %v6569_v18 = vshrl.u32 %v6553_v57, 16  ;;  %v6817_v26 = vld [vmem:[#allocation5 + $0x38] sm:$0xff]  ;;  %v6814_v50 = vld [vmem:[#allocation5] sm:$0xfc] }
0x1934   :  { %6800 = vmatmul.mubr.bf16.vlgmr.msra.gmra.mrb[124].mxu0 %v6524_v36  ;;  %v6564_v8 = vshll.u32 %v6554_v2, 16  ;;  %v6561_v9 = vrot.slane %v6559_v3, 1  ;;  %v6841_v30 = vpack.c.bf16 %v6817_v26, %v6501_v5  ;;  %v6580_v33 = vshrl.u32 %v6554_v2, 16  ;;  %v14499_v21 = vld [vmem:[%s18763_s5 + $0xb90] ss:$8 sps:$4 sm:$0xff]  }
0x1935   :  { %12345 = vmatprep.mubr.msk.bf16.mxu0 %vm18818_vm8, %v6527_v60  ;;  %v6576_v17 = vshll.u32 %v6555_v20, 16  ;;  %v6573_v6 = vrot.slane %v6571_v1, 1  ;;  %v6583_v12 = vshrl.u32 %v6555_v20, 16  ;;  %v6849_v11 = vrot.slane %v6839_v32, 1  ;;  %v14500_v5 = vld [vmem:[%s18763_s5 + $0xbb0] ss:$8 sps:$4 sm:$0xff]   ;;  %vm18826_vm8 = vmmov %vm18817_vm2 }
0x1936   :  { %v6566_v55 = vrot.slane %v6564_v8, 1  ;;  %v6562_v39 = vor.u32 %v6561_v9, %v6557_v0  ;;  %v6850_v34 = vrot.slane %v6841_v30, 1  ;;  %v6840_v51 = vpack.c.bf16 %v6816_v48, %v17227_v62  ;;  %v14501_v56 = vld [vmem:[%s18763_s5 + $0xbc0] ss:$8 sps:$4 sm:$0xff]   ;;  %v14502_v57 = vld [vmem:[%s18763_s5 + $0xbd0] ss:$8 sps:$4 sm:$0xff]  }
0x1937   :  { %v6578_v58 = vrot.slane %v6576_v17, 1  ;;  %v6574_v19 = vor.u32 %v6573_v6, %v6569_v18  ;;  %v6838_v35 = vpack.c.bf16 %v17222_v52, %v6814_v50  ;;  %v14503_v52 = vld [vmem:[%s18763_s5 + $0xc50] ss:$8 sps:$4 sm:$0xff]   ;;  %v14505_v28 = vld [vmem:[%s18763_s5 + $0xc60] ss:$8 sps:$4 sm:$0xff]  }
0x1938   :  { %v6567_v7 = vsel %vm4448_vm4, %v6562_v39, %v6566_v55  ;;  %v6582_v38 = vor.u32 %v6580_v33, %v6566_v55  ;;  %v6851_v40 = vsel %vm4869_vm12, %v6849_v11, %v6850_v34  ;;  %v6847_v54 = vrot.slane %v6840_v51, 1  ;;  %7156 = vmatpush1.bf16.msra.mxu0 %v14503_v52  ;;  %v14507_v59 = vld [vmem:[%s18763_s5 + $0xc70] ss:$8 sps:$4 sm:$0xff]   ;;  %v14504_v60 = vld [vmem:[%s18763_s5 + $0xbe0] ss:$8 sps:$4 sm:$0xff]  }
0x1939   :  { %v6585_v24 = vor.u32 %v6583_v12, %v6578_v58  ;;  %v6579_v27 = vsel %vm4448_vm4, %v6574_v19, %v6578_v58  ;;  %v6846_v46 = vrot.slane %v6838_v35, 1  ;;  %7157 = vmatprep.subr.bf16.mxu0 %v14849_v4  ;;  %v14509_v20 = vld [vmem:[%s18763_s5 + $0xc80] ss:$8 sps:$4 sm:$0xff]   ;;  %v14506_v62 = vld [vmem:[%s18763_s5 + $0xbf0] ss:$8 sps:$4 sm:$0xff]  }
0x193a   :  { %12332 = vmatprep.mubr.msk.bf16.mxu1 %vm18819_vm10, %v6579_v27  ;;  %v14508_v63 = vld [vmem:[%s18763_s5 + $0xc00] ss:$8 sps:$4 sm:$0xff]   ;;  %v14510_v1 = vld [vmem:[%s18763_s5 + $0xc10] ss:$8 sps:$4 sm:$0xff]   ;;  %vm18827_vm10 = vmmov %vm18817_vm2 }
0x193b   :  { %6687 = vmatmul.mubr.bf16.vlgmr.msra.gmra.mrb[80].mxu1 %v6567_v7  ;;  %v6848_v36 = vsel %vm4869_vm12, %v6846_v46, %v6847_v54  ;;  %v14511_v16 = vld [vmem:[%s18763_s5 + $0xc90] ss:$8 sps:$4 sm:$0xff]   ;;  %v14512_v30 = vld [vmem:[%s18763_s5 + $0xc20] ss:$8 sps:$4 sm:$0xff]  }
0x193c   :  { %6807 = vmatmul.mubr.bf16.gmra.mrb[128].mxu0 %v6526_v29  ;;  %6921 = vmatpush1.bf16.msra.mxu1 %v14490_v23  ;;  %v6969_v29 = vld [vmem:[%s18763_s5 + $0xba0] sm:$0x1]  ;;  %v14514_v32 = vld [vmem:[%s18763_s5 + $0xc30] ss:$8 sps:$4 sm:$0xff]  }
0x193d   :  { %12333 = vmatprep.mubr.msk.bf16.mxu1 %vm18820_vm11, %v6585_v24  ;;  %6922 = vmatprep.subr.bf16.mxu1 %v14849_v4  ;;  %v6970_v7 = vunpack.c.l.bf16 %v6969_v29  ;;  %v14517_v48 = vld [vmem:[%s18763_s5 + $0xcc0] ss:$8 sps:$4 sm:$0xff]   ;;  %v14518_v35 = vld [vmem:[%s18763_s5 + $0xcd0] ss:$8 sps:$4 sm:$0xff]   ;;  %vm18828_vm11 = vcmask 130048  }
0x193e   :  { %7158 = vmatpush1.bf16.msra.mxu0 %v14505_v28 }
0x193f   :  { %7159 = vmatprep.subr.bf16.mxu0 %v14849_v4  ;;  %v6974_v33 = vrot.slane %v6970_v7, %v15079_v43 }
0x1940   :  { %6923 = vmatpush1.bf16.msra.mxu1 %v14491_v31  ;;  %v14513_v31 = vld [vmem:[%s18763_s5 + $0xca0] ss:$8 sps:$4 sm:$0xff]  }
0x1941   :  { %6924 = vmatprep.subr.bf16.mxu1 %v14849_v4 }
0x1942   :  { %7160 = vmatpush1.bf16.msra.mxu0 %v14507_v59 }
0x1943   :  { %6694 = vmatmul.mubr.bf16.gmra.mrb[84].mxu1 %v6582_v38  ;;  %7161 = vmatprep.subr.bf16.mxu0 %v14849_v4 }
0x1944   :  { %6925 = vmatpush1.bf16.msra.mxu1 %v14492_v37  ;;  %12356 = vmatprep.mubr.msk.bf16.mxu1 %vm18821_vm13, %v6851_v40  ;;  %vm18829_vm13 = vmmov %vm18828_vm11 }
0x1945   :  { %6926 = vmatprep.subr.bf16.mxu1 %v14849_v4 }
0x1946   :  { %7162 = vmatpush1.bf16.msra.mxu0 %v14509_v20 }
0x1947   :  { %7163 = vmatprep.subr.bf16.mxu0 %v14849_v4 }
0x1948   :  { %6927 = vmatpush1.bf16.msra.mxu1 %v14493_v15 }
0x1949   :  { %6928 = vmatprep.subr.bf16.mxu1 %v14849_v4 }
0x194a   :  { %7164 = vmatpush1.bf16.msra.mxu0 %v14511_v16 }
0x194b   :  { %7165 = vmatprep.subr.bf16.mxu0 %v14849_v4 }
0x194c   :  { %6929 = vmatpush1.bf16.msra.mxu1 %v14494_v41  ;;  %v14515_v41 = vld [vmem:[%s18763_s5 + $0xcb0] ss:$8 sps:$4 sm:$0xff]  }
0x194d   :  { %6930 = vmatprep.subr.bf16.mxu1 %v14849_v4 }
0x194e   :  { %7166 = vmatpush1.bf16.msra.mxu0 %v14513_v31 }
0x194f   :  { %7167 = vmatprep.subr.bf16.mxu0 %v14849_v4 }
0x1950   :  { %6931 = vmatpush1.bf16.msra.mxu1 %v14495_v44  ;;  %v14516_v44 = vld [vmem:[%s18763_s5 + $0xc40] ss:$8 sps:$4 sm:$0xff]  }
0x1951   :  { %6932 = vmatprep.subr.bf16.mxu1 %v14849_v4 }
0x1952   :  { %7168 = vmatpush1.bf16.msra.mxu0 %v14515_v41 }
0x1953   :  { %7169 = vmatprep.subr.bf16.mxu0 %v14849_v4 }
0x1954   :  { %6933 = vmatpush1.bf16.msra.mxu1 %v14496_v45 }
0x1955   :  { %6934 = vmatprep.subr.bf16.mxu1 %v14849_v4 }
0x1956   :  { %7170 = vmatpush1.bf16.msra.mxu0 %v14517_v48 }
0x1957   :  { %7171 = vmatprep.subr.bf16.mxu0 %v14849_v4 }
0x1958   :  { %6935 = vmatpush1.bf16.msra.mxu1 %v14497_v47 }
0x1959   :  { %6936 = vmatprep.subr.bf16.mxu1 %v14849_v4 }
0x195a   :  { %7172 = vmatpush1.bf16.msra.mxu0 %v14518_v35 }
0x195b   :  { %7173 = vmatprep.subr.bf16.mxu0 %v14849_v4 }
0x195c   :  { %6937 = vmatpush1.bf16.msra.mxu1 %v14498_v49 }
0x195d   :  { %6938 = vmatprep.subr.bf16.mxu1 %v14849_v4 }
0x1960   :  { %6939 = vmatpush1.bf16.msra.mxu1 %v14499_v21 }
0x1961   :  { %7268 = vmatprep.subr.bf16.mxu1 %v14849_v4 }
0x1963   :  { %6953 = vmatmul.mubr.bf16.vlgmr.msra.gmra.mrb[88].mxu1 %v6848_v36 }
0x1964   :  { %12357 = vmatprep.mubr.msk.bf16.mxu1 %vm18822_vm14, %v6850_v34  ;;  %7269 = vmatpush1.bf16.msra.mxu1 %v14500_v5  ;;  %vm18830_vm14 = vmmov %vm18828_vm11 }
0x1965   :  { %7270 = vmatprep.subr.bf16.mxu1 %v14849_v4 }
0x1968   :  { %7271 = vmatpush1.bf16.msra.mxu1 %v14501_v56 }
0x1969   :  { %7272 = vmatprep.subr.bf16.mxu1 %v14849_v4 }
0x196b   :  { %6960 = vmatmul.mubr.bf16.gmra.mrb[92].mxu1 %v6847_v54 }
0x196c   :  { %7273 = vmatpush1.bf16.msra.mxu1 %v14502_v57 }
0x196d   :  { %7274 = vmatprep.subr.bf16.mxu1 %v14849_v4 }
0x1970   :  { %7275 = vmatpush1.bf16.msra.mxu1 %v14504_v60 }
0x1971   :  { %7276 = vmatprep.subr.bf16.mxu1 %v14849_v4 }
0x1974   :  { %7277 = vmatpush1.bf16.msra.mxu1 %v14506_v62 }
0x1975   :  { %7278 = vmatprep.subr.bf16.mxu1 %v14849_v4 }
0x1978   :  { %7279 = vmatpush1.bf16.msra.mxu1 %v14508_v63 }
0x1979   :  { %7280 = vmatprep.subr.bf16.mxu1 %v14849_v4 }
0x197c   :  { %7281 = vmatpush1.bf16.msra.mxu1 %v14510_v1 }
0x197d   :  { %7282 = vmatprep.subr.bf16.mxu1 %v14849_v4 }
0x1980   :  { %7283 = vmatpush1.bf16.msra.mxu1 %v14512_v30  ;;  %v17386_v30 = vld [vmem:[#allocation6] sm:$0xff] }
0x1981   :  { %7284 = vmatprep.subr.bf16.mxu1 %v14849_v4 }
0x1984   :  { %7285 = vmatpush1.bf16.msra.mxu1 %v14514_v32 }
0x1985   :  { %7286 = vmatprep.subr.bf16.mxu1 %v14849_v4 }
0x1988   :  { %7287 = vmatpush1.bf16.msra.mxu1 %v14516_v44 }
0x1989   :  { %13799 = vmatprep.subr.bf16.mxu1 %v16990_v10  ;;  %v14519_v10 = vld [vmem:[%s18763_s5 + $0xce0] ss:$8 sps:$4 sm:$0xff]  }
0x198a   :  { %7174 = vmatpush1.bf16.msra.mxu0 %v14519_v10  ;;  %v14527_v10 = vld [vmem:[%s18763_s5 + $0xd60] ss:$8 sps:$4 sm:$0xff]  }
0x198b   :  { %7421 = vmatprep.subr.bf16.mxu0 %v14849_v4 }
0x1a07   :  { %v6801_v2 = vpop.f32.mrb[124].mxu0 }
0x1a08   :  { %v6803_v17 = vpop.f32.mrb[125].mxu0 }
0x1a09   :  { %v6804_v3 = vpop.f32.mrb[126].mxu0 }
0x1a0a   :  { %v6805_v18 = vpop.f32.mrb[127].mxu0 }
0x1a0e   :  { %v6688_v6 = vpop.f32.mrb[80].mxu1 }
0x1a0f   :  { %v6808_v8 = vpop.f32.mrb[128].mxu0  ;;  %v6802_v58 = vadd.f32 %v6801_v2, %v6688_v6  ;;  %v6690_v0 = vpop.f32.mrb[81].mxu1 }
0x1a10   :  { %v6810_v9 = vpop.f32.mrb[129].mxu0  ;;  %v6691_v12 = vpop.f32.mrb[82].mxu1 }
0x1a11   :  { %v6811_v14 = vpop.f32.mrb[130].mxu0  ;;  %v6692_v19 = vpop.f32.mrb[83].mxu1 }
0x1a12   :  { %v6812_v55 = vpop.f32.mrb[131].mxu0 }
0x1a16   :  { %v6695_v39 = vpop.f32.mrb[84].mxu1 }
0x1a17   :  { %v6809_v23 = vadd.f32 %v6808_v8, %v6695_v39  ;;  %v6697_v24 = vpop.f32.mrb[85].mxu1 }
0x1a18   :  { %v6698_v26 = vpop.f32.mrb[86].mxu1 }
0x1a19   :  { %v6699_v27 = vpop.f32.mrb[87].mxu1 }
0x1a36   :  { %v6954_v34 = vpop.f32.mrb[88].mxu1 }
0x1a37   :  { %v6967_v37 = vadd.f32 %v6954_v34, %v6802_v58  ;;  %v6956_v38 = vpop.f32.mrb[89].mxu1 }
0x1a38   :  { %v6957_v11 = vpop.f32.mrb[90].mxu1 }
0x1a39   :  { %v6975_v40 = vadd.f32 %v6974_v33, %v6967_v37  ;;  %v6958_v15 = vpop.f32.mrb[91].mxu1  ;;  %v14520_v37 = vld [vmem:[%s18763_s5 + $0xcf0] ss:$8 sps:$4 sm:$0xff]  }
0x1a3b   :  { %v6977_v45 = vmax.f32 %v6975_v40, 0.0 }
0x1a3d   :  { %v6980_v47 = vrot.slane %v6977_v45, 7  ;;  %v14521_v45 = vld [vmem:[%s18763_s5 + $0xd00] ss:$8 sps:$4 sm:$0xff]  }
0x1a3e   :  { %v6961_v49 = vpop.f32.mrb[92].mxu1 }
0x1a3f   :  { %v6968_v50 = vadd.f32 %v6961_v49, %v6809_v23  ;;  %6981 = vrot.lane.b32.xlu0 %v6980_v47, %s14846_s15  ;;  %v6963_v51 = vpop.f32.mrb[93].mxu1 }
0x1a40   :  { %v6964_v21 = vpop.f32.mrb[94].mxu1 }
0x1a41   :  { %v6976_v54 = vadd.f32 %v6974_v33, %v6968_v50  ;;  %v6965_v46 = vpop.f32.mrb[95].mxu1  ;;  %v14522_v50 = vld [vmem:[%s18763_s5 + $0xd10] ss:$8 sps:$4 sm:$0xff]  }
0x1a42   :  { %v14524_v46 = vld [vmem:[%s18763_s5 + $0xd30] ss:$8 sps:$4 sm:$0xff]  }
0x1a43   :  { %v6978_v36 = vmax.f32 %v6976_v54, 0.0  ;;  %v14523_v54 = vld [vmem:[%s18763_s5 + $0xd20] ss:$8 sps:$4 sm:$0xff]  }
0x1a45   :  { %v6989_v5 = vrot.slane %v6978_v36, 7  ;;  %v14525_v36 = vld [vmem:[%s18763_s5 + $0xd40] ss:$8 sps:$4 sm:$0xff]  }
0x1a47   :  { %6990 = vrot.lane.b32.xlu1 %v6989_v5, %s14846_s15  ;;  %v14526_v5 = vld [vmem:[%s18763_s5 + $0xd50] ss:$8 sps:$4 sm:$0xff]  }
0x1ab1   :  { %v6982_v52 = vpop.permute.xlu0 %6981 }
0x1ab2   :  { %6984 = vst.msk [vmem:[#allocation5] sm:$0xfe] %vm6479_vm9, %v6982_v52 }
0x1ab3   :  { %6985 = vst.msk [vmem:[#allocation5 + $0x8] sm:$0xfe] %vm6481_vm0, %v6982_v52 }
0x1ab4   :  { %6986 = vst.msk [vmem:[#allocation5 + $0x10] sm:$0x1] %vm6483_vm6, %v6982_v52 }
0x1ab5   :  { %6987 = vst.msk [vmem:[#allocation5 + $0x18] sm:$0x1] %vm6485_vm3, %v6982_v52 }
0x1ab9   :  { %v6991_v56 = vpop.permute.xlu1 %6990  ;;  %v6997_v59 = vld [vmem:[#allocation5] sm:$0xff] }
0x1aba   :  { %v6998_v28 = vld [vmem:[#allocation5 + $0x8] sm:$0xff]  ;;  %6993 = vst.msk [vmem:[#allocation5 + $0x20] sm:$0xfe] %vm6479_vm9, %v6991_v56  ;;  %v7029_v63 = vld [vmem:[#allocation5] sm:$0xfe] }
0x1abb   :  { %6994 = vst.msk [vmem:[#allocation5 + $0x28] sm:$0xfe] %vm6481_vm0, %v6991_v56  ;;  %v17376_v20 = vld [vmem:[#allocation5 + $0x10] sm:$0xff]  ;;  %v7030_v62 = vld [vmem:[#allocation5 + $0x8] sm:$0xfe] }
0x1abc   :  { %v7000_v57 = vld [vmem:[#allocation5 + $0x18] sm:$0xff]  ;;  %6995 = vst.msk [vmem:[#allocation5 + $0x30] sm:$0x1] %vm6483_vm6, %v6991_v56  ;;  %v7025_v1 = vpack.c.bf16 %v17376_v20, %v6997_v59  ;;  %v7053_v17 = vpack.c.bf16 %v17376_v20, %v7029_v63  ;;  %v7316_v41 = vld [vmem:[#allocation5 + $0x8] sm:$0xfc] }
0x1abd   :  { %6996 = vst.msk [vmem:[#allocation5 + $0x38] sm:$0x1] %vm6485_vm3, %v6991_v56  ;;  %v7026_v60 = vpack.c.bf16 %v7000_v57, %v6998_v28  ;;  %v7054_v2 = vpack.c.bf16 %v7000_v57, %v7030_v62  ;;  %v7340_v47 = vpack.c.bf16 %v7000_v57, %v7316_v41  ;;  %v14528_v56 = vld [vmem:[%s18763_s5 + $0xd70] ss:$8 sps:$4 sm:$0xff]   ;;  %v7315_v28 = vld [vmem:[#allocation5] sm:$0xfc] }
0x1abe   :  { %v7060_v18 = vshll.u32 %v7053_v17, 16  ;;  %v7058_v29 = vshrl.u32 %v7053_v17, 16  ;;  %v14529_v59 = vld [vmem:[%s18763_s5 + $0xd80] ss:$8 sps:$4 sm:$0xff]   ;;  %v14533_v17 = vld [vmem:[%s18763_s5 + $0x70] ss:$8 sps:$4 sm:$0xff]  }
0x1abf   :  { %12380 = vmatprep.mubr.msk.bf16.mxu1 %vm18823_vm5, %v7026_v60  ;;  %v7072_v3 = vshll.u32 %v7054_v2, 16  ;;  %v7070_v26 = vshrl.u32 %v7054_v2, 16  ;;  %v7350_v21 = vrot.slane %v7340_v47, 1  ;;  %v7339_v60 = vpack.c.bf16 %v17376_v20, %v7315_v28  ;;  %v14531_v20 = vld [vmem:[%s18763_s5 + $0x50] ss:$8 sps:$4 sm:$0xff]   ;;  %vm18831_vm5 = vmmov %vm18828_vm11 }
0x1ac0   :  { %7301 = vmatmul.mubr.bf16.vlgmr.msra.gmra.mrb[96].mxu1 %v7025_v1  ;;  %v7062_v24 = vrot.slane %v7060_v18, 1  ;;  %v14532_v2 = vld [vmem:[%s18763_s5 + $0x60] ss:$8 sps:$4 sm:$0xff]   ;;  %v14535_v18 = vld [vmem:[%s18763_s5 + $0x90] ss:$8 sps:$4 sm:$0xff]  }
0x1ac1   :  { %v17381_v58 = vld [vmem:[#allocation5 + $0x20] sm:$0xff]  ;;  %v7074_v0 = vrot.slane %v7072_v3, 1  ;;  %v7347_v63 = vrot.slane %v7339_v60, 1 }
0x1ac2   :  { %v7002_v6 = vld [vmem:[#allocation5 + $0x28] sm:$0xff]  ;;  %v7063_v32 = vor.u32 %v7062_v24, %v7058_v29 }
0x1ac3   :  { %v7003_v12 = vld [vmem:[#allocation5 + $0x30] sm:$0x3f]  ;;  %v7075_v16 = vor.u32 %v7074_v0, %v7070_v26  ;;  %v14534_v3 = vld [vmem:[%s18763_s5 + $0x80] ss:$8 sps:$4 sm:$0xff]  }
0x1ac4   :  { %v7004_v8 = vld [vmem:[#allocation5 + $0x38] sm:$0x3f]  ;;  %v7031_v19 = vld [vmem:[#allocation5 + $0x30] sm:$0x7f]  ;;  %v7027_v55 = vpack.c.bf16 %v7003_v12, %v17381_v58 }
0x1ac5   :  { %v7028_v9 = vpack.c.bf16 %v7004_v8, %v7002_v6  ;;  %v7032_v14 = vld [vmem:[#allocation5 + $0x38] sm:$0x7f]  ;;  %v7055_v23 = vpack.c.bf16 %v7031_v19, %v17381_v58  ;;  %v7317_v52 = vld [vmem:[#allocation5 + $0x30] sm:$0xff] }
0x1ac6   :  { %v7056_v39 = vpack.c.bf16 %v7032_v14, %v7002_v6  ;;  %v7318_v38 = vld [vmem:[#allocation5 + $0x38] sm:$0xff]  ;;  %v7341_v57 = vpack.c.bf16 %v7317_v52, %v17381_v58 }
0x1ac7   :  { %12381 = vmatprep.mubr.msk.bf16.mxu1 %vm18824_vm7, %v7028_v9  ;;  %v7065_v7 = vshll.u32 %v7055_v23, 16  ;;  %v7342_v44 = vpack.c.bf16 %v7318_v38, %v7002_v6  ;;  %v7081_v48 = vshrl.u32 %v7055_v23, 16  ;;  %v14536_v6 = vld [vmem:[%s18763_s5 + $0xa0] ss:$8 sps:$4 sm:$0xff]   ;;  %v14537_v8 = vld [vmem:[%s18763_s5 + $0xb0] ss:$8 sps:$4 sm:$0xff]   ;;  %vm18832_vm7 = vmmov %vm18831_vm5 }
0x1ac8   :  { %7308 = vmatmul.mubr.bf16.gmra.mrb[100].mxu1 %v7027_v55  ;;  %v7077_v27 = vshll.u32 %v7056_v39, 16  ;;  %v7084_v34 = vshrl.u32 %v7056_v39, 16  ;;  %v7348_v62 = vrot.slane %v7341_v57, 1 }
0x1ac9   :  { %13801 = vmatprep.mubr.msk.bf16.mxu1 %vm18775_vm1, %v17386_v30  ;;  %v7067_v33 = vrot.slane %v7065_v7, 1  ;;  %v7351_v49 = vrot.slane %v7342_v44, 1 }
0x1aca   :  { %v7079_v31 = vrot.slane %v7077_v27, 1  ;;  %v7349_v1 = vsel %vm4869_vm12, %v7347_v63, %v7348_v62 }
0x1acb   :  { %v7068_v40 = vsel %vm4448_vm4, %v7063_v32, %v7067_v33  ;;  %v7083_v51 = vor.u32 %v7081_v48, %v7067_v33  ;;  %v7352_v35 = vsel %vm4869_vm12, %v7350_v21, %v7351_v49 }
0x1acc   :  { %v7080_v11 = vsel %vm4448_vm4, %v7075_v16, %v7079_v31  ;;  %v7086_v15 = vor.u32 %v7084_v34, %v7079_v31 }
0x1acd   :  { %12368 = vmatprep.mubr.msk.bf16.mxu0 %vm18825_vm15, %v7080_v11  ;;  %vm18833_vm15 = vmmov %vm18831_vm5 }
0x1ace   :  { %7188 = vmatmul.mubr.bf16.vlgmr.msra.gmra.mrb[132].mxu0 %v7068_v40 }
0x1acf   :  { %7422 = vmatpush1.bf16.msra.mxu0 %v14520_v37  ;;  %12369 = vmatprep.mubr.msk.bf16.mxu0 %vm18817_vm2, %v7086_v15 }
0x1ad0   :  { %7423 = vmatprep.subr.bf16.mxu0 %v14849_v4 }
0x1ad3   :  { %7424 = vmatpush1.bf16.msra.mxu0 %v14521_v45 }
0x1ad4   :  { %7425 = vmatprep.subr.bf16.mxu0 %v14849_v4 }
0x1ad6   :  { %7195 = vmatmul.mubr.bf16.gmra.mrb[136].mxu0 %v7083_v51 }
0x1ad7   :  { %7426 = vmatpush1.bf16.msra.mxu0 %v14522_v50  ;;  %12392 = vmatprep.mubr.msk.bf16.mxu0 %vm18826_vm8, %v7352_v35  ;;  %v7629_v35 = vpack.c.bf16 %v16687_v53, %v16687_v53  ;;  %vm18834_vm8 = vmmov %vm18817_vm2 }
0x1ad8   :  { %7427 = vmatprep.subr.bf16.mxu0 %v14849_v4 }
0x1adb   :  { %7428 = vmatpush1.bf16.msra.mxu0 %v14523_v54  ;;  %v14538_v54 = vld [vmem:[%s18763_s5 + $0xc0] ss:$8 sps:$4 sm:$0xff]  }
0x1adc   :  { %7429 = vmatprep.subr.bf16.mxu0 %v14849_v4 }
0x1adf   :  { %7430 = vmatpush1.bf16.msra.mxu0 %v14524_v46 }
0x1ae0   :  { %7431 = vmatprep.subr.bf16.mxu0 %v14849_v4 }
0x1ae3   :  { %7432 = vmatpush1.bf16.msra.mxu0 %v14525_v36 }
0x1ae4   :  { %7433 = vmatprep.subr.bf16.mxu0 %v14849_v4 }
0x1ae7   :  { %7434 = vmatpush1.bf16.msra.mxu0 %v14526_v5 }
0x1ae8   :  { %7435 = vmatprep.subr.bf16.mxu0 %v14849_v4 }
0x1aeb   :  { %7436 = vmatpush1.bf16.msra.mxu0 %v14527_v10 }
0x1aec   :  { %7437 = vmatprep.subr.bf16.mxu0 %v14849_v4 }
0x1aef   :  { %7438 = vmatpush1.bf16.msra.mxu0 %v14528_v56 }
0x1af0   :  { %7439 = vmatprep.subr.bf16.mxu0 %v14849_v4 }
0x1af3   :  { %7440 = vmatpush1.bf16.msra.mxu0 %v14529_v59  ;;  %v14539_v59 = vld [vmem:[%s18763_s5 + $0x1280] ss:$8 sps:$4 sm:$0xff]  }
0x1af4   :  { %13805 = vmatprep.subr.bf16.mxu0 %v17386_v30 }
0x1af6   :  { %7454 = vmatmul.mubr.bf16.vlgmr.msra.gmra.mrb[140].mxu0 %v7349_v1 }
0x1af7   :  { %12393 = vmatprep.mubr.msk.bf16.mxu0 %vm18827_vm10, %v7351_v49  ;;  %13806 = vmatpush3.bf16.msra.mxu0 %v14531_v20  ;;  %vm7860_vm10 = vcmask 654336  }
0x1af8   :  { %13807 = vmatprep.subr.bf16.mxu0 %v17386_v30 }
0x1afb   :  { %13808 = vmatpush3.bf16.msra.mxu0 %v14532_v2  ;;  %v14540_v2 = vld [vmem:[%s18763_s5 + $0x12b0] ss:$8 sps:$4 sm:$0xff]  }
0x1afc   :  { %13809 = vmatprep.subr.bf16.mxu0 %v17386_v30 }
0x1afe   :  { %7461 = vmatmul.mubr.bf16.gmra.mrb[144].mxu0 %v7348_v62 }
0x1aff   :  { %13821 = vmatprep.mubr.msk.bf16.mxu0 %vm18775_vm1, %v17386_v30  ;;  %13810 = vmatpush3.bf16.msra.mxu0 %v14533_v17  ;;  %v7728_v17 = vld [vmem:[%s18763_s5 + $0x12a0] sm:$0x1] }
0x1b00   :  { %13811 = vmatprep.subr.bf16.mxu0 %v17386_v30 }
0x1b03   :  { %13812 = vmatpush3.bf16.msra.mxu0 %v14534_v3  ;;  %v7729_v3 = vunpack.c.l.bf16 %v7728_v17 }
0x1b04   :  { %13813 = vmatprep.subr.bf16.mxu0 %v17386_v30 }
0x1b07   :  { %13814 = vmatpush3.bf16.msra.mxu0 %v14535_v18  ;;  %v7733_v18 = vrot.slane %v7729_v3, %v15079_v43 }
0x1b08   :  { %13815 = vmatprep.subr.bf16.mxu0 %v17386_v30 }
0x1b0b   :  { %13816 = vmatpush3.bf16.msra.mxu0 %v14536_v6 }
0x1b0c   :  { %13817 = vmatprep.subr.bf16.mxu0 %v17386_v30 }
0x1b0f   :  { %13818 = vmatpush3.bf16.msra.mxu0 %v14537_v8 }
0x1b10   :  { %13819 = vmatprep.subr.bf16.mxu0 %v17386_v30 }
0x1b13   :  { %13820 = vmatpush3.bf16.msra.mxu0 %v14538_v54 }
0x1b14   :  { %13843 = vmatprep.subr.bf16.mxu0 %v17386_v30 }
0x1b93   :  { %v7302_v58 = vpop.f32.mrb[96].mxu1 }
0x1b94   :  { %v7304_v0 = vpop.f32.mrb[97].mxu1 }
0x1b95   :  { %v7305_v9 = vpop.f32.mrb[98].mxu1 }
0x1b96   :  { %v7306_v12 = vpop.f32.mrb[99].mxu1 }
0x1b9b   :  { %v7309_v14 = vpop.f32.mrb[100].mxu1 }
0x1b9c   :  { %v7311_v19 = vpop.f32.mrb[101].mxu1 }
0x1b9d   :  { %v7312_v55 = vpop.f32.mrb[102].mxu1 }
0x1b9e   :  { %v7313_v39 = vpop.f32.mrb[103].mxu1  ;;  %v7739_v55 = vld [vmem:[%s18763_s5 + $0x12c0] sm:$0x1] }
0x1b9f   :  { %v7740_v39 = vunpack.c.l.bf16 %v7739_v55  ;;  %v14551_v55 = vld [vmem:[%s18763_s5 + $0xe30] ss:$8 sps:$4 sm:$0xff]  }
0x1ba1   :  { %v7189_v23 = vpop.f32.mrb[132].mxu0 }
0x1ba2   :  { %v7303_v24 = vadd.f32 %v7302_v58, %v7189_v23  ;;  %v7191_v26 = vpop.f32.mrb[133].mxu0  ;;  %v7744_v23 = vrot.slane %v7740_v39, %v15079_v43  ;;  %v14556_v39 = vld [vmem:[%s18763_s5 + $0xdd0] ss:$8 sps:$4 sm:$0xff]  }
0x1ba3   :  { %v7192_v27 = vpop.f32.mrb[134].mxu0 }
0x1ba4   :  { %v7193_v29 = vpop.f32.mrb[135].mxu0 }
0x1ba9   :  { %v7196_v7 = vpop.f32.mrb[136].mxu0 }
0x1baa   :  { %v7310_v16 = vadd.f32 %v7309_v14, %v7196_v7  ;;  %v7198_v31 = vpop.f32.mrb[137].mxu0 }
0x1bab   :  { %v7199_v32 = vpop.f32.mrb[138].mxu0 }
0x1bac   :  { %v7200_v33 = vpop.f32.mrb[139].mxu0 }
0x1bad   :  { %v14541_v33 = vld [vmem:[%s18763_s5 + $0x11f0] ss:$8 sps:$4 sm:$0xff]  }
0x1bc9   :  { %v7455_v34 = vpop.f32.mrb[140].mxu0 }
0x1bca   :  { %v7468_v37 = vadd.f32 %v7455_v34, %v7303_v24  ;;  %v7457_v38 = vpop.f32.mrb[141].mxu0  ;;  %v14542_v34 = vld [vmem:[%s18763_s5 + $0x1200] ss:$8 sps:$4 sm:$0xff]  }
0x1bcb   :  { %v7458_v11 = vpop.f32.mrb[142].mxu0 }
0x1bcc   :  { %v7459_v40 = vpop.f32.mrb[143].mxu0  ;;  %v17471_v41 = vadd.f32 %v7468_v37, %v17200_v25  ;;  %v7474_v25 = vld [vmem:[%s18763_s5 + $0x40] sm:$0x1]  ;;  %v14543_v37 = vld [vmem:[%s18763_s5 + $0x1210] ss:$8 sps:$4 sm:$0xff]  }
0x1bce   :  { %v7472_v50 = vmax.f32 %v17471_v41, 0.0  ;;  %v14550_v41 = vld [vmem:[%s18763_s5 + $0xda0] ss:$8 sps:$4 sm:$0xff]  }
0x1bd1   :  { %v7462_v15 = vpop.f32.mrb[144].mxu0 }
0x1bd2   :  { %v7469_v44 = vadd.f32 %v7462_v15, %v7310_v16  ;;  %v7464_v45 = vpop.f32.mrb[145].mxu0  ;;  %v14544_v15 = vld [vmem:[%s18763_s5 + $0x1220] ss:$8 sps:$4 sm:$0xff]  }
0x1bd3   :  { %v7465_v47 = vpop.f32.mrb[146].mxu0  ;;  %v14547_v45 = vld [vmem:[%s18763_s5 + $0x1250] ss:$8 sps:$4 sm:$0xff]  }
0x1bd4   :  { %v17474_v48 = vadd.f32 %v7469_v44, %v17204_v42  ;;  %v7466_v49 = vpop.f32.mrb[147].mxu0  ;;  %v14530_v42 = vld [vmem:[%s18763_s5 + $0x1290] ss:$8 sps:$4 sm:$0xff]   ;;  %v14548_v47 = vld [vmem:[%s18763_s5 + $0x1260] ss:$8 sps:$4 sm:$0xff]  }
0x1bd5   :  { %v14545_v44 = vld [vmem:[%s18763_s5 + $0x1230] ss:$8 sps:$4 sm:$0xff]  }
0x1bd6   :  { %v7473_v51 = vmax.f32 %v17474_v48, 0.0  ;;  %v14555_v48 = vld [vmem:[%s18763_s5 + $0xe50] ss:$8 sps:$4 sm:$0xff]  }
0x1bd8   :  { %v7475_v21 = vpack.c.bf16 %v7473_v51, %v7472_v50 }
0x1bda   :  { %13800 = vmatpush3.bf16.msra.mxu1 %v7475_v21 }
0x1bdb   :  { %13825 = vmatprep.subr.bf16.mxu1 %v17386_v30 }
0x1bdd   :  { %13802 = vmatmul.mubr.msk.bf16.vlgmr.msra.gmra.mrb[104].mxu1 %vm18828_vm11, %v7474_v25  ;;  %vm18835_vm11 = vcmask 392192  }
0x1bde   :  { %13826 = vmatpush3.bf16.msra.mxu1 %v14530_v42  ;;  %13827 = vmatprep.mubr.msk.bf16.mxu1 %vm18775_vm1, %v17386_v30 }
0x1bdf   :  { %13831 = vmatprep.subr.bf16.mxu1 %v17386_v30 }
0x1be5   :  { %13828 = vmatmul.mubr.msk.bf16.vlgmr.msra.gmra.mrb[108].mxu1 %vm18829_vm13, %v7629_v35  ;;  %vm18836_vm13 = vmmov %vm18835_vm11 }
0x1be6   :  { %13833 = vmatprep.mubr.msk.bf16.mxu1 %vm18775_vm1, %v17386_v30  ;;  %13832 = vmatpush3.bf16.msra.mxu1 %v14539_v59 }
0x1be7   :  { %13837 = vmatprep.subr.bf16.mxu1 %v17386_v30 }
0x1cb0   :  { %v7513_v46 = vpop.f32.mrb[104].mxu1 }
0x1cb1   :  { %v7535_v36 = vpack.c.bf16 %v7513_v46, %v7513_v46  ;;  %v13803_v5 = vpop.f32.mrb[105].mxu1 }
0x1cb2   :  { %v7516_v10 = vpop.f32.mrb[106].mxu1 }
0x1cb3   :  { %v13804_v52 = vpop.f32.mrb[107].mxu1  ;;  %13822 = vmatmul.mubr.bf16.vlgmr.msra.gmra.mrb[148].mxu0 %v7535_v36 }
0x1cb4   :  { %13859 = vmatprep.mubr.msk.bf16.mxu0 %vm18775_vm1, %v17386_v30  ;;  %13844 = vmatpush3.bf16.msra.mxu0 %v14541_v33  ;;  %v14565_v33 = vld [vmem:[%s18763_s5 + $0xea0] ss:$8 sps:$4 sm:$0xff]  }
0x1cb5   :  { %13845 = vmatprep.subr.bf16.mxu0 %v17386_v30 }
0x1cb8   :  { %v7673_v53 = vpop.f32.mrb[108].mxu1  ;;  %13846 = vmatpush3.bf16.msra.mxu0 %v14542_v34 }
0x1cb9   :  { %v13829_v56 = vpop.f32.mrb[109].mxu1  ;;  %13847 = vmatprep.subr.bf16.mxu0 %v17386_v30 }
0x1cba   :  { %v7676_v28 = vpop.f32.mrb[110].mxu1 }
0x1cbb   :  { %v13830_v57 = vpop.f32.mrb[111].mxu1 }
0x1cbc   :  { %13848 = vmatpush3.bf16.msra.mxu0 %v14543_v37  ;;  %v14566_v37 = vld [vmem:[%s18763_s5 + $0xe20] ss:$8 sps:$4 sm:$0xff]  }
0x1cbd   :  { %13849 = vmatprep.subr.bf16.mxu0 %v17386_v30 }
0x1cc0   :  { %13850 = vmatpush3.bf16.msra.mxu0 %v14544_v15 }
0x1cc1   :  { %13851 = vmatprep.subr.bf16.mxu0 %v17386_v30 }
0x1cc4   :  { %13852 = vmatpush3.bf16.msra.mxu0 %v14545_v44 }
0x1cc5   :  { %13853 = vmatprep.subr.bf16.mxu0 %v17386_v30 }
0x1d86   :  { %v7618_v60 = vpop.f32.mrb[148].mxu0 }
0x1d87   :  { %v7626_v62 = vpack.c.bf16 %v7618_v60, %v7618_v60  ;;  %v13823_v63 = vpop.f32.mrb[149].mxu0 }
0x1d88   :  { %v7621_v1 = vpop.f32.mrb[150].mxu0 }
0x1d89   :  { %v13824_v20 = vpop.f32.mrb[151].mxu0  ;;  %13834 = vmatmul.mubr.msk.bf16.vlgmr.msra.gmra.mrb[112].mxu1 %vm18830_vm14, %v7626_v62  ;;  %vm18837_vm14 = vcmask 523264  }
0x1d8a   :  { %13839 = vmatprep.mubr.msk.bf16.mxu1 %vm18775_vm1, %v17386_v30  ;;  %13838 = vmatpush3.bf16.msra.mxu1 %v14540_v2  ;;  %vm7865_vm1 = vcmask 916480  }
0x1d8b   :  { %8160 = vmatprep.subr.bf16.mxu1 %v14849_v4 }
0x1e5c   :  { %v7722_v6 = vpop.f32.mrb[112].mxu1 }
0x1e5d   :  { %v7723_v8 = vadd.f32 %v7722_v6, %v7673_v53  ;;  %v13835_v58 = vpop.f32.mrb[113].mxu1 }
0x1e5e   :  { %v7725_v0 = vpop.f32.mrb[114].mxu1 }
0x1e5f   :  { %v7734_v9 = vadd.f32 %v7733_v18, %v7723_v8  ;;  %v13836_v12 = vpop.f32.mrb[115].mxu1 }
0x1e61   :  { %v7735_v14 = vmax.f32 %v7734_v9, 0.0 }
0x1e63   :  { %v7738_v19 = vpack.c.bf16 %v7735_v14, %v7735_v14 }
0x1e65   :  { %13840 = vmatmul.mubr.msk.bf16.vlgmr.msra.gmra.mrb[116].mxu1 %vm18831_vm5, %v7738_v19  ;;  %vm18838_vm5 = vmmov %vm18837_vm14  ;;  %v14549_v19 = vld [vmem:[%s18763_s5 + $0xd90] ss:$8 sps:$4 sm:$0xff]  }
0x1e66   :  { %8161 = vmatpush1.bf16.msra.mxu1 %v14551_v55 }
0x1e67   :  { %8162 = vmatprep.subr.bf16.mxu1 %v14849_v4 }
0x1f38   :  { %v7788_v24 = vpop.f32.mrb[116].mxu1 }
0x1f39   :  { %v7789_v26 = vadd.f32 %v7788_v24, %v7744_v23  ;;  %v13841_v27 = vpop.f32.mrb[117].mxu1  ;;  %v14559_v23 = vld [vmem:[%s18763_s5 + $0xe70] ss:$8 sps:$4 sm:$0xff]   ;;  %v14558_v24 = vld [vmem:[%s18763_s5 + $0xde0] ss:$8 sps:$4 sm:$0xff]  }
0x1f3a   :  { %v7791_v29 = vpop.f32.mrb[118].mxu1  ;;  %v14560_v27 = vld [vmem:[%s18763_s5 + $0xdf0] ss:$8 sps:$4 sm:$0xff]  }
0x1f3b   :  { %v12409_v7 = vmul.f32 -1.442695, %v7789_v26  ;;  %v13842_v16 = vpop.f32.mrb[119].mxu1  ;;  %v14561_v26 = vld [vmem:[%s18763_s5 + $0xe80] ss:$8 sps:$4 sm:$0xff]  }
0x1f3c   :  { %v7889_v29 = vld [vmem:[%s18763_s5 + $0x1270] sm:$0x1] }
0x1f3d   :  { %14821 = vpow2.f32 %v12409_v7  ;;  %v14562_v7 = vld [vmem:[%s18763_s5 + $0xe00] ss:$8 sps:$4 sm:$0xff]   ;;  %v7890_v16 = vunpack.c.l.bf16 %v7889_v29 }
0x1f3f   :  { %v7894_v34 = vrot.slane %v7890_v16, %v15079_v43  ;;  %v14571_v16 = vld [vmem:[%s18763_s5 + $0xef0] ss:$8 sps:$4 sm:$0xff]  }
0x1f47   :  { %v14822_v31 = vpop.eup %14821 }
0x1f48   :  { %v7797_v32 = vadd.f32 1.0, %v14822_v31  ;;  %v14563_v31 = vld [vmem:[%s18763_s5 + $0xe90] ss:$8 sps:$4 sm:$0xff]  }
0x1f4a   :  { %14823 = vrcp.f32 %v7797_v32  ;;  %v14564_v32 = vld [vmem:[%s18763_s5 + $0xe10] ss:$8 sps:$4 sm:$0xff]  }
0x1f54   :  { %v14824_v38 = vpop.eup %14823 }
0x1f55   :  { %v7803_v11 = vrot.slane %v14824_v38, %v15079_v43  ;;  %v7807_v40 = vrot.slane %v14824_v38, %v15505_v13  ;;  %v14546_v13 = vld [vmem:[%s18763_s5 + $0x1240] ss:$8 sps:$4 sm:$0xff]  }
0x1f56   :  { %13854 = vmatpush3.bf16.msra.mxu0 %v14546_v13 }
0x1f57   :  { %7812 = vrot.lane.b32.xlu1 %v7807_v40, %s14846_s15  ;;  %7810 = vrot.lane.b32.xlu0 %v7803_v11, %s14846_s15 }
0x1f58   :  { %13855 = vmatprep.subr.bf16.mxu0 %v17386_v30 }
0x1f5a   :  { %13856 = vmatpush3.bf16.msra.mxu0 %v14547_v45 }
0x1f5b   :  { %7818 = vrot.lane.b32.xlu1 %v7807_v40, %s14847_s1  ;;  %7816 = vrot.lane.b32.xlu0 %v7803_v11, %s14847_s1 }
0x1f5c   :  { %13857 = vmatprep.subr.bf16.mxu0 %v17386_v30 }
0x1f5e   :  { %13858 = vmatpush3.bf16.msra.mxu0 %v14548_v47 }
0x1f5f   :  { %7824 = vrot.lane.b32.xlu1 %v7807_v40, %s14848_s0  ;;  %7822 = vrot.lane.b32.xlu0 %v7803_v11, %s14848_s0  ;;  %s14862_s0 = smov 96  }
0x1f60   :  { %8273 = vmatprep.subr.bf16.mxu0 %v14849_v4 }
0x1f63   :  { %7830 = vrot.lane.b32.xlu1 %v7807_v40, %s14860_s11  ;;  %7828 = vrot.lane.b32.xlu0 %v7803_v11, %s14860_s11 }
0x1f67   :  { %7836 = vrot.lane.b32.xlu1 %v7807_v40, %s14861_s2  ;;  %7834 = vrot.lane.b32.xlu0 %v7803_v11, %s14861_s2 }
0x1f6b   :  { %7842 = vrot.lane.b32.xlu1 %v7807_v40, %s14862_s0  ;;  %7840 = vrot.lane.b32.xlu0 %v7803_v11, %s14862_s0 }
0x1f6f   :  { %7848 = vrot.lane.b32.xlu1 %v7807_v40, %s14863_s23  ;;  %7846 = vrot.lane.b32.xlu0 %v7803_v11, %s14863_s23 }
0x1fc9   :  { %v7813_v49 = vpop.permute.xlu1 %7812  ;;  %v7811_v21 = vpop.permute.xlu0 %7810 }
0x1fca   :  { %v7853_v10 = vsel %vm18832_vm7, %v7807_v40, %v7813_v49  ;;  %v7852_v52 = vsel %vm18833_vm15, %v7803_v11, %v7811_v21  ;;  %vm18839_vm7 = vcmask 785408   ;;  %v14567_v11 = vld [vmem:[%s18763_s5 + $0xeb0] ss:$8 sps:$4 sm:$0xff]   ;;  %v14568_v49 = vld [vmem:[%s18763_s5 + $0xec0] ss:$8 sps:$4 sm:$0xff]  }
0x1fcb   :  { %vm18840_vm15 = vmmov %vm18839_vm7 }
0x1fcd   :  { %v7819_v25 = vpop.permute.xlu1 %7818  ;;  %v7817_v30 = vpop.permute.xlu0 %7816 }
0x1fce   :  { %v7855_v53 = vsel %vm18817_vm2, %v7853_v10, %v7819_v25  ;;  %v7854_v56 = vsel %vm18834_vm8, %v7852_v52, %v7817_v30 }
0x1fd1   :  { %v7825_v42 = vpop.permute.xlu1 %7824  ;;  %v7823_v35 = vpop.permute.xlu0 %7822 }
0x1fd2   :  { %v7857_v59 = vsel %vm18835_vm11, %v7855_v53, %v7825_v42  ;;  %v7856_v60 = vsel %vm18836_vm13, %v7854_v56, %v7823_v35 }
0x1fd5   :  { %v7831_v54 = vpop.permute.xlu1 %7830  ;;  %v7829_v46 = vpop.permute.xlu0 %7828 }
0x1fd6   :  { %v7859_v62 = vsel %vm18837_vm14, %v7857_v59, %v7831_v54  ;;  %v7858_v63 = vsel %vm18838_vm5, %v7856_v60, %v7829_v46 }
0x1fd9   :  { %v7837_v36 = vpop.permute.xlu1 %7836  ;;  %v7835_v5 = vpop.permute.xlu0 %7834 }
0x1fda   :  { %v7862_v1 = vsel %vm7860_vm10, %v7859_v62, %v7837_v36  ;;  %v7861_v20 = vsel %vm7860_vm10, %v7858_v63, %v7835_v5 }
0x1fdd   :  { %v7843_v28 = vpop.permute.xlu1 %7842  ;;  %v7841_v57 = vpop.permute.xlu0 %7840 }
0x1fde   :  { %v7864_v2 = vsel %vm18839_vm7, %v7862_v1, %v7843_v28  ;;  %v7863_v17 = vsel %vm18840_vm15, %v7861_v20, %v7841_v57 }
0x1fe1   :  { %v7849_v3 = vpop.permute.xlu1 %7848  ;;  %v7847_v18 = vpop.permute.xlu0 %7846 }
0x1fe2   :  { %v7867_v6 = vsel %vm7865_vm1, %v7864_v2, %v7849_v3  ;;  %v7866_v8 = vsel %vm7865_vm1, %v7863_v17, %v7847_v18  ;;  %vm18841_vm1 = vmmov %vm18817_vm2 }
0x1fe3   :  { %v7869_v58 = vmul.f32 %v7867_v6, %v7473_v51  ;;  %v7868_v0 = vmul.f32 %v7866_v8, %v7472_v50  ;;  %v14554_v50 = vld [vmem:[%s18763_s5 + $0xdc0] ss:$8 sps:$4 sm:$0xff]   ;;  %vm18842_vm2 = vmmov %vm18841_vm1 }
0x1fe4   :  { %v14557_v51 = vld [vmem:[%s18763_s5 + $0xe60] ss:$8 sps:$4 sm:$0xff]   ;;  %vm18843_vm8 = vmmov %vm18841_vm1 }
0x1fe5   :  { %v7871_v9 = vadd.f32 %v7869_v58, %v16703_v61  ;;  %v7870_v12 = vadd.f32 %v7868_v0, %v16695_v22  ;;  %v14553_v22 = vld [vmem:[%s18763_s5 + $0xe40] ss:$8 sps:$4 sm:$0xff]   ;;  %v14552_v61 = vld [vmem:[%s18763_s5 + $0xdb0] ss:$8 sps:$4 sm:$0xff]   ;;  %vm18844_vm10 = vmmov %vm18841_vm1 }
0x1fe6   :  { %8163 = vmatpush1.bf16.msra.mxu1 %v14553_v22  ;;  %v14569_v22 = vld [vmem:[%s18763_s5 + $0xed0] ss:$8 sps:$4 sm:$0xff]   ;;  %vm18845_vm11 = vmmov %vm18841_vm1 }
0x1fe7   :  { %v7888_v14 = vpack.c.bf16 %v7871_v9, %v7870_v12  ;;  %8164 = vmatprep.subr.bf16.mxu1 %v14849_v4  ;;  %vm18846_vm13 = vmmov %vm18841_vm1 }
0x1fe8   :  { %vm18847_vm14 = vmmov %vm18841_vm1 }
0x1fe9   :  { %13860 = vmatmul.mubr.bf16.vlgmr.msra.gmra.mrb[152].mxu0 %v7888_v14  ;;  %vm18848_vm5 = vmmov %vm18841_vm1 }
0x1fea   :  { %8274 = vmatpush1.bf16.msra.mxu0 %v14549_v19  ;;  %8165 = vmatpush1.bf16.msra.mxu1 %v14555_v48  ;;  %vm18849_vm7 = vmmov %vm18841_vm1 }
0x1feb   :  { %8275 = vmatprep.subr.bf16.mxu0 %v14849_v4  ;;  %8166 = vmatprep.subr.bf16.mxu1 %v14849_v4  ;;  %vm18850_vm15 = vmmov %vm18841_vm1 }
0x1fee   :  { %8276 = vmatpush1.bf16.msra.mxu0 %v14550_v41  ;;  %8167 = vmatpush1.bf16.msra.mxu1 %v14557_v51 }
0x1fef   :  { %8277 = vmatprep.subr.bf16.mxu0 %v14849_v4  ;;  %8168 = vmatprep.subr.bf16.mxu1 %v14849_v4 }
0x1ff2   :  { %8278 = vmatpush1.bf16.msra.mxu0 %v14552_v61  ;;  %8169 = vmatpush1.bf16.msra.mxu1 %v14559_v23 }
0x1ff3   :  { %8279 = vmatprep.subr.bf16.mxu0 %v14849_v4  ;;  %8170 = vmatprep.subr.bf16.mxu1 %v14849_v4 }
0x1ff6   :  { %8280 = vmatpush1.bf16.msra.mxu0 %v14554_v50  ;;  %8171 = vmatpush1.bf16.msra.mxu1 %v14561_v26  ;;  %v14570_v26 = vld [vmem:[%s18763_s5 + $0xee0] ss:$8 sps:$4 sm:$0xff]  }
0x1ff7   :  { %8281 = vmatprep.subr.bf16.mxu0 %v14849_v4  ;;  %8172 = vmatprep.subr.bf16.mxu1 %v14849_v4 }
0x1ffa   :  { %8282 = vmatpush1.bf16.msra.mxu0 %v14556_v39  ;;  %8173 = vmatpush1.bf16.msra.mxu1 %v14563_v31 }
0x1ffb   :  { %8283 = vmatprep.subr.bf16.mxu0 %v14849_v4  ;;  %8174 = vmatprep.subr.bf16.mxu1 %v14849_v4 }
0x1ffe   :  { %8284 = vmatpush1.bf16.msra.mxu0 %v14558_v24  ;;  %8175 = vmatpush1.bf16.msra.mxu1 %v14565_v33 }
0x1fff   :  { %8285 = vmatprep.subr.bf16.mxu0 %v14849_v4  ;;  %8176 = vmatprep.subr.bf16.mxu1 %v14849_v4 }
0x2002   :  { %8286 = vmatpush1.bf16.msra.mxu0 %v14560_v27  ;;  %8177 = vmatpush1.bf16.msra.mxu1 %v14567_v11  ;;  %v14575_v11 = vld [vmem:[%s18763_s5 + $0xf30] ss:$8 sps:$4 sm:$0xff]  }
0x2003   :  { %8287 = vmatprep.subr.bf16.mxu0 %v14849_v4  ;;  %8178 = vmatprep.subr.bf16.mxu1 %v14849_v4 }
0x2006   :  { %8288 = vmatpush1.bf16.msra.mxu0 %v14562_v7  ;;  %8179 = vmatpush1.bf16.msra.mxu1 %v14568_v49 }
0x2007   :  { %8289 = vmatprep.subr.bf16.mxu0 %v14849_v4  ;;  %8426 = vmatprep.subr.bf16.mxu1 %v14849_v4 }
0x200a   :  { %8290 = vmatpush1.bf16.msra.mxu0 %v14564_v32 }
0x200b   :  { %8291 = vmatprep.subr.bf16.mxu0 %v14849_v4 }
0x200e   :  { %8292 = vmatpush1.bf16.msra.mxu0 %v14566_v37  ;;  %v14573_v37 = vld [vmem:[%s18763_s5 + $0xf10] ss:$8 sps:$4 sm:$0xff]  }
0x200f   :  { %8661 = vmatprep.subr.bf16.mxu0 %v14849_v4 }
0x20bc   :  { %v7977_v38 = vpop.f32.mrb[152].mxu0 }
0x20bd   :  { %v17657_v40 = vadd.f32 %v7977_v38, %v7894_v34  ;;  %v13861_v15 = vpop.f32.mrb[153].mxu0  ;;  %v14574_v38 = vld [vmem:[%s18763_s5 + $0xf20] ss:$8 sps:$4 sm:$0xff]  }
0x20be   :  { %v7980_v44 = vpop.f32.mrb[154].mxu0  ;;  %v14576_v15 = vld [vmem:[%s18763_s5 + $0xf40] ss:$8 sps:$4 sm:$0xff]  }
0x20bf   :  { %v7985_v13 = vrot.slane %v17657_v40, 7  ;;  %v17661_v45 = vadd.f32 %v7980_v44, %v7894_v34  ;;  %v13862_v47 = vpop.f32.mrb[155].mxu0  ;;  %v14572_v34 = vld [vmem:[%s18763_s5 + $0xf00] ss:$8 sps:$4 sm:$0xff]  }
0x20c1   :  { %v7994_v21 = vrot.slane %v17661_v45, 7  ;;  %7986 = vrot.lane.b32.xlu0 %v7985_v13, %s14846_s15  ;;  %v14577_v13 = vld [vmem:[%s18763_s5 + $0xf50] ss:$8 sps:$4 sm:$0xff]  }
0x20c3   :  { %7995 = vrot.lane.b32.xlu1 %v7994_v21, %s14846_s15  ;;  %v14578_v21 = vld [vmem:[%s18763_s5 + $0xf60] ss:$8 sps:$4 sm:$0xff]  }
0x2133   :  { %v7987_v25 = vpop.permute.xlu0 %7986 }
0x2134   :  { %7989 = vst.msk [vmem:[#allocation5] sm:$0xfe] %vm6479_vm9, %v7987_v25 }
0x2135   :  { %7990 = vst.msk [vmem:[#allocation5 + $0x8] sm:$0xfe] %vm6481_vm0, %v7987_v25  ;;  %v7996_v30 = vpop.permute.xlu1 %7995 }
0x2136   :  { %7991 = vst.msk [vmem:[#allocation5 + $0x10] sm:$0x1] %vm6483_vm6, %v7987_v25  ;;  %8000 = vst.msk [vmem:[#allocation5 + $0x30] sm:$0x1] %vm6483_vm6, %v7996_v30 }
0x2137   :  { %7992 = vst.msk [vmem:[#allocation5 + $0x18] sm:$0x1] %vm6485_vm3, %v7987_v25  ;;  %8001 = vst.msk [vmem:[#allocation5 + $0x38] sm:$0x1] %vm6485_vm3, %v7996_v30 }
0x2138   :  { %7998 = vst.msk [vmem:[#allocation5 + $0x20] sm:$0xfe] %vm6479_vm9, %v7996_v30 }
0x2139   :  { %7999 = vst.msk [vmem:[#allocation5 + $0x28] sm:$0xfe] %vm6481_vm0, %v7996_v30 }
0x213b   :  { %v8002_v54 = vld [vmem:[#allocation5] sm:$0xff] }
0x213c   :  { %v8003_v42 = vld [vmem:[#allocation5 + $0x8] sm:$0xff]  ;;  %v8034_v10 = vld [vmem:[#allocation5] sm:$0xfe] }
0x213d   :  { %v17680_v36 = vld [vmem:[#allocation5 + $0x10] sm:$0xff]  ;;  %v8035_v5 = vld [vmem:[#allocation5 + $0x8] sm:$0xfe]  ;;  %v8320_v47 = vld [vmem:[#allocation5] sm:$0xfc] }
0x213e   :  { %v8005_v35 = vld [vmem:[#allocation5 + $0x18] sm:$0xff]  ;;  %v8030_v52 = vpack.c.bf16 %v17680_v36, %v8002_v54  ;;  %v8058_v59 = vpack.c.bf16 %v17680_v36, %v8034_v10  ;;  %v8036_v1 = vld [vmem:[#allocation5 + $0x30] sm:$0x7f]  ;;  %v8321_v23 = vld [vmem:[#allocation5 + $0x8] sm:$0xfc]  ;;  %v8344_v25 = vpack.c.bf16 %v17680_v36, %v8320_v47 }
0x213f   :  { %v8031_v46 = vpack.c.bf16 %v8005_v35, %v8003_v42  ;;  %v8009_v56 = vld [vmem:[#allocation5 + $0x38] sm:$0x3f]  ;;  %v8059_v57 = vpack.c.bf16 %v8005_v35, %v8035_v5  ;;  %v17685_v63 = vld [vmem:[#allocation5 + $0x20] sm:$0xff]  ;;  %v8008_v14 = vld [vmem:[#allocation5 + $0x30] sm:$0x3f]  ;;  %v8345_v27 = vpack.c.bf16 %v8005_v35, %v8321_v23 }
0x2140   :  { %v8007_v53 = vld [vmem:[#allocation5 + $0x28] sm:$0xff]  ;;  %v8037_v28 = vld [vmem:[#allocation5 + $0x38] sm:$0x7f]  ;;  %v8060_v2 = vpack.c.bf16 %v8036_v1, %v17685_v63  ;;  %v8065_v3 = vshll.u32 %v8058_v59, 16  ;;  %v8063_v0 = vshrl.u32 %v8058_v59, 16  ;;  %v8032_v51 = vpack.c.bf16 %v8008_v14, %v17685_v63  ;;  %v8322_v44 = vld [vmem:[#allocation5 + $0x30] sm:$0xff] }
0x2141   :  { %12440 = vmatprep.mubr.msk.bf16.mxu0 %vm18841_vm1, %v8031_v46  ;;  %v8033_v60 = vpack.c.bf16 %v8009_v56, %v8007_v53  ;;  %v8061_v62 = vpack.c.bf16 %v8037_v28, %v8007_v53  ;;  %v8077_v20 = vshll.u32 %v8059_v57, 16  ;;  %v8075_v18 = vshrl.u32 %v8059_v57, 16  ;;  %v8323_v48 = vld [vmem:[#allocation5 + $0x38] sm:$0xff]  ;;  %v14579_v54 = vld [vmem:[%s18763_s5 + $0xf80] ss:$8 sps:$4 sm:$0xff]  }
0x2142   :  { %8306 = vmatmul.mubr.bf16.vlgmr.msra.gmra.mrb[156].mxu0 %v8030_v52  ;;  %v8070_v8 = vshll.u32 %v8060_v2, 16  ;;  %v8067_v9 = vrot.slane %v8065_v3, 1  ;;  %v8347_v24 = vpack.c.bf16 %v8323_v48, %v8007_v53  ;;  %v8086_v29 = vshrl.u32 %v8060_v2, 16  ;;  %v14582_v46 = vld [vmem:[%s18763_s5 + $0x1020] ss:$8 sps:$4 sm:$0xff]  }
0x2143   :  { %12441 = vmatprep.mubr.msk.bf16.mxu0 %vm18842_vm2, %v8033_v60  ;;  %v8082_v17 = vshll.u32 %v8061_v62, 16  ;;  %v8079_v6 = vrot.slane %v8077_v20, 1  ;;  %v8089_v12 = vshrl.u32 %v8061_v62, 16  ;;  %v8355_v32 = vrot.slane %v8345_v27, 1  ;;  %v14580_v36 = vld [vmem:[%s18763_s5 + $0xf90] ss:$8 sps:$4 sm:$0xff]   ;;  %8662 = vmatpush1.bf16.msra.mxu0 %v14582_v46  ;;  %vm18851_vm2 = vmmov %vm18841_vm1 }
0x2144   :  { %v8072_v55 = vrot.slane %v8070_v8, 1  ;;  %v8068_v41 = vor.u32 %v8067_v9, %v8063_v0  ;;  %v8356_v7 = vrot.slane %v8347_v24, 1  ;;  %v8346_v49 = vpack.c.bf16 %v8322_v44, %v17685_v63  ;;  %v14584_v5 = vld [vmem:[%s18763_s5 + $0x1030] ss:$8 sps:$4 sm:$0xff]   ;;  %8663 = vmatprep.subr.bf16.mxu0 %v14849_v4  ;;  %v14581_v10 = vld [vmem:[%s18763_s5 + $0xfa0] ss:$8 sps:$4 sm:$0xff]  }
0x2145   :  { %v8084_v58 = vrot.slane %v8082_v17, 1  ;;  %v8080_v19 = vor.u32 %v8079_v6, %v8075_v18  ;;  %v8352_v42 = vrot.slane %v8344_v25, 1  ;;  %v14586_v52 = vld [vmem:[%s18763_s5 + $0x1040] ss:$8 sps:$4 sm:$0xff]   ;;  %v14583_v53 = vld [vmem:[%s18763_s5 + $0xfb0] ss:$8 sps:$4 sm:$0xff]  }
0x2146   :  { %v8073_v39 = vsel %vm4448_vm4, %v8068_v41, %v8072_v55  ;;  %v8088_v31 = vor.u32 %v8086_v29, %v8072_v55  ;;  %v8357_v33 = vsel %vm4869_vm12, %v8355_v32, %v8356_v7  ;;  %v8353_v30 = vrot.slane %v8346_v49, 1  ;;  %v14588_v56 = vld [vmem:[%s18763_s5 + $0x1050] ss:$8 sps:$4 sm:$0xff]   ;;  %v14585_v28 = vld [vmem:[%s18763_s5 + $0xfc0] ss:$8 sps:$4 sm:$0xff]  }
0x2147   :  { %v8091_v61 = vor.u32 %v8089_v12, %v8084_v58  ;;  %v8085_v50 = vsel %vm4448_vm4, %v8080_v19, %v8084_v58  ;;  %8664 = vmatpush1.bf16.msra.mxu0 %v14584_v5  ;;  %v14587_v57 = vld [vmem:[%s18763_s5 + $0xfd0] ss:$8 sps:$4 sm:$0xff]   ;;  %v14589_v59 = vld [vmem:[%s18763_s5 + $0xfe0] ss:$8 sps:$4 sm:$0xff]  }
0x2148   :  { %12428 = vmatprep.mubr.msk.bf16.mxu1 %vm18843_vm8, %v8085_v50  ;;  %v8354_v35 = vsel %vm4869_vm12, %v8352_v42, %v8353_v30  ;;  %8665 = vmatprep.subr.bf16.mxu0 %v14849_v4  ;;  %v8475_v41 = vld [vmem:[%s18763_s5 + $0xf70] sm:$0x1]  ;;  %v14597_v44 = vld [vmem:[%s18763_s5 + $0x10a0] ss:$8 sps:$4 sm:$0xff]   ;;  %vm18852_vm8 = vcmask 130048  }
0x2149   :  { %8193 = vmatmul.mubr.bf16.vlgmr.msra.gmra.mrb[120].mxu1 %v8073_v39  ;;  %v14591_v48 = vld [vmem:[%s18763_s5 + $0xff0] ss:$8 sps:$4 sm:$0xff]  }
0x214a   :  { %8313 = vmatmul.mubr.bf16.gmra.mrb[160].mxu0 %v8032_v51  ;;  %8427 = vmatpush1.bf16.msra.mxu1 %v14569_v22  ;;  %v8476_v22 = vunpack.c.l.bf16 %v8475_v41  ;;  %v14592_v50 = vld [vmem:[%s18763_s5 + $0x1070] ss:$8 sps:$4 sm:$0xff]   ;;  %v14593_v51 = vld [vmem:[%s18763_s5 + $0x1000] ss:$8 sps:$4 sm:$0xff]  }
0x214b   :  { %12429 = vmatprep.mubr.msk.bf16.mxu1 %vm18844_vm10, %v8091_v61  ;;  %8428 = vmatprep.subr.bf16.mxu1 %v14849_v4  ;;  %v14590_v61 = vld [vmem:[%s18763_s5 + $0x1060] ss:$8 sps:$4 sm:$0xff]   ;;  %v14598_v25 = vld [vmem:[%s18763_s5 + $0x10b0] ss:$8 sps:$4 sm:$0xff]   ;;  %vm18853_vm10 = vmmov %vm18852_vm8 }
0x214c   :  { %8666 = vmatpush1.bf16.msra.mxu0 %v14586_v52  ;;  %v8480_v39 = vrot.slane %v8476_v22, %v15079_v43 }
0x214d   :  { %8667 = vmatprep.subr.bf16.mxu0 %v14849_v4 }
0x214e   :  { %8429 = vmatpush1.bf16.msra.mxu1 %v14570_v26 }
0x214f   :  { %8430 = vmatprep.subr.bf16.mxu1 %v14849_v4 }
0x2150   :  { %8668 = vmatpush1.bf16.msra.mxu0 %v14588_v56 }
0x2151   :  { %8200 = vmatmul.mubr.bf16.gmra.mrb[124].mxu1 %v8088_v31  ;;  %8669 = vmatprep.subr.bf16.mxu0 %v14849_v4  ;;  %v14595_v31 = vld [vmem:[%s18763_s5 + $0x1010] ss:$8 sps:$4 sm:$0xff]  }
0x2152   :  { %8431 = vmatpush1.bf16.msra.mxu1 %v14571_v16  ;;  %12452 = vmatprep.mubr.msk.bf16.mxu1 %vm18845_vm11, %v8357_v33  ;;  %v14594_v16 = vld [vmem:[%s18763_s5 + $0x1080] ss:$8 sps:$4 sm:$0xff]   ;;  %vm18854_vm11 = vmmov 0  }
0x2153   :  { %8432 = vmatprep.subr.bf16.mxu1 %v14849_v4 }
0x2154   :  { %8670 = vmatpush1.bf16.msra.mxu0 %v14590_v61 }
0x2155   :  { %8671 = vmatprep.subr.bf16.mxu0 %v14849_v4 }
0x2156   :  { %8433 = vmatpush1.bf16.msra.mxu1 %v14572_v34  ;;  %v14596_v34 = vld [vmem:[%s18763_s5 + $0x1090] ss:$8 sps:$4 sm:$0xff]  }
0x2157   :  { %8434 = vmatprep.subr.bf16.mxu1 %v14849_v4 }
0x2158   :  { %8672 = vmatpush1.bf16.msra.mxu0 %v14592_v50  ;;  %v14599_v50 = vld [vmem:[%s18763_s5 + $0x10c0] ss:$8 sps:$4 sm:$0xff]  }
0x2159   :  { %8673 = vmatprep.subr.bf16.mxu0 %v14849_v4 }
0x215a   :  { %8435 = vmatpush1.bf16.msra.mxu1 %v14573_v37 }
0x215b   :  { %8436 = vmatprep.subr.bf16.mxu1 %v14849_v4 }
0x215c   :  { %8674 = vmatpush1.bf16.msra.mxu0 %v14594_v16 }
0x215d   :  { %8675 = vmatprep.subr.bf16.mxu0 %v14849_v4 }
0x215e   :  { %8437 = vmatpush1.bf16.msra.mxu1 %v14574_v38 }
0x215f   :  { %8438 = vmatprep.subr.bf16.mxu1 %v14849_v4 }
0x2160   :  { %8676 = vmatpush1.bf16.msra.mxu0 %v14596_v34 }
0x2161   :  { %8677 = vmatprep.subr.bf16.mxu0 %v14849_v4 }
0x2162   :  { %8439 = vmatpush1.bf16.msra.mxu1 %v14575_v11 }
0x2163   :  { %8440 = vmatprep.subr.bf16.mxu1 %v14849_v4 }
0x2164   :  { %8678 = vmatpush1.bf16.msra.mxu0 %v14597_v44  ;;  %v14606_v44 = vld [vmem:[%s18763_s5 + $0x1130] ss:$8 sps:$4 sm:$0xff]  }
0x2165   :  { %8679 = vmatprep.subr.bf16.mxu0 %v14849_v4 }
0x2166   :  { %8441 = vmatpush1.bf16.msra.mxu1 %v14576_v15 }
0x2167   :  { %8442 = vmatprep.subr.bf16.mxu1 %v14849_v4 }
0x2168   :  { %8680 = vmatpush1.bf16.msra.mxu0 %v14598_v25  ;;  %v14608_v25 = vld [vmem:[%s18763_s5 + $0x1150] ss:$8 sps:$4 sm:$0xff]  }
0x2169   :  { %8927 = vmatprep.subr.bf16.mxu0 %v14849_v4 }
0x216a   :  { %8443 = vmatpush1.bf16.msra.mxu1 %v14577_v13 }
0x216b   :  { %8444 = vmatprep.subr.bf16.mxu1 %v14849_v4 }
0x216e   :  { %8445 = vmatpush1.bf16.msra.mxu1 %v14578_v21 }
0x216f   :  { %8774 = vmatprep.subr.bf16.mxu1 %v14849_v4 }
0x2171   :  { %8459 = vmatmul.mubr.bf16.vlgmr.msra.gmra.mrb[128].mxu1 %v8354_v35 }
0x2172   :  { %12453 = vmatprep.mubr.msk.bf16.mxu1 %vm18846_vm13, %v8356_v7  ;;  %8775 = vmatpush1.bf16.msra.mxu1 %v14579_v54  ;;  %vm9239_vm13 = vcmask 1040384  }
0x2173   :  { %8776 = vmatprep.subr.bf16.mxu1 %v14849_v4 }
0x2176   :  { %8777 = vmatpush1.bf16.msra.mxu1 %v14580_v36 }
0x2177   :  { %8778 = vmatprep.subr.bf16.mxu1 %v14849_v4 }
0x2179   :  { %8466 = vmatmul.mubr.bf16.gmra.mrb[132].mxu1 %v8353_v30 }
0x217a   :  { %8779 = vmatpush1.bf16.msra.mxu1 %v14581_v10 }
0x217b   :  { %8780 = vmatprep.subr.bf16.mxu1 %v14849_v4 }
0x217e   :  { %8781 = vmatpush1.bf16.msra.mxu1 %v14583_v53 }
0x217f   :  { %8782 = vmatprep.subr.bf16.mxu1 %v14849_v4 }
0x2182   :  { %8783 = vmatpush1.bf16.msra.mxu1 %v14585_v28 }
0x2183   :  { %8784 = vmatprep.subr.bf16.mxu1 %v14849_v4 }
0x2186   :  { %8785 = vmatpush1.bf16.msra.mxu1 %v14587_v57 }
0x2187   :  { %8786 = vmatprep.subr.bf16.mxu1 %v14849_v4 }
0x218a   :  { %8787 = vmatpush1.bf16.msra.mxu1 %v14589_v59 }
0x218b   :  { %8788 = vmatprep.subr.bf16.mxu1 %v14849_v4 }
0x218e   :  { %8789 = vmatpush1.bf16.msra.mxu1 %v14591_v48 }
0x218f   :  { %8790 = vmatprep.subr.bf16.mxu1 %v14849_v4 }
0x2192   :  { %8791 = vmatpush1.bf16.msra.mxu1 %v14593_v51 }
0x2193   :  { %8792 = vmatprep.subr.bf16.mxu1 %v14849_v4 }
0x2196   :  { %8793 = vmatpush1.bf16.msra.mxu1 %v14595_v31  ;;  %v14601_v31 = vld [vmem:[%s18763_s5 + $0x10e0] ss:$8 sps:$4 sm:$0xff]  }
0x2215   :  { %v8307_v60 = vpop.f32.mrb[156].mxu0 }
0x2216   :  { %v8309_v62 = vpop.f32.mrb[157].mxu0 }
0x2217   :  { %v8310_v63 = vpop.f32.mrb[158].mxu0 }
0x2218   :  { %v8311_v1 = vpop.f32.mrb[159].mxu0 }
0x221c   :  { %v8194_v20 = vpop.f32.mrb[120].mxu1 }
0x221d   :  { %v8314_v2 = vpop.f32.mrb[160].mxu0  ;;  %v8308_v17 = vadd.f32 %v8307_v60, %v8194_v20  ;;  %v8196_v3 = vpop.f32.mrb[121].mxu1 }
0x221e   :  { %v8316_v18 = vpop.f32.mrb[161].mxu0  ;;  %v8197_v6 = vpop.f32.mrb[122].mxu1 }
0x221f   :  { %v8317_v8 = vpop.f32.mrb[162].mxu0  ;;  %v8198_v58 = vpop.f32.mrb[123].mxu1 }
0x2220   :  { %v8318_v0 = vpop.f32.mrb[163].mxu0 }
0x2224   :  { %v8201_v9 = vpop.f32.mrb[124].mxu1 }
0x2225   :  { %v8315_v12 = vadd.f32 %v8314_v2, %v8201_v9  ;;  %v8203_v14 = vpop.f32.mrb[125].mxu1 }
0x2226   :  { %v8204_v19 = vpop.f32.mrb[126].mxu1 }
0x2227   :  { %v8205_v55 = vpop.f32.mrb[127].mxu1 }
0x2244   :  { %v8460_v23 = vpop.f32.mrb[128].mxu1 }
0x2245   :  { %v8473_v24 = vadd.f32 %v8460_v23, %v8308_v17  ;;  %v8462_v26 = vpop.f32.mrb[129].mxu1 }
0x2246   :  { %v8463_v27 = vpop.f32.mrb[130].mxu1 }
0x2247   :  { %v8481_v29 = vadd.f32 %v8480_v39, %v8473_v24  ;;  %v8464_v7 = vpop.f32.mrb[131].mxu1  ;;  %v14600_v27 = vld [vmem:[%s18763_s5 + $0x10d0] ss:$8 sps:$4 sm:$0xff]  }
0x2249   :  { %v8483_v32 = vmax.f32 %v8481_v29, 0.0 }
0x224b   :  { %v8486_v33 = vrot.slane %v8483_v32, 7 }
0x224c   :  { %v8467_v37 = vpop.f32.mrb[132].mxu1 }
0x224d   :  { %v8474_v38 = vadd.f32 %v8467_v37, %v8315_v12  ;;  %8487 = vrot.lane.b32.xlu0 %v8486_v33, %s14846_s15  ;;  %v8469_v11 = vpop.f32.mrb[133].mxu1  ;;  %v14602_v37 = vld [vmem:[%s18763_s5 + $0x10f0] ss:$8 sps:$4 sm:$0xff]  }
0x224e   :  { %v8470_v15 = vpop.f32.mrb[134].mxu1  ;;  %v14604_v11 = vld [vmem:[%s18763_s5 + $0x1110] ss:$8 sps:$4 sm:$0xff]  }
0x224f   :  { %v8482_v13 = vadd.f32 %v8480_v39, %v8474_v38  ;;  %v8471_v47 = vpop.f32.mrb[135].mxu1  ;;  %v14603_v38 = vld [vmem:[%s18763_s5 + $0x1100] ss:$8 sps:$4 sm:$0xff]  }
0x2250   :  { %v14605_v15 = vld [vmem:[%s18763_s5 + $0x1120] ss:$8 sps:$4 sm:$0xff]  }
0x2251   :  { %v8484_v49 = vmax.f32 %v8482_v13, 0.0  ;;  %v14607_v47 = vld [vmem:[%s18763_s5 + $0x1140] ss:$8 sps:$4 sm:$0xff]  }
0x2253   :  { %v8495_v21 = vrot.slane %v8484_v49, 7 }
0x2255   :  { %8496 = vrot.lane.b32.xlu1 %v8495_v21, %s14846_s15 }
0x22bf   :  { %v8488_v30 = vpop.permute.xlu0 %8487 }
0x22c0   :  { %8490 = vst.msk [vmem:[#allocation5] sm:$0xfe] %vm6479_vm9, %v8488_v30 }
0x22c1   :  { %8491 = vst.msk [vmem:[#allocation5 + $0x8] sm:$0xfe] %vm6481_vm0, %v8488_v30 }
0x22c2   :  { %8492 = vst.msk [vmem:[#allocation5 + $0x10] sm:$0x1] %vm6483_vm6, %v8488_v30 }
0x22c3   :  { %8493 = vst.msk [vmem:[#allocation5 + $0x18] sm:$0x1] %vm6485_vm3, %v8488_v30 }
0x22c7   :  { %v8497_v42 = vpop.permute.xlu1 %8496  ;;  %v8503_v46 = vld [vmem:[#allocation5] sm:$0xff] }
0x22c8   :  { %v8504_v35 = vld [vmem:[#allocation5 + $0x8] sm:$0xff]  ;;  %8499 = vst.msk [vmem:[#allocation5 + $0x20] sm:$0xfe] %vm6479_vm9, %v8497_v42  ;;  %v8535_v52 = vld [vmem:[#allocation5] sm:$0xfe] }
0x22c9   :  { %8500 = vst.msk [vmem:[#allocation5 + $0x28] sm:$0xfe] %vm6481_vm0, %v8497_v42  ;;  %v17833_v5 = vld [vmem:[#allocation5 + $0x10] sm:$0xff]  ;;  %v8536_v10 = vld [vmem:[#allocation5 + $0x8] sm:$0xfe] }
0x22ca   :  { %v8506_v54 = vld [vmem:[#allocation5 + $0x18] sm:$0xff]  ;;  %8501 = vst.msk [vmem:[#allocation5 + $0x30] sm:$0x1] %vm6483_vm6, %v8497_v42  ;;  %v8531_v53 = vpack.c.bf16 %v17833_v5, %v8503_v46  ;;  %v8559_v56 = vpack.c.bf16 %v17833_v5, %v8535_v52  ;;  %v8822_v24 = vld [vmem:[#allocation5 + $0x8] sm:$0xfc] }
0x22cb   :  { %8502 = vst.msk [vmem:[#allocation5 + $0x38] sm:$0x1] %vm6485_vm3, %v8497_v42  ;;  %v8532_v36 = vpack.c.bf16 %v8506_v54, %v8504_v35  ;;  %v8560_v28 = vpack.c.bf16 %v8506_v54, %v8536_v10  ;;  %v8846_v29 = vpack.c.bf16 %v8506_v54, %v8822_v24  ;;  %v8821_v49 = vld [vmem:[#allocation5] sm:$0xfc]  ;;  %v14614_v24 = vld [vmem:[%s18765_s6 + $0x30] ss:$8 sps:$4 sm:$0xff]  }
0x22cc   :  { %v8566_v57 = vshll.u32 %v8559_v56, 16  ;;  %v8564_v9 = vshrl.u32 %v8559_v56, 16  ;;  %v8845_v30 = vpack.c.bf16 %v17833_v5, %v8821_v49  ;;  %v14609_v46 = vld [vmem:[%s18765_s6] ss:$8 sps:$4 sm:$0xff]  }
0x22cd   :  { %12476 = vmatprep.mubr.msk.bf16.mxu1 %vm18847_vm14, %v8532_v36  ;;  %v8578_v59 = vshll.u32 %v8560_v28, 16  ;;  %v8576_v12 = vshrl.u32 %v8560_v28, 16  ;;  %v8856_v33 = vrot.slane %v8846_v29, 1  ;;  %v14622_v29 = vld [vmem:[%s18765_s6 + $0x54] ss:$8 sps:$4 sm:$0xff]   ;;  %vm9273_vm14 = vcmask 1047680  }
0x22ce   :  { %8807 = vmatmul.mubr.bf16.vlgmr.msra.gmra.mrb[136].mxu1 %v8531_v53  ;;  %v8568_v6 = vrot.slane %v8566_v57, 1  ;;  %v8853_v35 = vrot.slane %v8845_v30, 1  ;;  %v14635_v30 = vld [vmem:[%s18765_s6 + $0x240] ss:$8 sps:$4 sm:$0xff]  }
0x22cf   :  { %v17838_v63 = vld [vmem:[#allocation5 + $0x20] sm:$0xff]  ;;  %v8580_v58 = vrot.slane %v8578_v59, 1 }
0x22d0   :  { %v8508_v60 = vld [vmem:[#allocation5 + $0x28] sm:$0xff]  ;;  %v8569_v19 = vor.u32 %v8568_v6, %v8564_v9 }
0x22d1   :  { %v8509_v20 = vld [vmem:[#allocation5 + $0x30] sm:$0x3f]  ;;  %v8581_v41 = vor.u32 %v8580_v58, %v8576_v12 }
0x22d2   :  { %v8510_v62 = vld [vmem:[#allocation5 + $0x38] sm:$0x3f]  ;;  %v8537_v2 = vld [vmem:[#allocation5 + $0x30] sm:$0x7f]  ;;  %v8533_v17 = vpack.c.bf16 %v8509_v20, %v17838_v63 }
0x22d3   :  { %v8534_v1 = vpack.c.bf16 %v8510_v62, %v8508_v60  ;;  %v8561_v3 = vpack.c.bf16 %v8537_v2, %v17838_v63  ;;  %v8538_v18 = vld [vmem:[#allocation5 + $0x38] sm:$0x7f]  ;;  %v8823_v13 = vld [vmem:[#allocation5 + $0x30] sm:$0xff] }
0x22d4   :  { %v8562_v8 = vpack.c.bf16 %v8538_v18, %v8508_v60  ;;  %v8824_v51 = vld [vmem:[#allocation5 + $0x38] sm:$0xff]  ;;  %v8847_v21 = vpack.c.bf16 %v8823_v13, %v17838_v63 }
0x22d5   :  { %12477 = vmatprep.mubr.msk.bf16.mxu1 %vm18848_vm5, %v8534_v1  ;;  %v8571_v0 = vshll.u32 %v8561_v3, 16  ;;  %v8848_v26 = vpack.c.bf16 %v8824_v51, %v8508_v60  ;;  %v8587_v7 = vshrl.u32 %v8561_v3, 16  ;;  %vm18855_vm5 = vmmov %vm18852_vm8 }
0x22d6   :  { %8814 = vmatmul.mubr.bf16.gmra.mrb[140].mxu1 %v8533_v17  ;;  %v8583_v14 = vshll.u32 %v8562_v8, 16  ;;  %v8590_v61 = vshrl.u32 %v8562_v8, 16  ;;  %v8854_v42 = vrot.slane %v8847_v21, 1 }
0x22d7   :  { %v8573_v55 = vrot.slane %v8571_v0, 1  ;;  %v8857_v16 = vrot.slane %v8848_v26, 1  ;;  %13865 = vmatprep.mubr.msk.bf16.mxu1 %vm18852_vm8, %v14609_v46  ;;  %v14619_v26 = vld [vmem:[%s18765_s6 + $0x44] ss:$8 sps:$4 sm:$0xff]   ;;  %v14639_v46 = vld [vmem:[%s18765_s6 + $0x260] ss:$8 sps:$4 sm:$0xff]  }
0x22d8   :  { %v8585_v22 = vrot.slane %v8583_v14, 1  ;;  %v8855_v54 = vsel %vm4869_vm12, %v8853_v35, %v8854_v42  ;;  %v14637_v35 = vld [vmem:[%s18765_s6 + $0x250] ss:$8 sps:$4 sm:$0xff]  }
0x22d9   :  { %v8574_v48 = vsel %vm4448_vm4, %v8569_v19, %v8573_v55  ;;  %v8589_v32 = vor.u32 %v8587_v7, %v8573_v55  ;;  %v8858_v34 = vsel %vm4869_vm12, %v8856_v33, %v8857_v16  ;;  %v14620_v7 = vld [vmem:[%s18765_s6 + $0x50] ss:$8 sps:$4 sm:$0xff]  }
0x22da   :  { %v8586_v39 = vsel %vm4448_vm4, %v8581_v41, %v8585_v22  ;;  %v8592_v23 = vor.u32 %v8590_v61, %v8585_v22  ;;  %v14626_v33 = vld [vmem:[%s18765_s6 + $0x70] ss:$8 sps:$4 sm:$0xff]  }
0x22db   :  { %12464 = vmatprep.mubr.msk.bf16.mxu0 %vm18849_vm7, %v8586_v39  ;;  %v14613_v39 = vld [vmem:[%s18765_s6 + $0x24] ss:$8 sps:$4 sm:$0xff]   ;;  %vm18856_vm7 = vmmov %vm18855_vm5 }
0x22dc   :  { %8694 = vmatmul.mubr.bf16.vlgmr.msra.gmra.mrb[164].mxu0 %v8574_v48 }
0x22dd   :  { %8928 = vmatpush1.bf16.msra.mxu0 %v14599_v50  ;;  %12465 = vmatprep.mubr.msk.bf16.mxu0 %vm18850_vm15, %v8592_v23  ;;  %v14610_v23 = vld [vmem:[%s18765_s6 + $0x10] ss:$8 sps:$4 sm:$0xff]   ;;  %vm18857_vm15 = vmmov %vm18855_vm5 }
0x22de   :  { %8929 = vmatprep.subr.bf16.mxu0 %v14849_v4 }
0x22e1   :  { %8930 = vmatpush1.bf16.msra.mxu0 %v14600_v27  ;;  %v14617_v27 = vld [vmem:[%s18765_s6 + $0x40] ss:$8 sps:$4 sm:$0xff]  }
0x22e2   :  { %8931 = vmatprep.subr.bf16.mxu0 %v14849_v4 }
0x22e4   :  { %8701 = vmatmul.mubr.bf16.gmra.mrb[168].mxu0 %v8589_v32  ;;  %v14628_v32 = vld [vmem:[%s18765_s6 + $0x74] ss:$8 sps:$4 sm:$0xff]  }
0x22e5   :  { %8932 = vmatpush1.bf16.msra.mxu0 %v14601_v31  ;;  %12488 = vmatprep.mubr.msk.bf16.mxu0 %vm18841_vm1, %v8858_v34  ;;  %v14623_v31 = vld [vmem:[%s18765_s6 + $0x60] ss:$8 sps:$4 sm:$0xff]   ;;  %v14631_v34 = vld [vmem:[%s18765_s6 + $0x84] ss:$8 sps:$4 sm:$0xff]   ;;  %vm18858_vm1 = vmmov %vm18855_vm5 }
0x22e6   :  { %8933 = vmatprep.subr.bf16.mxu0 %v14849_v4 }
0x22e9   :  { %8934 = vmatpush1.bf16.msra.mxu0 %v14602_v37  ;;  %v14629_v37 = vld [vmem:[%s18765_s6 + $0x80] ss:$8 sps:$4 sm:$0xff]  }
0x22ea   :  { %8935 = vmatprep.subr.bf16.mxu0 %v14849_v4 }
0x22ed   :  { %8936 = vmatpush1.bf16.msra.mxu0 %v14603_v38  ;;  %v14634_v38 = vld [vmem:[%s18765_s6 + $0x94] ss:$8 sps:$4 sm:$0xff]  }
0x22ee   :  { %8937 = vmatprep.subr.bf16.mxu0 %v14849_v4 }
0x22f1   :  { %8938 = vmatpush1.bf16.msra.mxu0 %v14604_v11  ;;  %v14632_v11 = vld [vmem:[%s18765_s6 + $0x90] ss:$8 sps:$4 sm:$0xff]  }
0x22f2   :  { %8939 = vmatprep.subr.bf16.mxu0 %v14849_v4 }
0x22f5   :  { %8940 = vmatpush1.bf16.msra.mxu0 %v14605_v15  ;;  %v17951_v15 = vld [vmem:[#allocation6] sm:$0xff] }
0x22f6   :  { %8941 = vmatprep.subr.bf16.mxu0 %v14849_v4 }
0x22f9   :  { %8942 = vmatpush1.bf16.msra.mxu0 %v14606_v44 }
0x22fa   :  { %8943 = vmatprep.subr.bf16.mxu0 %v14849_v4 }
0x22fd   :  { %8944 = vmatpush1.bf16.msra.mxu0 %v14607_v47 }
0x22fe   :  { %8945 = vmatprep.subr.bf16.mxu0 %v14849_v4 }
0x2301   :  { %8946 = vmatpush1.bf16.msra.mxu0 %v14608_v25 }
0x2302   :  { %12964 = vmatprep.subr.bf16.mxu0 %v14635_v30 }
0x2304   :  { %8960 = vmatmul.mubr.bf16.vlgmr.msra.gmra.mrb[172].mxu0 %v8855_v54  ;;  %v14638_v54 = vld [vmem:[%s18765_s6 + $0x1d0] ss:$8 sps:$4 sm:$0xff]  }
0x2305   :  { %12489 = vmatprep.mubr.msk.bf16.mxu0 %vm18851_vm2, %v8857_v16  ;;  %v14625_v16 = vld [vmem:[%s18765_s6 + $0x64] ss:$8 sps:$4 sm:$0xff]   ;;  %vm18859_vm2 = vmmov %vm18858_vm1 }
0x230c   :  { %8967 = vmatmul.mubr.bf16.gmra.mrb[176].mxu0 %v8854_v42  ;;  %v14636_v42 = vld [vmem:[%s18765_s6 + $0x1c0] ss:$8 sps:$4 sm:$0xff]  }
0x230d   :  { %12965 = vmatpush3.bf16.msra.mxu0 %v14636_v42 }
0x230e   :  { %12966 = vmatprep.subr.bf16.mxu0 %v14637_v35 }
0x2311   :  { %12967 = vmatpush3.bf16.msra.mxu0 %v14638_v54 }
0x2312   :  { %12968 = vmatprep.subr.bf16.mxu0 %v14639_v46 }
0x23a1   :  { %v8808_v36 = vpop.f32.mrb[136].mxu1 }
0x23a2   :  { %v8810_v10 = vpop.f32.mrb[137].mxu1 }
0x23a3   :  { %v8811_v5 = vpop.f32.mrb[138].mxu1 }
0x23a4   :  { %v8812_v52 = vpop.f32.mrb[139].mxu1  ;;  %v14641_v5 = vld [vmem:[%s18765_s6 + $0x270] ss:$8 sps:$4 sm:$0xff]  }
0x23a9   :  { %v8815_v53 = vpop.f32.mrb[140].mxu1 }
0x23aa   :  { %v8817_v56 = vpop.f32.mrb[141].mxu1 }
0x23ab   :  { %v8818_v28 = vpop.f32.mrb[142].mxu1  ;;  %v14642_v56 = vld [vmem:[%s18765_s6 + $0x1f0] ss:$8 sps:$4 sm:$0xff]  }
0x23ac   :  { %v8819_v57 = vpop.f32.mrb[143].mxu1 }
0x23af   :  { %v8695_v59 = vpop.f32.mrb[164].mxu0 }
0x23b0   :  { %v8809_v60 = vadd.f32 %v8808_v36, %v8695_v59  ;;  %v8697_v62 = vpop.f32.mrb[165].mxu0  ;;  %v14640_v36 = vld [vmem:[%s18765_s6 + $0x1e0] ss:$8 sps:$4 sm:$0xff]  }
0x23b1   :  { %v8698_v63 = vpop.f32.mrb[166].mxu0  ;;  %12969 = vmatpush3.bf16.msra.mxu0 %v14640_v36 }
0x23b2   :  { %v8699_v1 = vpop.f32.mrb[167].mxu0  ;;  %12970 = vmatprep.subr.bf16.mxu0 %v14641_v5  ;;  %v14643_v63 = vld [vmem:[%s18765_s6 + $0x280] ss:$8 sps:$4 sm:$0xff]  }
0x23b5   :  { %12971 = vmatpush3.bf16.msra.mxu0 %v14642_v56 }
0x23b6   :  { %12972 = vmatprep.subr.bf16.mxu0 %v14643_v63 }
0x23b7   :  { %v8702_v20 = vpop.f32.mrb[168].mxu0 }
0x23b8   :  { %v8816_v2 = vadd.f32 %v8815_v53, %v8702_v20  ;;  %v8704_v17 = vpop.f32.mrb[169].mxu0  ;;  %v14644_v20 = vld [vmem:[%s18765_s6 + $0x200] ss:$8 sps:$4 sm:$0xff]  }
0x23b9   :  { %v8705_v3 = vpop.f32.mrb[170].mxu0  ;;  %12973 = vmatpush3.bf16.msra.mxu0 %v14644_v20 }
0x23ba   :  { %v8706_v18 = vpop.f32.mrb[171].mxu0  ;;  %v14645_v3 = vld [vmem:[%s18765_s6 + $0x290] ss:$8 sps:$4 sm:$0xff]  }
0x23bb   :  { %v14646_v18 = vld [vmem:[%s18765_s6 + $0x2c0] ss:$8 sps:$4 sm:$0xff]   ;;  %12974 = vmatprep.subr.bf16.mxu0 %v14645_v3 }
0x23d7   :  { %v8961_v6 = vpop.f32.mrb[172].mxu0 }
0x23d8   :  { %v8974_v8 = vadd.f32 %v8961_v6, %v8809_v60  ;;  %v8963_v58 = vpop.f32.mrb[173].mxu0 }
0x23d9   :  { %v8964_v0 = vpop.f32.mrb[174].mxu0 }
0x23da   :  { %v8965_v9 = vpop.f32.mrb[175].mxu0  ;;  %v8976_v14 = vadd.f32 %v8974_v8, %v17657_v40  ;;  %v14611_v40 = vld [vmem:[%s18765_s6 + $0x20] ss:$8 sps:$4 sm:$0xff]   ;;  %v14647_v8 = vld [vmem:[%s18765_s6 + $0x210] ss:$8 sps:$4 sm:$0xff]  }
0x23db   :  { %12975 = vmatpush3.bf16.msra.mxu0 %v14647_v8  ;;  %v14659_v8 = vld [vmem:[%s18765_s6 + $0x1a0] ss:$8 sps:$4 sm:$0xff]  }
0x23dc   :  { %v8978_v48 = vmax.f32 %v8976_v14, 0.0 }
0x23df   :  { %v8968_v12 = vpop.f32.mrb[176].mxu0 }
0x23e0   :  { %v8975_v19 = vadd.f32 %v8968_v12, %v8816_v2  ;;  %v8970_v55 = vpop.f32.mrb[177].mxu0 }
0x23e1   :  { %v8971_v41 = vpop.f32.mrb[178].mxu0  ;;  %v14648_v55 = vld [vmem:[%s18765_s6 + $0x2a0] ss:$8 sps:$4 sm:$0xff]  }
0x23e2   :  { %v8977_v22 = vadd.f32 %v8975_v19, %v17661_v45  ;;  %v8972_v61 = vpop.f32.mrb[179].mxu0  ;;  %v14616_v45 = vld [vmem:[%s18765_s6 + $0x34] ss:$8 sps:$4 sm:$0xff]   ;;  %v14649_v41 = vld [vmem:[%s18765_s6 + $0x2d0] ss:$8 sps:$4 sm:$0xff]   ;;  %12976 = vmatprep.subr.bf16.mxu0 %v14648_v55 }
0x23e3   :  { %v14650_v61 = vld [vmem:[%s18765_s6 + $0x220] ss:$8 sps:$4 sm:$0xff]  }
0x23e4   :  { %v8979_v50 = vmax.f32 %v8977_v22, 0.0  ;;  %12977 = vmatpush3.bf16.msra.mxu0 %v14650_v61 }
0x23e6   :  { %v9018_v51 = vpack.c.bf16 %v8979_v50, %v8978_v48  ;;  %v14651_v50 = vld [vmem:[%s18765_s6 + $0x2b0] ss:$8 sps:$4 sm:$0xff]  }
0x23e7   :  { %12978 = vmatprep.subr.bf16.mxu0 %v14651_v50 }
0x23e8   :  { %13863 = vmatprep.subr.bf16.mxu1 %v9018_v51 }
0x23e9   :  { %13864 = vmatpush3.bf16.msra.mxu1 %v9018_v51  ;;  %v14652_v51 = vld [vmem:[%s18765_s6 + $0x230] ss:$8 sps:$4 sm:$0xff]  }
0x23ea   :  { %9182 = vmatprep.subr.bf16.mxu1 %v14613_v39  ;;  %12979 = vmatpush3.bf16.msra.mxu0 %v14652_v51  ;;  %v14653_v39 = vld [vmem:[%s18765_s6 + $0x120] ss:$8 sps:$4 sm:$0xff]  }
0x23eb   :  { %13003 = vmatprep.subr.bf16.mxu0 %v14653_v39  ;;  %v14662_v39 = vld [vmem:[%s18765_s6 + $0x1b0] ss:$8 sps:$4 sm:$0xff]  }
0x23ec   :  { %13866 = vmatmul.mubr.msk.bf16.vlgmr.msra.gmra.mrb[144].mxu1 %vm18853_vm10, %v14610_v23 }
0x23ed   :  { %9183 = vmatpush1.bf16.msra.mxu1 %v14611_v40  ;;  %9214 = vmatprep.mubr.bf16.mxu1 %v14849_v4 }
0x23ee   :  { %9184 = vmatprep.subr.bf16.mxu1 %v14616_v45 }
0x23f1   :  { %9185 = vmatpush1.bf16.msra.mxu1 %v14614_v24 }
0x23f2   :  { %9186 = vmatprep.subr.bf16.mxu1 %v14619_v26 }
0x23f5   :  { %9187 = vmatpush1.bf16.msra.mxu1 %v14617_v27 }
0x23f6   :  { %9188 = vmatprep.subr.bf16.mxu1 %v14622_v29 }
0x23f9   :  { %9189 = vmatpush1.bf16.msra.mxu1 %v14620_v7 }
0x23fa   :  { %9190 = vmatprep.subr.bf16.mxu1 %v14625_v16 }
0x23fd   :  { %9191 = vmatpush1.bf16.msra.mxu1 %v14623_v31 }
0x23fe   :  { %9192 = vmatprep.subr.bf16.mxu1 %v14628_v32 }
0x2401   :  { %9193 = vmatpush1.bf16.msra.mxu1 %v14626_v33 }
0x2402   :  { %9194 = vmatprep.subr.bf16.mxu1 %v14631_v34 }
0x2405   :  { %9195 = vmatpush1.bf16.msra.mxu1 %v14629_v37 }
0x2406   :  { %9196 = vmatprep.subr.bf16.mxu1 %v14634_v38 }
0x2409   :  { %9197 = vmatpush1.bf16.msra.mxu1 %v14632_v11 }
0x240a   :  { %13869 = vmatprep.subr.bf16.mxu1 %v17951_v15 }
0x24bf   :  { %v13867_v44 = vpop.f32.mrb[144].mxu1 }
0x24c0   :  { %v9069_v13 = vpop.f32.mrb[145].mxu1 }
0x24c1   :  { %v13868_v47 = vpop.f32.mrb[146].mxu1 }
0x24c2   :  { %v9101_v49 = vpack.c.bf16 %v13868_v47, %v13867_v44  ;;  %v9072_v21 = vpop.f32.mrb[147].mxu1 }
0x24c3   :  { %v9100_v25 = vpack.c.bf16 %v9072_v21, %v9069_v13 }
0x24c5   :  { %9215 = vmatmul.mubr.bf16.vlgmr.msra.gmra.mrb[148].mxu1 %v9100_v25 }
0x24c6   :  { %9224 = vmatprep.mubr.bf16.mxu1 %v14849_v4  ;;  %13870 = vmatpush3.bf16.msra.mxu1 %v14646_v18 }
0x24c7   :  { %13871 = vmatprep.subr.bf16.mxu1 %v17951_v15 }
0x24ca   :  { %13872 = vmatpush3.bf16.msra.mxu1 %v14649_v41 }
0x24cb   :  { %13885 = vmatprep.subr.bf16.mxu1 %v17951_v15 }
0x24cd   :  { %9225 = vmatmul.mubr.bf16.gmra.mrb[152].mxu1 %v9101_v49 }
0x24ce   :  { %13873 = vmatprep.mubr.msk.bf16.mxu1 %vm18854_vm11, %v17951_v15 }
0x2598   :  { %v9216_v10 = vpop.f32.mrb[148].mxu1 }
0x2599   :  { %v9240_v52 = vrot.slane %v9216_v10, 7  ;;  %v9218_v53 = vpop.f32.mrb[149].mxu1 }
0x259a   :  { %v9220_v28 = vpop.f32.mrb[150].mxu1  ;;  %v9241_v60 = vrot.slane %v9218_v53, 7 }
0x259b   :  { %v9242_v57 = vrot.slane %v9220_v28, 7  ;;  %9246 = vrot.lane.b32.xlu0 %v9240_v52, %s14846_s15  ;;  %v9222_v59 = vpop.f32.mrb[151].mxu1 }
0x259c   :  { %v9244_v62 = vrot.slane %v9222_v59, 7 }
0x259d   :  { %v9243_v1 = vsel %vm9239_vm13, %v9240_v52, %v9242_v57 }
0x259e   :  { %9250 = vrot.lane.b32.xlu1 %v9243_v1, %s14846_s15  ;;  %v9245_v2 = vsel %vm9239_vm13, %v9241_v60, %v9244_v62 }
0x259f   :  { %9248 = vrot.lane.b32.xlu0 %v9241_v60, %s14846_s15 }
0x25a0   :  { %v9226_v17 = vpop.f32.mrb[152].mxu1 }
0x25a1   :  { %v9228_v6 = vpop.f32.mrb[153].mxu1  ;;  %v9284_v0 = vrot.slane %v9226_v17, 7 }
0x25a2   :  { %9252 = vrot.lane.b32.xlu1 %v9245_v2, %s14846_s15  ;;  %v9230_v58 = vpop.f32.mrb[154].mxu1  ;;  %v9285_v14 = vrot.slane %v9228_v6, 7 }
0x25a3   :  { %v9286_v9 = vrot.slane %v9230_v58, 7  ;;  %9256 = vrot.lane.b32.xlu0 %v9244_v62, %s14846_s15  ;;  %v9232_v12 = vpop.f32.mrb[155].mxu1 }
0x25a4   :  { %v9288_v19 = vrot.slane %v9232_v12, 7 }
0x25a5   :  { %v9287_v22 = vsel %vm9239_vm13, %v9284_v0, %v9286_v9 }
0x25a6   :  { %9292 = vrot.lane.b32.xlu1 %v9285_v14, %s14846_s15  ;;  %v9289_v48 = vsel %vm9239_vm13, %v9285_v14, %v9288_v19 }
0x25a7   :  { %9254 = vrot.lane.b32.xlu0 %v9242_v57, %s14846_s15 }
0x25aa   :  { %9290 = vrot.lane.b32.xlu1 %v9284_v0, %s14846_s15 }
0x25ab   :  { %9296 = vrot.lane.b32.xlu0 %v9289_v48, %s14846_s15 }
0x25ae   :  { %9300 = vrot.lane.b32.xlu1 %v9288_v19, %s14846_s15 }
0x25af   :  { %9294 = vrot.lane.b32.xlu0 %v9287_v22, %s14846_s15 }
0x25b2   :  { %9298 = vrot.lane.b32.xlu1 %v9286_v9, %s14846_s15 }
0x260d   :  { %v9247_v23 = vpop.permute.xlu0 %9246 }
0x260e   :  { %9270 = vst.msk [vmem:[#allocation6] sm:$0xfe] %vm6479_vm9, %v9247_v23 }
0x2610   :  { %v9251_v40 = vpop.permute.xlu1 %9250 }
0x2611   :  { %9274 = vst.msk [vmem:[#allocation6 + $0x18] sm:$0xff] %vm9273_vm14, %v9251_v40  ;;  %v9249_v45 = vpop.permute.xlu0 %9248 }
0x2612   :  { %v9258_v24 = vsel %vm18855_vm5, %v9247_v23, %v9249_v45  ;;  %9272 = vst.msk [vmem:[#allocation6 + $0x10] sm:$0xfe] %vm6481_vm0, %v9249_v45 }
0x2613   :  { %9271 = vst [vmem:[#allocation6 + $0x8] sm:$0xfe] %v9258_v24  ;;  %v14665_v24 = vld [vmem:[%s18765_s6 + $0x360] ss:$8 sps:$4 sm:$0xff]  }
0x2614   :  { %v9253_v26 = vpop.permute.xlu1 %9252 }
0x2615   :  { %v18037_v27 = vsel %vm18856_vm7, %v9251_v40, %v9253_v26  ;;  %9276 = vst.msk [vmem:[#allocation6 + $0x28] sm:$0xff] %vm18857_vm15, %v9253_v26  ;;  %v9257_v29 = vpop.permute.xlu0 %9256  ;;  %v9386_v49 = vld [vmem:[#allocation6] sm:$0xfe] }
0x2616   :  { %9279 = vst.msk [vmem:[#allocation6 + $0x40] sm:$0x1] %vm6485_vm3, %v9257_v29 }
0x2618   :  { %v9293_v7 = vpop.permute.xlu1 %9292  ;;  %v18046_v38 = vld [vmem:[#allocation6 + $0x18] sm:$0xff] }
0x2619   :  { %9316 = vst.msk [vmem:[#allocation6 + $0x58] sm:$0xfe] %vm6481_vm0, %v9293_v7  ;;  %v9255_v16 = vpop.permute.xlu0 %9254  ;;  %v9388_v37 = vld [vmem:[#allocation6 + $0x10] sm:$0xfe]  ;;  %vm18860_vm0 = vmmov %vm18858_vm1  ;;  %v9428_v30 = vpack.c.bf16 %v18046_v38, %v9386_v49 }
0x261a   :  { %v9260_v31 = vsel %vm18858_vm1, %v9255_v16, %v9257_v29  ;;  %9277 = vst.msk [vmem:[#allocation6 + $0x30] sm:$0x1] %vm6483_vm6, %v9255_v16  ;;  %v9387_v32 = vld [vmem:[#allocation6 + $0x8] sm:$0xfe]  ;;  %v9964_v21 = vld [vmem:[#allocation6 + $0x10] sm:$0xfc] }
0x261b   :  { %9278 = vst [vmem:[#allocation6 + $0x38] sm:$0x1] %v9260_v31  ;;  %v9429_v47 = vpack.c.bf16 %v18037_v27, %v9387_v32  ;;  %v9437_v57 = vshll.u32 %v9428_v30, 16  ;;  %v9435_v48 = vshrl.u32 %v9428_v30, 16 }
0x261c   :  { %v9291_v33 = vpop.permute.xlu1 %9290  ;;  %v18044_v34 = vld [vmem:[#allocation6 + $0x28] sm:$0xff] }
0x261d   :  { %v9302_v11 = vsel %vm18859_vm2, %v9291_v33, %v9293_v7  ;;  %9314 = vst.msk [vmem:[#allocation6 + $0x48] sm:$0xfe] %vm6479_vm9, %v9291_v33  ;;  %v9297_v44 = vpop.permute.xlu0 %9296  ;;  %v9430_v13 = vpack.c.bf16 %v18044_v34, %v9388_v37  ;;  %v10006_v42 = vpack.c.bf16 %v18044_v34, %v9964_v21  ;;  %v9331_v54 = vld [vmem:[#allocation6 + $0x40] sm:$0xff]  ;;  %vm18861_vm9 = vmmov %vm18860_vm0  ;;  %v9449_v56 = vshll.u32 %v9429_v47, 16  ;;  %v14655_v33 = vld [vmem:[%s18765_s6 + $0x130] ss:$8 sps:$4 sm:$0xff]  }
0x261e   :  { %9315 = vst [vmem:[#allocation6 + $0x50] sm:$0xfe] %v9302_v11  ;;  %9319 = vst.msk [vmem:[#allocation6 + $0x70] sm:$0xff] %vm18860_vm0, %v9297_v44  ;;  %v9439_v14 = vrot.slane %v9437_v57, 1  ;;  %v9447_v55 = vshrl.u32 %v9429_v47, 16 }
0x261f   :  { %v9461_v25 = vshll.u32 %v9430_v13, 16  ;;  %v9459_v53 = vshrl.u32 %v9430_v13, 16  ;;  %v10025_v59 = vrot.slane %v10006_v42, 1  ;;  %v9451_v9 = vrot.slane %v9449_v56, 1  ;;  %v14654_v7 = vld [vmem:[%s18765_s6 + $0xa0] ss:$8 sps:$4 sm:$0xff]  }
0x2620   :  { %v9301_v35 = vpop.permute.xlu1 %9300  ;;  %v9334_v46 = vld [vmem:[#allocation6 + $0x58] sm:$0xff]  ;;  %v9440_v29 = vor.u32 %v9439_v14, %v9435_v48  ;;  %v9324_v14 = vld [vmem:[#allocation6 + $0x8] sm:$0xff]  ;;  %v9325_v48 = vld [vmem:[#allocation6 + $0x10] sm:$0xff] }
0x2621   :  { %9322 = vst.msk [vmem:[#allocation6 + $0x88] sm:$0x1] %vm6485_vm3, %v9301_v35  ;;  %v9295_v36 = vpop.permute.xlu0 %9294  ;;  %v18056_v10 = vpack.c.bf16 %v9334_v46, %v9331_v54  ;;  %v9463_v5 = vrot.slane %v9461_v25, 1  ;;  %v9329_v1 = vld [vmem:[#allocation6 + $0x30] sm:$0xff]  ;;  %vm18862_vm3 = vmmov %vm18860_vm0  ;;  %v9452_v40 = vor.u32 %v9451_v9, %v9447_v55  ;;  %v14663_v9 = vld [vmem:[%s18765_s6 + $0x160] ss:$8 sps:$4 sm:$0xff]  }
0x2622   :  { %v18059_v52 = vsel %vm18861_vm9, %v9295_v36, %v9297_v44  ;;  %9317 = vst.msk [vmem:[#allocation6 + $0x60] sm:$0xff] %vm9273_vm14, %v9295_v36  ;;  %v9330_v3 = vld [vmem:[#allocation6 + $0x38] sm:$0xff] }
0x2623   :  { %v9466_v28 = vshll.u32 %v18056_v10, 16  ;;  %v10026_v60 = vrot.slane %v18056_v10, 1  ;;  %v9464_v63 = vor.u32 %v9463_v5, %v9459_v53  ;;  %v9486_v16 = vshrl.u32 %v18056_v10, 16  ;;  %v14657_v5 = vld [vmem:[%s18765_s6 + $0x140] ss:$8 sps:$4 sm:$0xff]  }
0x2624   :  { %v9299_v62 = vpop.permute.xlu1 %9298  ;;  %v9332_v20 = vld [vmem:[#allocation6 + $0x48] sm:$0xff] }
0x2625   :  { %v9304_v2 = vsel %vm18862_vm3, %v9299_v62, %v9301_v35  ;;  %9320 = vst.msk [vmem:[#allocation6 + $0x78] sm:$0x1] %vm6483_vm6, %v9299_v62  ;;  %v9468_v17 = vrot.slane %v9466_v28, 1  ;;  %v9333_v18 = vld [vmem:[#allocation6 + $0x50] sm:$0xff]  ;;  %v18066_v6 = vpack.c.bf16 %v9332_v20, %v9329_v1  ;;  %v18074_v58 = vsel %vm4869_vm12, %v10025_v59, %v10026_v60  ;;  %v14658_v1 = vld [vmem:[%s18765_s6 + $0xc0] ss:$8 sps:$4 sm:$0xff]  }
0x2626   :  { %9321 = vst [vmem:[#allocation6 + $0x80] sm:$0x1] %v9304_v2  ;;  %v18076_v0 = vpack.c.bf16 %v9333_v18, %v9330_v3  ;;  %vm18863_vm6 = vcmask 261120   ;;  %v18082_v22 = vld [vmem:[#allocation6 + $0x70] sm:$0xff] }
0x2627   :  { %v9469_v12 = vsel %vm4448_vm4, %v9464_v63, %v9468_v17  ;;  %v9442_v19 = vshll.u32 %v18066_v6, 16  ;;  %v9488_v13 = vor.u32 %v9486_v16, %v9468_v17  ;;  %v14656_v35 = vld [vmem:[%s18765_s6 + $0xb0] ss:$8 sps:$4 sm:$0xff]   ;;  %vm18864_vm8 = vmmov %vm18863_vm6  ;;  %v9470_v53 = vshrl.u32 %v18066_v6, 16 }
0x2628   :  { %13874 = vmatmul.mubr.msk.bf16.vlgmr.msra.gmra.mrb[156].mxu1 %vm18863_vm6, %v9469_v12  ;;  %v9454_v41 = vshll.u32 %v18076_v0, 16  ;;  %v9391_v61 = vld [vmem:[#allocation6 + $0x88] sm:$0x7f]  ;;  %v9478_v46 = vshrl.u32 %v18076_v0, 16  ;;  %v14660_v3 = vld [vmem:[%s18765_s6 + $0x150] ss:$8 sps:$4 sm:$0xff]   ;;  %vm18865_vm10 = vmmov %vm18863_vm6 }
0x2629   :  { %v9444_v50 = vrot.slane %v9442_v19, 1  ;;  %13877 = vmatprep.mubr.msk.bf16.mxu1 %vm18854_vm11, %v17951_v15  ;;  %v9433_v51 = vpack.c.bf16 %v9391_v61, %v18082_v22  ;;  %13886 = vmatpush3.bf16.msra.mxu1 %v14659_v8  ;;  %v9967_v23 = vld [vmem:[#allocation6 + $0x88] sm:$0xff]  ;;  %v18103_v37 = vld [vmem:[#allocation6 + $0x60] sm:$0xff]  ;;  %v14661_v8 = vld [vmem:[%s18765_s6 + $0xd0] ss:$8 sps:$4 sm:$0xff]   ;;  %v9378_v61 = vpack.c.bf16 %v18037_v27, %v9324_v14 }
0x262a   :  { %v9456_v45 = vrot.slane %v9454_v41, 1  ;;  %13887 = vmatprep.subr.bf16.mxu1 %v17951_v15  ;;  %v10009_v26 = vpack.c.bf16 %v9967_v23, %v18082_v22  ;;  %v14664_v19 = vld [vmem:[%s18765_s6 + $0xe0] ss:$8 sps:$4 sm:$0xff]   ;;  %v14667_v41 = vld [vmem:[%s18765_s6 + $0x170] ss:$8 sps:$4 sm:$0xff]   ;;  %vm18866_vm14 = vmmov %vm18863_vm6 }
0x262b   :  { %v9490_v31 = vshll.u32 %v9433_v51, 16  ;;  %v9445_v44 = vsel %vm4448_vm4, %v9440_v29, %v9444_v50  ;;  %v9472_v63 = vor.u32 %v9470_v53, %v9444_v50  ;;  %v9500_v17 = vshrl.u32 %v9433_v51, 16  ;;  %v14666_v50 = vld [vmem:[%s18765_s6 + $0x2e0] ss:$8 sps:$4 sm:$0xff]   ;;  %v14668_v23 = vld [vmem:[%s18765_s6 + $0xf0] ss:$8 sps:$4 sm:$0xff]   ;;  %vm18867_vm5 = vmmov %vm18863_vm6 }
0x262c   :  { %v9457_v32 = vsel %vm4448_vm4, %v9452_v40, %v9456_v45  ;;  %v9389_v11 = vld [vmem:[#allocation6 + $0x78] sm:$0x7f]  ;;  %v18108_v30 = vrot.slane %v10009_v26, 1  ;;  %v9480_v57 = vor.u32 %v9478_v46, %v9456_v45  ;;  %v9379_v51 = vpack.c.bf16 %v18044_v34, %v9325_v48  ;;  %v14671_v40 = vld [vmem:[%s18765_s6 + $0x180] ss:$8 sps:$4 sm:$0xff]   ;;  %vm18868_vm7 = vmmov %vm18867_vm5 }
0x262d   :  { %9658 = vmatprep.mubr.bf16.mxu0 %v9457_v32  ;;  %v9492_v47 = vrot.slane %v9490_v31, 1  ;;  %v9390_v49 = vld [vmem:[#allocation6 + $0x80] sm:$0x7f]  ;;  %v9431_v21 = vpack.c.bf16 %v9389_v11, %v18103_v37  ;;  %13888 = vmatpush3.bf16.msra.mxu1 %v14662_v39  ;;  %v14669_v39 = vld [vmem:[%s18765_s6 + $0x370] ss:$8 sps:$4 sm:$0xff]   ;;  %vm18869_vm15 = vmmov %vm18867_vm5  ;;  %vm18876_vm6 = vcmask 523264  }
0x262e   :  { %9659 = vmatmul.mubr.bf16.vlgmr.msra.gmra.mrb[180].mxu0 %v9445_v44  ;;  %v9432_v25 = vpack.c.bf16 %v9390_v49, %v18059_v52  ;;  %13042 = vmatprep.subr.bf16.mxu1 %v14665_v24  ;;  %v18126_v28 = vsel %vm4869_vm12, %v10026_v60, %v18108_v30  ;;  %v14670_v34 = vld [vmem:[%s18765_s6 + $0x2f0] ss:$8 sps:$4 sm:$0xff]   ;;  %v14673_v45 = vld [vmem:[%s18765_s6 + $0x380] ss:$8 sps:$4 sm:$0xff]   ;;  %v10023_v49 = vrot.slane %v18076_v0, 1  ;;  %vm18870_vm1 = vmmov %vm18867_vm5 }
0x262f   :  { %13004 = vmatpush3.bf16.msra.mxu0 %v14654_v7  ;;  %v9493_v42 = vsel %vm4448_vm4, %v9488_v13, %v9492_v47  ;;  %v9474_v54 = vshll.u32 %v9431_v21, 16  ;;  %v9502_v18 = vor.u32 %v9500_v17, %v9492_v47  ;;  %v9494_v12 = vshrl.u32 %v9431_v21, 16  ;;  %v14672_v24 = vld [vmem:[%s18765_s6 + $0x100] ss:$8 sps:$4 sm:$0xff]   ;;  %v14675_v26 = vld [vmem:[%s18765_s6 + $0x190] ss:$8 sps:$4 sm:$0xff]   ;;  %vm18871_vm2 = vmmov %vm18870_vm1 }
0x2630   :  { %13878 = vmatmul.mubr.msk.bf16.gmra.mrb[160].mxu1 %vm18864_vm8, %v9493_v42  ;;  %13005 = vmatprep.subr.bf16.mxu0 %v14655_v33  ;;  %v9482_v36 = vshll.u32 %v9432_v25, 16  ;;  %v9497_v62 = vshrl.u32 %v9432_v25, 16  ;;  %v14674_v29 = vld [vmem:[%s18765_s6 + $0x300] ss:$8 sps:$4 sm:$0xff]   ;;  %v14677_v7 = vld [vmem:[%s18765_s6 + $0x390] ss:$8 sps:$4 sm:$0xff]   ;;  %vm18872_vm0 = vmmov %vm18870_vm1 }
0x2631   :  { %v9476_v56 = vrot.slane %v9474_v54, 1  ;;  %13881 = vmatprep.mubr.msk.bf16.mxu1 %vm18854_vm11, %v17951_v15  ;;  %v14676_v16 = vld [vmem:[%s18765_s6 + $0x110] ss:$8 sps:$4 sm:$0xff]   ;;  %v9963_v31 = vld [vmem:[#allocation6 + $0x8] sm:$0xfc]  ;;  %v9323_v44 = vld [vmem:[#allocation6] sm:$0xff] }
0x2632   :  { %v9484_v59 = vrot.slane %v9482_v36, 1  ;;  %v14678_v32 = vld [vmem:[%s18765_s6 + $0x310] ss:$8 sps:$4 sm:$0xff]   ;;  %v14679_v33 = vld [vmem:[%s18765_s6 + $0x3a0] ss:$8 sps:$4 sm:$0xff]   ;;  %v10005_v11 = vpack.c.bf16 %v18037_v27, %v9963_v31  ;;  %v9377_v47 = vpack.c.bf16 %v18046_v38, %v9323_v44  ;;  %vm18874_vm9 = vmmov %vm18872_vm0 }
0x2633   :  { %13006 = vmatpush3.bf16.msra.mxu0 %v14656_v35  ;;  %v9477_v60 = vsel %vm4448_vm4, %v9472_v63, %v9476_v56  ;;  %v9496_v55 = vor.u32 %v9494_v12, %v9476_v56  ;;  %v9340_v13 = vld [vmem:[#allocation6 + $0x88] sm:$0x3f]  ;;  %v14681_v42 = vld [vmem:[%s18765_s6 + $0x3b0] ss:$8 sps:$4 sm:$0xff]   ;;  %v9339_v46 = vld [vmem:[#allocation6 + $0x80] sm:$0x3f] }
0x2634   :  { %v9485_v20 = vsel %vm4448_vm4, %v9480_v57, %v9484_v59  ;;  %13007 = vmatprep.subr.bf16.mxu0 %v14657_v5  ;;  %v9499_v2 = vor.u32 %v9497_v62, %v9484_v59  ;;  %v14680_v21 = vld [vmem:[%s18765_s6 + $0x320] ss:$8 sps:$4 sm:$0xff]   ;;  %v9385_v27 = vpack.c.bf16 %v9340_v13, %v18082_v22  ;;  %v10022_v25 = vrot.slane %v10005_v11, 1  ;;  %v14688_v35 = vld [vmem:[%s18765_s6 + $0x3f0] ss:$8 sps:$4 sm:$0xff]   ;;  %vm18875_vm3 = vmmov %vm18872_vm0 }
0x2635   :  { %9666 = vmatprep.mubr.bf16.mxu0 %v9485_v20  ;;  %v14682_v22 = vld [vmem:[%s18765_s6 + $0x330] ss:$8 sps:$4 sm:$0xff]   ;;  %v9384_v36 = vpack.c.bf16 %v9339_v46, %v18059_v52  ;;  %v14684_v5 = vld [vmem:[%s18765_s6 + $0x340] ss:$8 sps:$4 sm:$0xff]   ;;  %v10020_v20 = vrot.slane %v18066_v6, 1  ;;  %vm18877_vm8 = vmmov %vm18876_vm6 }
0x2636   :  { %9667 = vmatmul.mubr.bf16.gmra.mrb[184].mxu0 %v9477_v60  ;;  %v10024_v54 = vsel %vm4869_vm12, %v10022_v25, %v10023_v49  ;;  %v9966_v53 = vld [vmem:[#allocation6 + $0x80] sm:$0xff]  ;;  %v14686_v56 = vld [vmem:[%s18765_s6 + $0x3d0] ss:$8 sps:$4 sm:$0xff]  }
0x2637   :  { %13008 = vmatpush3.bf16.msra.mxu0 %v14658_v1  ;;  %9673 = vmatprep.mubr.bf16.mxu0 %v9499_v2  ;;  %v9962_v57 = vld [vmem:[#allocation6] sm:$0xfc]  ;;  %v10008_v59 = vpack.c.bf16 %v9966_v53, %v18059_v52  ;;  %v14687_v62 = vld [vmem:[%s18765_s6 + $0x350] ss:$8 sps:$4 sm:$0xff]  }
0x2638   :  { %13882 = vmatmul.mubr.msk.bf16.gmra.mrb[164].mxu1 %vm18865_vm10, %v9502_v18  ;;  %13009 = vmatprep.subr.bf16.mxu0 %v14660_v3  ;;  %v9338_v63 = vld [vmem:[#allocation6 + $0x78] sm:$0x3f]  ;;  %v10004_v1 = vpack.c.bf16 %v18046_v38, %v9962_v57  ;;  %v14704_v14 = vld [vmem:[%s18765_s6 + $0x484] ss:$8 sps:$4 sm:$0xff]   ;;  %v14708_v48 = vld [vmem:[%s18765_s6 + $0x4a0] ss:$8 sps:$4 sm:$0xff]  }
0x2639   :  { %13889 = vmatprep.mubr.msk.bf16.mxu1 %vm18854_vm11, %v17951_v15  ;;  %v9383_v2 = vpack.c.bf16 %v9338_v63, %v18103_v37  ;;  %v10030_v17 = vrot.slane %v10008_v59, 1  ;;  %v9965_v3 = vld [vmem:[#allocation6 + $0x78] sm:$0xff]  ;;  %vm18878_vm10 = vmmov %vm18876_vm6 }
0x263a   :  { %v10019_v60 = vrot.slane %v10004_v1, 1  ;;  %v10007_v18 = vpack.c.bf16 %v9965_v3, %v18103_v37  ;;  %v14693_v37 = vld [vmem:[%s18765_s6 + $0x450] ss:$8 sps:$4 sm:$0xff]  }
0x263b   :  { %13010 = vmatpush3.bf16.msra.mxu0 %v14661_v8  ;;  %v10031_v38 = vsel %vm4869_vm12, %v10023_v49, %v10030_v17  ;;  %v14699_v12 = vld [vmem:[%s18765_s6 + $0x470] ss:$8 sps:$4 sm:$0xff]  }
0x263c   :  { %13011 = vmatprep.subr.bf16.mxu0 %v14663_v9  ;;  %v10021_v52 = vsel %vm4869_vm12, %v10019_v60, %v10020_v20  ;;  %v10028_v8 = vrot.slane %v10007_v18, 1  ;;  %v14701_v9 = vld [vmem:[%s18765_s6 + $0x474] ss:$8 sps:$4 sm:$0xff]  }
0x263e   :  { %9674 = vmatmul.mubr.bf16.gmra.mrb[188].mxu0 %v9496_v55  ;;  %v14707_v55 = vld [vmem:[%s18765_s6 + $0x494] ss:$8 sps:$4 sm:$0xff]  }
0x263f   :  { %13012 = vmatpush3.bf16.msra.mxu0 %v14664_v19  ;;  %9884 = vmatprep.mubr.bf16.mxu0 %v9378_v61  ;;  %v14702_v19 = vld [vmem:[%s18765_s6 + $0x480] ss:$8 sps:$4 sm:$0xff]   ;;  %v14710_v61 = vld [vmem:[%s18765_s6 + $0x4a4] ss:$8 sps:$4 sm:$0xff]  }
0x2640   :  { %13890 = vmatmul.mubr.msk.bf16.vlgmr.msra.gmra.mrb[168].mxu1 %vm18866_vm14, %v9379_v51  ;;  %13013 = vmatprep.subr.bf16.mxu0 %v14667_v41  ;;  %v14705_v41 = vld [vmem:[%s18765_s6 + $0x490] ss:$8 sps:$4 sm:$0xff]   ;;  %vm18879_vm14 = vmmov %vm18876_vm6 }
0x2641   :  { %13043 = vmatpush3.bf16.msra.mxu1 %v14666_v50  ;;  %13893 = vmatprep.mubr.msk.bf16.mxu1 %vm18854_vm11, %v17951_v15  ;;  %v14713_v50 = vld [vmem:[%s18765_s6 + $0x4b4] ss:$8 sps:$4 sm:$0xff]   ;;  %v14711_v51 = vld [vmem:[%s18765_s6 + $0x4b0] ss:$8 sps:$4 sm:$0xff]  }
0x2642   :  { %13044 = vmatprep.subr.bf16.mxu1 %v14669_v39 }
0x2643   :  { %13014 = vmatpush3.bf16.msra.mxu0 %v14668_v23 }
0x2644   :  { %13015 = vmatprep.subr.bf16.mxu0 %v14671_v40 }
0x2645   :  { %13045 = vmatpush3.bf16.msra.mxu1 %v14670_v34 }
0x2646   :  { %13046 = vmatprep.subr.bf16.mxu1 %v14673_v45 }
0x2647   :  { %13016 = vmatpush3.bf16.msra.mxu0 %v14672_v24 }
0x2648   :  { %13894 = vmatmul.mubr.msk.bf16.gmra.mrb[172].mxu1 %vm18867_vm5, %v18056_v10  ;;  %13017 = vmatprep.subr.bf16.mxu0 %v14675_v26  ;;  %v14685_v10 = vld [vmem:[%s18765_s6 + $0x3e0] ss:$8 sps:$4 sm:$0xff]   ;;  %vm11031_vm5 = vcmask 1042432  }
0x2649   :  { %13047 = vmatpush3.bf16.msra.mxu1 %v14674_v29  ;;  %13897 = vmatprep.mubr.msk.bf16.mxu1 %vm18854_vm11, %v17951_v15 }
0x264a   :  { %13048 = vmatprep.subr.bf16.mxu1 %v14677_v7 }
0x264b   :  { %13018 = vmatpush3.bf16.msra.mxu0 %v14676_v16 }
0x264c   :  { %13901 = vmatprep.subr.bf16.mxu0 %v17951_v15 }
0x264d   :  { %13049 = vmatpush3.bf16.msra.mxu1 %v14678_v32 }
0x264e   :  { %9885 = vmatmul.mubr.bf16.vlgmr.msra.gmra.mrb[192].mxu0 %v9377_v47  ;;  %13050 = vmatprep.subr.bf16.mxu1 %v14679_v33 }
0x264f   :  { %9892 = vmatprep.mubr.bf16.mxu0 %v18076_v0  ;;  %13902 = vmatpush3.bf16.msra.mxu0 %v14685_v10  ;;  %v14683_v0 = vld [vmem:[%s18765_s6 + $0x3c0] ss:$8 sps:$4 sm:$0xff]  }
0x2650   :  { %13898 = vmatmul.mubr.msk.bf16.gmra.mrb[176].mxu1 %vm18868_vm7, %v9385_v27  ;;  %13903 = vmatprep.subr.bf16.mxu0 %v17951_v15  ;;  %vm11011_vm7 = vcmask 982017  }
0x2651   :  { %13051 = vmatpush3.bf16.msra.mxu1 %v14680_v21  ;;  %10189 = vmatprep.mubr.bf16.mxu1 %v10024_v54 }
0x2652   :  { %13052 = vmatprep.subr.bf16.mxu1 %v14681_v42 }
0x2653   :  { %13904 = vmatpush3.bf16.msra.mxu0 %v14688_v35 }
0x2655   :  { %13053 = vmatpush3.bf16.msra.mxu1 %v14682_v22 }
0x2656   :  { %9893 = vmatmul.mubr.bf16.gmra.mrb[196].mxu0 %v18066_v6  ;;  %13054 = vmatprep.subr.bf16.mxu1 %v14683_v0  ;;  %v10029_v6 = vsel %vm4869_vm12, %v10020_v20, %v10028_v8 }
0x2657   :  { %9899 = vmatprep.mubr.bf16.mxu0 %v9384_v36 }
0x2659   :  { %13055 = vmatpush3.bf16.msra.mxu1 %v14684_v5 }
0x265a   :  { %13056 = vmatprep.subr.bf16.mxu1 %v14686_v56 }
0x265d   :  { %13057 = vmatpush3.bf16.msra.mxu1 %v14687_v62 }
0x265e   :  { %9900 = vmatmul.mubr.bf16.gmra.mrb[200].mxu0 %v9383_v2 }
0x265f   :  { %13905 = vmatprep.mubr.msk.bf16.mxu0 %vm18854_vm11, %v17951_v15 }
0x2660   :  { %10190 = vmatmul.mubr.bf16.vlgmr.msra.gmra.mrb[180].mxu1 %v10021_v52 }
0x2661   :  { %10197 = vmatprep.mubr.bf16.mxu1 %v10031_v38 }
0x2666   :  { %13906 = vmatmul.mubr.msk.bf16.vlgmr.msra.gmra.mrb[204].mxu0 %vm18869_vm15, %v18074_v58  ;;  %v14689_v58 = vld [vmem:[%s18765_s6 + $0x410] ss:$8 sps:$4 sm:$0xff]   ;;  %vm18880_vm15 = vcmask 64512  }
0x2667   :  { %13909 = vmatprep.mubr.msk.bf16.mxu0 %vm18854_vm11, %v17951_v15 }
0x2668   :  { %10198 = vmatmul.mubr.bf16.gmra.mrb[184].mxu1 %v10029_v6 }
0x2669   :  { %10204 = vmatprep.mubr.bf16.mxu1 %v10030_v17 }
0x266e   :  { %13910 = vmatmul.mubr.msk.bf16.gmra.mrb[208].mxu0 %vm18870_vm1, %v18126_v28  ;;  %v14698_v28 = vld [vmem:[%s18765_s6 + $0x464] ss:$8 sps:$4 sm:$0xff]   ;;  %vm11013_vm1 = vcmask 1047616  }
0x266f   :  { %13913 = vmatprep.mubr.msk.bf16.mxu0 %vm18854_vm11, %v17951_v15  ;;  %v14695_v15 = vld [vmem:[%s18765_s6 + $0x454] ss:$8 sps:$4 sm:$0xff]   ;;  %vm18873_vm11 = vmmov %vm18872_vm0 }
0x2670   :  { %10205 = vmatmul.mubr.bf16.gmra.mrb[188].mxu1 %v10028_v8  ;;  %10492 = vmatprep.subr.bf16.mxu1 %v14695_v15 }
0x2671   :  { %10524 = vmatprep.mubr.bf16.mxu1 %v14849_v4  ;;  %10493 = vmatpush1.bf16.msra.mxu1 %v14693_v37 }
0x2672   :  { %10494 = vmatprep.subr.bf16.mxu1 %v14698_v28 }
0x2676   :  { %13914 = vmatmul.mubr.msk.bf16.gmra.mrb[212].mxu0 %vm18871_vm2, %v18108_v30  ;;  %v14696_v30 = vld [vmem:[%s18765_s6 + $0x460] ss:$8 sps:$4 sm:$0xff]   ;;  %vm11015_vm2 = vcmask 982016  }
0x2677   :  { %13921 = vmatprep.mubr.msk.bf16.mxu0 %vm18872_vm0, %v14689_v58  ;;  %10495 = vmatpush1.bf16.msra.mxu1 %v14696_v30  ;;  %vm18881_vm0 = vmmov %vm18880_vm15 }
0x2678   :  { %10496 = vmatprep.subr.bf16.mxu1 %v14701_v9 }
0x267b   :  { %10497 = vmatpush1.bf16.msra.mxu1 %v14699_v12 }
0x267c   :  { %10498 = vmatprep.subr.bf16.mxu1 %v14704_v14 }
0x267f   :  { %10499 = vmatpush1.bf16.msra.mxu1 %v14702_v19 }
0x2680   :  { %10500 = vmatprep.subr.bf16.mxu1 %v14707_v55 }
0x2683   :  { %10501 = vmatpush1.bf16.msra.mxu1 %v14705_v41 }
0x2684   :  { %10502 = vmatprep.subr.bf16.mxu1 %v14710_v61 }
0x2687   :  { %10503 = vmatpush1.bf16.msra.mxu1 %v14708_v48 }
0x2688   :  { %10504 = vmatprep.subr.bf16.mxu1 %v14713_v50 }
0x268b   :  { %10505 = vmatpush1.bf16.msra.mxu1 %v14711_v51 }
0x26fb   :  { %v9715_v39 = vpop.f32.mrb[156].mxu1 }
0x26fc   :  { %v13875_v23 = vpop.f32.mrb[157].mxu1 }
0x26fd   :  { %v9718_v40 = vpop.f32.mrb[158].mxu1 }
0x26fe   :  { %v13876_v34 = vpop.f32.mrb[159].mxu1 }
0x2701   :  { %v12980_v45 = vpop.f32.mrb[180].mxu0 }
0x2702   :  { %v12981_v24 = vpop.f32.mrb[181].mxu0 }
0x2703   :  { %v12982_v26 = vadd.f32 %v12981_v24, %v12980_v45  ;;  %v12983_v29 = vpop.f32.mrb[182].mxu0  ;;  %v9723_v7 = vpop.f32.mrb[160].mxu1  ;;  %v10271_v45 = vld [vmem:[%s18765_s6 + $0x400] sm:$0x1] }
0x2704   :  { %v12984_v16 = vpop.f32.mrb[183].mxu0  ;;  %v13879_v31 = vpop.f32.mrb[161].mxu1 }
0x2705   :  { %v9716_v32 = vadd.f32 %v12982_v26, %v9715_v39  ;;  %v12985_v33 = vadd.f32 %v12984_v16, %v12983_v29  ;;  %v9725_v11 = vpop.f32.mrb[162].mxu1 }
0x2706   :  { %v13880_v44 = vpop.f32.mrb[163].mxu1 }
0x2707   :  { %v9719_v13 = vadd.f32 %v12985_v33, %v9718_v40 }
0x2709   :  { %v12986_v10 = vpop.f32.mrb[184].mxu0 }
0x270a   :  { %v12987_v47 = vpop.f32.mrb[185].mxu0 }
0x270b   :  { %v12989_v49 = vpop.f32.mrb[186].mxu0  ;;  %v9730_v21 = vpop.f32.mrb[164].mxu1 }
0x270c   :  { %v12990_v27 = vpop.f32.mrb[187].mxu0  ;;  %v13883_v25 = vpop.f32.mrb[165].mxu1 }
0x270d   :  { %v12991_v42 = vadd.f32 %v12990_v27, %v12989_v49  ;;  %v9733_v35 = vpop.f32.mrb[166].mxu1 }
0x270e   :  { %v13884_v54 = vpop.f32.mrb[167].mxu1 }
0x270f   :  { %v9726_v22 = vadd.f32 %v12991_v42, %v9725_v11 }
0x2711   :  { %v12992_v46 = vpop.f32.mrb[188].mxu0 }
0x2712   :  { %v12993_v0 = vpop.f32.mrb[189].mxu0 }
0x2713   :  { %v12994_v36 = vadd.f32 %v12993_v0, %v12992_v46  ;;  %v12995_v5 = vpop.f32.mrb[190].mxu0  ;;  %v9941_v53 = vpop.f32.mrb[168].mxu1 }
0x2714   :  { %v12996_v56 = vpop.f32.mrb[191].mxu0  ;;  %v13891_v57 = vpop.f32.mrb[169].mxu1 }
0x2715   :  { %v9731_v59 = vadd.f32 %v12994_v36, %v9730_v21  ;;  %v9944_v62 = vpop.f32.mrb[170].mxu1 }
0x2716   :  { %v13892_v63 = vpop.f32.mrb[171].mxu1 }
0x271b   :  { %v9949_v1 = vpop.f32.mrb[172].mxu1 }
0x271c   :  { %v13895_v20 = vpop.f32.mrb[173].mxu1 }
0x271d   :  { %v9951_v2 = vpop.f32.mrb[174].mxu1 }
0x271e   :  { %v13896_v17 = vpop.f32.mrb[175].mxu1 }
0x2721   :  { %v13019_v3 = vpop.f32.mrb[192].mxu0 }
0x2722   :  { %v13020_v60 = vpop.f32.mrb[193].mxu0 }
0x2723   :  { %v13021_v52 = vadd.f32 %v13020_v60, %v13019_v3  ;;  %v13022_v18 = vpop.f32.mrb[194].mxu0  ;;  %v9956_v38 = vpop.f32.mrb[176].mxu1 }
0x2724   :  { %v13023_v8 = vpop.f32.mrb[195].mxu0  ;;  %v13899_v6 = vpop.f32.mrb[177].mxu1 }
0x2725   :  { %v9887_v58 = vadd.f32 %v13021_v52, %v9716_v32  ;;  %v13024_v37 = vadd.f32 %v13023_v8, %v13022_v18  ;;  %v9959_v15 = vpop.f32.mrb[178].mxu1  ;;  %v10272_v32 = vunpack.c.l.bf16 %v10271_v45 }
0x2726   :  { %v13900_v28 = vpop.f32.mrb[179].mxu1 }
0x2727   :  { %v9890_v30 = vadd.f32 %v13024_v37, %v9719_v13  ;;  %v9942_v9 = vadd.f32 %v9941_v53, %v9887_v58  ;;  %v10276_v10 = vrot.slane %v10272_v32, %v15079_v43  ;;  %v14723_v32 = vld [vmem:[%s18765_s6 + $0x514] ss:$8 sps:$4 sm:$0xff]  }
0x2729   :  { %v13025_v12 = vpop.f32.mrb[196].mxu0  ;;  %v9945_v14 = vadd.f32 %v9944_v62, %v9890_v30 }
0x272a   :  { %v13026_v19 = vpop.f32.mrb[197].mxu0 }
0x272b   :  { %v13028_v55 = vpop.f32.mrb[198].mxu0  ;;  %v14690_v19 = vld [vmem:[%s18765_s6 + $0x420] ss:$8 sps:$4 sm:$0xff]  }
0x272c   :  { %v13029_v41 = vpop.f32.mrb[199].mxu0 }
0x272d   :  { %v13030_v61 = vadd.f32 %v13029_v41, %v13028_v55  ;;  %v14691_v55 = vld [vmem:[%s18765_s6 + $0x430] ss:$8 sps:$4 sm:$0xff]   ;;  %v14692_v41 = vld [vmem:[%s18765_s6 + $0x440] ss:$8 sps:$4 sm:$0xff]  }
0x272f   :  { %v9897_v48 = vadd.f32 %v13030_v61, %v9726_v22  ;;  %v14714_v61 = vld [vmem:[%s18765_s6 + $0x4c0] ss:$8 sps:$4 sm:$0xff]  }
0x2731   :  { %v13031_v50 = vpop.f32.mrb[200].mxu0  ;;  %v9952_v51 = vadd.f32 %v9951_v2, %v9897_v48  ;;  %v14716_v48 = vld [vmem:[%s18765_s6 + $0x4c4] ss:$8 sps:$4 sm:$0xff]  }
0x2732   :  { %v13032_v39 = vpop.f32.mrb[201].mxu0  ;;  %10506 = vmatprep.subr.bf16.mxu1 %v14716_v48 }
0x2733   :  { %v13033_v23 = vadd.f32 %v13032_v39, %v13031_v50  ;;  %v13034_v40 = vpop.f32.mrb[202].mxu0  ;;  %v13058_v34 = vpop.f32.mrb[180].mxu1  ;;  %10507 = vmatpush1.bf16.msra.mxu1 %v14714_v61 }
0x2734   :  { %v13035_v24 = vpop.f32.mrb[203].mxu0  ;;  %v13059_v26 = vpop.f32.mrb[181].mxu1  ;;  %10886 = vmatprep.subr.bf16.mxu1 %v14723_v32 }
0x2735   :  { %v9902_v29 = vadd.f32 %v13033_v23, %v9731_v59  ;;  %v13060_v7 = vadd.f32 %v13059_v26, %v13058_v34  ;;  %v13061_v16 = vpop.f32.mrb[182].mxu1 }
0x2736   :  { %v13062_v31 = vpop.f32.mrb[183].mxu1 }
0x2737   :  { %v13063_v33 = vadd.f32 %v13062_v31, %v13061_v16  ;;  %v9957_v11 = vadd.f32 %v9956_v38, %v9902_v29  ;;  %v14721_v31 = vld [vmem:[%s18765_s6 + $0x510] ss:$8 sps:$4 sm:$0xff]  }
0x2739   :  { %v10246_v44 = vpop.f32.mrb[204].mxu0 }
0x273a   :  { %v10247_v13 = vadd.f32 %v13060_v7, %v10246_v44  ;;  %v13907_v47 = vpop.f32.mrb[205].mxu0  ;;  %v14729_v44 = vld [vmem:[%s18765_s6 + $0x534] ss:$8 sps:$4 sm:$0xff]  }
0x273b   :  { %v13064_v49 = vpop.f32.mrb[184].mxu1  ;;  %v10249_v21 = vpop.f32.mrb[206].mxu0  ;;  %v14730_v47 = vld [vmem:[%s18765_s6 + $0x540] ss:$8 sps:$4 sm:$0xff]  }
0x273c   :  { %v10267_v27 = vadd.f32 %v10247_v13, %v9942_v9  ;;  %v10250_v25 = vadd.f32 %v13063_v33, %v10249_v21  ;;  %v13065_v42 = vpop.f32.mrb[185].mxu1  ;;  %v13908_v35 = vpop.f32.mrb[207].mxu0  ;;  %v14726_v33 = vld [vmem:[%s18765_s6 + $0x524] ss:$8 sps:$4 sm:$0xff]   ;;  %v14727_v13 = vld [vmem:[%s18765_s6 + $0x530] ss:$8 sps:$4 sm:$0xff]  }
0x273d   :  { %v13067_v54 = vpop.f32.mrb[186].mxu1  ;;  %v14735_v49 = vld [vmem:[%s18765_s6 + $0x554] ss:$8 sps:$4 sm:$0xff]   ;;  %v14733_v21 = vld [vmem:[%s18765_s6 + $0x550] ss:$8 sps:$4 sm:$0xff]  }
0x273e   :  { %v10277_v22 = vadd.f32 %v10276_v10, %v10267_v27  ;;  %v10268_v46 = vadd.f32 %v10250_v25, %v9945_v14  ;;  %v13068_v0 = vpop.f32.mrb[187].mxu1  ;;  %v14738_v27 = vld [vmem:[%s18765_s6 + $0x564] ss:$8 sps:$4 sm:$0xff]   ;;  %v14736_v25 = vld [vmem:[%s18765_s6 + $0x560] ss:$8 sps:$4 sm:$0xff]  }
0x273f   :  { %v13069_v36 = vadd.f32 %v13068_v0, %v13067_v54  ;;  %v14741_v42 = vld [vmem:[%s18765_s6 + $0x574] ss:$8 sps:$4 sm:$0xff]   ;;  %v14739_v35 = vld [vmem:[%s18765_s6 + $0x570] ss:$8 sps:$4 sm:$0xff]   ;;  %v14744_v54 = vld [vmem:[%s18765_s6 + $0x584] ss:$8 sps:$4 sm:$0xff]  }
0x2740   :  { %v10278_v5 = vadd.f32 %v10276_v10, %v10268_v46  ;;  %v10281_v56 = vmax.f32 %v10277_v22, 0.0  ;;  %v14742_v22 = vld [vmem:[%s18765_s6 + $0x580] ss:$8 sps:$4 sm:$0xff]   ;;  %v14747_v46 = vld [vmem:[%s18765_s6 + $0x594] ss:$8 sps:$4 sm:$0xff]  }
0x2741   :  { %v10254_v53 = vpop.f32.mrb[208].mxu0  ;;  %v14745_v0 = vld [vmem:[%s18765_s6 + $0x590] ss:$8 sps:$4 sm:$0xff]  }
0x2742   :  { %v10282_v57 = vmax.f32 %v10278_v5, 0.0  ;;  %v13911_v59 = vpop.f32.mrb[209].mxu0  ;;  %v14748_v5 = vld [vmem:[%s18765_s6 + $0x5a0] ss:$8 sps:$4 sm:$0xff]   ;;  %v14753_v53 = vld [vmem:[%s18765_s6 + $0x5b4] ss:$8 sps:$4 sm:$0xff]  }
0x2743   :  { %v13070_v62 = vpop.f32.mrb[188].mxu1  ;;  %v10256_v63 = vpop.f32.mrb[210].mxu0  ;;  %v14754_v59 = vld [vmem:[%s18765_s6 + $0x5c0] ss:$8 sps:$4 sm:$0xff]  }
0x2744   :  { %v10257_v1 = vadd.f32 %v13069_v36, %v10256_v63  ;;  %v13071_v20 = vpop.f32.mrb[189].mxu1  ;;  %v13912_v2 = vpop.f32.mrb[211].mxu0  ;;  %v10293_v17 = vpack.c.bf16 %v10282_v57, %v10281_v56  ;;  %v14750_v36 = vld [vmem:[%s18765_s6 + $0x5a4] ss:$8 sps:$4 sm:$0xff]   ;;  %v14751_v56 = vld [vmem:[%s18765_s6 + $0x5b0] ss:$8 sps:$4 sm:$0xff]  }
0x2745   :  { %v13072_v3 = vadd.f32 %v13071_v20, %v13070_v62  ;;  %v13073_v60 = vpop.f32.mrb[190].mxu1  ;;  %v14756_v57 = vld [vmem:[%s18765_s6 + $0x5c4] ss:$8 sps:$4 sm:$0xff]   ;;  %v14759_v62 = vld [vmem:[%s18765_s6 + $0x5d4] ss:$8 sps:$4 sm:$0xff]  }
0x2746   :  { %v10269_v52 = vadd.f32 %v10257_v1, %v9952_v51  ;;  %v13074_v18 = vpop.f32.mrb[191].mxu1  ;;  %13917 = vmatprep.subr.bf16.mxu0 %v10293_v17  ;;  %v14757_v63 = vld [vmem:[%s18765_s6 + $0x5d0] ss:$8 sps:$4 sm:$0xff]   ;;  %v14762_v1 = vld [vmem:[%s18765_s6 + $0x5e4] ss:$8 sps:$4 sm:$0xff]  }
0x2747   :  { %13918 = vmatpush3.bf16.msra.mxu0 %v10293_v17  ;;  %v14760_v20 = vld [vmem:[%s18765_s6 + $0x5e0] ss:$8 sps:$4 sm:$0xff]   ;;  %v14765_v2 = vld [vmem:[%s18765_s6 + $0x5f4] ss:$8 sps:$4 sm:$0xff]   ;;  %v14763_v17 = vld [vmem:[%s18765_s6 + $0x5f0] ss:$8 sps:$4 sm:$0xff]  }
0x2748   :  { %v10279_v37 = vadd.f32 %v10276_v10, %v10269_v52 }
0x2749   :  { %v10261_v38 = vpop.f32.mrb[212].mxu0 }
0x274a   :  { %v10262_v8 = vadd.f32 %v13072_v3, %v10261_v38  ;;  %v13915_v6 = vpop.f32.mrb[213].mxu0  ;;  %v10283_v9 = vmax.f32 %v10279_v37, 0.0 }
0x274b   :  { %v10264_v58 = vpop.f32.mrb[214].mxu0 }
0x274c   :  { %v10270_v15 = vadd.f32 %v10262_v8, %v9957_v11  ;;  %v13916_v28 = vpop.f32.mrb[215].mxu0  ;;  %v14724_v11 = vld [vmem:[%s18765_s6 + $0x520] ss:$8 sps:$4 sm:$0xff]  }
0x274e   :  { %v10280_v30 = vadd.f32 %v10276_v10, %v10270_v15  ;;  %v14732_v10 = vld [vmem:[%s18765_s6 + $0x544] ss:$8 sps:$4 sm:$0xff]  }
0x2750   :  { %v10284_v12 = vmax.f32 %v10280_v30, 0.0 }
0x2752   :  { %v10294_v14 = vpack.c.bf16 %v10284_v12, %v10283_v9 }
0x2754   :  { %13919 = vmatprep.subr.bf16.mxu0 %v10294_v14 }
0x2755   :  { %13920 = vmatpush3.bf16.msra.mxu0 %v10294_v14 }
0x2758   :  { %13922 = vmatmul.mubr.msk.bf16.vlgmr.msra.gmra.mrb[216].mxu0 %vm18873_vm11, %v14690_v19  ;;  %vm18882_vm11 = vmmov %vm18881_vm0 }
0x2759   :  { %13925 = vmatprep.mubr.msk.bf16.mxu0 %vm18874_vm9, %v14691_v55  ;;  %vm11019_vm9 = vcmask 1046592  }
0x2760   :  { %13926 = vmatmul.mubr.msk.bf16.gmra.mrb[220].mxu0 %vm18875_vm3, %v14692_v41  ;;  %vm11021_vm3 = vcmask 980992  }
0x2761   :  { %10645 = vmatprep.mubr.bf16.mxu0 %v14849_v4 }
0x282b   :  { %v13923_v50 = vpop.f32.mrb[216].mxu0 }
0x282c   :  { %v10361_v51 = vpop.f32.mrb[217].mxu0 }
0x282d   :  { %v13924_v39 = vpop.f32.mrb[218].mxu0 }
0x282e   :  { %v10409_v23 = vpack.c.bf16 %v13924_v39, %v13923_v50  ;;  %v10364_v40 = vpop.f32.mrb[219].mxu0 }
0x282f   :  { %v10408_v34 = vpack.c.bf16 %v10364_v40, %v10361_v51  ;;  %v14717_v40 = vld [vmem:[%s18765_s6 + $0x4d0] ss:$8 sps:$4 sm:$0xff]  }
0x2831   :  { %10525 = vmatmul.mubr.bf16.vlgmr.msra.gmra.mrb[192].mxu1 %v10408_v34  ;;  %v14718_v34 = vld [vmem:[%s18765_s6 + $0x4e0] ss:$8 sps:$4 sm:$0xff]  }
0x2832   :  { %10534 = vmatprep.mubr.bf16.mxu1 %v14849_v4  ;;  %10887 = vmatpush1.bf16.msra.mxu1 %v14721_v31 }
0x2833   :  { %v13927_v45 = vpop.f32.mrb[220].mxu0  ;;  %10888 = vmatprep.subr.bf16.mxu1 %v14726_v33 }
0x2834   :  { %v10377_v24 = vpop.f32.mrb[221].mxu0 }
0x2835   :  { %v13928_v26 = vpop.f32.mrb[222].mxu0 }
0x2836   :  { %v10411_v29 = vpack.c.bf16 %v13928_v26, %v13927_v45  ;;  %v10380_v7 = vpop.f32.mrb[223].mxu0  ;;  %10889 = vmatpush1.bf16.msra.mxu1 %v14724_v11  ;;  %v14719_v45 = vld [vmem:[%s18765_s6 + $0x4f0] ss:$8 sps:$4 sm:$0xff]   ;;  %v14766_v26 = vld [vmem:[%s18765_s6 + $0x600] ss:$8 sps:$4 sm:$0xff]  }
0x2837   :  { %v10410_v16 = vpack.c.bf16 %v10380_v7, %v10377_v24  ;;  %10890 = vmatprep.subr.bf16.mxu1 %v14729_v44  ;;  %v14720_v24 = vld [vmem:[%s18765_s6 + $0x500] ss:$8 sps:$4 sm:$0x3f]  }
0x2839   :  { %10535 = vmatmul.mubr.bf16.gmra.mrb[196].mxu1 %v10409_v23 }
0x283a   :  { %10544 = vmatprep.mubr.bf16.mxu1 %v14849_v4  ;;  %10891 = vmatpush1.bf16.msra.mxu1 %v14727_v13 }
0x283b   :  { %10892 = vmatprep.subr.bf16.mxu1 %v14732_v10 }
0x283e   :  { %10893 = vmatpush1.bf16.msra.mxu1 %v14730_v47 }
0x283f   :  { %10894 = vmatprep.subr.bf16.mxu1 %v14735_v49 }
0x2841   :  { %10545 = vmatmul.mubr.bf16.gmra.mrb[200].mxu1 %v10410_v16 }
0x2842   :  { %10554 = vmatprep.mubr.bf16.mxu1 %v14849_v4  ;;  %10895 = vmatpush1.bf16.msra.mxu1 %v14733_v21 }
0x2843   :  { %10896 = vmatprep.subr.bf16.mxu1 %v14738_v27 }
0x2846   :  { %10897 = vmatpush1.bf16.msra.mxu1 %v14736_v25 }
0x2847   :  { %10898 = vmatprep.subr.bf16.mxu1 %v14741_v42 }
0x2849   :  { %10555 = vmatmul.mubr.bf16.gmra.mrb[204].mxu1 %v10411_v29  ;;  %v14768_v29 = vld [vmem:[%s18765_s6 + $0x604] ss:$8 sps:$4 sm:$0xff]  }
0x284a   :  { %10899 = vmatpush1.bf16.msra.mxu1 %v14739_v35 }
0x284b   :  { %10900 = vmatprep.subr.bf16.mxu1 %v14744_v54 }
0x284e   :  { %10901 = vmatpush1.bf16.msra.mxu1 %v14742_v22 }
0x284f   :  { %10902 = vmatprep.subr.bf16.mxu1 %v14747_v46 }
0x2852   :  { %10903 = vmatpush1.bf16.msra.mxu1 %v14745_v0 }
0x2853   :  { %10904 = vmatprep.subr.bf16.mxu1 %v14750_v36 }
0x2856   :  { %10905 = vmatpush1.bf16.msra.mxu1 %v14748_v5 }
0x2857   :  { %10906 = vmatprep.subr.bf16.mxu1 %v14753_v53 }
0x285a   :  { %10907 = vmatpush1.bf16.msra.mxu1 %v14751_v56  ;;  %v14769_v56 = vld [vmem:[%s18765_s6 + $0x890] ss:$8 sps:$4 sm:$0xff]  }
0x285b   :  { %10908 = vmatprep.subr.bf16.mxu1 %v14756_v57  ;;  %v14770_v57 = vld [vmem:[%s18765_s6 + $0x810] ss:$8 sps:$4 sm:$0xff]  }
0x285e   :  { %10909 = vmatpush1.bf16.msra.mxu1 %v14754_v59  ;;  %v14771_v59 = vld [vmem:[%s18765_s6 + $0x790] ss:$8 sps:$4 sm:$0xff]  }
0x285f   :  { %10910 = vmatprep.subr.bf16.mxu1 %v14759_v62  ;;  %v14772_v62 = vld [vmem:[%s18765_s6 + $0x710] ss:$8 sps:$4 sm:$0xff]  }
0x2862   :  { %10911 = vmatpush1.bf16.msra.mxu1 %v14757_v63  ;;  %v14773_v63 = vld [vmem:[%s18765_s6 + $0x8a0] ss:$8 sps:$4 sm:$0xff]  }
0x2863   :  { %10912 = vmatprep.subr.bf16.mxu1 %v14762_v1  ;;  %v14774_v1 = vld [vmem:[%s18765_s6 + $0x820] ss:$8 sps:$4 sm:$0xff]  }
0x2866   :  { %10913 = vmatpush1.bf16.msra.mxu1 %v14760_v20  ;;  %v14775_v20 = vld [vmem:[%s18765_s6 + $0x7a0] ss:$8 sps:$4 sm:$0xff]  }
0x2867   :  { %10914 = vmatprep.subr.bf16.mxu1 %v14765_v2  ;;  %v14776_v2 = vld [vmem:[%s18765_s6 + $0x720] ss:$8 sps:$4 sm:$0xff]  }
0x286a   :  { %10915 = vmatpush1.bf16.msra.mxu1 %v14763_v17  ;;  %v14777_v17 = vld [vmem:[%s18765_s6 + $0x8b0] ss:$8 sps:$4 sm:$0xff]  }
0x286b   :  { %10916 = vmatprep.subr.bf16.mxu1 %v14768_v29  ;;  %v14792_v29 = vld [vmem:[%s18765_s6 + $0x760] ss:$8 sps:$4 sm:$0xff]  }
0x286e   :  { %10917 = vmatpush1.bf16.msra.mxu1 %v14766_v26 }
0x286f   :  { %13167 = vmatprep.subr.bf16.mxu1 %v14769_v56 }
0x2904   :  { %v10526_v3 = vpop.f32.mrb[192].mxu1 }
0x2905   :  { %v10528_v60 = vpop.f32.mrb[193].mxu1 }
0x2906   :  { %v10530_v52 = vpop.f32.mrb[194].mxu1 }
0x2907   :  { %v10573_v18 = vpack.c.bf16 %v10530_v52, %v10526_v3  ;;  %v10532_v38 = vpop.f32.mrb[195].mxu1  ;;  %v14778_v3 = vld [vmem:[%s18765_s6 + $0x830] ss:$8 sps:$4 sm:$0xff]  }
0x2908   :  { %v10574_v8 = vpack.c.bf16 %v10532_v38, %v10528_v60  ;;  %v14779_v60 = vld [vmem:[%s18765_s6 + $0x7b0] ss:$8 sps:$4 sm:$0xff]  }
0x2909   :  { %v14780_v52 = vld [vmem:[%s18765_s6 + $0x730] ss:$8 sps:$4 sm:$0xff]  }
0x290a   :  { %10613 = vmatprep.subr.bf16.mxu0 %v10574_v8 }
0x290b   :  { %10614 = vmatpush1.bf16.msra.mxu0 %v10573_v18  ;;  %v14781_v18 = vld [vmem:[%s18765_s6 + $0x8c0] ss:$8 sps:$4 sm:$0xff]  }
0x290c   :  { %v10536_v6 = vpop.f32.mrb[196].mxu1 }
0x290d   :  { %v10538_v58 = vpop.f32.mrb[197].mxu1 }
0x290e   :  { %v10540_v37 = vpop.f32.mrb[198].mxu1 }
0x290f   :  { %v10575_v15 = vpack.c.bf16 %v10540_v37, %v10536_v6  ;;  %v10542_v28 = vpop.f32.mrb[199].mxu1  ;;  %v14783_v37 = vld [vmem:[%s18765_s6 + $0x7c0] ss:$8 sps:$4 sm:$0xff]  }
0x2910   :  { %v10576_v30 = vpack.c.bf16 %v10542_v28, %v10538_v58  ;;  %v14782_v58 = vld [vmem:[%s18765_s6 + $0x840] ss:$8 sps:$4 sm:$0xff]  }
0x2912   :  { %10615 = vmatprep.subr.bf16.mxu0 %v10576_v30  ;;  %v14784_v30 = vld [vmem:[%s18765_s6 + $0x740] ss:$8 sps:$4 sm:$0xff]  }
0x2913   :  { %10616 = vmatpush1.bf16.msra.mxu0 %v10575_v15 }
0x2914   :  { %v10546_v9 = vpop.f32.mrb[200].mxu1 }
0x2915   :  { %v10548_v12 = vpop.f32.mrb[201].mxu1 }
0x2916   :  { %v10550_v14 = vpop.f32.mrb[202].mxu1 }
0x2917   :  { %v10577_v19 = vpack.c.bf16 %v10550_v14, %v10546_v9  ;;  %v10552_v55 = vpop.f32.mrb[203].mxu1  ;;  %v14785_v14 = vld [vmem:[%s18765_s6 + $0x8d0] ss:$8 sps:$4 sm:$0xff]  }
0x2918   :  { %v10578_v41 = vpack.c.bf16 %v10552_v55, %v10548_v12 }
0x291a   :  { %10617 = vmatprep.subr.bf16.mxu0 %v10578_v41  ;;  %v14786_v41 = vld [vmem:[%s18765_s6 + $0x850] ss:$8 sps:$4 sm:$0xff]  }
0x291b   :  { %10618 = vmatpush1.bf16.msra.mxu0 %v10577_v19 }
0x291c   :  { %v10556_v61 = vpop.f32.mrb[204].mxu1 }
0x291d   :  { %v10558_v48 = vpop.f32.mrb[205].mxu1 }
0x291e   :  { %v10560_v50 = vpop.f32.mrb[206].mxu1 }
0x291f   :  { %v10579_v51 = vpack.c.bf16 %v10560_v50, %v10556_v61  ;;  %v10562_v39 = vpop.f32.mrb[207].mxu1  ;;  %v14787_v61 = vld [vmem:[%s18765_s6 + $0x7d0] ss:$8 sps:$4 sm:$0xff]  }
0x2920   :  { %v10580_v23 = vpack.c.bf16 %v10562_v39, %v10558_v48  ;;  %v14788_v48 = vld [vmem:[%s18765_s6 + $0x750] ss:$8 sps:$4 sm:$0xff]  }
0x2922   :  { %10619 = vmatprep.subr.bf16.mxu0 %v10580_v23 }
0x2923   :  { %10620 = vmatpush1.bf16.msra.mxu0 %v10579_v51  ;;  %v14789_v51 = vld [vmem:[%s18765_s6 + $0x8e0] ss:$8 sps:$4 sm:$0xff]  }
0x2924   :  { %13087 = vmatprep.subr.bf16.mxu0 %v14771_v59 }
0x2926   :  { %12601 = vmatmul.mubr.msk.bf16.vlgmr.msra.gmra.mrb[224].mxu0 %vm18876_vm6, %v14717_v40  ;;  %vm18883_vm6 = vmmov %vm18881_vm0 }
0x2927   :  { %10655 = vmatprep.mubr.bf16.mxu0 %v14849_v4  ;;  %13088 = vmatpush3.bf16.msra.mxu0 %v14772_v62 }
0x2928   :  { %13089 = vmatprep.subr.bf16.mxu0 %v14775_v20 }
0x292b   :  { %13090 = vmatpush3.bf16.msra.mxu0 %v14776_v2 }
0x292c   :  { %13091 = vmatprep.subr.bf16.mxu0 %v14779_v60 }
0x292e   :  { %12602 = vmatmul.mubr.msk.bf16.gmra.mrb[228].mxu0 %vm18877_vm8, %v14718_v34  ;;  %v14790_v34 = vld [vmem:[%s18765_s6 + $0x860] ss:$8 sps:$4 sm:$0xff]   ;;  %vm18884_vm8 = vmmov %vm18881_vm0 }
0x292f   :  { %10665 = vmatprep.mubr.bf16.mxu0 %v14849_v4  ;;  %13092 = vmatpush3.bf16.msra.mxu0 %v14780_v52 }
0x2930   :  { %13093 = vmatprep.subr.bf16.mxu0 %v14783_v37 }
0x2933   :  { %13094 = vmatpush3.bf16.msra.mxu0 %v14784_v30 }
0x2934   :  { %13095 = vmatprep.subr.bf16.mxu0 %v14787_v61 }
0x2936   :  { %12603 = vmatmul.mubr.msk.bf16.gmra.mrb[232].mxu0 %vm18878_vm10, %v14719_v45  ;;  %v14791_v45 = vld [vmem:[%s18765_s6 + $0x7e0] ss:$8 sps:$4 sm:$0xff]   ;;  %vm18885_vm10 = vmmov %vm18881_vm0 }
0x2937   :  { %10675 = vmatprep.mubr.bf16.mxu0 %v14849_v4  ;;  %13096 = vmatpush3.bf16.msra.mxu0 %v14788_v48 }
0x2938   :  { %13097 = vmatprep.subr.bf16.mxu0 %v14791_v45 }
0x293b   :  { %13098 = vmatpush3.bf16.msra.mxu0 %v14792_v29 }
0x293e   :  { %12604 = vmatmul.mubr.msk.bf16.gmra.mrb[236].mxu0 %vm18879_vm14, %v14720_v24  ;;  %vm18886_vm14 = vmmov %vm18881_vm0 }
0x29f9   :  { %v10647_v7 = vpop.f32.mrb[224].mxu0 }
0x29fa   :  { %v10649_v16 = vpop.f32.mrb[225].mxu0 }
0x29fb   :  { %v10651_v31 = vpop.f32.mrb[226].mxu0 }
0x29fc   :  { %v10718_v4 = vpack.c.bf16 %v10651_v31, %v10647_v7  ;;  %v10653_v32 = vpop.f32.mrb[227].mxu0 }
0x29fd   :  { %v10719_v33 = vpack.c.bf16 %v10653_v32, %v10649_v16 }
0x29ff   :  { %10918 = vmatprep.mubr.bf16.mxu1 %v10719_v33 }
0x2a00   :  { %10919 = vmatmul.mubr.bf16.vlgmr.msra.gmra.mrb[208].mxu1 %v10718_v4  ;;  %v14793_v4 = vld [vmem:[%s18765_s6 + $0x8f0] ss:$8 sps:$4 sm:$0xff]  }
0x2a01   :  { %v10657_v11 = vpop.f32.mrb[228].mxu0  ;;  %13168 = vmatpush3.bf16.msra.mxu1 %v14770_v57 }
0x2a02   :  { %v10659_v44 = vpop.f32.mrb[229].mxu0  ;;  %13169 = vmatprep.subr.bf16.mxu1 %v14773_v63  ;;  %v14801_v63 = vld [vmem:[%s18765_s6 + $0x690] ss:$8 sps:$4 sm:$0xff]  }
0x2a03   :  { %v10661_v13 = vpop.f32.mrb[230].mxu0 }
0x2a04   :  { %v10720_v10 = vpack.c.bf16 %v10661_v13, %v10657_v11  ;;  %v10663_v47 = vpop.f32.mrb[231].mxu0  ;;  %v14795_v13 = vld [vmem:[%s18765_s6 + $0x7f0] ss:$8 sps:$4 sm:$0xff]  }
0x2a05   :  { %v10721_v49 = vpack.c.bf16 %v10663_v47, %v10659_v44  ;;  %13170 = vmatpush3.bf16.msra.mxu1 %v14774_v1  ;;  %v14794_v44 = vld [vmem:[%s18765_s6 + $0x870] ss:$8 sps:$4 sm:$0xff]   ;;  %13099 = vmatprep.subr.bf16.mxu0 %v14795_v13 }
0x2a06   :  { %13171 = vmatprep.subr.bf16.mxu1 %v14777_v17 }
0x2a07   :  { %10928 = vmatprep.mubr.bf16.mxu1 %v10721_v49  ;;  %v14797_v49 = vld [vmem:[%s18765_s6 + $0x900] ss:$8 sps:$4 sm:$0xff]  }
0x2a08   :  { %10929 = vmatmul.mubr.bf16.gmra.mrb[212].mxu1 %v10720_v10  ;;  %v14796_v10 = vld [vmem:[%s18765_s6 + $0x770] ss:$8 sps:$4 sm:$0xff]  }
0x2a09   :  { %v10667_v21 = vpop.f32.mrb[232].mxu0  ;;  %13172 = vmatpush3.bf16.msra.mxu1 %v14778_v3  ;;  %13100 = vmatpush3.bf16.msra.mxu0 %v14796_v10 }
0x2a0a   :  { %v10669_v27 = vpop.f32.mrb[233].mxu0  ;;  %13173 = vmatprep.subr.bf16.mxu1 %v14781_v18 }
0x2a0b   :  { %v10671_v25 = vpop.f32.mrb[234].mxu0 }
0x2a0c   :  { %v10722_v42 = vpack.c.bf16 %v10671_v25, %v10667_v21  ;;  %v10673_v35 = vpop.f32.mrb[235].mxu0 }
0x2a0d   :  { %v10723_v54 = vpack.c.bf16 %v10673_v35, %v10669_v27  ;;  %13174 = vmatpush3.bf16.msra.mxu1 %v14782_v58  ;;  %v14798_v35 = vld [vmem:[%s18765_s6 + $0x880] ss:$8 sps:$4 sm:$0xff]  }
0x2a0e   :  { %13175 = vmatprep.subr.bf16.mxu1 %v14785_v14 }
0x2a0f   :  { %10938 = vmatprep.mubr.bf16.mxu1 %v10723_v54  ;;  %v14799_v54 = vld [vmem:[%s18765_s6 + $0x800] ss:$8 sps:$4 sm:$0xff]  }
0x2a10   :  { %10939 = vmatmul.mubr.bf16.gmra.mrb[216].mxu1 %v10722_v42  ;;  %13101 = vmatprep.subr.bf16.mxu0 %v14799_v54 }
0x2a11   :  { %v10677_v22 = vpop.f32.mrb[236].mxu0  ;;  %13176 = vmatpush3.bf16.msra.mxu1 %v14786_v41 }
0x2a12   :  { %v10679_v46 = vpop.f32.mrb[237].mxu0  ;;  %13177 = vmatprep.subr.bf16.mxu1 %v14789_v51 }
0x2a13   :  { %v10681_v0 = vpop.f32.mrb[238].mxu0 }
0x2a14   :  { %v10724_v36 = vpack.c.bf16 %v10681_v0, %v10677_v22  ;;  %v10683_v5 = vpop.f32.mrb[239].mxu0 }
0x2a15   :  { %v10725_v53 = vpack.c.bf16 %v10683_v5, %v10679_v46  ;;  %13178 = vmatpush3.bf16.msra.mxu1 %v14790_v34 }
0x2a16   :  { %13179 = vmatprep.subr.bf16.mxu1 %v14793_v4 }
0x2a17   :  { %10948 = vmatprep.mubr.bf16.mxu1 %v10725_v53 }
0x2a18   :  { %10949 = vmatmul.mubr.bf16.gmra.mrb[220].mxu1 %v10724_v36  ;;  %v14800_v36 = vld [vmem:[%s18765_s6 + $0x780] ss:$8 sps:$4 sm:$0xff]  }
0x2a19   :  { %13180 = vmatpush3.bf16.msra.mxu1 %v14794_v44  ;;  %13102 = vmatpush3.bf16.msra.mxu0 %v14800_v36 }
0x2a1a   :  { %13181 = vmatprep.subr.bf16.mxu1 %v14797_v49  ;;  %13127 = vmatprep.subr.bf16.mxu0 %v14801_v63 }
0x2a1d   :  { %13182 = vmatpush3.bf16.msra.mxu1 %v14798_v35 }
0x2ad3   :  { %v10920_v38 = vpop.f32.mrb[208].mxu1 }
0x2ad4   :  { %v10967_v8 = vrot.slane %v10920_v38, 7  ;;  %v10922_v6 = vpop.f32.mrb[209].mxu1 }
0x2ad5   :  { %v10968_v15 = vrot.slane %v10922_v6, 7  ;;  %v10924_v28 = vpop.f32.mrb[210].mxu1 }
0x2ad6   :  { %10981 = vrot.lane.b32.xlu0 %v10967_v8, %s14850_s9  ;;  %v10969_v9 = vrot.slane %v10924_v28, 7  ;;  %v10926_v12 = vpop.f32.mrb[211].mxu1 }
0x2ad7   :  { %10983 = vrot.lane.b32.xlu1 %v10968_v15, %s14850_s9  ;;  %v10971_v19 = vrot.slane %v10926_v12, 7 }
0x2ad8   :  { %v10970_v55 = vsel %vm9239_vm13, %v10967_v8, %v10969_v9 }
0x2ad9   :  { %v10972_v50 = vsel %vm9239_vm13, %v10968_v15, %v10971_v19 }
0x2ada   :  { %10985 = vrot.lane.b32.xlu0 %v10970_v55, %s14850_s9 }
0x2adb   :  { %v10930_v39 = vpop.f32.mrb[212].mxu1  ;;  %10987 = vrot.lane.b32.xlu1 %v10972_v50, %s14850_s9 }
0x2adc   :  { %v10973_v23 = vrot.slane %v10930_v39, 7  ;;  %v10932_v40 = vpop.f32.mrb[213].mxu1 }
0x2add   :  { %v10975_v24 = vrot.slane %v10932_v40, 7  ;;  %v10934_v26 = vpop.f32.mrb[214].mxu1 }
0x2ade   :  { %v10974_v7 = vsel %vm9239_vm13, %v10969_v9, %v10973_v23  ;;  %v10977_v16 = vrot.slane %v10934_v26, 7  ;;  %v10936_v31 = vpop.f32.mrb[215].mxu1  ;;  %v11032_v21 = vrot.slane %v10934_v26, 5 }
0x2adf   :  { %10989 = vrot.lane.b32.xlu0 %v10974_v7, %s14850_s9  ;;  %v10976_v32 = vsel %vm9239_vm13, %v10971_v19, %v10975_v24  ;;  %v10979_v33 = vrot.slane %v10936_v31, 7  ;;  %v11035_v22 = vrot.slane %v10936_v31, 5 }
0x2ae0   :  { %10991 = vrot.lane.b32.xlu1 %v10976_v32, %s14850_s9  ;;  %v10978_v11 = vsel %vm9239_vm13, %v10973_v23, %v10977_v16 }
0x2ae1   :  { %v10980_v47 = vsel %vm9239_vm13, %v10975_v24, %v10979_v33  ;;  %vm11009_vm13 = vcmask 1047617  }
0x2ae3   :  { %10993 = vrot.lane.b32.xlu0 %v10978_v11, %s14850_s9  ;;  %v10940_v27 = vpop.f32.mrb[216].mxu1 }
0x2ae4   :  { %v11033_v25 = vrot.slane %v10940_v27, 5  ;;  %10995 = vrot.lane.b32.xlu1 %v10980_v47, %s14850_s9  ;;  %v10942_v42 = vpop.f32.mrb[217].mxu1 }
0x2ae5   :  { %v11036_v46 = vrot.slane %v10942_v42, 5  ;;  %v10944_v0 = vpop.f32.mrb[218].mxu1 }
0x2ae6   :  { %v11034_v5 = vsel %vm11031_vm5, %v11032_v21, %v11033_v25  ;;  %v11038_v53 = vrot.slane %v10944_v0, 5  ;;  %v10946_v56 = vpop.f32.mrb[219].mxu1 }
0x2ae7   :  { %11050 = vrot.lane.b32.xlu0 %v11034_v5, %s14850_s9  ;;  %v11037_v57 = vsel %vm11031_vm5, %v11035_v22, %v11036_v46  ;;  %v11040_v59 = vrot.slane %v10946_v56, 5 }
0x2ae8   :  { %11052 = vrot.lane.b32.xlu1 %v11037_v57, %s14850_s9  ;;  %v11039_v62 = vsel %vm11031_vm5, %v11033_v25, %v11038_v53 }
0x2ae9   :  { %v11041_v1 = vsel %vm11031_vm5, %v11036_v46, %v11040_v59 }
0x2aeb   :  { %11054 = vrot.lane.b32.xlu0 %v11039_v62, %s14850_s9  ;;  %v10950_v20 = vpop.f32.mrb[220].mxu1 }
0x2aec   :  { %v11042_v2 = vrot.slane %v10950_v20, 5  ;;  %11056 = vrot.lane.b32.xlu1 %v11041_v1, %s14850_s9  ;;  %v10952_v17 = vpop.f32.mrb[221].mxu1 }
0x2aed   :  { %v11044_v3 = vrot.slane %v10952_v17, 5  ;;  %v10954_v60 = vpop.f32.mrb[222].mxu1 }
0x2aee   :  { %v11043_v52 = vsel %vm11031_vm5, %v11038_v53, %v11042_v2  ;;  %v11046_v18 = vrot.slane %v10954_v60, 5  ;;  %v10956_v38 = vpop.f32.mrb[223].mxu1 }
0x2aef   :  { %11058 = vrot.lane.b32.xlu0 %v11043_v52, %s14850_s9  ;;  %v11045_v8 = vsel %vm11031_vm5, %v11040_v59, %v11044_v3  ;;  %v11048_v6 = vrot.slane %v10956_v38, 5  ;;  %v14802_v52 = vld [vmem:[%s18765_s6 + $0x610] ss:$8 sps:$4 sm:$0xff]  }
0x2af0   :  { %11060 = vrot.lane.b32.xlu1 %v11045_v8, %s14850_s9  ;;  %v11047_v58 = vsel %vm11031_vm5, %v11042_v2, %v11046_v18 }
0x2af1   :  { %v11049_v37 = vsel %vm11031_vm5, %v11044_v3, %v11048_v6  ;;  %vm18887_vm5 = vmmov %vm18881_vm0 }
0x2af3   :  { %11062 = vrot.lane.b32.xlu0 %v11047_v58, %s14850_s9  ;;  %v14803_v58 = vld [vmem:[%s18765_s6 + $0x6a0] ss:$8 sps:$4 sm:$0xff]  }
0x2af4   :  { %11064 = vrot.lane.b32.xlu1 %v11049_v37, %s14850_s9 }
0x2b48   :  { %v10982_v15 = vpop.permute.xlu0 %10981 }
0x2b49   :  { %11010 = vst.msk [vmem:[#allocation7] sm:$0xfe] %vm11009_vm13, %v10982_v15  ;;  %v10984_v28 = vpop.permute.xlu1 %10983 }
0x2b4a   :  { %v10997_v30 = vsel %vm18880_vm15, %v10982_v15, %v10984_v28 }
0x2b4b   :  { %11012 = vst.msk [vmem:[#allocation7 + $0x8] sm:$0xfe] %vm11011_vm7, %v10997_v30 }
0x2b4c   :  { %v10986_v9 = vpop.permute.xlu0 %10985 }
0x2b4d   :  { %11014 = vst.msk [vmem:[#allocation7 + $0x10] sm:$0xff] %vm11013_vm1, %v10986_v9  ;;  %v10988_v12 = vpop.permute.xlu1 %10987 }
0x2b4e   :  { %v10998_v14 = vsel %vm18881_vm0, %v10986_v9, %v10988_v12 }
0x2b4f   :  { %11016 = vst.msk [vmem:[#allocation7 + $0x18] sm:$0xff] %vm11015_vm2, %v10998_v14 }
0x2b50   :  { %v11142_v34 = vld [vmem:[#allocation7] sm:$0xfe] }
0x2b51   :  { %v10990_v19 = vpop.permute.xlu0 %10989  ;;  %v11574_v10 = vld [vmem:[#allocation7] sm:$0xfc] }
0x2b52   :  { %11017 = vst.msk [vmem:[#allocation7 + $0x20] sm:$0xff] %vm11013_vm1, %v10990_v19  ;;  %v10992_v55 = vpop.permute.xlu1 %10991  ;;  %v11143_v23 = vld [vmem:[#allocation7 + $0x8] sm:$0xfe] }
0x2b53   :  { %v10999_v41 = vsel %vm18882_vm11, %v10990_v19, %v10992_v55  ;;  %v11575_v31 = vld [vmem:[#allocation7 + $0x8] sm:$0xfc]  ;;  %v14804_v19 = vld [vmem:[%s18765_s6 + $0x620] ss:$8 sps:$4 sm:$0xff]  }
0x2b54   :  { %11018 = vst.msk [vmem:[#allocation7 + $0x28] sm:$0xff] %vm11015_vm2, %v10999_v41  ;;  %v18586_v51 = vld [vmem:[#allocation7 + $0x10] sm:$0xff] }
0x2b55   :  { %v10994_v61 = vpop.permute.xlu0 %10993  ;;  %v11178_v24 = vpack.c.bf16 %v18586_v51, %v11142_v34  ;;  %v11610_v27 = vpack.c.bf16 %v18586_v51, %v11574_v10 }
0x2b56   :  { %11020 = vst.msk [vmem:[#allocation7 + $0x30] sm:$0x7f] %vm11019_vm9, %v10994_v61  ;;  %v10996_v48 = vpop.permute.xlu1 %10995  ;;  %v18584_v50 = vld [vmem:[#allocation7 + $0x18] sm:$0xff] }
0x2b57   :  { %v11000_v39 = vsel %vm18883_vm6, %v10994_v61, %v10996_v48  ;;  %v11179_v40 = vpack.c.bf16 %v18584_v50, %v11143_v23  ;;  %v11185_v33 = vshll.u32 %v11178_v24, 16  ;;  %v11611_v44 = vpack.c.bf16 %v18584_v50, %v11575_v31 }
0x2b58   :  { %11022 = vst.msk [vmem:[#allocation7 + $0x38] sm:$0x7f] %vm11021_vm3, %v11000_v39  ;;  %v11622_v59 = vrot.slane %v11610_v27, 1  ;;  %v11183_v62 = vshrl.u32 %v11178_v24, 16  ;;  %v14805_v39 = vld [vmem:[%s18765_s6 + $0x6b0] ss:$8 sps:$4 sm:$0xff]  }
0x2b59   :  { %v11051_v45 = vpop.permute.xlu0 %11050  ;;  %v11197_v7 = vshll.u32 %v11179_v40, 16  ;;  %v11090_v4 = vld [vmem:[#allocation7 + $0x20] sm:$0xff]  ;;  %v11187_v46 = vrot.slane %v11185_v33, 1  ;;  %v11625_v36 = vrot.slane %v11611_v44, 1  ;;  %v11195_v53 = vshrl.u32 %v11179_v40, 16 }
0x2b5a   :  { %11078 = vst.msk [vmem:[#allocation7 + $0x40] sm:$0xfe] %vm11009_vm13, %v11051_v45  ;;  %v11053_v26 = vpop.permute.xlu1 %11052  ;;  %v14807_v33 = vld [vmem:[%s18765_s6 + $0x6c0] ss:$8 sps:$4 sm:$0xff]  }
0x2b5b   :  { %v11066_v29 = vsel %vm18884_vm8, %v11051_v45, %v11053_v26  ;;  %v11091_v49 = vld [vmem:[#allocation7 + $0x28] sm:$0xff]  ;;  %v11199_v42 = vrot.slane %v11197_v7, 1  ;;  %v11188_v60 = vor.u32 %v11187_v46, %v11183_v62 }
0x2b5c   :  { %11079 = vst.msk [vmem:[#allocation7 + $0x48] sm:$0xfe] %vm11011_vm7, %v11066_v29  ;;  %v14806_v26 = vld [vmem:[%s18765_s6 + $0x630] ss:$8 sps:$4 sm:$0xff]  }
0x2b5d   :  { %v11055_v16 = vpop.permute.xlu0 %11054  ;;  %v11092_v32 = vld [vmem:[#allocation7 + $0x30] sm:$0xff]  ;;  %v11200_v20 = vor.u32 %v11199_v42, %v11195_v53 }
0x2b5e   :  { %11080 = vst.msk [vmem:[#allocation7 + $0x50] sm:$0xff] %vm11013_vm1, %v11055_v16  ;;  %v11057_v11 = vpop.permute.xlu1 %11056  ;;  %v18597_v13 = vpack.c.bf16 %v11092_v32, %v11090_v4 }
0x2b5f   :  { %v11067_v47 = vsel %vm18885_vm10, %v11055_v16, %v11057_v11  ;;  %v11093_v21 = vld [vmem:[#allocation7 + $0x38] sm:$0xff] }
0x2b60   :  { %11081 = vst.msk [vmem:[#allocation7 + $0x58] sm:$0xff] %vm11015_vm2, %v11067_v47  ;;  %v18602_v25 = vpack.c.bf16 %v11093_v21, %v11091_v49  ;;  %v11190_v35 = vshll.u32 %v18597_v13, 16  ;;  %v11623_v22 = vrot.slane %v18597_v13, 1  ;;  %v11206_v23 = vshrl.u32 %v18597_v13, 16 }
0x2b61   :  { %v11059_v54 = vpop.permute.xlu0 %11058  ;;  %v11094_v18 = vld [vmem:[#allocation7 + $0x40] sm:$0xff] }
0x2b62   :  { %11082 = vst.msk [vmem:[#allocation7 + $0x60] sm:$0xff] %vm11013_vm1, %v11059_v54  ;;  %v11061_v0 = vpop.permute.xlu1 %11060  ;;  %v11626_v5 = vrot.slane %v18602_v25, 1  ;;  %v11202_v56 = vshll.u32 %v18602_v25, 16  ;;  %v11192_v63 = vrot.slane %v11190_v35, 1  ;;  %v11624_v3 = vsel %vm4869_vm12, %v11622_v59, %v11623_v22  ;;  %v14808_v35 = vld [vmem:[%s18765_s6 + $0x640] ss:$8 sps:$4 sm:$0xff]  }
0x2b63   :  { %v11068_v57 = vsel %vm18886_vm14, %v11059_v54, %v11061_v0  ;;  %v11095_v30 = vld [vmem:[#allocation7 + $0x48] sm:$0xff]  ;;  %v11214_v61 = vshrl.u32 %v18602_v25, 16  ;;  %vm18892_vm1 = vcmask 1043456  }
0x2b64   :  { %11083 = vst.msk [vmem:[#allocation7 + $0x68] sm:$0xff] %vm11015_vm2, %v11068_v57  ;;  %v11627_v1 = vsel %vm4869_vm12, %v11625_v36, %v11626_v5  ;;  %v11204_v2 = vrot.slane %v11202_v56, 1  ;;  %v11193_v28 = vsel %vm4448_vm4, %v11188_v60, %v11192_v63  ;;  %v11208_v7 = vor.u32 %v11206_v23, %v11192_v63  ;;  %v14811_v60 = vld [vmem:[%s18765_s6 + $0x6e0] ss:$8 sps:$4 sm:$0xff]  }
0x2b65   :  { %11772 = vmatprep.mubr.bf16.mxu1 %v11627_v1  ;;  %v11063_v17 = vpop.permute.xlu0 %11062  ;;  %v11096_v38 = vld [vmem:[#allocation7 + $0x50] sm:$0xff] }
0x2b66   :  { %11084 = vst.msk [vmem:[#allocation7 + $0x70] sm:$0x7f] %vm11019_vm9, %v11063_v17  ;;  %11773 = vmatmul.mubr.bf16.vlgmr.msra.gmra.mrb[224].mxu1 %v11624_v3  ;;  %v11065_v8 = vpop.permute.xlu1 %11064  ;;  %v11205_v6 = vsel %vm4448_vm4, %v11200_v20, %v11204_v2  ;;  %v18621_v37 = vpack.c.bf16 %v11096_v38, %v11094_v18  ;;  %v11216_v45 = vor.u32 %v11214_v61, %v11204_v2  ;;  %v14810_v2 = vld [vmem:[%s18765_s6 + $0x650] ss:$8 sps:$4 sm:$0xff]   ;;  %v14812_v18 = vld [vmem:[%s18765_s6 + $0x660] ss:$8 sps:$4 sm:$0xff]  }
0x2b67   :  { %v11069_v15 = vsel %vm18887_vm5, %v11063_v17, %v11065_v8  ;;  %11380 = vmatprep.mubr.bf16.mxu0 %v11205_v6  ;;  %v11097_v9 = vld [vmem:[#allocation7 + $0x58] sm:$0xff]  ;;  %v14813_v38 = vld [vmem:[%s18765_s6 + $0x6f0] ss:$8 sps:$4 sm:$0xff]  }
0x2b68   :  { %11085 = vst.msk [vmem:[#allocation7 + $0x78] sm:$0x7f] %vm11021_vm3, %v11069_v15  ;;  %11381 = vmatmul.mubr.bf16.vlgmr.msra.gmra.mrb[240].mxu0 %v11193_v28  ;;  %v18626_v12 = vpack.c.bf16 %v11097_v9, %v11095_v30  ;;  %v11210_v14 = vshll.u32 %v18621_v37, 16  ;;  %v11628_v55 = vrot.slane %v18621_v37, 1  ;;  %v11222_v53 = vshrl.u32 %v18621_v37, 16  ;;  %v11087_v15 = vld [vmem:[#allocation7 + $0x8] sm:$0xff] }
0x2b69   :  { %13128 = vmatpush3.bf16.msra.mxu0 %v14802_v52  ;;  %v18645_v16 = vld [vmem:[#allocation7 + $0x60] sm:$0xff]  ;;  %v14815_v28 = vld [vmem:[%s18765_s6 + $0x700] ss:$8 sps:$4 sm:$0xff]   ;;  %v11135_v30 = vpack.c.bf16 %v18584_v50, %v11087_v15 }
0x2b6a   :  { %13129 = vmatprep.subr.bf16.mxu0 %v14803_v58  ;;  %v11630_v41 = vrot.slane %v18626_v12, 1  ;;  %v11218_v48 = vshll.u32 %v18626_v12, 16  ;;  %v11212_v40 = vrot.slane %v11210_v14, 1  ;;  %v11629_v29 = vsel %vm4869_vm12, %v11623_v22, %v11628_v55  ;;  %v14814_v6 = vld [vmem:[%s18765_s6 + $0x670] ss:$8 sps:$4 sm:$0xff]  }
0x2b6b   :  { %v18653_v10 = vld [vmem:[#allocation7 + $0x68] sm:$0xff]  ;;  %v11230_v0 = vshrl.u32 %v18626_v12, 16  ;;  %v14816_v9 = vld [vmem:[%s18765_s6 + $0x680] ss:$8 sps:$4 sm:$0xff]   ;;  %v11086_v14 = vld [vmem:[#allocation7] sm:$0xff] }
0x2b6c   :  { %v11631_v34 = vsel %vm4869_vm12, %v11626_v5, %v11630_v41  ;;  %v11220_v24 = vrot.slane %v11218_v48, 1  ;;  %v11213_v44 = vsel %vm4448_vm4, %v11208_v7, %v11212_v40  ;;  %v14809_v5 = vld [vmem:[%s18765_s6 + $0x6d0] ss:$8 sps:$4 sm:$0xff]   ;;  %v11224_v20 = vor.u32 %v11222_v53, %v11212_v40 }
0x2b6d   :  { %13130 = vmatpush3.bf16.msra.mxu0 %v14804_v19  ;;  %11780 = vmatprep.mubr.bf16.mxu1 %v11631_v34  ;;  %v11576_v31 = vld [vmem:[#allocation7 + $0x70] sm:$0xff]  ;;  %v11134_v19 = vpack.c.bf16 %v18586_v51, %v11086_v14 }
0x2b6e   :  { %v11144_v4 = vld [vmem:[#allocation7 + $0x70] sm:$0x7f]  ;;  %11781 = vmatmul.mubr.bf16.gmra.mrb[228].mxu1 %v11629_v29  ;;  %v11221_v32 = vsel %vm4448_vm4, %v11216_v45, %v11220_v24  ;;  %13131 = vmatprep.subr.bf16.mxu0 %v14805_v39  ;;  %v11612_v11 = vpack.c.bf16 %v11576_v31, %v18645_v16  ;;  %v11232_v59 = vor.u32 %v11230_v0, %v11220_v24 }
0x2b6f   :  { %11388 = vmatprep.mubr.bf16.mxu0 %v11221_v32  ;;  %v11577_v47 = vld [vmem:[#allocation7 + $0x78] sm:$0xff]  ;;  %v11180_v21 = vpack.c.bf16 %v11144_v4, %v18645_v16 }
0x2b70   :  { %v11145_v49 = vld [vmem:[#allocation7 + $0x78] sm:$0x7f]  ;;  %11389 = vmatmul.mubr.bf16.gmra.mrb[244].mxu0 %v11213_v44  ;;  %v11613_v27 = vpack.c.bf16 %v11577_v47, %v18653_v10  ;;  %v11632_v54 = vrot.slane %v11612_v11, 1 }
0x2b71   :  { %v11181_v42 = vpack.c.bf16 %v11145_v49, %v18653_v10  ;;  %13132 = vmatpush3.bf16.msra.mxu0 %v14806_v26  ;;  %v11226_v22 = vshll.u32 %v11180_v21, 16  ;;  %v11238_v8 = vshrl.u32 %v11180_v21, 16  ;;  %v11101_v50 = vld [vmem:[#allocation7 + $0x78] sm:$0x3f] }
0x2b72   :  { %13133 = vmatprep.subr.bf16.mxu0 %v14807_v33  ;;  %v11634_v46 = vrot.slane %v11613_v27, 1  ;;  %v11633_v1 = vsel %vm4869_vm12, %v11628_v55, %v11632_v54  ;;  %v11141_v55 = vpack.c.bf16 %v11101_v50, %v18653_v10 }
0x2b73   :  { %v11234_v36 = vshll.u32 %v11181_v42, 16  ;;  %v11228_v56 = vrot.slane %v11226_v22, 1  ;;  %v11241_v63 = vshrl.u32 %v11181_v42, 16 }
0x2b74   :  { %v11635_v57 = vsel %vm4869_vm12, %v11630_v41, %v11634_v46  ;;  %v11100_v41 = vld [vmem:[#allocation7 + $0x70] sm:$0x3f]  ;;  %vm18888_vm12 = vcmask 1045504  }
0x2b75   :  { %v11236_v62 = vrot.slane %v11234_v36, 1  ;;  %13134 = vmatpush3.bf16.msra.mxu0 %v14808_v35  ;;  %11788 = vmatprep.mubr.bf16.mxu1 %v11635_v57  ;;  %v11229_v52 = vsel %vm4448_vm4, %v11224_v20, %v11228_v56  ;;  %v11240_v58 = vor.u32 %v11238_v8, %v11228_v56  ;;  %v11140_v61 = vpack.c.bf16 %v11100_v41, %v18645_v16  ;;  %vm18889_vm13 = vmmov %vm18888_vm12 }
0x2b76   :  { %11789 = vmatmul.mubr.bf16.gmra.mrb[232].mxu1 %v11633_v1  ;;  %13135 = vmatprep.subr.bf16.mxu0 %v14809_v5  ;;  %vm18890_vm7 = vmmov %vm18888_vm12 }
0x2b77   :  { %v11237_v17 = vsel %vm4448_vm4, %v11232_v59, %v11236_v62  ;;  %v11243_v3 = vor.u32 %v11241_v63, %v11236_v62  ;;  %11796 = vmatprep.mubr.bf16.mxu1 %v11634_v46  ;;  %vm11844_vm4 = vcmask 244736   ;;  %vm18891_vm15 = vmmov %vm18890_vm7 }
0x2b78   :  { %11396 = vmatprep.mubr.bf16.mxu0 %v11237_v17 }
0x2b79   :  { %11397 = vmatmul.mubr.bf16.gmra.mrb[248].mxu0 %v11229_v52 }
0x2b7a   :  { %11404 = vmatprep.mubr.bf16.mxu0 %v11243_v3  ;;  %13136 = vmatpush3.bf16.msra.mxu0 %v14810_v2 }
0x2b7b   :  { %13137 = vmatprep.subr.bf16.mxu0 %v14811_v60 }
0x2b7e   :  { %13138 = vmatpush3.bf16.msra.mxu0 %v14812_v18  ;;  %11797 = vmatmul.mubr.bf16.gmra.mrb[236].mxu1 %v11632_v54  ;;  %v11830_v18 = vld [vmem:[%s18765_s6 + $0x910] sm:$0x1] }
0x2b7f   :  { %13139 = vmatprep.subr.bf16.mxu0 %v14813_v38  ;;  %v11831_v8 = vunpack.c.l.bf16 %v11830_v18 }
0x2b81   :  { %11405 = vmatmul.mubr.bf16.gmra.mrb[252].mxu0 %v11240_v58 }
0x2b82   :  { %13140 = vmatpush3.bf16.msra.mxu0 %v14814_v6  ;;  %11541 = vmatprep.mubr.bf16.mxu0 %v11135_v30 }
0x2b83   :  { %13141 = vmatprep.subr.bf16.mxu0 %v14815_v28 }
0x2b86   :  { %13142 = vmatpush3.bf16.msra.mxu0 %v14816_v9  ;;  %v18709_v9 = vrot.slane %v11831_v8, %v15079_v43 }
0x2b89   :  { %11542 = vmatmul.mubr.bf16.vlgmr.msra.gmra.mrb[0].mxu0 %v11134_v19 }
0x2b8a   :  { %11549 = vmatprep.mubr.bf16.mxu0 %v18602_v25 }
0x2b91   :  { %11550 = vmatmul.mubr.bf16.gmra.mrb[4].mxu0 %v18597_v13 }
0x2b92   :  { %11557 = vmatprep.mubr.bf16.mxu0 %v18626_v12 }
0x2b99   :  { %11558 = vmatmul.mubr.bf16.gmra.mrb[8].mxu0 %v18621_v37 }
0x2b9a   :  { %11565 = vmatprep.mubr.bf16.mxu0 %v11141_v55 }
0x2ba1   :  { %11566 = vmatmul.mubr.bf16.gmra.mrb[12].mxu0 %v11140_v61 }
0x2c39   :  { %v13183_v48 = vpop.f32.mrb[224].mxu1 }
0x2c3a   :  { %v13184_v39 = vpop.f32.mrb[225].mxu1 }
0x2c3b   :  { %v13185_v51 = vadd.f32 %v13184_v39, %v13183_v48  ;;  %v13103_v23 = vpop.f32.mrb[240].mxu0  ;;  %v13186_v40 = vpop.f32.mrb[226].mxu1 }
0x2c3c   :  { %v13104_v25 = vpop.f32.mrb[241].mxu0  ;;  %v13187_v34 = vpop.f32.mrb[227].mxu1 }
0x2c3d   :  { %v13105_v13 = vadd.f32 %v13104_v25, %v13103_v23  ;;  %v13188_v45 = vadd.f32 %v13187_v34, %v13186_v40  ;;  %v13106_v12 = vpop.f32.mrb[242].mxu0 }
0x2c3e   :  { %v13107_v24 = vpop.f32.mrb[243].mxu0 }
0x2c3f   :  { %v13108_v26 = vadd.f32 %v13107_v24, %v13106_v12 }
0x2c41   :  { %v13189_v29 = vpop.f32.mrb[228].mxu1 }
0x2c42   :  { %v13190_v7 = vpop.f32.mrb[229].mxu1 }
0x2c43   :  { %v13191_v37 = vadd.f32 %v13190_v7, %v13189_v29  ;;  %v13109_v31 = vpop.f32.mrb[244].mxu0  ;;  %v13192_v4 = vpop.f32.mrb[230].mxu1 }
0x2c44   :  { %v13110_v32 = vpop.f32.mrb[245].mxu0  ;;  %v13193_v16 = vpop.f32.mrb[231].mxu1 }
0x2c45   :  { %v13111_v33 = vadd.f32 %v13110_v32, %v13109_v31  ;;  %v13194_v11 = vadd.f32 %v13193_v16, %v13192_v4  ;;  %v13112_v44 = vpop.f32.mrb[246].mxu0 }
0x2c46   :  { %v13113_v10 = vpop.f32.mrb[247].mxu0 }
0x2c47   :  { %v13114_v47 = vadd.f32 %v13113_v10, %v13112_v44 }
0x2c49   :  { %v13195_v49 = vpop.f32.mrb[232].mxu1 }
0x2c4a   :  { %v13196_v21 = vpop.f32.mrb[233].mxu1 }
0x2c4b   :  { %v18699_v27 = vadd.f32 %v13196_v21, %v13195_v49  ;;  %v13198_v35 = vpop.f32.mrb[234].mxu1 }
0x2c4c   :  { %v13115_v42 = vpop.f32.mrb[248].mxu0  ;;  %v13199_v22 = vpop.f32.mrb[235].mxu1 }
0x2c4d   :  { %v13116_v54 = vpop.f32.mrb[249].mxu0  ;;  %v13200_v0 = vadd.f32 %v13199_v22, %v13198_v35 }
0x2c4e   :  { %v13117_v46 = vadd.f32 %v13116_v54, %v13115_v42  ;;  %v13118_v36 = vpop.f32.mrb[250].mxu0 }
0x2c4f   :  { %v13119_v5 = vpop.f32.mrb[251].mxu0 }
0x2c50   :  { %v13120_v53 = vadd.f32 %v13119_v5, %v13118_v36 }
0x2c51   :  { %v13201_v56 = vpop.f32.mrb[236].mxu1 }
0x2c52   :  { %v13202_v57 = vpop.f32.mrb[237].mxu1 }
0x2c53   :  { %v18701_v59 = vadd.f32 %v13202_v57, %v13201_v56  ;;  %v13204_v63 = vpop.f32.mrb[238].mxu1 }
0x2c54   :  { %v13121_v62 = vpop.f32.mrb[252].mxu0  ;;  %v13205_v20 = vpop.f32.mrb[239].mxu1 }
0x2c55   :  { %v13122_v1 = vpop.f32.mrb[253].mxu0  ;;  %v18703_v17 = vadd.f32 %v13205_v20, %v13204_v63 }
0x2c56   :  { %v13123_v2 = vadd.f32 %v13122_v1, %v13121_v62  ;;  %v13124_v3 = vpop.f32.mrb[254].mxu0 }
0x2c57   :  { %v13125_v60 = vpop.f32.mrb[255].mxu0 }
0x2c58   :  { %v13126_v52 = vadd.f32 %v13125_v60, %v13124_v3 }
0x2c5c   :  { %v13143_v38 = vpop.f32.mrb[0].mxu0 }
0x2c5d   :  { %v13144_v6 = vpop.f32.mrb[1].mxu0 }
0x2c5e   :  { %v13145_v58 = vadd.f32 %v13144_v6, %v13143_v38  ;;  %v13146_v15 = vpop.f32.mrb[2].mxu0 }
0x2c5f   :  { %v13147_v28 = vpop.f32.mrb[3].mxu0 }
0x2c60   :  { %v11544_v30 = vadd.f32 %v13145_v58, %v13105_v13  ;;  %v13148_v14 = vadd.f32 %v13147_v28, %v13146_v15 }
0x2c62   :  { %v11805_v19 = vadd.f32 %v13185_v51, %v11544_v30  ;;  %v11547_v50 = vadd.f32 %v13148_v14, %v13108_v26 }
0x2c64   :  { %v11836_v55 = vadd.f32 %v18709_v9, %v11805_v19  ;;  %v11806_v41 = vadd.f32 %v13188_v45, %v11547_v50  ;;  %v13149_v61 = vpop.f32.mrb[4].mxu0 }
0x2c65   :  { %v13150_v48 = vpop.f32.mrb[5].mxu0 }
0x2c66   :  { %v11845_v39 = vsel %vm11844_vm4, %v11836_v55, 0.0  ;;  %v11837_v23 = vadd.f32 %v18709_v9, %v11806_v41  ;;  %v13151_v40 = vadd.f32 %v13150_v48, %v13149_v61  ;;  %v13152_v25 = vpop.f32.mrb[6].mxu0 }
0x2c67   :  { %11854 = vst [vmem:[%s18766_s7] sm:$0xff] %v11845_v39  ;;  %v13153_v43 = vpop.f32.mrb[7].mxu0 }
0x2c68   :  { %v11846_v51 = vsel %vm11844_vm4, %v11837_v23, 0.0  ;;  %v11552_v34 = vadd.f32 %v13151_v40, %v13111_v33  ;;  %v13154_v13 = vadd.f32 %v13153_v43, %v13152_v25 }
0x2c69   :  { %11855 = vst [vmem:[%s18766_s7 + $0x8] sm:$0xff] %v11846_v51 }
0x2c6a   :  { %v11807_v45 = vadd.f32 %v13191_v37, %v11552_v34  ;;  %v11555_v12 = vadd.f32 %v13154_v13, %v13114_v47 }
0x2c6c   :  { %v11838_v24 = vadd.f32 %v18709_v9, %v11807_v45  ;;  %v11808_v26 = vadd.f32 %v13194_v11, %v11555_v12  ;;  %v13155_v29 = vpop.f32.mrb[8].mxu0 }
0x2c6d   :  { %v13156_v7 = vpop.f32.mrb[9].mxu0 }
0x2c6e   :  { %v11847_v31 = vsel %vm11844_vm4, %v11838_v24, 0.0  ;;  %v13157_v4 = vadd.f32 %v13156_v7, %v13155_v29  ;;  %v13158_v32 = vpop.f32.mrb[10].mxu0 }
0x2c6f   :  { %11856 = vst [vmem:[%s18766_s7 + $0x10] sm:$0xff] %v11847_v31  ;;  %v13159_v16 = vpop.f32.mrb[11].mxu0 }
0x2c70   :  { %v11560_v33 = vadd.f32 %v13157_v4, %v13117_v46  ;;  %v13160_v44 = vadd.f32 %v13159_v16, %v13158_v32 }
0x2c72   :  { %v11809_v10 = vadd.f32 %v18699_v27, %v11560_v33  ;;  %v11563_v37 = vadd.f32 %v13160_v44, %v13120_v53 }
0x2c74   :  { %v11817_v47 = vrot.slane %v11809_v10, 2  ;;  %v11810_v49 = vadd.f32 %v13200_v0, %v11563_v37  ;;  %v13161_v21 = vpop.f32.mrb[12].mxu0 }
0x2c75   :  { %v13162_v11 = vpop.f32.mrb[13].mxu0 }
0x2c76   :  { %v11829_v42 = vsel %vm18888_vm12, %v11808_v26, %v11817_v47  ;;  %v11818_v35 = vrot.slane %v11810_v49, 2  ;;  %v13163_v54 = vadd.f32 %v13162_v11, %v13161_v21  ;;  %v13164_v22 = vpop.f32.mrb[14].mxu0 }
0x2c77   :  { %v11839_v36 = vadd.f32 %v18709_v9, %v11829_v42  ;;  %v13165_v5 = vpop.f32.mrb[15].mxu0 }
0x2c78   :  { %v11819_v56 = vsel %vm18889_vm13, %v11817_v47, %v11818_v35  ;;  %v11568_v57 = vadd.f32 %v13163_v54, %v13123_v2  ;;  %v13166_v46 = vadd.f32 %v13165_v5, %v13164_v22 }
0x2c79   :  { %v11848_v62 = vsel %vm11844_vm4, %v11839_v36, 0.0  ;;  %v11840_v27 = vadd.f32 %v18709_v9, %v11819_v56 }
0x2c7a   :  { %11857 = vst [vmem:[%s18766_s7 + $0x18] sm:$0xff] %v11848_v62  ;;  %v11811_v0 = vadd.f32 %v18701_v59, %v11568_v57  ;;  %v11571_v53 = vadd.f32 %v13166_v46, %v13126_v52 }
0x2c7b   :  { %v11849_v63 = vsel %vm11844_vm4, %v11840_v27, 0.0 }
0x2c7c   :  { %11858 = vst [vmem:[%s18766_s7 + $0x20] sm:$0xff] %v11849_v63  ;;  %v11820_v1 = vrot.slane %v11811_v0, 2  ;;  %v11812_v20 = vadd.f32 %v18703_v17, %v11571_v53 }
0x2c7e   :  { %v11821_v2 = vsel %vm18890_vm7, %v11818_v35, %v11820_v1  ;;  %v11822_v3 = vrot.slane %v11812_v20, 2 }
0x2c7f   :  { %v11841_v60 = vadd.f32 %v18709_v9, %v11821_v2 }
0x2c80   :  { %v11823_v18 = vsel %vm18891_vm15, %v11820_v1, %v11822_v3  ;;  %v11843_v38 = vadd.f32 %v18709_v9, %v11822_v3 }
0x2c81   :  { %v11850_v59 = vsel %vm11844_vm4, %v11841_v60, 0.0  ;;  %v11842_v52 = vadd.f32 %v18709_v9, %v11823_v18 }
0x2c82   :  { %11859 = vst [vmem:[%s18766_s7 + $0x28] sm:$0xff] %v11850_v59  ;;  %v11852_v8 = vsel %vm11844_vm4, %v11843_v38, 0.0 }
0x2c83   :  { %v11851_v17 = vsel %vm11844_vm4, %v11842_v52, 0.0  ;;  %v11853_v6 = vsel %vm18892_vm1, %v11852_v8, 0.0 }
0x2c84   :  { %11860 = vst [vmem:[%s18766_s7 + $0x30] sm:$0xff] %v11851_v17  ;;  %11861 = vst [vmem:[%s18766_s7 + $0x38] sm:$0xff] %v11853_v6 }

</bundles_post_ra>
